<compile_context>
chip_gen: v6e
topology: v6e:2x2x1
jax: 0.10.0
libtpu: 0.0.40
codegen_flags: <defaults>
</compile_context>

<pallas_src>
import jax
import jax.numpy as jnp
from jax.experimental import pallas as pl
from jax.experimental.pallas import tpu as pltpu

# ---------------- scaled-down ResNet-34 config (lane-dense channels) --------
IMG = 64
CIN = 3
STEM_C = 128                       # resnet34: 64  (128 => lane-dense outputs)
STAGE_C = (128, 128, 128, 128)     # resnet34: (64, 128, 256, 512)
STAGE_BLOCKS = (2, 2, 2, 2)        # resnet34: (3, 4, 6, 3)
STAGE_STRIDE = (1, 2, 2, 2)
FEAT = STAGE_C[-1]                 # resnet34: 512
N1, N2, N3 = 100, 10, 11           # head output sizes (from the spec)
HEAD_PAD = 128                     # lane-dense fused-head output width
BN_EPS = 1e-5

_VMEM_LIMIT = 32 * 1024 * 1024     # explicit budget; blocks use ~1-2 MiB


def _round_up(n, m):
    return ((n + m - 1) // m) * m


# ---------------- Pallas kernels ----------------

def _conv_bias_relu_kernel(x_ref, w_ref, b_ref, o_ref):
    # relu( (im2col @ W_bnfolded) + bias )
    acc = jnp.dot(x_ref[...], w_ref[...], preferred_element_type=jnp.float32)
    o_ref[...] = jnp.maximum(acc + b_ref[...], 0.0).astype(o_ref.dtype)


def _conv_bias_add_relu_kernel(x_ref, w_ref, b_ref, skip_ref, o_ref):
    # relu( (im2col @ W_bnfolded) + bias + identity_skip )
    acc = jnp.dot(x_ref[...], w_ref[...], preferred_element_type=jnp.float32)
    y = acc + b_ref[...] + skip_ref[...].astype(jnp.float32)
    o_ref[...] = jnp.maximum(y, 0.0).astype(o_ref.dtype)


def _conv_bias_ds_add_relu_kernel(x_ref, w_ref, b_ref,
                                  xd_ref, wd_ref, bd_ref, o_ref):
    # relu( main conv + fused 1x1/stride-s downsample branch ), BN folded both.
    main = jnp.dot(x_ref[...], w_ref[...], preferred_element_type=jnp.float32)
    main = main + b_ref[...]
    skip = jnp.dot(xd_ref[...], wd_ref[...], preferred_element_type=jnp.float32)
    skip = skip + bd_ref[...]
    o_ref[...] = jnp.maximum(main + skip, 0.0).astype(o_ref.dtype)


def _maxpool_kernel(x_ref, o_ref):
    # x_ref: (k*k, MT, C) stacked pooling windows -> max over the window axis,
    # computed directly in bf16 (max is exact; halves VMEM / vreg traffic).
    m = x_ref[0]
    for i in range(1, x_ref.shape[0]):
        m = jnp.maximum(m, x_ref[i])
    o_ref[...] = m


def _avgpool_heads_kernel(x_ref, w_ref, b_ref, o_ref):
    # x_ref: (B, HW, C).  Global average pool over HW, then the three
    # classifier heads fused into one lane-dense (C, 128) matmul.
    x = x_ref[...].astype(jnp.float32)
    hw = x.shape[1]
    acc = x[:, 0, :]
    for i in range(1, hw):
        acc = acc + x[:, i, :]
    feats = (acc * (1.0 / hw)).astype(jnp.bfloat16)        # (B, C)
    logits = jnp.dot(feats, w_ref[...],
                     preferred_element_type=jnp.float32) + b_ref[...]
    o_ref[...] = logits


# ---------------- pallas_call wrappers ----------------

def _choose_mt(m):
    # Real M tiling (perf review): prefer >= 4 grid steps so the Pallas
    # pipeline overlaps prefetch(i+1)/writeback(i-1) with compute(i) and both
    # v7x TensorCores get >= 2 steps.  Tiny GEMMs stay single-block.
    for mt in (512, 256, 128):
        if m % mt == 0 and m // mt >= 4:
            return mt
    return m


_CONV_CPARAMS = pltpu.CompilerParams(
    dimension_semantics=("parallel",),
    vmem_limit_bytes=_VMEM_LIMIT,
)


def conv_bias_relu(x, w, b):
    m, k = x.shape
    n = w.shape[1]
    mt = _choose_mt(m)
    return pl.pallas_call(
        _conv_bias_relu_kernel,
        grid=(pl.cdiv(m, mt),),
        in_specs=[pl.BlockSpec((mt, k), lambda i: (i, 0)),
                  pl.BlockSpec((k, n), lambda i: (0, 0)),
                  pl.BlockSpec((1, n), lambda i: (0, 0))],
        out_specs=pl.BlockSpec((mt, n), lambda i: (i, 0)),
        out_shape=jax.ShapeDtypeStruct((m, n), jnp.bfloat16),
        compiler_params=_CONV_CPARAMS,
    )(x, w, b)


def conv_bias_add_relu(x, w, b, skip):
    m, k = x.shape
    n = w.shape[1]
    mt = _choose_mt(m)
    return pl.pallas_call(
        _conv_bias_add_relu_kernel,
        grid=(pl.cdiv(m, mt),),
        in_specs=[pl.BlockSpec((mt, k), lambda i: (i, 0)),
                  pl.BlockSpec((k, n), lambda i: (0, 0)),
                  pl.BlockSpec((1, n), lambda i: (0, 0)),
                  pl.BlockSpec((mt, n), lambda i: (i, 0))],
        out_specs=pl.BlockSpec((mt, n), lambda i: (i, 0)),
        out_shape=jax.ShapeDtypeStruct((m, n), jnp.bfloat16),
        compiler_params=_CONV_CPARAMS,
    )(x, w, b, skip)


def conv_bias_ds_add_relu(x, w, b, xd, wd, bd):
    m, k = x.shape
    n = w.shape[1]
    kd = xd.shape[1]
    mt = _choose_mt(m)
    return pl.pallas_call(
        _conv_bias_ds_add_relu_kernel,
        grid=(pl.cdiv(m, mt),),
        in_specs=[pl.BlockSpec((mt, k), lambda i: (i, 0)),
                  pl.BlockSpec((k, n), lambda i: (0, 0)),
                  pl.BlockSpec((1, n), lambda i: (0, 0)),
                  pl.BlockSpec((mt, kd), lambda i: (i, 0)),
                  pl.BlockSpec((kd, n), lambda i: (0, 0)),
                  pl.BlockSpec((1, n), lambda i: (0, 0))],
        out_specs=pl.BlockSpec((mt, n), lambda i: (i, 0)),
        out_shape=jax.ShapeDtypeStruct((m, n), jnp.bfloat16),
        compiler_params=_CONV_CPARAMS,
    )(x, w, b, xd, wd, bd)


def maxpool(windows):
    t, m, c = windows.shape
    mt = _choose_mt(m)
    return pl.pallas_call(
        _maxpool_kernel,
        grid=(pl.cdiv(m, mt),),
        in_specs=[pl.BlockSpec((t, mt, c), lambda i: (0, i, 0))],
        out_specs=pl.BlockSpec((mt, c), lambda i: (i, 0)),
        out_shape=jax.ShapeDtypeStruct((m, c), windows.dtype),
        compiler_params=pltpu.CompilerParams(
            dimension_semantics=("parallel",),
            vmem_limit_bytes=_VMEM_LIMIT),
    )(windows)


def avgpool_heads(x_bhwc, w, b):
    bsz = x_bhwc.shape[0]
    return pl.pallas_call(
        _avgpool_heads_kernel,
        out_shape=jax.ShapeDtypeStruct((bsz, HEAD_PAD), jnp.float32),
    )(x_bhwc, w, b)


# ---------------- XLA glue: pure layout (no FLOPs) ----------------

def _im2col(x, k, stride, pad):
    # x: (B, H, W, C) NHWC -> (B*Ho*Wo, Kpad); K rows ordered (dy, dx, c), with
    # K zero-padded to a multiple of 128 for unmasked vreg loads.
    bsz, h, w, c = x.shape
    ho = (h + 2 * pad - k) // stride + 1
    wo = (w + 2 * pad - k) // stride + 1
    xp = jnp.pad(x, ((0, 0), (pad, pad), (pad, pad), (0, 0)))
    cols = []
    for dy in range(k):
        for dx in range(k):
            win = xp[:, dy:dy + (ho - 1) * stride + 1:stride,
                     dx:dx + (wo - 1) * stride + 1:stride, :]
            cols.append(win)
    patches = jnp.concatenate(cols, axis=-1).reshape(bsz * ho * wo, k * k * c)
    kk = k * k * c
    kp = _round_up(kk, 128)
    if kp != kk:
        patches = jnp.pad(patches, ((0, 0), (0, kp - kk)))
    return patches, (bsz, ho, wo)


def _pool_windows(x, k=3, stride=2, pad=1):
    # x: (B, H, W, C) post-ReLU (>= 0) -> (k*k, B*Ho*Wo, C).
    # Zero padding == -inf padding here because the pooled input is >= 0.
    bsz, h, w, c = x.shape
    ho = (h + 2 * pad - k) // stride + 1
    wo = (w + 2 * pad - k) // stride + 1
    xp = jnp.pad(x, ((0, 0), (pad, pad), (pad, pad), (0, 0)))
    wins = []
    for dy in range(k):
        for dx in range(k):
            win = xp[:, dy:dy + (ho - 1) * stride + 1:stride,
                     dx:dx + (wo - 1) * stride + 1:stride, :]
            wins.append(win.reshape(bsz * ho * wo, c))
    return jnp.stack(wins, axis=0), (bsz, ho, wo)


# ---------------- forward pass ----------------

def _basic_block(x, blk, stride):
    # torchvision BasicBlock: conv3x3(s)-BN-ReLU-conv3x3(1)-BN (+skip) -> ReLU
    bsz, h, w, cin = x.shape
    cout = blk["w1"].shape[1]
    cols1, (_, ho, wo) = _im2col(x, 3, stride, 1)
    h1 = conv_bias_relu(cols1, blk["w1"], blk["b1"]).reshape(bsz, ho, wo, cout)
    cols2, _ = _im2col(h1, 3, 1, 1)
    if "wd" in blk:   # 1x1/stride-s conv + BN downsample, fused in-kernel
        xd = x[:, ::stride, ::stride, :].reshape(bsz * ho * wo, cin)
        out = conv_bias_ds_add_relu(cols2, blk["w2"], blk["b2"],
                                    xd, blk["wd"], blk["bd"])
    else:             # identity skip
        skip = x.reshape(bsz * ho * wo, cin)
        out = conv_bias_add_relu(cols2, blk["w2"], blk["b2"], skip)
    return out.reshape(bsz, ho, wo, cout)


def jersey_number_classifier_forward(x_nchw, params):
    """ResNet backbone -> flatten -> (head1, head2, head3) logits."""
    bsz = x_nchw.shape[0]
    x = jnp.transpose(x_nchw, (0, 2, 3, 1)).astype(jnp.bfloat16)   # NHWC bf16

    # --- stem: conv7x7/2 + (folded) BN + ReLU, then maxpool3x3/2 ---
    cols, (_, ho, wo) = _im2col(x, 7, 2, 3)
    y = conv_bias_relu(cols, params["stem"]["w"], params["stem"]["b"])
    y = y.reshape(bsz, ho, wo, STEM_C)
    wins, (_, hp, wp) = _pool_windows(y, 3, 2, 1)
    y = maxpool(wins).reshape(bsz, hp, wp, STEM_C)

    # --- residual stages ---
    for si, stage in enumerate(params["stages"]):
        for bi, blk in enumerate(stage):
            stride = STAGE_STRIDE[si] if bi == 0 else 1
            y = _basic_block(y, blk, stride)

    # --- global average pool + fused three-head classifier ---
    b2, hf, wf, cf = y.shape
    logits = avgpool_heads(y.reshape(b2, hf * wf, cf),
                           params["head_w"], params["head_b"])
    h1 = logits[:, :N1]
    h2 = logits[:, N1:N1 + N2]
    h3 = logits[:, N1 + N2:N1 + N2 + N3]
    return h1, h2, h3


# ---------------- deterministic synthetic parameters ----------------

def _fold_bn(key, c):
    # eval-mode BatchNorm folded to per-channel (scale, bias)
    kg, kb, km, kv = jax.random.split(key, 4)
    gamma = 1.0 + 0.1 * jax.random.normal(kg, (1, c), jnp.float32)
    beta = 0.1 * jax.random.normal(kb, (1, c), jnp.float32)
    mean = 0.1 * jax.random.normal(km, (1, c), jnp.float32)
    var = 1.0 + 0.5 * jnp.abs(jax.random.normal(kv, (1, c), jnp.float32))
    scale = gamma * jax.lax.rsqrt(var + BN_EPS)
    bias = beta - mean * scale
    return scale, bias


def _conv_bn_params(key, k, cin, cout):
    # He-init conv weight with the BN scale folded in, K zero-padded to a
    # multiple of 128 (matches the im2col padding); bias stays f32.
    kw, kbn = jax.random.split(key)
    fan_in = k * k * cin
    std = (2.0 / fan_in) ** 0.5
    w = std * jax.random.normal(kw, (fan_in, cout), jnp.float32)
    scale, bias = _fold_bn(kbn, cout)
    w = w * scale                          # fold BN scale into conv weights
    kp = _round_up(fan_in, 128)
    if kp != fan_in:
        w = jnp.pad(w, ((0, kp - fan_in), (0, 0)))
    return w.astype(jnp.bfloat16), bias


def init_params(key):
    keys = iter(jax.random.split(key, 64))
    stem_w, stem_b = _conv_bn_params(next(keys), 7, CIN, STEM_C)
    params = {"stem": {"w": stem_w, "b": stem_b}, "stages": []}

    cin = STEM_C
    for si in range(4):
        cout = STAGE_C[si]
        stage = []
        for bi in range(STAGE_BLOCKS[si]):
            stride = STAGE_STRIDE[si] if bi == 0 else 1
            w1, b1 = _conv_bn_params(next(keys), 3, cin, cout)
            w2, b2 = _conv_bn_params(next(keys), 3, cout, cout)
            blk = {"w1": w1, "b1": b1, "w2": w2, "b2": b2}
            if stride != 1 or cin != cout:
                wd, bd = _conv_bn_params(next(keys), 1, cin, cout)
                blk["wd"] = wd
                blk["bd"] = bd
            stage.append(blk)
            cin = cout
        params["stages"].append(stage)

    # three heads Linear(FEAT, 100/10/11), concatenated and zero-padded to a
    # lane-dense 128-wide matmul
    kw, kb = jax.random.split(next(keys))
    n_all = N1 + N2 + N3
    w_all = 0.05 * jax.random.normal(kw, (FEAT, n_all), jnp.float32)
    b_all = 0.05 * jax.random.normal(kb, (1, n_all), jnp.float32)
    pad = HEAD_PAD - n_all
    params["head_w"] = jnp.pad(w_all, ((0, 0), (0, pad))).astype(jnp.bfloat16)
    params["head_b"] = jnp.pad(b_all, ((0, 0), (0, pad)))
    return params


if __name__ == "__main__":
    key = jax.random.PRNGKey(0)
    pkey, xkey = jax.random.split(key)
    params = init_params(pkey)
    x = jax.random.normal(xkey, (2, CIN, IMG, IMG), jnp.float32)   # NCHW input

    fwd = jax.jit(jersey_number_classifier_forward)
    h1, h2, h3 = fwd(x, params)
    h1, h2, h3 = jax.block_until_ready((h1, h2, h3))

    assert h1.shape == (2, N1) and h2.shape == (2, N2) and h3.shape == (2, N3)
    assert all(bool(jnp.all(jnp.isfinite(t))) for t in (h1, h2, h3))
    print("KERNEL_OK")
</pallas_src>

<mosaic_0001>
module attributes {stable_mosaic.version = 11 : i64} {
  func.func @_conv_bias_relu_kernel(%arg0: i32, %arg1: memref<512x256xbf16, #tpu.memory_space<vmem>>, %arg2: memref<256x128xbf16, #tpu.memory_space<vmem>>, %arg3: memref<1x128xf32, #tpu.memory_space<vmem>>, %arg4: memref<512x128xbf16, #tpu.memory_space<vmem>>) attributes {dimension_semantics = [#tpu.dimension_semantics<parallel>], iteration_bounds = array<i64: 4>, scalar_prefetch = 0 : i64, scratch_operands = 0 : i64, tpu.core_type = #tpu.core_type<tc>, window_params = [{transform_indices = @transform_0, window_bounds = array<i64: 512, 256>}, {pipeline_mode = #tpu.pipeline_mode<synchronous>, transform_indices = @transform_1, window_bounds = array<i64: 256, 128>}, {pipeline_mode = #tpu.pipeline_mode<synchronous>, transform_indices = @transform_2, window_bounds = array<i64: 1, 128>}, {transform_indices = @transform_3, window_bounds = array<i64: 512, 128>}]} {
    %c0 = arith.constant 0 : index
    %c0_0 = arith.constant 0 : index
    %0 = vector.load %arg1[%c0, %c0_0] : memref<512x256xbf16, #tpu.memory_space<vmem>>, vector<512x256xbf16>
    %c0_1 = arith.constant 0 : index
    %c0_2 = arith.constant 0 : index
    %1 = vector.load %arg2[%c0_1, %c0_2] : memref<256x128xbf16, #tpu.memory_space<vmem>>, vector<256x128xbf16>
    %cst = arith.constant dense<0.000000e+00> : vector<512x128xf32>
    %2 = tpu.matmul %0, %1, %cst {dimension_numbers = #tpu.dot_dimension_numbers<[1], [0], [0], [1], [0, 0, 1, 1], [], []>} : vector<512x256xbf16>, vector<256x128xbf16>, vector<512x128xf32> -> vector<512x128xf32>
    %c0_3 = arith.constant 0 : index
    %c0_4 = arith.constant 0 : index
    %3 = vector.load %arg3[%c0_3, %c0_4] : memref<1x128xf32, #tpu.memory_space<vmem>>, vector<1x128xf32>
    %4 = vector.broadcast %3 : vector<1x128xf32> to vector<512x128xf32>
    %5 = arith.addf %2, %4 : vector<512x128xf32>
    %cst_5 = arith.constant 0.000000e+00 : f32
    %6 = vector.broadcast %cst_5 : f32 to vector<512x128xf32>
    %7 = arith.maximumf %5, %6 : vector<512x128xf32>
    %8 = arith.truncf %7 : vector<512x128xf32> to vector<512x128xbf16>
    %c0_6 = arith.constant 0 : index
    %c0_7 = arith.constant 0 : index
    %9 = vector.load %arg4[%c0_6, %c0_7] : memref<512x128xbf16, #tpu.memory_space<vmem>>, vector<512x128xbf16>
    tpu.vector_store %arg4[%c0_6, %c0_7], %8 {strides = array<i32>} : memref<512x128xbf16, #tpu.memory_space<vmem>>, vector<512x128xbf16>,
    return
  }
  func.func @transform_0(%arg0: i32) -> (i32, i32) {
    %c0_i32 = arith.constant 0 : i32
    %c0_i32_0 = arith.constant 0 : i32
    return %arg0, %c0_i32 : i32, i32
  }
  func.func @transform_1(%arg0: i32) -> (i32, i32) {
    %c0_i32 = arith.constant 0 : i32
    %c0_i32_0 = arith.constant 0 : i32
    %c0_i32_1 = arith.constant 0 : i32
    return %c0_i32, %c0_i32_0 : i32, i32
  }
  func.func @transform_2(%arg0: i32) -> (i32, i32) {
    %c0_i32 = arith.constant 0 : i32
    %c0_i32_0 = arith.constant 0 : i32
    %c0_i32_1 = arith.constant 0 : i32
    return %c0_i32, %c0_i32_0 : i32, i32
  }
  func.func @transform_3(%arg0: i32) -> (i32, i32) {
    %c0_i32 = arith.constant 0 : i32
    %c0_i32_0 = arith.constant 0 : i32
    return %arg0, %c0_i32 : i32, i32
  }
}

module attributes {stable_mosaic.version = 11 : i64} {
  func.func @_maxpool_kernel(%arg0: i32, %arg1: memref<9x128x128xbf16, #tpu.memory_space<vmem>>, %arg2: memref<128x128xbf16, #tpu.memory_space<vmem>>) attributes {dimension_semantics = [#tpu.dimension_semantics<parallel>], iteration_bounds = array<i64: 4>, scalar_prefetch = 0 : i64, scratch_operands = 0 : i64, tpu.core_type = #tpu.core_type<tc>, window_params = [{transform_indices = @transform_0, window_bounds = array<i64: 9, 128, 128>}, {transform_indices = @transform_1, window_bounds = array<i64: 128, 128>}]} {
    %c0 = arith.constant 0 : index
    %c0_0 = arith.constant 0 : index
    %c0_1 = arith.constant 0 : index
    %0 = vector.load %arg1[%c0, %c0_0, %c0_1] : memref<9x128x128xbf16, #tpu.memory_space<vmem>>, vector<1x128x128xbf16>
    %1 = vector.shape_cast %0 : vector<1x128x128xbf16> to vector<128x128xbf16>
    %c1 = arith.constant 1 : index
    %c0_2 = arith.constant 0 : index
    %c0_3 = arith.constant 0 : index
    %2 = vector.load %arg1[%c1, %c0_2, %c0_3] : memref<9x128x128xbf16, #tpu.memory_space<vmem>>, vector<1x128x128xbf16>
    %3 = vector.shape_cast %2 : vector<1x128x128xbf16> to vector<128x128xbf16>
    %4 = arith.maximumf %1, %3 : vector<128x128xbf16>
    %c2 = arith.constant 2 : index
    %c0_4 = arith.constant 0 : index
    %c0_5 = arith.constant 0 : index
    %5 = vector.load %arg1[%c2, %c0_4, %c0_5] : memref<9x128x128xbf16, #tpu.memory_space<vmem>>, vector<1x128x128xbf16>
    %6 = vector.shape_cast %5 : vector<1x128x128xbf16> to vector<128x128xbf16>
    %7 = arith.maximumf %4, %6 : vector<128x128xbf16>
    %c3 = arith.constant 3 : index
    %c0_6 = arith.constant 0 : index
    %c0_7 = arith.constant 0 : index
    %8 = vector.load %arg1[%c3, %c0_6, %c0_7] : memref<9x128x128xbf16, #tpu.memory_space<vmem>>, vector<1x128x128xbf16>
    %9 = vector.shape_cast %8 : vector<1x128x128xbf16> to vector<128x128xbf16>
    %10 = arith.maximumf %7, %9 : vector<128x128xbf16>
    %c4 = arith.constant 4 : index
    %c0_8 = arith.constant 0 : index
    %c0_9 = arith.constant 0 : index
    %11 = vector.load %arg1[%c4, %c0_8, %c0_9] : memref<9x128x128xbf16, #tpu.memory_space<vmem>>, vector<1x128x128xbf16>
    %12 = vector.shape_cast %11 : vector<1x128x128xbf16> to vector<128x128xbf16>
    %13 = arith.maximumf %10, %12 : vector<128x128xbf16>
    %c5 = arith.constant 5 : index
    %c0_10 = arith.constant 0 : index
    %c0_11 = arith.constant 0 : index
    %14 = vector.load %arg1[%c5, %c0_10, %c0_11] : memref<9x128x128xbf16, #tpu.memory_space<vmem>>, vector<1x128x128xbf16>
    %15 = vector.shape_cast %14 : vector<1x128x128xbf16> to vector<128x128xbf16>
    %16 = arith.maximumf %13, %15 : vector<128x128xbf16>
    %c6 = arith.constant 6 : index
    %c0_12 = arith.constant 0 : index
    %c0_13 = arith.constant 0 : index
    %17 = vector.load %arg1[%c6, %c0_12, %c0_13] : memref<9x128x128xbf16, #tpu.memory_space<vmem>>, vector<1x128x128xbf16>
    %18 = vector.shape_cast %17 : vector<1x128x128xbf16> to vector<128x128xbf16>
    %19 = arith.maximumf %16, %18 : vector<128x128xbf16>
    %c7 = arith.constant 7 : index
    %c0_14 = arith.constant 0 : index
    %c0_15 = arith.constant 0 : index
    %20 = vector.load %arg1[%c7, %c0_14, %c0_15] : memref<9x128x128xbf16, #tpu.memory_space<vmem>>, vector<1x128x128xbf16>
    %21 = vector.shape_cast %20 : vector<1x128x128xbf16> to vector<128x128xbf16>
    %22 = arith.maximumf %19, %21 : vector<128x128xbf16>
    %c8 = arith.constant 8 : index
    %c0_16 = arith.constant 0 : index
    %c0_17 = arith.constant 0 : index
    %23 = vector.load %arg1[%c8, %c0_16, %c0_17] : memref<9x128x128xbf16, #tpu.memory_space<vmem>>, vector<1x128x128xbf16>
    %24 = vector.shape_cast %23 : vector<1x128x128xbf16> to vector<128x128xbf16>
    %25 = arith.maximumf %22, %24 : vector<128x128xbf16>
    %c0_18 = arith.constant 0 : index
    %c0_19 = arith.constant 0 : index
    %26 = vector.load %arg2[%c0_18, %c0_19] : memref<128x128xbf16, #tpu.memory_space<vmem>>, vector<128x128xbf16>
    tpu.vector_store %arg2[%c0_18, %c0_19], %25 {strides = array<i32>} : memref<128x128xbf16, #tpu.memory_space<vmem>>, vector<128x128xbf16>,
    return
  }
  func.func @transform_0(%arg0: i32) -> (i32, i32, i32) {
    %c0_i32 = arith.constant 0 : i32
    %c0_i32_0 = arith.constant 0 : i32
    %c0_i32_1 = arith.constant 0 : i32
    return %c0_i32, %arg0, %c0_i32_0 : i32, i32, i32
  }
  func.func @transform_1(%arg0: i32) -> (i32, i32) {
    %c0_i32 = arith.constant 0 : i32
    %c0_i32_0 = arith.constant 0 : i32
    return %arg0, %c0_i32 : i32, i32
  }
}

module attributes {stable_mosaic.version = 11 : i64} {
  func.func @_conv_bias_add_relu_kernel(%arg0: i32, %arg1: memref<128x1152xbf16, #tpu.memory_space<vmem>>, %arg2: memref<1152x128xbf16, #tpu.memory_space<vmem>>, %arg3: memref<1x128xf32, #tpu.memory_space<vmem>>, %arg4: memref<128x128xbf16, #tpu.memory_space<vmem>>, %arg5: memref<128x128xbf16, #tpu.memory_space<vmem>>) attributes {dimension_semantics = [#tpu.dimension_semantics<parallel>], iteration_bounds = array<i64: 4>, scalar_prefetch = 0 : i64, scratch_operands = 0 : i64, tpu.core_type = #tpu.core_type<tc>, window_params = [{transform_indices = @transform_0, window_bounds = array<i64: 128, 1152>}, {pipeline_mode = #tpu.pipeline_mode<synchronous>, transform_indices = @transform_1, window_bounds = array<i64: 1152, 128>}, {pipeline_mode = #tpu.pipeline_mode<synchronous>, transform_indices = @transform_2, window_bounds = array<i64: 1, 128>}, {transform_indices = @transform_3, window_bounds = array<i64: 128, 128>}, {transform_indices = @transform_4, window_bounds = array<i64: 128, 128>}]} {
    %c0 = arith.constant 0 : index
    %c0_0 = arith.constant 0 : index
    %0 = vector.load %arg1[%c0, %c0_0] : memref<128x1152xbf16, #tpu.memory_space<vmem>>, vector<128x1152xbf16>
    %c0_1 = arith.constant 0 : index
    %c0_2 = arith.constant 0 : index
    %1 = vector.load %arg2[%c0_1, %c0_2] : memref<1152x128xbf16, #tpu.memory_space<vmem>>, vector<1152x128xbf16>
    %cst = arith.constant dense<0.000000e+00> : vector<128x128xf32>
    %2 = tpu.matmul %0, %1, %cst {dimension_numbers = #tpu.dot_dimension_numbers<[1], [0], [0], [1], [0, 0, 1, 1], [], []>} : vector<128x1152xbf16>, vector<1152x128xbf16>, vector<128x128xf32> -> vector<128x128xf32>
    %c0_3 = arith.constant 0 : index
    %c0_4 = arith.constant 0 : index
    %3 = vector.load %arg3[%c0_3, %c0_4] : memref<1x128xf32, #tpu.memory_space<vmem>>, vector<1x128xf32>
    %4 = vector.broadcast %3 : vector<1x128xf32> to vector<128x128xf32>
    %5 = arith.addf %2, %4 : vector<128x128xf32>
    %c0_5 = arith.constant 0 : index
    %c0_6 = arith.constant 0 : index
    %6 = vector.load %arg4[%c0_5, %c0_6] : memref<128x128xbf16, #tpu.memory_space<vmem>>, vector<128x128xbf16>
    %7 = arith.extf %6 : vector<128x128xbf16> to vector<128x128xf32>
    %8 = arith.addf %5, %7 : vector<128x128xf32>
    %cst_7 = arith.constant 0.000000e+00 : f32
    %9 = vector.broadcast %cst_7 : f32 to vector<128x128xf32>
    %10 = arith.maximumf %8, %9 : vector<128x128xf32>
    %11 = arith.truncf %10 : vector<128x128xf32> to vector<128x128xbf16>
    %c0_8 = arith.constant 0 : index
    %c0_9 = arith.constant 0 : index
    %12 = vector.load %arg5[%c0_8, %c0_9] : memref<128x128xbf16, #tpu.memory_space<vmem>>, vector<128x128xbf16>
    tpu.vector_store %arg5[%c0_8, %c0_9], %11 {strides = array<i32>} : memref<128x128xbf16, #tpu.memory_space<vmem>>, vector<128x128xbf16>,
    return
  }
  func.func @transform_0(%arg0: i32) -> (i32, i32) {
    %c0_i32 = arith.constant 0 : i32
    %c0_i32_0 = arith.constant 0 : i32
    return %arg0, %c0_i32 : i32, i32
  }
  func.func @transform_1(%arg0: i32) -> (i32, i32) {
    %c0_i32 = arith.constant 0 : i32
    %c0_i32_0 = arith.constant 0 : i32
    %c0_i32_1 = arith.constant 0 : i32
    return %c0_i32, %c0_i32_0 : i32, i32
  }
  func.func @transform_2(%arg0: i32) -> (i32, i32) {
    %c0_i32 = arith.constant 0 : i32
    %c0_i32_0 = arith.constant 0 : i32
    %c0_i32_1 = arith.constant 0 : i32
    return %c0_i32, %c0_i32_0 : i32, i32
  }
  func.func @transform_3(%arg0: i32) -> (i32, i32) {
    %c0_i32 = arith.constant 0 : i32
    %c0_i32_0 = arith.constant 0 : i32
    return %arg0, %c0_i32 : i32, i32
  }
  func.func @transform_4(%arg0: i32) -> (i32, i32) {
    %c0_i32 = arith.constant 0 : i32
    %c0_i32_0 = arith.constant 0 : i32
    return %arg0, %c0_i32 : i32, i32
  }
}

module attributes {stable_mosaic.version = 11 : i64} {
  func.func @_conv_bias_relu_kernel(%arg0: i32, %arg1: memref<128x1152xbf16, #tpu.memory_space<vmem>>, %arg2: memref<1152x128xbf16, #tpu.memory_space<vmem>>, %arg3: memref<1x128xf32, #tpu.memory_space<vmem>>, %arg4: memref<128x128xbf16, #tpu.memory_space<vmem>>) attributes {dimension_semantics = [#tpu.dimension_semantics<parallel>], iteration_bounds = array<i64: 4>, scalar_prefetch = 0 : i64, scratch_operands = 0 : i64, tpu.core_type = #tpu.core_type<tc>, window_params = [{transform_indices = @transform_0, window_bounds = array<i64: 128, 1152>}, {pipeline_mode = #tpu.pipeline_mode<synchronous>, transform_indices = @transform_1, window_bounds = array<i64: 1152, 128>}, {pipeline_mode = #tpu.pipeline_mode<synchronous>, transform_indices = @transform_2, window_bounds = array<i64: 1, 128>}, {transform_indices = @transform_3, window_bounds = array<i64: 128, 128>}]} {
    %c0 = arith.constant 0 : index
    %c0_0 = arith.constant 0 : index
    %0 = vector.load %arg1[%c0, %c0_0] : memref<128x1152xbf16, #tpu.memory_space<vmem>>, vector<128x1152xbf16>
    %c0_1 = arith.constant 0 : index
    %c0_2 = arith.constant 0 : index
    %1 = vector.load %arg2[%c0_1, %c0_2] : memref<1152x128xbf16, #tpu.memory_space<vmem>>, vector<1152x128xbf16>
    %cst = arith.constant dense<0.000000e+00> : vector<128x128xf32>
    %2 = tpu.matmul %0, %1, %cst {dimension_numbers = #tpu.dot_dimension_numbers<[1], [0], [0], [1], [0, 0, 1, 1], [], []>} : vector<128x1152xbf16>, vector<1152x128xbf16>, vector<128x128xf32> -> vector<128x128xf32>
    %c0_3 = arith.constant 0 : index
    %c0_4 = arith.constant 0 : index
    %3 = vector.load %arg3[%c0_3, %c0_4] : memref<1x128xf32, #tpu.memory_space<vmem>>, vector<1x128xf32>
    %4 = vector.broadcast %3 : vector<1x128xf32> to vector<128x128xf32>
    %5 = arith.addf %2, %4 : vector<128x128xf32>
    %cst_5 = arith.constant 0.000000e+00 : f32
    %6 = vector.broadcast %cst_5 : f32 to vector<128x128xf32>
    %7 = arith.maximumf %5, %6 : vector<128x128xf32>
    %8 = arith.truncf %7 : vector<128x128xf32> to vector<128x128xbf16>
    %c0_6 = arith.constant 0 : index
    %c0_7 = arith.constant 0 : index
    %9 = vector.load %arg4[%c0_6, %c0_7] : memref<128x128xbf16, #tpu.memory_space<vmem>>, vector<128x128xbf16>
    tpu.vector_store %arg4[%c0_6, %c0_7], %8 {strides = array<i32>} : memref<128x128xbf16, #tpu.memory_space<vmem>>, vector<128x128xbf16>,
    return
  }
  func.func @transform_0(%arg0: i32) -> (i32, i32) {
    %c0_i32 = arith.constant 0 : i32
    %c0_i32_0 = arith.constant 0 : i32
    return %arg0, %c0_i32 : i32, i32
  }
  func.func @transform_1(%arg0: i32) -> (i32, i32) {
    %c0_i32 = arith.constant 0 : i32
    %c0_i32_0 = arith.constant 0 : i32
    %c0_i32_1 = arith.constant 0 : i32
    return %c0_i32, %c0_i32_0 : i32, i32
  }
  func.func @transform_2(%arg0: i32) -> (i32, i32) {
    %c0_i32 = arith.constant 0 : i32
    %c0_i32_0 = arith.constant 0 : i32
    %c0_i32_1 = arith.constant 0 : i32
    return %c0_i32, %c0_i32_0 : i32, i32
  }
  func.func @transform_3(%arg0: i32) -> (i32, i32) {
    %c0_i32 = arith.constant 0 : i32
    %c0_i32_0 = arith.constant 0 : i32
    return %arg0, %c0_i32 : i32, i32
  }
}

module attributes {stable_mosaic.version = 11 : i64} {
  func.func @_conv_bias_relu_kernel(%arg0: i32, %arg1: memref<128x1152xbf16, #tpu.memory_space<vmem>>, %arg2: memref<1152x128xbf16, #tpu.memory_space<vmem>>, %arg3: memref<1x128xf32, #tpu.memory_space<vmem>>, %arg4: memref<128x128xbf16, #tpu.memory_space<vmem>>) attributes {dimension_semantics = [#tpu.dimension_semantics<parallel>], iteration_bounds = array<i64: 1>, scalar_prefetch = 0 : i64, scratch_operands = 0 : i64, tpu.core_type = #tpu.core_type<tc>, window_params = [{transform_indices = @transform_0, window_bounds = array<i64: 128, 1152>}, {pipeline_mode = #tpu.pipeline_mode<synchronous>, transform_indices = @transform_1, window_bounds = array<i64: 1152, 128>}, {pipeline_mode = #tpu.pipeline_mode<synchronous>, transform_indices = @transform_2, window_bounds = array<i64: 1, 128>}, {transform_indices = @transform_3, window_bounds = array<i64: 128, 128>}]} {
    %c0 = arith.constant 0 : index
    %c0_0 = arith.constant 0 : index
    %0 = vector.load %arg1[%c0, %c0_0] : memref<128x1152xbf16, #tpu.memory_space<vmem>>, vector<128x1152xbf16>
    %c0_1 = arith.constant 0 : index
    %c0_2 = arith.constant 0 : index
    %1 = vector.load %arg2[%c0_1, %c0_2] : memref<1152x128xbf16, #tpu.memory_space<vmem>>, vector<1152x128xbf16>
    %cst = arith.constant dense<0.000000e+00> : vector<128x128xf32>
    %2 = tpu.matmul %0, %1, %cst {dimension_numbers = #tpu.dot_dimension_numbers<[1], [0], [0], [1], [0, 0, 1, 1], [], []>} : vector<128x1152xbf16>, vector<1152x128xbf16>, vector<128x128xf32> -> vector<128x128xf32>
    %c0_3 = arith.constant 0 : index
    %c0_4 = arith.constant 0 : index
    %3 = vector.load %arg3[%c0_3, %c0_4] : memref<1x128xf32, #tpu.memory_space<vmem>>, vector<1x128xf32>
    %4 = vector.broadcast %3 : vector<1x128xf32> to vector<128x128xf32>
    %5 = arith.addf %2, %4 : vector<128x128xf32>
    %cst_5 = arith.constant 0.000000e+00 : f32
    %6 = vector.broadcast %cst_5 : f32 to vector<128x128xf32>
    %7 = arith.maximumf %5, %6 : vector<128x128xf32>
    %8 = arith.truncf %7 : vector<128x128xf32> to vector<128x128xbf16>
    %c0_6 = arith.constant 0 : index
    %c0_7 = arith.constant 0 : index
    %9 = vector.load %arg4[%c0_6, %c0_7] : memref<128x128xbf16, #tpu.memory_space<vmem>>, vector<128x128xbf16>
    tpu.vector_store %arg4[%c0_6, %c0_7], %8 {strides = array<i32>} : memref<128x128xbf16, #tpu.memory_space<vmem>>, vector<128x128xbf16>,
    return
  }
  func.func @transform_0(%arg0: i32) -> (i32, i32) {
    %c0_i32 = arith.constant 0 : i32
    %c0_i32_0 = arith.constant 0 : i32
    return %arg0, %c0_i32 : i32, i32
  }
  func.func @transform_1(%arg0: i32) -> (i32, i32) {
    %c0_i32 = arith.constant 0 : i32
    %c0_i32_0 = arith.constant 0 : i32
    %c0_i32_1 = arith.constant 0 : i32
    return %c0_i32, %c0_i32_0 : i32, i32
  }
  func.func @transform_2(%arg0: i32) -> (i32, i32) {
    %c0_i32 = arith.constant 0 : i32
    %c0_i32_0 = arith.constant 0 : i32
    %c0_i32_1 = arith.constant 0 : i32
    return %c0_i32, %c0_i32_0 : i32, i32
  }
  func.func @transform_3(%arg0: i32) -> (i32, i32) {
    %c0_i32 = arith.constant 0 : i32
    %c0_i32_0 = arith.constant 0 : i32
    return %arg0, %c0_i32 : i32, i32
  }
}

module attributes {stable_mosaic.version = 11 : i64} {
  func.func @_conv_bias_ds_add_relu_kernel(%arg0: i32, %arg1: memref<128x1152xbf16, #tpu.memory_space<vmem>>, %arg2: memref<1152x128xbf16, #tpu.memory_space<vmem>>, %arg3: memref<1x128xf32, #tpu.memory_space<vmem>>, %arg4: memref<128x128xbf16, #tpu.memory_space<vmem>>, %arg5: memref<128x128xbf16, #tpu.memory_space<vmem>>, %arg6: memref<1x128xf32, #tpu.memory_space<vmem>>, %arg7: memref<128x128xbf16, #tpu.memory_space<vmem>>) attributes {dimension_semantics = [#tpu.dimension_semantics<parallel>], iteration_bounds = array<i64: 1>, scalar_prefetch = 0 : i64, scratch_operands = 0 : i64, tpu.core_type = #tpu.core_type<tc>, window_params = [{transform_indices = @transform_0, window_bounds = array<i64: 128, 1152>}, {pipeline_mode = #tpu.pipeline_mode<synchronous>, transform_indices = @transform_1, window_bounds = array<i64: 1152, 128>}, {pipeline_mode = #tpu.pipeline_mode<synchronous>, transform_indices = @transform_2, window_bounds = array<i64: 1, 128>}, {transform_indices = @transform_3, window_bounds = array<i64: 128, 128>}, {pipeline_mode = #tpu.pipeline_mode<synchronous>, transform_indices = @transform_4, window_bounds = array<i64: 128, 128>}, {pipeline_mode = #tpu.pipeline_mode<synchronous>, transform_indices = @transform_5, window_bounds = array<i64: 1, 128>}, {transform_indices = @transform_6, window_bounds = array<i64: 128, 128>}]} {
    %c0 = arith.constant 0 : index
    %c0_0 = arith.constant 0 : index
    %0 = vector.load %arg1[%c0, %c0_0] : memref<128x1152xbf16, #tpu.memory_space<vmem>>, vector<128x1152xbf16>
    %c0_1 = arith.constant 0 : index
    %c0_2 = arith.constant 0 : index
    %1 = vector.load %arg2[%c0_1, %c0_2] : memref<1152x128xbf16, #tpu.memory_space<vmem>>, vector<1152x128xbf16>
    %cst = arith.constant dense<0.000000e+00> : vector<128x128xf32>
    %2 = tpu.matmul %0, %1, %cst {dimension_numbers = #tpu.dot_dimension_numbers<[1], [0], [0], [1], [0, 0, 1, 1], [], []>} : vector<128x1152xbf16>, vector<1152x128xbf16>, vector<128x128xf32> -> vector<128x128xf32>
    %c0_3 = arith.constant 0 : index
    %c0_4 = arith.constant 0 : index
    %3 = vector.load %arg3[%c0_3, %c0_4] : memref<1x128xf32, #tpu.memory_space<vmem>>, vector<1x128xf32>
    %4 = vector.broadcast %3 : vector<1x128xf32> to vector<128x128xf32>
    %5 = arith.addf %2, %4 : vector<128x128xf32>
    %c0_5 = arith.constant 0 : index
    %c0_6 = arith.constant 0 : index
    %6 = vector.load %arg4[%c0_5, %c0_6] : memref<128x128xbf16, #tpu.memory_space<vmem>>, vector<128x128xbf16>
    %c0_7 = arith.constant 0 : index
    %c0_8 = arith.constant 0 : index
    %7 = vector.load %arg5[%c0_7, %c0_8] : memref<128x128xbf16, #tpu.memory_space<vmem>>, vector<128x128xbf16>
    %cst_9 = arith.constant dense<0.000000e+00> : vector<128x128xf32>
    %8 = tpu.matmul %6, %7, %cst_9 {dimension_numbers = #tpu.dot_dimension_numbers<[1], [0], [0], [1], [0, 0, 1, 1], [], []>} : vector<128x128xbf16>, vector<128x128xbf16>, vector<128x128xf32> -> vector<128x128xf32>
    %c0_10 = arith.constant 0 : index
    %c0_11 = arith.constant 0 : index
    %9 = vector.load %arg6[%c0_10, %c0_11] : memref<1x128xf32, #tpu.memory_space<vmem>>, vector<1x128xf32>
    %10 = vector.broadcast %9 : vector<1x128xf32> to vector<128x128xf32>
    %11 = arith.addf %8, %10 : vector<128x128xf32>
    %12 = arith.addf %5, %11 : vector<128x128xf32>
    %cst_12 = arith.constant 0.000000e+00 : f32
    %13 = vector.broadcast %cst_12 : f32 to vector<128x128xf32>
    %14 = arith.maximumf %12, %13 : vector<128x128xf32>
    %15 = arith.truncf %14 : vector<128x128xf32> to vector<128x128xbf16>
    %c0_13 = arith.constant 0 : index
    %c0_14 = arith.constant 0 : index
    %16 = vector.load %arg7[%c0_13, %c0_14] : memref<128x128xbf16, #tpu.memory_space<vmem>>, vector<128x128xbf16>
    tpu.vector_store %arg7[%c0_13, %c0_14], %15 {strides = array<i32>} : memref<128x128xbf16, #tpu.memory_space<vmem>>, vector<128x128xbf16>,
    return
  }
  func.func @transform_0(%arg0: i32) -> (i32, i32) {
    %c0_i32 = arith.constant 0 : i32
    %c0_i32_0 = arith.constant 0 : i32
    return %arg0, %c0_i32 : i32, i32
  }
  func.func @transform_1(%arg0: i32) -> (i32, i32) {
    %c0_i32 = arith.constant 0 : i32
    %c0_i32_0 = arith.constant 0 : i32
    %c0_i32_1 = arith.constant 0 : i32
    return %c0_i32, %c0_i32_0 : i32, i32
  }
  func.func @transform_2(%arg0: i32) -> (i32, i32) {
    %c0_i32 = arith.constant 0 : i32
    %c0_i32_0 = arith.constant 0 : i32
    %c0_i32_1 = arith.constant 0 : i32
    return %c0_i32, %c0_i32_0 : i32, i32
  }
  func.func @transform_3(%arg0: i32) -> (i32, i32) {
    %c0_i32 = arith.constant 0 : i32
    %c0_i32_0 = arith.constant 0 : i32
    return %arg0, %c0_i32 : i32, i32
  }
  func.func @transform_4(%arg0: i32) -> (i32, i32) {
    %c0_i32 = arith.constant 0 : i32
    %c0_i32_0 = arith.constant 0 : i32
    %c0_i32_1 = arith.constant 0 : i32
    return %c0_i32, %c0_i32_0 : i32, i32
  }
  func.func @transform_5(%arg0: i32) -> (i32, i32) {
    %c0_i32 = arith.constant 0 : i32
    %c0_i32_0 = arith.constant 0 : i32
    %c0_i32_1 = arith.constant 0 : i32
    return %c0_i32, %c0_i32_0 : i32, i32
  }
  func.func @transform_6(%arg0: i32) -> (i32, i32) {
    %c0_i32 = arith.constant 0 : i32
    %c0_i32_0 = arith.constant 0 : i32
    return %arg0, %c0_i32 : i32, i32
  }
}

module attributes {stable_mosaic.version = 11 : i64} {
  func.func @_conv_bias_add_relu_kernel(%arg0: i32, %arg1: memref<128x1152xbf16, #tpu.memory_space<vmem>>, %arg2: memref<1152x128xbf16, #tpu.memory_space<vmem>>, %arg3: memref<1x128xf32, #tpu.memory_space<vmem>>, %arg4: memref<128x128xbf16, #tpu.memory_space<vmem>>, %arg5: memref<128x128xbf16, #tpu.memory_space<vmem>>) attributes {dimension_semantics = [#tpu.dimension_semantics<parallel>], iteration_bounds = array<i64: 1>, scalar_prefetch = 0 : i64, scratch_operands = 0 : i64, tpu.core_type = #tpu.core_type<tc>, window_params = [{transform_indices = @transform_0, window_bounds = array<i64: 128, 1152>}, {pipeline_mode = #tpu.pipeline_mode<synchronous>, transform_indices = @transform_1, window_bounds = array<i64: 1152, 128>}, {pipeline_mode = #tpu.pipeline_mode<synchronous>, transform_indices = @transform_2, window_bounds = array<i64: 1, 128>}, {transform_indices = @transform_3, window_bounds = array<i64: 128, 128>}, {transform_indices = @transform_4, window_bounds = array<i64: 128, 128>}]} {
    %c0 = arith.constant 0 : index
    %c0_0 = arith.constant 0 : index
    %0 = vector.load %arg1[%c0, %c0_0] : memref<128x1152xbf16, #tpu.memory_space<vmem>>, vector<128x1152xbf16>
    %c0_1 = arith.constant 0 : index
    %c0_2 = arith.constant 0 : index
    %1 = vector.load %arg2[%c0_1, %c0_2] : memref<1152x128xbf16, #tpu.memory_space<vmem>>, vector<1152x128xbf16>
    %cst = arith.constant dense<0.000000e+00> : vector<128x128xf32>
    %2 = tpu.matmul %0, %1, %cst {dimension_numbers = #tpu.dot_dimension_numbers<[1], [0], [0], [1], [0, 0, 1, 1], [], []>} : vector<128x1152xbf16>, vector<1152x128xbf16>, vector<128x128xf32> -> vector<128x128xf32>
    %c0_3 = arith.constant 0 : index
    %c0_4 = arith.constant 0 : index
    %3 = vector.load %arg3[%c0_3, %c0_4] : memref<1x128xf32, #tpu.memory_space<vmem>>, vector<1x128xf32>
    %4 = vector.broadcast %3 : vector<1x128xf32> to vector<128x128xf32>
    %5 = arith.addf %2, %4 : vector<128x128xf32>
    %c0_5 = arith.constant 0 : index
    %c0_6 = arith.constant 0 : index
    %6 = vector.load %arg4[%c0_5, %c0_6] : memref<128x128xbf16, #tpu.memory_space<vmem>>, vector<128x128xbf16>
    %7 = arith.extf %6 : vector<128x128xbf16> to vector<128x128xf32>
    %8 = arith.addf %5, %7 : vector<128x128xf32>
    %cst_7 = arith.constant 0.000000e+00 : f32
    %9 = vector.broadcast %cst_7 : f32 to vector<128x128xf32>
    %10 = arith.maximumf %8, %9 : vector<128x128xf32>
    %11 = arith.truncf %10 : vector<128x128xf32> to vector<128x128xbf16>
    %c0_8 = arith.constant 0 : index
    %c0_9 = arith.constant 0 : index
    %12 = vector.load %arg5[%c0_8, %c0_9] : memref<128x128xbf16, #tpu.memory_space<vmem>>, vector<128x128xbf16>
    tpu.vector_store %arg5[%c0_8, %c0_9], %11 {strides = array<i32>} : memref<128x128xbf16, #tpu.memory_space<vmem>>, vector<128x128xbf16>,
    return
  }
  func.func @transform_0(%arg0: i32) -> (i32, i32) {
    %c0_i32 = arith.constant 0 : i32
    %c0_i32_0 = arith.constant 0 : i32
    return %arg0, %c0_i32 : i32, i32
  }
  func.func @transform_1(%arg0: i32) -> (i32, i32) {
    %c0_i32 = arith.constant 0 : i32
    %c0_i32_0 = arith.constant 0 : i32
    %c0_i32_1 = arith.constant 0 : i32
    return %c0_i32, %c0_i32_0 : i32, i32
  }
  func.func @transform_2(%arg0: i32) -> (i32, i32) {
    %c0_i32 = arith.constant 0 : i32
    %c0_i32_0 = arith.constant 0 : i32
    %c0_i32_1 = arith.constant 0 : i32
    return %c0_i32, %c0_i32_0 : i32, i32
  }
  func.func @transform_3(%arg0: i32) -> (i32, i32) {
    %c0_i32 = arith.constant 0 : i32
    %c0_i32_0 = arith.constant 0 : i32
    return %arg0, %c0_i32 : i32, i32
  }
  func.func @transform_4(%arg0: i32) -> (i32, i32) {
    %c0_i32 = arith.constant 0 : i32
    %c0_i32_0 = arith.constant 0 : i32
    return %arg0, %c0_i32 : i32, i32
  }
}

module attributes {stable_mosaic.version = 11 : i64} {
  func.func @_conv_bias_relu_kernel(%arg0: i32, %arg1: memref<32x1152xbf16, #tpu.memory_space<vmem>>, %arg2: memref<1152x128xbf16, #tpu.memory_space<vmem>>, %arg3: memref<1x128xf32, #tpu.memory_space<vmem>>, %arg4: memref<32x128xbf16, #tpu.memory_space<vmem>>) attributes {dimension_semantics = [#tpu.dimension_semantics<parallel>], iteration_bounds = array<i64: 1>, scalar_prefetch = 0 : i64, scratch_operands = 0 : i64, tpu.core_type = #tpu.core_type<tc>, window_params = [{transform_indices = @transform_0, window_bounds = array<i64: 32, 1152>}, {pipeline_mode = #tpu.pipeline_mode<synchronous>, transform_indices = @transform_1, window_bounds = array<i64: 1152, 128>}, {pipeline_mode = #tpu.pipeline_mode<synchronous>, transform_indices = @transform_2, window_bounds = array<i64: 1, 128>}, {transform_indices = @transform_3, window_bounds = array<i64: 32, 128>}]} {
    %c0 = arith.constant 0 : index
    %c0_0 = arith.constant 0 : index
    %0 = vector.load %arg1[%c0, %c0_0] : memref<32x1152xbf16, #tpu.memory_space<vmem>>, vector<32x1152xbf16>
    %c0_1 = arith.constant 0 : index
    %c0_2 = arith.constant 0 : index
    %1 = vector.load %arg2[%c0_1, %c0_2] : memref<1152x128xbf16, #tpu.memory_space<vmem>>, vector<1152x128xbf16>
    %cst = arith.constant dense<0.000000e+00> : vector<32x128xf32>
    %2 = tpu.matmul %0, %1, %cst {dimension_numbers = #tpu.dot_dimension_numbers<[1], [0], [0], [1], [0, 0, 1, 1], [], []>} : vector<32x1152xbf16>, vector<1152x128xbf16>, vector<32x128xf32> -> vector<32x128xf32>
    %c0_3 = arith.constant 0 : index
    %c0_4 = arith.constant 0 : index
    %3 = vector.load %arg3[%c0_3, %c0_4] : memref<1x128xf32, #tpu.memory_space<vmem>>, vector<1x128xf32>
    %4 = vector.broadcast %3 : vector<1x128xf32> to vector<32x128xf32>
    %5 = arith.addf %2, %4 : vector<32x128xf32>
    %cst_5 = arith.constant 0.000000e+00 : f32
    %6 = vector.broadcast %cst_5 : f32 to vector<32x128xf32>
    %7 = arith.maximumf %5, %6 : vector<32x128xf32>
    %8 = arith.truncf %7 : vector<32x128xf32> to vector<32x128xbf16>
    %c0_6 = arith.constant 0 : index
    %c0_7 = arith.constant 0 : index
    %9 = vector.load %arg4[%c0_6, %c0_7] : memref<32x128xbf16, #tpu.memory_space<vmem>>, vector<32x128xbf16>
    tpu.vector_store %arg4[%c0_6, %c0_7], %8 {strides = array<i32>} : memref<32x128xbf16, #tpu.memory_space<vmem>>, vector<32x128xbf16>,
    return
  }
  func.func @transform_0(%arg0: i32) -> (i32, i32) {
    %c0_i32 = arith.constant 0 : i32
    %c0_i32_0 = arith.constant 0 : i32
    return %arg0, %c0_i32 : i32, i32
  }
  func.func @transform_1(%arg0: i32) -> (i32, i32) {
    %c0_i32 = arith.constant 0 : i32
    %c0_i32_0 = arith.constant 0 : i32
    %c0_i32_1 = arith.constant 0 : i32
    return %c0_i32, %c0_i32_0 : i32, i32
  }
  func.func @transform_2(%arg0: i32) -> (i32, i32) {
    %c0_i32 = arith.constant 0 : i32
    %c0_i32_0 = arith.constant 0 : i32
    %c0_i32_1 = arith.constant 0 : i32
    return %c0_i32, %c0_i32_0 : i32, i32
  }
  func.func @transform_3(%arg0: i32) -> (i32, i32) {
    %c0_i32 = arith.constant 0 : i32
    %c0_i32_0 = arith.constant 0 : i32
    return %arg0, %c0_i32 : i32, i32
  }
}

module attributes {stable_mosaic.version = 11 : i64} {
  func.func @_conv_bias_add_relu_kernel(%arg0: i32, %arg1: memref<32x1152xbf16, #tpu.memory_space<vmem>>, %arg2: memref<1152x128xbf16, #tpu.memory_space<vmem>>, %arg3: memref<1x128xf32, #tpu.memory_space<vmem>>, %arg4: memref<32x128xbf16, #tpu.memory_space<vmem>>, %arg5: memref<32x128xbf16, #tpu.memory_space<vmem>>) attributes {dimension_semantics = [#tpu.dimension_semantics<parallel>], iteration_bounds = array<i64: 1>, scalar_prefetch = 0 : i64, scratch_operands = 0 : i64, tpu.core_type = #tpu.core_type<tc>, window_params = [{transform_indices = @transform_0, window_bounds = array<i64: 32, 1152>}, {pipeline_mode = #tpu.pipeline_mode<synchronous>, transform_indices = @transform_1, window_bounds = array<i64: 1152, 128>}, {pipeline_mode = #tpu.pipeline_mode<synchronous>, transform_indices = @transform_2, window_bounds = array<i64: 1, 128>}, {transform_indices = @transform_3, window_bounds = array<i64: 32, 128>}, {transform_indices = @transform_4, window_bounds = array<i64: 32, 128>}]} {
    %c0 = arith.constant 0 : index
    %c0_0 = arith.constant 0 : index
    %0 = vector.load %arg1[%c0, %c0_0] : memref<32x1152xbf16, #tpu.memory_space<vmem>>, vector<32x1152xbf16>
    %c0_1 = arith.constant 0 : index
    %c0_2 = arith.constant 0 : index
    %1 = vector.load %arg2[%c0_1, %c0_2] : memref<1152x128xbf16, #tpu.memory_space<vmem>>, vector<1152x128xbf16>
    %cst = arith.constant dense<0.000000e+00> : vector<32x128xf32>
    %2 = tpu.matmul %0, %1, %cst {dimension_numbers = #tpu.dot_dimension_numbers<[1], [0], [0], [1], [0, 0, 1, 1], [], []>} : vector<32x1152xbf16>, vector<1152x128xbf16>, vector<32x128xf32> -> vector<32x128xf32>
    %c0_3 = arith.constant 0 : index
    %c0_4 = arith.constant 0 : index
    %3 = vector.load %arg3[%c0_3, %c0_4] : memref<1x128xf32, #tpu.memory_space<vmem>>, vector<1x128xf32>
    %4 = vector.broadcast %3 : vector<1x128xf32> to vector<32x128xf32>
    %5 = arith.addf %2, %4 : vector<32x128xf32>
    %c0_5 = arith.constant 0 : index
    %c0_6 = arith.constant 0 : index
    %6 = vector.load %arg4[%c0_5, %c0_6] : memref<32x128xbf16, #tpu.memory_space<vmem>>, vector<32x128xbf16>
    %7 = arith.extf %6 : vector<32x128xbf16> to vector<32x128xf32>
    %8 = arith.addf %5, %7 : vector<32x128xf32>
    %cst_7 = arith.constant 0.000000e+00 : f32
    %9 = vector.broadcast %cst_7 : f32 to vector<32x128xf32>
    %10 = arith.maximumf %8, %9 : vector<32x128xf32>
    %11 = arith.truncf %10 : vector<32x128xf32> to vector<32x128xbf16>
    %c0_8 = arith.constant 0 : index
    %c0_9 = arith.constant 0 : index
    %12 = vector.load %arg5[%c0_8, %c0_9] : memref<32x128xbf16, #tpu.memory_space<vmem>>, vector<32x128xbf16>
    tpu.vector_store %arg5[%c0_8, %c0_9], %11 {strides = array<i32>} : memref<32x128xbf16, #tpu.memory_space<vmem>>, vector<32x128xbf16>,
    return
  }
  func.func @transform_0(%arg0: i32) -> (i32, i32) {
    %c0_i32 = arith.constant 0 : i32
    %c0_i32_0 = arith.constant 0 : i32
    return %arg0, %c0_i32 : i32, i32
  }
  func.func @transform_1(%arg0: i32) -> (i32, i32) {
    %c0_i32 = arith.constant 0 : i32
    %c0_i32_0 = arith.constant 0 : i32
    %c0_i32_1 = arith.constant 0 : i32
    return %c0_i32, %c0_i32_0 : i32, i32
  }
  func.func @transform_2(%arg0: i32) -> (i32, i32) {
    %c0_i32 = arith.constant 0 : i32
    %c0_i32_0 = arith.constant 0 : i32
    %c0_i32_1 = arith.constant 0 : i32
    return %c0_i32, %c0_i32_0 : i32, i32
  }
  func.func @transform_3(%arg0: i32) -> (i32, i32) {
    %c0_i32 = arith.constant 0 : i32
    %c0_i32_0 = arith.constant 0 : i32
    return %arg0, %c0_i32 : i32, i32
  }
  func.func @transform_4(%arg0: i32) -> (i32, i32) {
    %c0_i32 = arith.constant 0 : i32
    %c0_i32_0 = arith.constant 0 : i32
    return %arg0, %c0_i32 : i32, i32
  }
}

module attributes {stable_mosaic.version = 11 : i64} {
  func.func @_conv_bias_ds_add_relu_kernel(%arg0: i32, %arg1: memref<32x1152xbf16, #tpu.memory_space<vmem>>, %arg2: memref<1152x128xbf16, #tpu.memory_space<vmem>>, %arg3: memref<1x128xf32, #tpu.memory_space<vmem>>, %arg4: memref<32x128xbf16, #tpu.memory_space<vmem>>, %arg5: memref<128x128xbf16, #tpu.memory_space<vmem>>, %arg6: memref<1x128xf32, #tpu.memory_space<vmem>>, %arg7: memref<32x128xbf16, #tpu.memory_space<vmem>>) attributes {dimension_semantics = [#tpu.dimension_semantics<parallel>], iteration_bounds = array<i64: 1>, scalar_prefetch = 0 : i64, scratch_operands = 0 : i64, tpu.core_type = #tpu.core_type<tc>, window_params = [{transform_indices = @transform_0, window_bounds = array<i64: 32, 1152>}, {pipeline_mode = #tpu.pipeline_mode<synchronous>, transform_indices = @transform_1, window_bounds = array<i64: 1152, 128>}, {pipeline_mode = #tpu.pipeline_mode<synchronous>, transform_indices = @transform_2, window_bounds = array<i64: 1, 128>}, {transform_indices = @transform_3, window_bounds = array<i64: 32, 128>}, {pipeline_mode = #tpu.pipeline_mode<synchronous>, transform_indices = @transform_4, window_bounds = array<i64: 128, 128>}, {pipeline_mode = #tpu.pipeline_mode<synchronous>, transform_indices = @transform_5, window_bounds = array<i64: 1, 128>}, {transform_indices = @transform_6, window_bounds = array<i64: 32, 128>}]} {
    %c0 = arith.constant 0 : index
    %c0_0 = arith.constant 0 : index
    %0 = vector.load %arg1[%c0, %c0_0] : memref<32x1152xbf16, #tpu.memory_space<vmem>>, vector<32x1152xbf16>
    %c0_1 = arith.constant 0 : index
    %c0_2 = arith.constant 0 : index
    %1 = vector.load %arg2[%c0_1, %c0_2] : memref<1152x128xbf16, #tpu.memory_space<vmem>>, vector<1152x128xbf16>
    %cst = arith.constant dense<0.000000e+00> : vector<32x128xf32>
    %2 = tpu.matmul %0, %1, %cst {dimension_numbers = #tpu.dot_dimension_numbers<[1], [0], [0], [1], [0, 0, 1, 1], [], []>} : vector<32x1152xbf16>, vector<1152x128xbf16>, vector<32x128xf32> -> vector<32x128xf32>
    %c0_3 = arith.constant 0 : index
    %c0_4 = arith.constant 0 : index
    %3 = vector.load %arg3[%c0_3, %c0_4] : memref<1x128xf32, #tpu.memory_space<vmem>>, vector<1x128xf32>
    %4 = vector.broadcast %3 : vector<1x128xf32> to vector<32x128xf32>
    %5 = arith.addf %2, %4 : vector<32x128xf32>
    %c0_5 = arith.constant 0 : index
    %c0_6 = arith.constant 0 : index
    %6 = vector.load %arg4[%c0_5, %c0_6] : memref<32x128xbf16, #tpu.memory_space<vmem>>, vector<32x128xbf16>
    %c0_7 = arith.constant 0 : index
    %c0_8 = arith.constant 0 : index
    %7 = vector.load %arg5[%c0_7, %c0_8] : memref<128x128xbf16, #tpu.memory_space<vmem>>, vector<128x128xbf16>
    %cst_9 = arith.constant dense<0.000000e+00> : vector<32x128xf32>
    %8 = tpu.matmul %6, %7, %cst_9 {dimension_numbers = #tpu.dot_dimension_numbers<[1], [0], [0], [1], [0, 0, 1, 1], [], []>} : vector<32x128xbf16>, vector<128x128xbf16>, vector<32x128xf32> -> vector<32x128xf32>
    %c0_10 = arith.constant 0 : index
    %c0_11 = arith.constant 0 : index
    %9 = vector.load %arg6[%c0_10, %c0_11] : memref<1x128xf32, #tpu.memory_space<vmem>>, vector<1x128xf32>
    %10 = vector.broadcast %9 : vector<1x128xf32> to vector<32x128xf32>
    %11 = arith.addf %8, %10 : vector<32x128xf32>
    %12 = arith.addf %5, %11 : vector<32x128xf32>
    %cst_12 = arith.constant 0.000000e+00 : f32
    %13 = vector.broadcast %cst_12 : f32 to vector<32x128xf32>
    %14 = arith.maximumf %12, %13 : vector<32x128xf32>
    %15 = arith.truncf %14 : vector<32x128xf32> to vector<32x128xbf16>
    %c0_13 = arith.constant 0 : index
    %c0_14 = arith.constant 0 : index
    %16 = vector.load %arg7[%c0_13, %c0_14] : memref<32x128xbf16, #tpu.memory_space<vmem>>, vector<32x128xbf16>
    tpu.vector_store %arg7[%c0_13, %c0_14], %15 {strides = array<i32>} : memref<32x128xbf16, #tpu.memory_space<vmem>>, vector<32x128xbf16>,
    return
  }
  func.func @transform_0(%arg0: i32) -> (i32, i32) {
    %c0_i32 = arith.constant 0 : i32
    %c0_i32_0 = arith.constant 0 : i32
    return %arg0, %c0_i32 : i32, i32
  }
  func.func @transform_1(%arg0: i32) -> (i32, i32) {
    %c0_i32 = arith.constant 0 : i32
    %c0_i32_0 = arith.constant 0 : i32
    %c0_i32_1 = arith.constant 0 : i32
    return %c0_i32, %c0_i32_0 : i32, i32
  }
  func.func @transform_2(%arg0: i32) -> (i32, i32) {
    %c0_i32 = arith.constant 0 : i32
    %c0_i32_0 = arith.constant 0 : i32
    %c0_i32_1 = arith.constant 0 : i32
    return %c0_i32, %c0_i32_0 : i32, i32
  }
  func.func @transform_3(%arg0: i32) -> (i32, i32) {
    %c0_i32 = arith.constant 0 : i32
    %c0_i32_0 = arith.constant 0 : i32
    return %arg0, %c0_i32 : i32, i32
  }
  func.func @transform_4(%arg0: i32) -> (i32, i32) {
    %c0_i32 = arith.constant 0 : i32
    %c0_i32_0 = arith.constant 0 : i32
    %c0_i32_1 = arith.constant 0 : i32
    return %c0_i32, %c0_i32_0 : i32, i32
  }
  func.func @transform_5(%arg0: i32) -> (i32, i32) {
    %c0_i32 = arith.constant 0 : i32
    %c0_i32_0 = arith.constant 0 : i32
    %c0_i32_1 = arith.constant 0 : i32
    return %c0_i32, %c0_i32_0 : i32, i32
  }
  func.func @transform_6(%arg0: i32) -> (i32, i32) {
    %c0_i32 = arith.constant 0 : i32
    %c0_i32_0 = arith.constant 0 : i32
    return %arg0, %c0_i32 : i32, i32
  }
}

module attributes {stable_mosaic.version = 11 : i64} {
  func.func @_conv_bias_relu_kernel(%arg0: i32, %arg1: memref<8x1152xbf16, #tpu.memory_space<vmem>>, %arg2: memref<1152x128xbf16, #tpu.memory_space<vmem>>, %arg3: memref<1x128xf32, #tpu.memory_space<vmem>>, %arg4: memref<8x128xbf16, #tpu.memory_space<vmem>>) attributes {dimension_semantics = [#tpu.dimension_semantics<parallel>], iteration_bounds = array<i64: 1>, scalar_prefetch = 0 : i64, scratch_operands = 0 : i64, tpu.core_type = #tpu.core_type<tc>, window_params = [{transform_indices = @transform_0, window_bounds = array<i64: 8, 1152>}, {pipeline_mode = #tpu.pipeline_mode<synchronous>, transform_indices = @transform_1, window_bounds = array<i64: 1152, 128>}, {pipeline_mode = #tpu.pipeline_mode<synchronous>, transform_indices = @transform_2, window_bounds = array<i64: 1, 128>}, {transform_indices = @transform_3, window_bounds = array<i64: 8, 128>}]} {
    %c0 = arith.constant 0 : index
    %c0_0 = arith.constant 0 : index
    %0 = vector.load %arg1[%c0, %c0_0] : memref<8x1152xbf16, #tpu.memory_space<vmem>>, vector<8x1152xbf16>
    %c0_1 = arith.constant 0 : index
    %c0_2 = arith.constant 0 : index
    %1 = vector.load %arg2[%c0_1, %c0_2] : memref<1152x128xbf16, #tpu.memory_space<vmem>>, vector<1152x128xbf16>
    %cst = arith.constant dense<0.000000e+00> : vector<8x128xf32>
    %2 = tpu.matmul %0, %1, %cst {dimension_numbers = #tpu.dot_dimension_numbers<[1], [0], [0], [1], [0, 0, 1, 1], [], []>} : vector<8x1152xbf16>, vector<1152x128xbf16>, vector<8x128xf32> -> vector<8x128xf32>
    %c0_3 = arith.constant 0 : index
    %c0_4 = arith.constant 0 : index
    %3 = vector.load %arg3[%c0_3, %c0_4] : memref<1x128xf32, #tpu.memory_space<vmem>>, vector<1x128xf32>
    %4 = vector.broadcast %3 : vector<1x128xf32> to vector<8x128xf32>
    %5 = arith.addf %2, %4 : vector<8x128xf32>
    %cst_5 = arith.constant 0.000000e+00 : f32
    %6 = vector.broadcast %cst_5 : f32 to vector<8x128xf32>
    %7 = arith.maximumf %5, %6 : vector<8x128xf32>
    %8 = arith.truncf %7 : vector<8x128xf32> to vector<8x128xbf16>
    %c0_6 = arith.constant 0 : index
    %c0_7 = arith.constant 0 : index
    %9 = vector.load %arg4[%c0_6, %c0_7] : memref<8x128xbf16, #tpu.memory_space<vmem>>, vector<8x128xbf16>
    tpu.vector_store %arg4[%c0_6, %c0_7], %8 {strides = array<i32>} : memref<8x128xbf16, #tpu.memory_space<vmem>>, vector<8x128xbf16>,
    return
  }
  func.func @transform_0(%arg0: i32) -> (i32, i32) {
    %c0_i32 = arith.constant 0 : i32
    %c0_i32_0 = arith.constant 0 : i32
    return %arg0, %c0_i32 : i32, i32
  }
  func.func @transform_1(%arg0: i32) -> (i32, i32) {
    %c0_i32 = arith.constant 0 : i32
    %c0_i32_0 = arith.constant 0 : i32
    %c0_i32_1 = arith.constant 0 : i32
    return %c0_i32, %c0_i32_0 : i32, i32
  }
  func.func @transform_2(%arg0: i32) -> (i32, i32) {
    %c0_i32 = arith.constant 0 : i32
    %c0_i32_0 = arith.constant 0 : i32
    %c0_i32_1 = arith.constant 0 : i32
    return %c0_i32, %c0_i32_0 : i32, i32
  }
  func.func @transform_3(%arg0: i32) -> (i32, i32) {
    %c0_i32 = arith.constant 0 : i32
    %c0_i32_0 = arith.constant 0 : i32
    return %arg0, %c0_i32 : i32, i32
  }
}

module attributes {stable_mosaic.version = 11 : i64} {
  func.func @_conv_bias_ds_add_relu_kernel(%arg0: i32, %arg1: memref<8x1152xbf16, #tpu.memory_space<vmem>>, %arg2: memref<1152x128xbf16, #tpu.memory_space<vmem>>, %arg3: memref<1x128xf32, #tpu.memory_space<vmem>>, %arg4: memref<8x128xbf16, #tpu.memory_space<vmem>>, %arg5: memref<128x128xbf16, #tpu.memory_space<vmem>>, %arg6: memref<1x128xf32, #tpu.memory_space<vmem>>, %arg7: memref<8x128xbf16, #tpu.memory_space<vmem>>) attributes {dimension_semantics = [#tpu.dimension_semantics<parallel>], iteration_bounds = array<i64: 1>, scalar_prefetch = 0 : i64, scratch_operands = 0 : i64, tpu.core_type = #tpu.core_type<tc>, window_params = [{transform_indices = @transform_0, window_bounds = array<i64: 8, 1152>}, {pipeline_mode = #tpu.pipeline_mode<synchronous>, transform_indices = @transform_1, window_bounds = array<i64: 1152, 128>}, {pipeline_mode = #tpu.pipeline_mode<synchronous>, transform_indices = @transform_2, window_bounds = array<i64: 1, 128>}, {transform_indices = @transform_3, window_bounds = array<i64: 8, 128>}, {pipeline_mode = #tpu.pipeline_mode<synchronous>, transform_indices = @transform_4, window_bounds = array<i64: 128, 128>}, {pipeline_mode = #tpu.pipeline_mode<synchronous>, transform_indices = @transform_5, window_bounds = array<i64: 1, 128>}, {transform_indices = @transform_6, window_bounds = array<i64: 8, 128>}]} {
    %c0 = arith.constant 0 : index
    %c0_0 = arith.constant 0 : index
    %0 = vector.load %arg1[%c0, %c0_0] : memref<8x1152xbf16, #tpu.memory_space<vmem>>, vector<8x1152xbf16>
    %c0_1 = arith.constant 0 : index
    %c0_2 = arith.constant 0 : index
    %1 = vector.load %arg2[%c0_1, %c0_2] : memref<1152x128xbf16, #tpu.memory_space<vmem>>, vector<1152x128xbf16>
    %cst = arith.constant dense<0.000000e+00> : vector<8x128xf32>
    %2 = tpu.matmul %0, %1, %cst {dimension_numbers = #tpu.dot_dimension_numbers<[1], [0], [0], [1], [0, 0, 1, 1], [], []>} : vector<8x1152xbf16>, vector<1152x128xbf16>, vector<8x128xf32> -> vector<8x128xf32>
    %c0_3 = arith.constant 0 : index
    %c0_4 = arith.constant 0 : index
    %3 = vector.load %arg3[%c0_3, %c0_4] : memref<1x128xf32, #tpu.memory_space<vmem>>, vector<1x128xf32>
    %4 = vector.broadcast %3 : vector<1x128xf32> to vector<8x128xf32>
    %5 = arith.addf %2, %4 : vector<8x128xf32>
    %c0_5 = arith.constant 0 : index
    %c0_6 = arith.constant 0 : index
    %6 = vector.load %arg4[%c0_5, %c0_6] : memref<8x128xbf16, #tpu.memory_space<vmem>>, vector<8x128xbf16>
    %c0_7 = arith.constant 0 : index
    %c0_8 = arith.constant 0 : index
    %7 = vector.load %arg5[%c0_7, %c0_8] : memref<128x128xbf16, #tpu.memory_space<vmem>>, vector<128x128xbf16>
    %cst_9 = arith.constant dense<0.000000e+00> : vector<8x128xf32>
    %8 = tpu.matmul %6, %7, %cst_9 {dimension_numbers = #tpu.dot_dimension_numbers<[1], [0], [0], [1], [0, 0, 1, 1], [], []>} : vector<8x128xbf16>, vector<128x128xbf16>, vector<8x128xf32> -> vector<8x128xf32>
    %c0_10 = arith.constant 0 : index
    %c0_11 = arith.constant 0 : index
    %9 = vector.load %arg6[%c0_10, %c0_11] : memref<1x128xf32, #tpu.memory_space<vmem>>, vector<1x128xf32>
    %10 = vector.broadcast %9 : vector<1x128xf32> to vector<8x128xf32>
    %11 = arith.addf %8, %10 : vector<8x128xf32>
    %12 = arith.addf %5, %11 : vector<8x128xf32>
    %cst_12 = arith.constant 0.000000e+00 : f32
    %13 = vector.broadcast %cst_12 : f32 to vector<8x128xf32>
    %14 = arith.maximumf %12, %13 : vector<8x128xf32>
    %15 = arith.truncf %14 : vector<8x128xf32> to vector<8x128xbf16>
    %c0_13 = arith.constant 0 : index
    %c0_14 = arith.constant 0 : index
    %16 = vector.load %arg7[%c0_13, %c0_14] : memref<8x128xbf16, #tpu.memory_space<vmem>>, vector<8x128xbf16>
    tpu.vector_store %arg7[%c0_13, %c0_14], %15 {strides = array<i32>} : memref<8x128xbf16, #tpu.memory_space<vmem>>, vector<8x128xbf16>,
    return
  }
  func.func @transform_0(%arg0: i32) -> (i32, i32) {
    %c0_i32 = arith.constant 0 : i32
    %c0_i32_0 = arith.constant 0 : i32
    return %arg0, %c0_i32 : i32, i32
  }
  func.func @transform_1(%arg0: i32) -> (i32, i32) {
    %c0_i32 = arith.constant 0 : i32
    %c0_i32_0 = arith.constant 0 : i32
    %c0_i32_1 = arith.constant 0 : i32
    return %c0_i32, %c0_i32_0 : i32, i32
  }
  func.func @transform_2(%arg0: i32) -> (i32, i32) {
    %c0_i32 = arith.constant 0 : i32
    %c0_i32_0 = arith.constant 0 : i32
    %c0_i32_1 = arith.constant 0 : i32
    return %c0_i32, %c0_i32_0 : i32, i32
  }
  func.func @transform_3(%arg0: i32) -> (i32, i32) {
    %c0_i32 = arith.constant 0 : i32
    %c0_i32_0 = arith.constant 0 : i32
    return %arg0, %c0_i32 : i32, i32
  }
  func.func @transform_4(%arg0: i32) -> (i32, i32) {
    %c0_i32 = arith.constant 0 : i32
    %c0_i32_0 = arith.constant 0 : i32
    %c0_i32_1 = arith.constant 0 : i32
    return %c0_i32, %c0_i32_0 : i32, i32
  }
  func.func @transform_5(%arg0: i32) -> (i32, i32) {
    %c0_i32 = arith.constant 0 : i32
    %c0_i32_0 = arith.constant 0 : i32
    %c0_i32_1 = arith.constant 0 : i32
    return %c0_i32, %c0_i32_0 : i32, i32
  }
  func.func @transform_6(%arg0: i32) -> (i32, i32) {
    %c0_i32 = arith.constant 0 : i32
    %c0_i32_0 = arith.constant 0 : i32
    return %arg0, %c0_i32 : i32, i32
  }
}

module attributes {stable_mosaic.version = 11 : i64} {
  func.func @_conv_bias_add_relu_kernel(%arg0: i32, %arg1: memref<8x1152xbf16, #tpu.memory_space<vmem>>, %arg2: memref<1152x128xbf16, #tpu.memory_space<vmem>>, %arg3: memref<1x128xf32, #tpu.memory_space<vmem>>, %arg4: memref<8x128xbf16, #tpu.memory_space<vmem>>, %arg5: memref<8x128xbf16, #tpu.memory_space<vmem>>) attributes {dimension_semantics = [#tpu.dimension_semantics<parallel>], iteration_bounds = array<i64: 1>, scalar_prefetch = 0 : i64, scratch_operands = 0 : i64, tpu.core_type = #tpu.core_type<tc>, window_params = [{transform_indices = @transform_0, window_bounds = array<i64: 8, 1152>}, {pipeline_mode = #tpu.pipeline_mode<synchronous>, transform_indices = @transform_1, window_bounds = array<i64: 1152, 128>}, {pipeline_mode = #tpu.pipeline_mode<synchronous>, transform_indices = @transform_2, window_bounds = array<i64: 1, 128>}, {transform_indices = @transform_3, window_bounds = array<i64: 8, 128>}, {transform_indices = @transform_4, window_bounds = array<i64: 8, 128>}]} {
    %c0 = arith.constant 0 : index
    %c0_0 = arith.constant 0 : index
    %0 = vector.load %arg1[%c0, %c0_0] : memref<8x1152xbf16, #tpu.memory_space<vmem>>, vector<8x1152xbf16>
    %c0_1 = arith.constant 0 : index
    %c0_2 = arith.constant 0 : index
    %1 = vector.load %arg2[%c0_1, %c0_2] : memref<1152x128xbf16, #tpu.memory_space<vmem>>, vector<1152x128xbf16>
    %cst = arith.constant dense<0.000000e+00> : vector<8x128xf32>
    %2 = tpu.matmul %0, %1, %cst {dimension_numbers = #tpu.dot_dimension_numbers<[1], [0], [0], [1], [0, 0, 1, 1], [], []>} : vector<8x1152xbf16>, vector<1152x128xbf16>, vector<8x128xf32> -> vector<8x128xf32>
    %c0_3 = arith.constant 0 : index
    %c0_4 = arith.constant 0 : index
    %3 = vector.load %arg3[%c0_3, %c0_4] : memref<1x128xf32, #tpu.memory_space<vmem>>, vector<1x128xf32>
    %4 = vector.broadcast %3 : vector<1x128xf32> to vector<8x128xf32>
    %5 = arith.addf %2, %4 : vector<8x128xf32>
    %c0_5 = arith.constant 0 : index
    %c0_6 = arith.constant 0 : index
    %6 = vector.load %arg4[%c0_5, %c0_6] : memref<8x128xbf16, #tpu.memory_space<vmem>>, vector<8x128xbf16>
    %7 = arith.extf %6 : vector<8x128xbf16> to vector<8x128xf32>
    %8 = arith.addf %5, %7 : vector<8x128xf32>
    %cst_7 = arith.constant 0.000000e+00 : f32
    %9 = vector.broadcast %cst_7 : f32 to vector<8x128xf32>
    %10 = arith.maximumf %8, %9 : vector<8x128xf32>
    %11 = arith.truncf %10 : vector<8x128xf32> to vector<8x128xbf16>
    %c0_8 = arith.constant 0 : index
    %c0_9 = arith.constant 0 : index
    %12 = vector.load %arg5[%c0_8, %c0_9] : memref<8x128xbf16, #tpu.memory_space<vmem>>, vector<8x128xbf16>
    tpu.vector_store %arg5[%c0_8, %c0_9], %11 {strides = array<i32>} : memref<8x128xbf16, #tpu.memory_space<vmem>>, vector<8x128xbf16>,
    return
  }
  func.func @transform_0(%arg0: i32) -> (i32, i32) {
    %c0_i32 = arith.constant 0 : i32
    %c0_i32_0 = arith.constant 0 : i32
    return %arg0, %c0_i32 : i32, i32
  }
  func.func @transform_1(%arg0: i32) -> (i32, i32) {
    %c0_i32 = arith.constant 0 : i32
    %c0_i32_0 = arith.constant 0 : i32
    %c0_i32_1 = arith.constant 0 : i32
    return %c0_i32, %c0_i32_0 : i32, i32
  }
  func.func @transform_2(%arg0: i32) -> (i32, i32) {
    %c0_i32 = arith.constant 0 : i32
    %c0_i32_0 = arith.constant 0 : i32
    %c0_i32_1 = arith.constant 0 : i32
    return %c0_i32, %c0_i32_0 : i32, i32
  }
  func.func @transform_3(%arg0: i32) -> (i32, i32) {
    %c0_i32 = arith.constant 0 : i32
    %c0_i32_0 = arith.constant 0 : i32
    return %arg0, %c0_i32 : i32, i32
  }
  func.func @transform_4(%arg0: i32) -> (i32, i32) {
    %c0_i32 = arith.constant 0 : i32
    %c0_i32_0 = arith.constant 0 : i32
    return %arg0, %c0_i32 : i32, i32
  }
}

module attributes {stable_mosaic.version = 11 : i64} {
  func.func @_avgpool_heads_kernel(%arg0: memref<2x4x128xbf16, #tpu.memory_space<vmem>>, %arg1: memref<128x128xbf16, #tpu.memory_space<vmem>>, %arg2: memref<1x128xf32, #tpu.memory_space<vmem>>, %arg3: memref<2x128xf32, #tpu.memory_space<vmem>>) attributes {dimension_semantics = [], scalar_prefetch = 0 : i64, scratch_operands = 0 : i64, tpu.core_type = #tpu.core_type<tc>} {
    %c0 = arith.constant 0 : index
    %c0_0 = arith.constant 0 : index
    %c0_1 = arith.constant 0 : index
    %0 = vector.load %arg0[%c0, %c0_0, %c0_1] : memref<2x4x128xbf16, #tpu.memory_space<vmem>>, vector<2x4x128xbf16>
    %1 = arith.extf %0 : vector<2x4x128xbf16> to vector<2x4x128xf32>
    %2 = vector.extract_strided_slice %1 {offsets = [0, 0, 0], sizes = [2, 1, 128], strides = [1, 1, 1]} : vector<2x4x128xf32> to vector<2x1x128xf32>
    %3 = vector.shape_cast %2 : vector<2x1x128xf32> to vector<2x128xf32>
    %4 = vector.extract_strided_slice %1 {offsets = [0, 1, 0], sizes = [2, 1, 128], strides = [1, 1, 1]} : vector<2x4x128xf32> to vector<2x1x128xf32>
    %5 = vector.shape_cast %4 : vector<2x1x128xf32> to vector<2x128xf32>
    %6 = arith.addf %3, %5 : vector<2x128xf32>
    %7 = vector.extract_strided_slice %1 {offsets = [0, 2, 0], sizes = [2, 1, 128], strides = [1, 1, 1]} : vector<2x4x128xf32> to vector<2x1x128xf32>
    %8 = vector.shape_cast %7 : vector<2x1x128xf32> to vector<2x128xf32>
    %9 = arith.addf %6, %8 : vector<2x128xf32>
    %10 = vector.extract_strided_slice %1 {offsets = [0, 3, 0], sizes = [2, 1, 128], strides = [1, 1, 1]} : vector<2x4x128xf32> to vector<2x1x128xf32>
    %11 = vector.shape_cast %10 : vector<2x1x128xf32> to vector<2x128xf32>
    %12 = arith.addf %9, %11 : vector<2x128xf32>
    %cst = arith.constant 2.500000e-01 : f32
    %13 = vector.broadcast %cst : f32 to vector<2x128xf32>
    %14 = arith.mulf %12, %13 : vector<2x128xf32>
    %15 = arith.truncf %14 : vector<2x128xf32> to vector<2x128xbf16>
    %c0_2 = arith.constant 0 : index
    %c0_3 = arith.constant 0 : index
    %16 = vector.load %arg1[%c0_2, %c0_3] : memref<128x128xbf16, #tpu.memory_space<vmem>>, vector<128x128xbf16>
    %cst_4 = arith.constant dense<0.000000e+00> : vector<2x128xf32>
    %17 = tpu.matmul %15, %16, %cst_4 {dimension_numbers = #tpu.dot_dimension_numbers<[1], [0], [0], [1], [0, 0, 1, 1], [], []>} : vector<2x128xbf16>, vector<128x128xbf16>, vector<2x128xf32> -> vector<2x128xf32>
    %c0_5 = arith.constant 0 : index
    %c0_6 = arith.constant 0 : index
    %18 = vector.load %arg2[%c0_5, %c0_6] : memref<1x128xf32, #tpu.memory_space<vmem>>, vector<1x128xf32>
    %19 = vector.broadcast %18 : vector<1x128xf32> to vector<2x128xf32>
    %20 = arith.addf %17, %19 : vector<2x128xf32>
    %c0_7 = arith.constant 0 : index
    %c0_8 = arith.constant 0 : index
    %21 = vector.load %arg3[%c0_7, %c0_8] : memref<2x128xf32, #tpu.memory_space<vmem>>, vector<2x128xf32>
    tpu.vector_store %arg3[%c0_7, %c0_8], %20 {strides = array<i32>} : memref<2x128xf32, #tpu.memory_space<vmem>>, vector<2x128xf32>,
    return
  }
}

</mosaic_0001>

<bundles_post_ra>
// kernel: jersey_number_classifier_forward.19
= control target key start
LH: loop header
LB: loop body
LE: loop exit
PB: predicated region body
PF: predicated region fallthrough
CT: control target
= control target key end

     0   :  { %s2021_s12 = smov 0   ;;  %s2291_s0 = inlined_call_operand.vmem [shape: bf16[2048,256], index: 0, kind: input, shape index: {}]   ;;  %s2292_s1 = inlined_call_operand.vmem [shape: bf16[256,128], index: 1, kind: input, shape index: {}]   ;;  %s2293_s2 = inlined_call_operand.vmem [shape: f32[1,128], index: 2, kind: input, shape index: {}]   ;;  %s2294_s3 = inlined_call_operand.vmem [shape: bf16[2048,128], index: 3, kind: output, shape index: {}]  }
   0x1 LB: > { %s1426_s13 = sadd.s32 4294967295, %s1998_s12   ;;  %p1430_p0 = scmp.ge.s32.totalorder %s1998_s12, 1  ;;  %s1998_s12 = sphi %s2021_s12, %s13_s12  }
   0x2   : > { %p139_p1 = scmp.lt.s32.totalorder %s1998_s12, 5 }
   0x4   : > { %p140_p2 = pnand %p1430_p0, %p139_p1 }
   0x5   : > { %s1431_s16 = sshll.u32 (!%p140_p2), %s1426_s13, 6 }
   0x6   : > { %143 = sbr.rel (%p140_p2) target bundleno = 400 (0x190), region = 32  ;;  %p165_p3 = scmp.lt.s32.totalorder (!%p140_p2), %s1431_s16, 255 }
   0xb   : > { %v1880_v0 = vld [vmem:[%s2292_s1 + $0x38] sm:$0xff]   ;;  %v2000_v1 = vmov 0   ;;  %v1881_v2 = vld [vmem:[%s2292_s1 + $0x30] sm:$0xff]   ;;  %v1882_v3 = vld [vmem:[%s2292_s1 + $0x28] sm:$0xff]   ;;  %s2296_s16 = smov (!%p165_p3, %s1431_s16), 255 }
   0xc   : > { %697 = vmatprep.subr.bf16.mxu0 %v2000_v1  ;;  %1839 = vmatprep.subr.bf16.mxu1 %v2000_v1  ;;  %v1883_v4 = vld [vmem:[%s2292_s1 + $0x20] sm:$0xff]   ;;  %s1583_s23 = sshll.u32 %s2296_s16, 3  ;;  %v1884_v5 = vld [vmem:[%s2292_s1 + $0x18] sm:$0xff]   ;;  %v1885_v7 = vld [vmem:[%s2292_s1 + $0x10] sm:$0xff]   ;;  %s1435_s29 = sshll.u32 %s2296_s16, 2 }
   0xd   : > { %698 = vmatpush1.bf16.msra.mxu0 %v1880_v0  ;;  %1855 = vmatpush1.bf16.msra.mxu1 %v1880_v0  ;;  %s2058_s28 = scalar_lea.vmem %s2291_s0, %s1583_s23  ;;  %v1886_v9 = vld [vmem:[%s2292_s1 + $0x8] sm:$0xff]   ;;  %v1887_v10 = vld [vmem:[%s2292_s1] sm:$0xff]   ;;  %v1888_v11 = vld [vmem:[%s2292_s1 + $0x78] sm:$0xff]   ;;  %s2194_s4 = scalar_lea.vmem %s2294_s3, %s1435_s29 }
   0xe   : > { %699 = vmatprep.subr.bf16.mxu0 %v2000_v1  ;;  %1840 = vmatprep.subr.bf16.mxu1 %v2000_v1  ;;  %v1898_v6 = vld [vmem:[%s2058_s28 + $0x4] ss:$8 sps:$4 sm:$0xff]   ;;  %v1889_v12 = vld [vmem:[%s2292_s1 + $0x70] sm:$0xff]   ;;  %v1892_v15 = vld [vmem:[%s2292_s1 + $0x58] sm:$0xff]  }
   0xf   : > { %v1901_v8 = vld [vmem:[%s2058_s28 + $0x104] ss:$8 sps:$4 sm:$0xff]   ;;  %729 = vmatprep.mubr.bf16.mxu0 %v1898_v6  ;;  %v1893_v16 = vld [vmem:[%s2292_s1 + $0x50] sm:$0xff]   ;;  %v1896_v19 = vld [vmem:[%s2058_s28] ss:$8 sps:$4 sm:$0xff]  }
  0x10   : > { %857 = vmatprep.mubr.bf16.mxu1 %v1901_v8  ;;  %v1890_v13 = vld [vmem:[%s2292_s1 + $0x68] sm:$0xff]   ;;  %v1891_v14 = vld [vmem:[%s2292_s1 + $0x60] sm:$0xff]   ;;  %v1902_v21 = vld [vmem:[%s2058_s28 + $0x14] ss:$8 sps:$4 sm:$0xff]  }
  0x11   : > { %700 = vmatpush1.bf16.msra.mxu0 %v1881_v2  ;;  %1856 = vmatpush1.bf16.msra.mxu1 %v1881_v2  ;;  %v1894_v17 = vld [vmem:[%s2292_s1 + $0x48] sm:$0xff]   ;;  %v1895_v18 = vld [vmem:[%s2292_s1 + $0x40] sm:$0xff]   ;;  %v1904_v22 = vld [vmem:[%s2058_s28 + $0x114] ss:$8 sps:$4 sm:$0xff]  }
  0x12   : > { %701 = vmatprep.subr.bf16.mxu0 %v2000_v1  ;;  %1841 = vmatprep.subr.bf16.mxu1 %v2000_v1  ;;  %v1899_v20 = vld [vmem:[%s2058_s28 + $0x100] ss:$8 sps:$4 sm:$0xff]   ;;  %v1906_v23 = vld [vmem:[%s2058_s28 + $0x10] ss:$8 sps:$4 sm:$0xff]   ;;  %v1908_v25 = vld [vmem:[%s2058_s28 + $0x24] ss:$8 sps:$4 sm:$0xff]  }
  0x13   : > { %v1907_v24 = vld [vmem:[%s2058_s28 + $0x110] ss:$8 sps:$4 sm:$0xff]   ;;  %v1910_v26 = vld [vmem:[%s2058_s28 + $0x124] ss:$8 sps:$4 sm:$0xff]   ;;  %v1912_v27 = vld [vmem:[%s2058_s28 + $0x20] ss:$8 sps:$4 sm:$0xff]  }
  0x14   : > { %v1913_v28 = vld [vmem:[%s2058_s28 + $0x120] ss:$8 sps:$4 sm:$0xff]   ;;  %v1914_v29 = vld [vmem:[%s2058_s28 + $0x34] ss:$8 sps:$4 sm:$0xff]   ;;  %v1918_v31 = vld [vmem:[%s2058_s28 + $0x30] ss:$8 sps:$4 sm:$0xff]  }
  0x15   : > { %702 = vmatpush1.bf16.msra.mxu0 %v1882_v3  ;;  %1857 = vmatpush1.bf16.msra.mxu1 %v1882_v3  ;;  %v1916_v30 = vld [vmem:[%s2058_s28 + $0x134] ss:$8 sps:$4 sm:$0xff]   ;;  %v1919_v32 = vld [vmem:[%s2058_s28 + $0x130] ss:$8 sps:$4 sm:$0xff]   ;;  %v1920_v33 = vld [vmem:[%s2058_s28 + $0x44] ss:$8 sps:$4 sm:$0xff]  }
  0x16   : > { %703 = vmatprep.subr.bf16.mxu0 %v2000_v1  ;;  %1842 = vmatprep.subr.bf16.mxu1 %v2000_v1  ;;  %v1922_v34 = vld [vmem:[%s2058_s28 + $0x144] ss:$8 sps:$4 sm:$0xff]   ;;  %v1924_v35 = vld [vmem:[%s2058_s28 + $0x40] ss:$8 sps:$4 sm:$0xff]   ;;  %v1926_v37 = vld [vmem:[%s2058_s28 + $0x54] ss:$8 sps:$4 sm:$0xff]  }
  0x17   : > { %v1925_v36 = vld [vmem:[%s2058_s28 + $0x140] ss:$8 sps:$4 sm:$0xff]   ;;  %v1928_v38 = vld [vmem:[%s2058_s28 + $0x154] ss:$8 sps:$4 sm:$0xff]   ;;  %v1930_v39 = vld [vmem:[%s2058_s28 + $0x50] ss:$8 sps:$4 sm:$0xff]  }
  0x18   : > { %v1931_v40 = vld [vmem:[%s2058_s28 + $0x150] ss:$8 sps:$4 sm:$0xff]   ;;  %v1932_v41 = vld [vmem:[%s2058_s28 + $0x64] ss:$8 sps:$4 sm:$0xff]   ;;  %v1936_v43 = vld [vmem:[%s2058_s28 + $0x60] ss:$8 sps:$4 sm:$0xff]  }
  0x19   : > { %704 = vmatpush1.bf16.msra.mxu0 %v1883_v4  ;;  %1858 = vmatpush1.bf16.msra.mxu1 %v1883_v4  ;;  %v1934_v42 = vld [vmem:[%s2058_s28 + $0x164] ss:$8 sps:$4 sm:$0xff]   ;;  %v1937_v44 = vld [vmem:[%s2058_s28 + $0x160] ss:$8 sps:$4 sm:$0xff]   ;;  %v1938_v45 = vld [vmem:[%s2058_s28 + $0x74] ss:$8 sps:$4 sm:$0xff]  }
  0x1a   : > { %705 = vmatprep.subr.bf16.mxu0 %v2000_v1  ;;  %1843 = vmatprep.subr.bf16.mxu1 %v2000_v1  ;;  %v1940_v46 = vld [vmem:[%s2058_s28 + $0x174] ss:$8 sps:$4 sm:$0xff]   ;;  %v1942_v47 = vld [vmem:[%s2058_s28 + $0x70] ss:$8 sps:$4 sm:$0xff]   ;;  %v1944_v49 = vld [vmem:[%s2058_s28 + $0x84] ss:$8 sps:$4 sm:$0xff]  }
  0x1b   : > { %v1943_v48 = vld [vmem:[%s2058_s28 + $0x170] ss:$8 sps:$4 sm:$0xff]   ;;  %v1946_v50 = vld [vmem:[%s2058_s28 + $0x184] ss:$8 sps:$4 sm:$0xff]   ;;  %v1948_v51 = vld [vmem:[%s2058_s28 + $0x80] ss:$8 sps:$4 sm:$0xff]  }
  0x1c   : > { %v1949_v52 = vld [vmem:[%s2058_s28 + $0x180] ss:$8 sps:$4 sm:$0xff]   ;;  %v1950_v53 = vld [vmem:[%s2058_s28 + $0x94] ss:$8 sps:$4 sm:$0xff]   ;;  %v1954_v55 = vld [vmem:[%s2058_s28 + $0x90] ss:$8 sps:$4 sm:$0xff]  }
  0x1d   : > { %706 = vmatpush1.bf16.msra.mxu0 %v1884_v5  ;;  %1859 = vmatpush1.bf16.msra.mxu1 %v1884_v5  ;;  %v1952_v54 = vld [vmem:[%s2058_s28 + $0x194] ss:$8 sps:$4 sm:$0xff]   ;;  %v1955_v56 = vld [vmem:[%s2058_s28 + $0x190] ss:$8 sps:$4 sm:$0xff]   ;;  %v1956_v57 = vld [vmem:[%s2058_s28 + $0xa4] ss:$8 sps:$4 sm:$0xff]  }
  0x1e   : > { %707 = vmatprep.subr.bf16.mxu0 %v2000_v1  ;;  %1844 = vmatprep.subr.bf16.mxu1 %v2000_v1  ;;  %v1958_v58 = vld [vmem:[%s2058_s28 + $0x1a4] ss:$8 sps:$4 sm:$0xff]   ;;  %v1960_v59 = vld [vmem:[%s2058_s28 + $0xa0] ss:$8 sps:$4 sm:$0xff]   ;;  %v1962_v61 = vld [vmem:[%s2058_s28 + $0xb4] ss:$8 sps:$4 sm:$0xff]  }
  0x1f   : > { %v1961_v60 = vld [vmem:[%s2058_s28 + $0x1a0] ss:$8 sps:$4 sm:$0xff]   ;;  %v1964_v62 = vld [vmem:[%s2058_s28 + $0x1b4] ss:$8 sps:$4 sm:$0xff]   ;;  %v1966_v63 = vld [vmem:[%s2058_s28 + $0xb0] ss:$8 sps:$4 sm:$0xff]  }
  0x20   : > { %v1967_v0 = vld [vmem:[%s2058_s28 + $0x1b0] ss:$8 sps:$4 sm:$0xff]   ;;  %v1970_v2 = vld [vmem:[%s2058_s28 + $0x1c4] ss:$8 sps:$4 sm:$0xff]   ;;  %v1972_v3 = vld [vmem:[%s2058_s28 + $0xc0] ss:$8 sps:$4 sm:$0xff]  }
  0x21   : > { %708 = vmatpush1.bf16.msra.mxu0 %v1885_v7  ;;  %1860 = vmatpush1.bf16.msra.mxu1 %v1885_v7  ;;  %v1973_v4 = vld [vmem:[%s2058_s28 + $0x1c0] ss:$8 sps:$4 sm:$0xff]   ;;  %v1974_v5 = vld [vmem:[%s2058_s28 + $0xd4] ss:$8 sps:$4 sm:$0xff]   ;;  %v1978_v7 = vld [vmem:[%s2058_s28 + $0xd0] ss:$8 sps:$4 sm:$0xff]  }
  0x22   : > { %709 = vmatprep.subr.bf16.mxu0 %v2000_v1  ;;  %1845 = vmatprep.subr.bf16.mxu1 %v2000_v1  ;;  %v1976_v6 = vld [vmem:[%s2058_s28 + $0x1d4] ss:$8 sps:$4 sm:$0xff]   ;;  %v1979_v8 = vld [vmem:[%s2058_s28 + $0x1d0] ss:$8 sps:$4 sm:$0xff]  }
  0x25   : > { %710 = vmatpush1.bf16.msra.mxu0 %v1886_v9  ;;  %1861 = vmatpush1.bf16.msra.mxu1 %v1886_v9  ;;  %v1980_v9 = vld [vmem:[%s2058_s28 + $0xe4] ss:$8 sps:$4 sm:$0xff]  }
  0x26   : > { %711 = vmatprep.subr.bf16.mxu0 %v2000_v1  ;;  %1846 = vmatprep.subr.bf16.mxu1 %v2000_v1 }
  0x29   : > { %712 = vmatpush1.bf16.msra.mxu0 %v1887_v10  ;;  %1862 = vmatpush1.bf16.msra.mxu1 %v1887_v10  ;;  %v1982_v10 = vld [vmem:[%s2058_s28 + $0x1e4] ss:$8 sps:$4 sm:$0xff]  }
  0x2a   : > { %713 = vmatprep.subr.bf16.mxu0 %v2000_v1  ;;  %1847 = vmatprep.subr.bf16.mxu1 %v2000_v1 }
  0x2d   : > { %714 = vmatpush2.bf16.msra.mxu0 %v1888_v11  ;;  %1863 = vmatpush2.bf16.msra.mxu1 %v1888_v11  ;;  %v1984_v11 = vld [vmem:[%s2058_s28 + $0xe0] ss:$8 sps:$4 sm:$0xff]  }
  0x2e   : > { %715 = vmatprep.subr.bf16.mxu0 %v2000_v1  ;;  %1848 = vmatprep.subr.bf16.mxu1 %v2000_v1 }
  0x31   : > { %716 = vmatpush2.bf16.msra.mxu0 %v1889_v12  ;;  %1864 = vmatpush2.bf16.msra.mxu1 %v1889_v12  ;;  %v1985_v12 = vld [vmem:[%s2058_s28 + $0x1e0] ss:$8 sps:$4 sm:$0xff]  }
  0x32   : > { %717 = vmatprep.subr.bf16.mxu0 %v2000_v1  ;;  %1849 = vmatprep.subr.bf16.mxu1 %v2000_v1 }
  0x35   : > { %718 = vmatpush2.bf16.msra.mxu0 %v1890_v13  ;;  %1865 = vmatpush2.bf16.msra.mxu1 %v1890_v13  ;;  %v1986_v13 = vld [vmem:[%s2058_s28 + $0xf4] ss:$8 sps:$4 sm:$0xff]  }
  0x36   : > { %719 = vmatprep.subr.bf16.mxu0 %v2000_v1  ;;  %1850 = vmatprep.subr.bf16.mxu1 %v2000_v1 }
  0x39   : > { %720 = vmatpush2.bf16.msra.mxu0 %v1891_v14  ;;  %1866 = vmatpush2.bf16.msra.mxu1 %v1891_v14  ;;  %v1988_v14 = vld [vmem:[%s2058_s28 + $0x1f4] ss:$8 sps:$4 sm:$0xff]  }
  0x3a   : > { %721 = vmatprep.subr.bf16.mxu0 %v2000_v1  ;;  %1851 = vmatprep.subr.bf16.mxu1 %v2000_v1 }
  0x3d   : > { %722 = vmatpush2.bf16.msra.mxu0 %v1892_v15  ;;  %1867 = vmatpush2.bf16.msra.mxu1 %v1892_v15  ;;  %v1990_v15 = vld [vmem:[%s2058_s28 + $0xf0] ss:$8 sps:$4 sm:$0xff]  }
  0x3e   : > { %723 = vmatprep.subr.bf16.mxu0 %v2000_v1  ;;  %1852 = vmatprep.subr.bf16.mxu1 %v2000_v1 }
  0x41   : > { %724 = vmatpush2.bf16.msra.mxu0 %v1893_v16  ;;  %1868 = vmatpush2.bf16.msra.mxu1 %v1893_v16  ;;  %v1991_v16 = vld [vmem:[%s2058_s28 + $0x1f0] ss:$8 sps:$4 sm:$0xff]  }
  0x42   : > { %725 = vmatprep.subr.bf16.mxu0 %v2000_v1  ;;  %1853 = vmatprep.subr.bf16.mxu1 %v2000_v1 }
  0x45   : > { %726 = vmatpush2.bf16.msra.mxu0 %v1894_v17  ;;  %1869 = vmatpush2.bf16.msra.mxu1 %v1894_v17  ;;  %v2184_v17 = vld [vmem:[%s2293_s2] ss:$0 sm:$0xff] }
  0x46   : > { %727 = vmatprep.subr.bf16.mxu0 %v2000_v1  ;;  %1854 = vmatprep.subr.bf16.mxu1 %v2000_v1  ;;  %v1968_v1 = vld [vmem:[%s2058_s28 + $0xc4] ss:$8 sps:$4 sm:$0xff]  }
  0x49   : > { %728 = vmatpush2.bf16.msra.mxu0 %v1895_v18  ;;  %1870 = vmatpush2.bf16.msra.mxu1 %v1895_v18 }
  0x4c   : > { %730 = vmatmul.mubr.bf16.vlgmr.msra.gmra.mxu0 %v1896_v19  ;;  %858 = vmatmul.mubr.bf16.vlgmr.msra.gmra.mxu1 %v1899_v20 }
  0x4d   : > { %737 = vmatprep.mubr.bf16.mxu0 %v1902_v21  ;;  %865 = vmatprep.mubr.bf16.mxu1 %v1904_v22 }
  0x54   : > { %738 = vmatmul.mubr.bf16.gmra.mxu0 %v1906_v23  ;;  %866 = vmatmul.mubr.bf16.gmra.mxu1 %v1907_v24 }
  0x55   : > { %745 = vmatprep.mubr.bf16.mxu0 %v1908_v25  ;;  %873 = vmatprep.mubr.bf16.mxu1 %v1910_v26 }
  0x5c   : > { %746 = vmatmul.mubr.bf16.gmra.mxu0 %v1912_v27  ;;  %874 = vmatmul.mubr.bf16.gmra.mxu1 %v1913_v28 }
  0x5d   : > { %753 = vmatprep.mubr.bf16.mxu0 %v1914_v29  ;;  %881 = vmatprep.mubr.bf16.mxu1 %v1916_v30 }
  0x64   : > { %754 = vmatmul.mubr.bf16.gmra.mxu0 %v1918_v31  ;;  %882 = vmatmul.mubr.bf16.gmra.mxu1 %v1919_v32 }
  0x65   : > { %761 = vmatprep.mubr.bf16.mxu0 %v1920_v33  ;;  %889 = vmatprep.mubr.bf16.mxu1 %v1922_v34 }
  0x6c   : > { %762 = vmatmul.mubr.bf16.gmra.mxu0 %v1924_v35  ;;  %890 = vmatmul.mubr.bf16.gmra.mxu1 %v1925_v36 }
  0x6d   : > { %769 = vmatprep.mubr.bf16.mxu0 %v1926_v37  ;;  %897 = vmatprep.mubr.bf16.mxu1 %v1928_v38 }
  0x74   : > { %770 = vmatmul.mubr.bf16.gmra.mxu0 %v1930_v39  ;;  %898 = vmatmul.mubr.bf16.gmra.mxu1 %v1931_v40 }
  0x75   : > { %777 = vmatprep.mubr.bf16.mxu0 %v1932_v41  ;;  %905 = vmatprep.mubr.bf16.mxu1 %v1934_v42 }
  0x7c   : > { %778 = vmatmul.mubr.bf16.gmra.mxu0 %v1936_v43  ;;  %906 = vmatmul.mubr.bf16.gmra.mxu1 %v1937_v44 }
  0x7d   : > { %785 = vmatprep.mubr.bf16.mxu0 %v1938_v45  ;;  %913 = vmatprep.mubr.bf16.mxu1 %v1940_v46 }
  0x84   : > { %786 = vmatmul.mubr.bf16.gmra.mxu0 %v1942_v47  ;;  %914 = vmatmul.mubr.bf16.gmra.mxu1 %v1943_v48 }
  0x85   : > { %793 = vmatprep.mubr.bf16.mxu0 %v1944_v49  ;;  %921 = vmatprep.mubr.bf16.mxu1 %v1946_v50 }
  0x8c   : > { %794 = vmatmul.mubr.bf16.gmra.mxu0 %v1948_v51  ;;  %922 = vmatmul.mubr.bf16.gmra.mxu1 %v1949_v52 }
  0x8d   : > { %801 = vmatprep.mubr.bf16.mxu0 %v1950_v53  ;;  %929 = vmatprep.mubr.bf16.mxu1 %v1952_v54 }
  0x94   : > { %802 = vmatmul.mubr.bf16.gmra.mxu0 %v1954_v55  ;;  %930 = vmatmul.mubr.bf16.gmra.mxu1 %v1955_v56 }
  0x95   : > { %809 = vmatprep.mubr.bf16.mxu0 %v1956_v57  ;;  %937 = vmatprep.mubr.bf16.mxu1 %v1958_v58 }
  0x9c   : > { %810 = vmatmul.mubr.bf16.gmra.mxu0 %v1960_v59  ;;  %938 = vmatmul.mubr.bf16.gmra.mxu1 %v1961_v60 }
  0x9d   : > { %817 = vmatprep.mubr.bf16.mxu0 %v1962_v61  ;;  %945 = vmatprep.mubr.bf16.mxu1 %v1964_v62 }
  0xa4   : > { %818 = vmatmul.mubr.bf16.gmra.mxu0 %v1966_v63  ;;  %946 = vmatmul.mubr.bf16.gmra.mxu1 %v1967_v0 }
  0xa5   : > { %825 = vmatprep.mubr.bf16.mxu0 %v1968_v1  ;;  %953 = vmatprep.mubr.bf16.mxu1 %v1970_v2 }
  0xac   : > { %826 = vmatmul.mubr.bf16.gmra.mxu0 %v1972_v3  ;;  %954 = vmatmul.mubr.bf16.gmra.mxu1 %v1973_v4 }
  0xad   : > { %833 = vmatprep.mubr.bf16.mxu0 %v1974_v5  ;;  %961 = vmatprep.mubr.bf16.mxu1 %v1976_v6 }
  0xb4   : > { %834 = vmatmul.mubr.bf16.gmra.mxu0 %v1978_v7  ;;  %962 = vmatmul.mubr.bf16.gmra.mxu1 %v1979_v8 }
  0xb5   : > { %841 = vmatprep.mubr.bf16.mxu0 %v1980_v9  ;;  %969 = vmatprep.mubr.bf16.mxu1 %v1982_v10 }
  0xbc   : > { %842 = vmatmul.mubr.bf16.gmra.mxu0 %v1984_v11  ;;  %970 = vmatmul.mubr.bf16.gmra.mxu1 %v1985_v12 }
  0xbd   : > { %849 = vmatprep.mubr.bf16.mxu0 %v1986_v13  ;;  %977 = vmatprep.mubr.bf16.mxu1 %v1988_v14 }
  0xc4   : > { %850 = vmatmul.mubr.bf16.gmra.mxu0 %v1990_v15  ;;  %978 = vmatmul.mubr.bf16.gmra.mxu1 %v1991_v16 }
 0x10c   : > { %v731_v18 = vpop.f32.mrf.mxu0  ;;  %v859_v19 = vpop.f32.mrf.mxu1 }
 0x10d   : > { %v732_v22 = vadd.f32 %v2184_v17, %v731_v18  ;;  %v860_v23 = vadd.f32 %v2184_v17, %v859_v19 }
 0x10e   : > { %v733_v20 = vpop.f32.mrf.mxu0  ;;  %v861_v21 = vpop.f32.mrf.mxu1 }
 0x10f   : > { %v986_v30 = vmax.f32 %v732_v22, 0.0  ;;  %v1018_v31 = vmax.f32 %v860_v23, 0.0 }
 0x110   : > { %v734_v24 = vpop.f32.mrf.mxu0  ;;  %v862_v25 = vpop.f32.mrf.mxu1 }
 0x111   : > { %v735_v26 = vadd.f32 %v2184_v17, %v734_v24  ;;  %v863_v27 = vadd.f32 %v2184_v17, %v862_v25 }
 0x112   : > { %v736_v28 = vpop.f32.mrf.mxu0  ;;  %v864_v29 = vpop.f32.mrf.mxu1 }
 0x113   : > { %v987_v32 = vmax.f32 %v735_v26, 0.0  ;;  %v1019_v33 = vmax.f32 %v863_v27, 0.0 }
 0x114   : > { %v739_v34 = vpop.f32.mrf.mxu0  ;;  %v867_v35 = vpop.f32.mrf.mxu1 }
 0x115   : > { %v1651_v36 = vpack.c.bf16 %v987_v32, %v986_v30  ;;  %v1731_v37 = vpack.c.bf16 %v1019_v33, %v1018_v31  ;;  %v740_v40 = vadd.f32 %v2184_v17, %v739_v34  ;;  %v868_v41 = vadd.f32 %v2184_v17, %v867_v35 }
 0x116   : > { %v741_v38 = vpop.f32.mrf.mxu0  ;;  %v869_v39 = vpop.f32.mrf.mxu1 }
 0x117   : > { %1652 = vst [vmem:[%s2194_s4] sm:$0xff] %v1651_v36   ;;  %1823 = vst [vmem:[%s2194_s4 + $0x80] sm:$0xff] %v1731_v37   ;;  %v988_v48 = vmax.f32 %v740_v40, 0.0  ;;  %v1020_v49 = vmax.f32 %v868_v41, 0.0 }
 0x118   : > { %v742_v42 = vpop.f32.mrf.mxu0  ;;  %v870_v43 = vpop.f32.mrf.mxu1 }
 0x119   : > { %v743_v44 = vadd.f32 %v2184_v17, %v742_v42  ;;  %v871_v45 = vadd.f32 %v2184_v17, %v870_v43 }
 0x11a   : > { %v744_v46 = vpop.f32.mrf.mxu0  ;;  %v872_v47 = vpop.f32.mrf.mxu1 }
 0x11b   : > { %v989_v50 = vmax.f32 %v743_v44, 0.0  ;;  %v1021_v51 = vmax.f32 %v871_v45, 0.0 }
 0x11c   : > { %v747_v52 = vpop.f32.mrf.mxu0  ;;  %v875_v53 = vpop.f32.mrf.mxu1 }
 0x11d   : > { %v1656_v54 = vpack.c.bf16 %v989_v50, %v988_v48  ;;  %v1736_v55 = vpack.c.bf16 %v1021_v51, %v1020_v49  ;;  %v748_v58 = vadd.f32 %v2184_v17, %v747_v52  ;;  %v876_v59 = vadd.f32 %v2184_v17, %v875_v53 }
 0x11e   : > { %v749_v56 = vpop.f32.mrf.mxu0  ;;  %v877_v57 = vpop.f32.mrf.mxu1 }
 0x11f   : > { %1808 = vst [vmem:[%s2194_s4 + $0x8] sm:$0xff] %v1656_v54   ;;  %1824 = vst [vmem:[%s2194_s4 + $0x88] sm:$0xff] %v1736_v55   ;;  %v990_v2 = vmax.f32 %v748_v58, 0.0  ;;  %v1022_v3 = vmax.f32 %v876_v59, 0.0 }
 0x120   : > { %v750_v60 = vpop.f32.mrf.mxu0  ;;  %v878_v61 = vpop.f32.mrf.mxu1 }
 0x121   : > { %v751_v62 = vadd.f32 %v2184_v17, %v750_v60  ;;  %v879_v63 = vadd.f32 %v2184_v17, %v878_v61 }
 0x122   : > { %v752_v0 = vpop.f32.mrf.mxu0  ;;  %v880_v1 = vpop.f32.mrf.mxu1 }
 0x123   : > { %v991_v4 = vmax.f32 %v751_v62, 0.0  ;;  %v1023_v5 = vmax.f32 %v879_v63, 0.0 }
 0x124   : > { %v755_v6 = vpop.f32.mrf.mxu0  ;;  %v883_v7 = vpop.f32.mrf.mxu1 }
 0x125   : > { %v1661_v8 = vpack.c.bf16 %v991_v4, %v990_v2  ;;  %v1741_v9 = vpack.c.bf16 %v1023_v5, %v1022_v3  ;;  %v756_v12 = vadd.f32 %v2184_v17, %v755_v6  ;;  %v884_v13 = vadd.f32 %v2184_v17, %v883_v7 }
 0x126   : > { %v757_v10 = vpop.f32.mrf.mxu0  ;;  %v885_v11 = vpop.f32.mrf.mxu1 }
 0x127   : > { %1809 = vst [vmem:[%s2194_s4 + $0x10] sm:$0xff] %v1661_v8   ;;  %1825 = vst [vmem:[%s2194_s4 + $0x90] sm:$0xff] %v1741_v9   ;;  %v992_v21 = vmax.f32 %v756_v12, 0.0  ;;  %v1024_v22 = vmax.f32 %v884_v13, 0.0 }
 0x128   : > { %v758_v14 = vpop.f32.mrf.mxu0  ;;  %v886_v15 = vpop.f32.mrf.mxu1 }
 0x129   : > { %v759_v16 = vadd.f32 %v2184_v17, %v758_v14  ;;  %v887_v18 = vadd.f32 %v2184_v17, %v886_v15 }
 0x12a   : > { %v760_v19 = vpop.f32.mrf.mxu0  ;;  %v888_v20 = vpop.f32.mrf.mxu1 }
 0x12b   : > { %v993_v23 = vmax.f32 %v759_v16, 0.0  ;;  %v1025_v24 = vmax.f32 %v887_v18, 0.0 }
 0x12c   : > { %v763_v25 = vpop.f32.mrf.mxu0  ;;  %v891_v26 = vpop.f32.mrf.mxu1 }
 0x12d   : > { %v1666_v27 = vpack.c.bf16 %v993_v23, %v992_v21  ;;  %v1746_v28 = vpack.c.bf16 %v1025_v24, %v1024_v22  ;;  %v764_v31 = vadd.f32 %v2184_v17, %v763_v25  ;;  %v892_v32 = vadd.f32 %v2184_v17, %v891_v26 }
 0x12e   : > { %v765_v29 = vpop.f32.mrf.mxu0  ;;  %v893_v30 = vpop.f32.mrf.mxu1 }
 0x12f   : > { %1810 = vst [vmem:[%s2194_s4 + $0x18] sm:$0xff] %v1666_v27   ;;  %1826 = vst [vmem:[%s2194_s4 + $0x98] sm:$0xff] %v1746_v28   ;;  %v994_v39 = vmax.f32 %v764_v31, 0.0  ;;  %v1026_v40 = vmax.f32 %v892_v32, 0.0 }
 0x130   : > { %v766_v33 = vpop.f32.mrf.mxu0  ;;  %v894_v34 = vpop.f32.mrf.mxu1 }
 0x131   : > { %v767_v35 = vadd.f32 %v2184_v17, %v766_v33  ;;  %v895_v36 = vadd.f32 %v2184_v17, %v894_v34 }
 0x132   : > { %v768_v37 = vpop.f32.mrf.mxu0  ;;  %v896_v38 = vpop.f32.mrf.mxu1 }
 0x133   : > { %v995_v41 = vmax.f32 %v767_v35, 0.0  ;;  %v1027_v42 = vmax.f32 %v895_v36, 0.0 }
 0x134   : > { %v771_v43 = vpop.f32.mrf.mxu0  ;;  %v899_v44 = vpop.f32.mrf.mxu1 }
 0x135   : > { %v1671_v45 = vpack.c.bf16 %v995_v41, %v994_v39  ;;  %v1751_v46 = vpack.c.bf16 %v1027_v42, %v1026_v40  ;;  %v772_v49 = vadd.f32 %v2184_v17, %v771_v43  ;;  %v900_v50 = vadd.f32 %v2184_v17, %v899_v44 }
 0x136   : > { %v773_v47 = vpop.f32.mrf.mxu0  ;;  %v901_v48 = vpop.f32.mrf.mxu1 }
 0x137   : > { %1811 = vst [vmem:[%s2194_s4 + $0x20] sm:$0xff] %v1671_v45   ;;  %1827 = vst [vmem:[%s2194_s4 + $0xa0] sm:$0xff] %v1751_v46   ;;  %v996_v57 = vmax.f32 %v772_v49, 0.0  ;;  %v1028_v58 = vmax.f32 %v900_v50, 0.0 }
 0x138   : > { %v774_v51 = vpop.f32.mrf.mxu0  ;;  %v902_v52 = vpop.f32.mrf.mxu1 }
 0x139   : > { %v775_v53 = vadd.f32 %v2184_v17, %v774_v51  ;;  %v903_v54 = vadd.f32 %v2184_v17, %v902_v52 }
 0x13a   : > { %v776_v55 = vpop.f32.mrf.mxu0  ;;  %v904_v56 = vpop.f32.mrf.mxu1 }
 0x13b   : > { %v997_v59 = vmax.f32 %v775_v53, 0.0  ;;  %v1029_v60 = vmax.f32 %v903_v54, 0.0 }
 0x13c   : > { %v779_v61 = vpop.f32.mrf.mxu0  ;;  %v907_v62 = vpop.f32.mrf.mxu1 }
 0x13d   : > { %v1676_v63 = vpack.c.bf16 %v997_v59, %v996_v57  ;;  %v1756_v0 = vpack.c.bf16 %v1029_v60, %v1028_v58  ;;  %v780_v3 = vadd.f32 %v2184_v17, %v779_v61  ;;  %v908_v4 = vadd.f32 %v2184_v17, %v907_v62 }
 0x13e   : > { %v781_v1 = vpop.f32.mrf.mxu0  ;;  %v909_v2 = vpop.f32.mrf.mxu1 }
 0x13f   : > { %1812 = vst [vmem:[%s2194_s4 + $0x28] sm:$0xff] %v1676_v63   ;;  %1828 = vst [vmem:[%s2194_s4 + $0xa8] sm:$0xff] %v1756_v0   ;;  %v998_v11 = vmax.f32 %v780_v3, 0.0  ;;  %v1030_v12 = vmax.f32 %v908_v4, 0.0 }
 0x140   : > { %v782_v5 = vpop.f32.mrf.mxu0  ;;  %v910_v6 = vpop.f32.mrf.mxu1 }
 0x141   : > { %v783_v7 = vadd.f32 %v2184_v17, %v782_v5  ;;  %v911_v8 = vadd.f32 %v2184_v17, %v910_v6 }
 0x142   : > { %v784_v9 = vpop.f32.mrf.mxu0  ;;  %v912_v10 = vpop.f32.mrf.mxu1 }
 0x143   : > { %v999_v13 = vmax.f32 %v783_v7, 0.0  ;;  %v1031_v14 = vmax.f32 %v911_v8, 0.0 }
 0x144   : > { %v787_v15 = vpop.f32.mrf.mxu0  ;;  %v915_v16 = vpop.f32.mrf.mxu1 }
 0x145   : > { %v1681_v18 = vpack.c.bf16 %v999_v13, %v998_v11  ;;  %v1761_v19 = vpack.c.bf16 %v1031_v14, %v1030_v12  ;;  %v788_v22 = vadd.f32 %v2184_v17, %v787_v15  ;;  %v916_v23 = vadd.f32 %v2184_v17, %v915_v16 }
 0x146   : > { %v789_v20 = vpop.f32.mrf.mxu0  ;;  %v917_v21 = vpop.f32.mrf.mxu1 }
 0x147   : > { %1813 = vst [vmem:[%s2194_s4 + $0x30] sm:$0xff] %v1681_v18   ;;  %1829 = vst [vmem:[%s2194_s4 + $0xb0] sm:$0xff] %v1761_v19   ;;  %v1000_v30 = vmax.f32 %v788_v22, 0.0  ;;  %v1032_v31 = vmax.f32 %v916_v23, 0.0 }
 0x148   : > { %v790_v24 = vpop.f32.mrf.mxu0  ;;  %v918_v25 = vpop.f32.mrf.mxu1 }
 0x149   : > { %v791_v26 = vadd.f32 %v2184_v17, %v790_v24  ;;  %v919_v27 = vadd.f32 %v2184_v17, %v918_v25 }
 0x14a   : > { %v792_v28 = vpop.f32.mrf.mxu0  ;;  %v920_v29 = vpop.f32.mrf.mxu1 }
 0x14b   : > { %v1001_v32 = vmax.f32 %v791_v26, 0.0  ;;  %v1033_v33 = vmax.f32 %v919_v27, 0.0 }
 0x14c   : > { %v795_v34 = vpop.f32.mrf.mxu0  ;;  %v923_v35 = vpop.f32.mrf.mxu1 }
 0x14d   : > { %v1686_v36 = vpack.c.bf16 %v1001_v32, %v1000_v30  ;;  %v1766_v37 = vpack.c.bf16 %v1033_v33, %v1032_v31  ;;  %v796_v40 = vadd.f32 %v2184_v17, %v795_v34  ;;  %v924_v41 = vadd.f32 %v2184_v17, %v923_v35 }
 0x14e   : > { %v797_v38 = vpop.f32.mrf.mxu0  ;;  %v925_v39 = vpop.f32.mrf.mxu1 }
 0x14f   : > { %1814 = vst [vmem:[%s2194_s4 + $0x38] sm:$0xff] %v1686_v36   ;;  %1830 = vst [vmem:[%s2194_s4 + $0xb8] sm:$0xff] %v1766_v37   ;;  %v1002_v48 = vmax.f32 %v796_v40, 0.0  ;;  %v1034_v49 = vmax.f32 %v924_v41, 0.0 }
 0x150   : > { %v798_v42 = vpop.f32.mrf.mxu0  ;;  %v926_v43 = vpop.f32.mrf.mxu1 }
 0x151   : > { %v799_v44 = vadd.f32 %v2184_v17, %v798_v42  ;;  %v927_v45 = vadd.f32 %v2184_v17, %v926_v43 }
 0x152   : > { %v800_v46 = vpop.f32.mrf.mxu0  ;;  %v928_v47 = vpop.f32.mrf.mxu1 }
 0x153   : > { %v1003_v50 = vmax.f32 %v799_v44, 0.0  ;;  %v1035_v51 = vmax.f32 %v927_v45, 0.0 }
 0x154   : > { %v803_v52 = vpop.f32.mrf.mxu0  ;;  %v931_v53 = vpop.f32.mrf.mxu1 }
 0x155   : > { %v1691_v54 = vpack.c.bf16 %v1003_v50, %v1002_v48  ;;  %v1771_v55 = vpack.c.bf16 %v1035_v51, %v1034_v49  ;;  %v804_v58 = vadd.f32 %v2184_v17, %v803_v52  ;;  %v932_v59 = vadd.f32 %v2184_v17, %v931_v53 }
 0x156   : > { %v805_v56 = vpop.f32.mrf.mxu0  ;;  %v933_v57 = vpop.f32.mrf.mxu1 }
 0x157   : > { %1815 = vst [vmem:[%s2194_s4 + $0x40] sm:$0xff] %v1691_v54   ;;  %1831 = vst [vmem:[%s2194_s4 + $0xc0] sm:$0xff] %v1771_v55   ;;  %v1004_v2 = vmax.f32 %v804_v58, 0.0  ;;  %v1036_v3 = vmax.f32 %v932_v59, 0.0 }
 0x158   : > { %v806_v60 = vpop.f32.mrf.mxu0  ;;  %v934_v61 = vpop.f32.mrf.mxu1 }
 0x159   : > { %v807_v62 = vadd.f32 %v2184_v17, %v806_v60  ;;  %v935_v63 = vadd.f32 %v2184_v17, %v934_v61 }
 0x15a   : > { %v808_v0 = vpop.f32.mrf.mxu0  ;;  %v936_v1 = vpop.f32.mrf.mxu1 }
 0x15b   : > { %v1005_v4 = vmax.f32 %v807_v62, 0.0  ;;  %v1037_v5 = vmax.f32 %v935_v63, 0.0 }
 0x15c   : > { %v811_v6 = vpop.f32.mrf.mxu0  ;;  %v939_v7 = vpop.f32.mrf.mxu1 }
 0x15d   : > { %v1696_v8 = vpack.c.bf16 %v1005_v4, %v1004_v2  ;;  %v1776_v9 = vpack.c.bf16 %v1037_v5, %v1036_v3  ;;  %v812_v12 = vadd.f32 %v2184_v17, %v811_v6  ;;  %v940_v13 = vadd.f32 %v2184_v17, %v939_v7 }
 0x15e   : > { %v813_v10 = vpop.f32.mrf.mxu0  ;;  %v941_v11 = vpop.f32.mrf.mxu1 }
 0x15f   : > { %1816 = vst [vmem:[%s2194_s4 + $0x48] sm:$0xff] %v1696_v8   ;;  %1832 = vst [vmem:[%s2194_s4 + $0xc8] sm:$0xff] %v1776_v9   ;;  %v1006_v21 = vmax.f32 %v812_v12, 0.0  ;;  %v1038_v22 = vmax.f32 %v940_v13, 0.0 }
 0x160   : > { %v814_v14 = vpop.f32.mrf.mxu0  ;;  %v942_v15 = vpop.f32.mrf.mxu1 }
 0x161   : > { %v815_v16 = vadd.f32 %v2184_v17, %v814_v14  ;;  %v943_v18 = vadd.f32 %v2184_v17, %v942_v15 }
 0x162   : > { %v816_v19 = vpop.f32.mrf.mxu0  ;;  %v944_v20 = vpop.f32.mrf.mxu1 }
 0x163   : > { %v1007_v23 = vmax.f32 %v815_v16, 0.0  ;;  %v1039_v24 = vmax.f32 %v943_v18, 0.0 }
 0x164   : > { %v819_v25 = vpop.f32.mrf.mxu0  ;;  %v947_v26 = vpop.f32.mrf.mxu1 }
 0x165   : > { %v1701_v27 = vpack.c.bf16 %v1007_v23, %v1006_v21  ;;  %v1781_v28 = vpack.c.bf16 %v1039_v24, %v1038_v22  ;;  %v820_v31 = vadd.f32 %v2184_v17, %v819_v25  ;;  %v948_v32 = vadd.f32 %v2184_v17, %v947_v26 }
 0x166   : > { %v821_v29 = vpop.f32.mrf.mxu0  ;;  %v949_v30 = vpop.f32.mrf.mxu1 }
 0x167   : > { %1817 = vst [vmem:[%s2194_s4 + $0x50] sm:$0xff] %v1701_v27   ;;  %1833 = vst [vmem:[%s2194_s4 + $0xd0] sm:$0xff] %v1781_v28   ;;  %v1008_v39 = vmax.f32 %v820_v31, 0.0  ;;  %v1040_v40 = vmax.f32 %v948_v32, 0.0 }
 0x168   : > { %v822_v33 = vpop.f32.mrf.mxu0  ;;  %v950_v34 = vpop.f32.mrf.mxu1 }
 0x169   : > { %v823_v35 = vadd.f32 %v2184_v17, %v822_v33  ;;  %v951_v36 = vadd.f32 %v2184_v17, %v950_v34 }
 0x16a   : > { %v824_v37 = vpop.f32.mrf.mxu0  ;;  %v952_v38 = vpop.f32.mrf.mxu1 }
 0x16b   : > { %v1009_v41 = vmax.f32 %v823_v35, 0.0  ;;  %v1041_v42 = vmax.f32 %v951_v36, 0.0 }
 0x16c   : > { %v827_v43 = vpop.f32.mrf.mxu0  ;;  %v955_v44 = vpop.f32.mrf.mxu1 }
 0x16d   : > { %v1706_v45 = vpack.c.bf16 %v1009_v41, %v1008_v39  ;;  %v1786_v46 = vpack.c.bf16 %v1041_v42, %v1040_v40  ;;  %v828_v49 = vadd.f32 %v2184_v17, %v827_v43  ;;  %v956_v50 = vadd.f32 %v2184_v17, %v955_v44 }
 0x16e   : > { %v829_v47 = vpop.f32.mrf.mxu0  ;;  %v957_v48 = vpop.f32.mrf.mxu1 }
 0x16f   : > { %1818 = vst [vmem:[%s2194_s4 + $0x58] sm:$0xff] %v1706_v45   ;;  %1834 = vst [vmem:[%s2194_s4 + $0xd8] sm:$0xff] %v1786_v46   ;;  %v1010_v57 = vmax.f32 %v828_v49, 0.0  ;;  %v1042_v58 = vmax.f32 %v956_v50, 0.0 }
 0x170   : > { %v830_v51 = vpop.f32.mrf.mxu0  ;;  %v958_v52 = vpop.f32.mrf.mxu1 }
 0x171   : > { %v831_v53 = vadd.f32 %v2184_v17, %v830_v51  ;;  %v959_v54 = vadd.f32 %v2184_v17, %v958_v52 }
 0x172   : > { %v832_v55 = vpop.f32.mrf.mxu0  ;;  %v960_v56 = vpop.f32.mrf.mxu1 }
 0x173   : > { %v1011_v59 = vmax.f32 %v831_v53, 0.0  ;;  %v1043_v60 = vmax.f32 %v959_v54, 0.0 }
 0x174   : > { %v835_v61 = vpop.f32.mrf.mxu0  ;;  %v963_v62 = vpop.f32.mrf.mxu1 }
 0x175   : > { %v1711_v63 = vpack.c.bf16 %v1011_v59, %v1010_v57  ;;  %v1791_v0 = vpack.c.bf16 %v1043_v60, %v1042_v58  ;;  %v836_v3 = vadd.f32 %v2184_v17, %v835_v61  ;;  %v964_v4 = vadd.f32 %v2184_v17, %v963_v62 }
 0x176   : > { %v837_v1 = vpop.f32.mrf.mxu0  ;;  %v965_v2 = vpop.f32.mrf.mxu1 }
 0x177   : > { %1819 = vst [vmem:[%s2194_s4 + $0x60] sm:$0xff] %v1711_v63   ;;  %1835 = vst [vmem:[%s2194_s4 + $0xe0] sm:$0xff] %v1791_v0   ;;  %v1012_v11 = vmax.f32 %v836_v3, 0.0  ;;  %v1044_v12 = vmax.f32 %v964_v4, 0.0 }
 0x178   : > { %v838_v5 = vpop.f32.mrf.mxu0  ;;  %v966_v6 = vpop.f32.mrf.mxu1 }
 0x179   : > { %v839_v7 = vadd.f32 %v2184_v17, %v838_v5  ;;  %v967_v8 = vadd.f32 %v2184_v17, %v966_v6 }
 0x17a   : > { %v840_v9 = vpop.f32.mrf.mxu0  ;;  %v968_v10 = vpop.f32.mrf.mxu1 }
 0x17b   : > { %v1013_v13 = vmax.f32 %v839_v7, 0.0  ;;  %v1045_v14 = vmax.f32 %v967_v8, 0.0 }
 0x17c   : > { %v843_v15 = vpop.f32.mrf.mxu0  ;;  %v971_v16 = vpop.f32.mrf.mxu1 }
 0x17d   : > { %v1716_v18 = vpack.c.bf16 %v1013_v13, %v1012_v11  ;;  %v1796_v19 = vpack.c.bf16 %v1045_v14, %v1044_v12  ;;  %v844_v22 = vadd.f32 %v2184_v17, %v843_v15  ;;  %v972_v23 = vadd.f32 %v2184_v17, %v971_v16 }
 0x17e   : > { %v845_v20 = vpop.f32.mrf.mxu0  ;;  %v973_v21 = vpop.f32.mrf.mxu1 }
 0x17f   : > { %1820 = vst [vmem:[%s2194_s4 + $0x68] sm:$0xff] %v1716_v18   ;;  %1836 = vst [vmem:[%s2194_s4 + $0xe8] sm:$0xff] %v1796_v19   ;;  %v1014_v30 = vmax.f32 %v844_v22, 0.0  ;;  %v1046_v31 = vmax.f32 %v972_v23, 0.0 }
 0x180   : > { %v846_v24 = vpop.f32.mrf.mxu0  ;;  %v974_v25 = vpop.f32.mrf.mxu1 }
 0x181   : > { %v847_v26 = vadd.f32 %v2184_v17, %v846_v24  ;;  %v975_v27 = vadd.f32 %v2184_v17, %v974_v25 }
 0x182   : > { %v848_v28 = vpop.f32.mrf.mxu0  ;;  %v976_v29 = vpop.f32.mrf.mxu1 }
 0x183   : > { %v1015_v32 = vmax.f32 %v847_v26, 0.0  ;;  %v1047_v33 = vmax.f32 %v975_v27, 0.0 }
 0x184   : > { %v851_v34 = vpop.f32.mrf.mxu0  ;;  %v979_v35 = vpop.f32.mrf.mxu1 }
 0x185   : > { %v1721_v36 = vpack.c.bf16 %v1015_v32, %v1014_v30  ;;  %v1801_v37 = vpack.c.bf16 %v1047_v33, %v1046_v31  ;;  %v852_v40 = vadd.f32 %v2184_v17, %v851_v34  ;;  %v980_v41 = vadd.f32 %v2184_v17, %v979_v35 }
 0x186   : > { %v853_v38 = vpop.f32.mrf.mxu0  ;;  %v981_v39 = vpop.f32.mrf.mxu1 }
 0x187   : > { %1821 = vst [vmem:[%s2194_s4 + $0x70] sm:$0xff] %v1721_v36   ;;  %1837 = vst [vmem:[%s2194_s4 + $0xf0] sm:$0xff] %v1801_v37   ;;  %v1016_v48 = vmax.f32 %v852_v40, 0.0  ;;  %v1048_v49 = vmax.f32 %v980_v41, 0.0 }
 0x188   : > { %v854_v42 = vpop.f32.mrf.mxu0  ;;  %v982_v43 = vpop.f32.mrf.mxu1 }
 0x189   : > { %v855_v44 = vadd.f32 %v2184_v17, %v854_v42  ;;  %v983_v45 = vadd.f32 %v2184_v17, %v982_v43 }
 0x18a   : > { %v856_v46 = vpop.f32.mrf.mxu0  ;;  %v984_v47 = vpop.f32.mrf.mxu1 }
 0x18b   : > { %v1017_v50 = vmax.f32 %v855_v44, 0.0  ;;  %v1049_v51 = vmax.f32 %v983_v45, 0.0 }
 0x18d   : > { %v1726_v52 = vpack.c.bf16 %v1017_v50, %v1016_v48  ;;  %v1806_v53 = vpack.c.bf16 %v1049_v51, %v1048_v49 }
 0x18f   : > { %1822 = vst [vmem:[%s2194_s4 + $0x78] sm:$0xff] %v1726_v52   ;;  %1838 = vst [vmem:[%s2194_s4 + $0xf8] sm:$0xff] %v1806_v53  }
 0x190 PF: > { %s13_s12 = sadd.s32 1, %s1998_s12  }
 0x191   : > { %p10_p4 = scmp.ge.s32.totalorder %s13_s12, 6  }
 0x193   :  { %12 = sbr.rel (!%p10_p4) target bundleno = 1 (0x1), region = 62 }

// kernel: jersey_number_classifier_forward.20
= control target key start
LH: loop header
LB: loop body
LE: loop exit
PB: predicated region body
PF: predicated region fallthrough
CT: control target
= control target key end

     0   :  { %s1348_s6 = smov 0   ;;  %s1350_s7 = smov 0   ;;  %s1708_s0 = inlined_call_operand.vmem [shape: bf16[9,512,128], index: 0, kind: input, shape index: {}]   ;;  %s1709_s1 = inlined_call_operand.vmem [shape: bf16[512,128], index: 1, kind: output, shape index: {}]  }
   0x1   :  { %s1352_s8 = smov 0  }
   0x2 LB: > { %s1093_s9 = sadd.s32 4294967295, %s1336_s8   ;;  %s1365_s10 = sadd.s32 1, %s1336_s8   ;;  %s1336_s8 = sphi %s1352_s8, %s1712_s8   ;;  %s1332_s7 = sphi %s1350_s7, %s1711_s7   ;;  %s1328_s6 = sphi %s1348_s6, %s1710_s6  }
   0x3   : > { %s15_s11 = ssub.s32 %s1336_s8, %s1365_s10  ;;  %s18_s12 = sadd.s32 1, %s1332_s7 }
   0x4   : > { %p16_p0 = scmp.eq.s32.totalorder %s15_s11, 0  ;;  %p25_p1 = scmp.ne.s32.totalorder %s1332_s7, %s1328_s6 }
   0x5   : > { %p26_p2 = scmp.eq.s32.totalorder %s1336_s8, 0  ;;  %p1096_p4 = scmp.ge.s32.totalorder %s1336_s8, 4 }
   0x6   : > { %s1374_s13 = scalar_select %p16_p0, %s1332_s7, %s18_s12  }
   0x7   : > { %p27_p3 = por %p26_p2, %p25_p1  ;;  %77 = sbr.rel (%p1096_p4) target bundleno = 53 (0x35), region = 16 }
   0xc   : > { %80 = sbr.rel (!%p27_p3) target bundleno = 53 (0x35), region = 20  ;;  %s82_s14 = sand.u32 (%p27_p3), 1, %s1332_s7  }
   0xd   : > { %s1232_s15 = sshll.u32 (%p27_p3), %s1336_s8, 6  ;;  %s1288_s16 = smul.u32 (%p27_p3), 576, %s82_s14 }
   0xe   : > { %s1382_s19 = scalar_lea.vmem (%p27_p3), %s1708_s0, %s1232_s15 }
   0xf   : > { %v104_v0 = vld [vmem:[%s1382_s19] sm:$0xff] (%p27_p3)   ;;  %v108_v1 = vld [vmem:[%s1382_s19 + $0x8] sm:$0xff] (%p27_p3)   ;;  %v112_v2 = vld [vmem:[%s1382_s19 + $0x10] sm:$0xff] (%p27_p3)   ;;  %s1390_s20 = scalar_lea.vmem (%p27_p3), [#allocation2], %s1288_s16 }
  0x10   : > { %v116_v3 = vld [vmem:[%s1382_s19 + $0x18] sm:$0xff] (%p27_p3)   ;;  %v120_v4 = vld [vmem:[%s1382_s19 + $0x20] sm:$0xff] (%p27_p3)   ;;  %v124_v5 = vld [vmem:[%s1382_s19 + $0x28] sm:$0xff] (%p27_p3)   ;;  %105 = vst [vmem:[%s1390_s20] sm:$0xff] (%p27_p3), %v104_v0  }
  0x11   : > { %109 = vst [vmem:[%s1390_s20 + $0x8] sm:$0xff] %v108_v1   ;;  %113 = vst [vmem:[%s1390_s20 + $0x10] sm:$0xff] %v112_v2   ;;  %v128_v6 = vld [vmem:[%s1382_s19 + $0x30] sm:$0xff]   ;;  %v132_v7 = vld [vmem:[%s1382_s19 + $0x38] sm:$0xff]  }
  0x12   : > { %117 = vst [vmem:[%s1390_s20 + $0x18] sm:$0xff] %v116_v3   ;;  %121 = vst [vmem:[%s1390_s20 + $0x20] sm:$0xff] %v120_v4   ;;  %v136_v8 = vld [vmem:[%s1382_s19 + $0x100] sm:$0xff]   ;;  %v140_v9 = vld [vmem:[%s1382_s19 + $0x108] sm:$0xff]  }
  0x13   : > { %125 = vst [vmem:[%s1390_s20 + $0x28] sm:$0xff] %v124_v5   ;;  %129 = vst [vmem:[%s1390_s20 + $0x30] sm:$0xff] %v128_v6   ;;  %v144_v10 = vld [vmem:[%s1382_s19 + $0x110] sm:$0xff]   ;;  %v148_v11 = vld [vmem:[%s1382_s19 + $0x118] sm:$0xff]  }
  0x14   : > { %133 = vst [vmem:[%s1390_s20 + $0x38] sm:$0xff] %v132_v7   ;;  %137 = vst [vmem:[%s1390_s20 + $0x40] sm:$0xff] %v136_v8   ;;  %v152_v12 = vld [vmem:[%s1382_s19 + $0x120] sm:$0xff]   ;;  %v156_v13 = vld [vmem:[%s1382_s19 + $0x128] sm:$0xff]  }
  0x15   : > { %141 = vst [vmem:[%s1390_s20 + $0x48] sm:$0xff] %v140_v9   ;;  %145 = vst [vmem:[%s1390_s20 + $0x50] sm:$0xff] %v144_v10   ;;  %v160_v14 = vld [vmem:[%s1382_s19 + $0x130] sm:$0xff]   ;;  %v164_v15 = vld [vmem:[%s1382_s19 + $0x138] sm:$0xff]  }
  0x16   : > { %149 = vst [vmem:[%s1390_s20 + $0x58] sm:$0xff] %v148_v11   ;;  %153 = vst [vmem:[%s1390_s20 + $0x60] sm:$0xff] %v152_v12   ;;  %v168_v16 = vld [vmem:[%s1382_s19 + $0x200] sm:$0xff]   ;;  %v172_v17 = vld [vmem:[%s1382_s19 + $0x208] sm:$0xff]  }
  0x17   : > { %157 = vst [vmem:[%s1390_s20 + $0x68] sm:$0xff] %v156_v13   ;;  %161 = vst [vmem:[%s1390_s20 + $0x70] sm:$0xff] %v160_v14   ;;  %v176_v18 = vld [vmem:[%s1382_s19 + $0x210] sm:$0xff]   ;;  %v180_v19 = vld [vmem:[%s1382_s19 + $0x218] sm:$0xff]  }
  0x18   : > { %165 = vst [vmem:[%s1390_s20 + $0x78] sm:$0xff] %v164_v15   ;;  %169 = vst [vmem:[%s1390_s20 + $0x80] sm:$0xff] %v168_v16   ;;  %v184_v20 = vld [vmem:[%s1382_s19 + $0x220] sm:$0xff]   ;;  %v188_v21 = vld [vmem:[%s1382_s19 + $0x228] sm:$0xff]  }
  0x19   : > { %173 = vst [vmem:[%s1390_s20 + $0x88] sm:$0xff] %v172_v17   ;;  %177 = vst [vmem:[%s1390_s20 + $0x90] sm:$0xff] %v176_v18   ;;  %v192_v22 = vld [vmem:[%s1382_s19 + $0x230] sm:$0xff]   ;;  %v196_v23 = vld [vmem:[%s1382_s19 + $0x238] sm:$0xff]  }
  0x1a   : > { %181 = vst [vmem:[%s1390_s20 + $0x98] sm:$0xff] %v180_v19   ;;  %185 = vst [vmem:[%s1390_s20 + $0xa0] sm:$0xff] %v184_v20   ;;  %v200_v24 = vld [vmem:[%s1382_s19 + $0x300] sm:$0xff]   ;;  %v204_v25 = vld [vmem:[%s1382_s19 + $0x308] sm:$0xff]  }
  0x1b   : > { %189 = vst [vmem:[%s1390_s20 + $0xa8] sm:$0xff] %v188_v21   ;;  %193 = vst [vmem:[%s1390_s20 + $0xb0] sm:$0xff] %v192_v22   ;;  %v208_v26 = vld [vmem:[%s1382_s19 + $0x310] sm:$0xff]   ;;  %v212_v27 = vld [vmem:[%s1382_s19 + $0x318] sm:$0xff]  }
  0x1c   : > { %197 = vst [vmem:[%s1390_s20 + $0xb8] sm:$0xff] %v196_v23   ;;  %201 = vst [vmem:[%s1390_s20 + $0xc0] sm:$0xff] %v200_v24   ;;  %v216_v28 = vld [vmem:[%s1382_s19 + $0x320] sm:$0xff]   ;;  %v220_v29 = vld [vmem:[%s1382_s19 + $0x328] sm:$0xff]  }
  0x1d   : > { %205 = vst [vmem:[%s1390_s20 + $0xc8] sm:$0xff] %v204_v25   ;;  %209 = vst [vmem:[%s1390_s20 + $0xd0] sm:$0xff] %v208_v26   ;;  %v224_v30 = vld [vmem:[%s1382_s19 + $0x330] sm:$0xff]   ;;  %v228_v31 = vld [vmem:[%s1382_s19 + $0x338] sm:$0xff]  }
  0x1e   : > { %213 = vst [vmem:[%s1390_s20 + $0xd8] sm:$0xff] %v212_v27   ;;  %217 = vst [vmem:[%s1390_s20 + $0xe0] sm:$0xff] %v216_v28   ;;  %v232_v32 = vld [vmem:[%s1382_s19 + $0x400] sm:$0xff]   ;;  %v236_v33 = vld [vmem:[%s1382_s19 + $0x408] sm:$0xff]  }
  0x1f   : > { %221 = vst [vmem:[%s1390_s20 + $0xe8] sm:$0xff] %v220_v29   ;;  %225 = vst [vmem:[%s1390_s20 + $0xf0] sm:$0xff] %v224_v30   ;;  %v240_v34 = vld [vmem:[%s1382_s19 + $0x410] sm:$0xff]   ;;  %v244_v35 = vld [vmem:[%s1382_s19 + $0x418] sm:$0xff]  }
  0x20   : > { %229 = vst [vmem:[%s1390_s20 + $0xf8] sm:$0xff] %v228_v31   ;;  %233 = vst [vmem:[%s1390_s20 + $0x100] sm:$0xff] %v232_v32   ;;  %v248_v36 = vld [vmem:[%s1382_s19 + $0x420] sm:$0xff]   ;;  %v252_v37 = vld [vmem:[%s1382_s19 + $0x428] sm:$0xff]  }
  0x21   : > { %237 = vst [vmem:[%s1390_s20 + $0x108] sm:$0xff] %v236_v33   ;;  %241 = vst [vmem:[%s1390_s20 + $0x110] sm:$0xff] %v240_v34   ;;  %v256_v38 = vld [vmem:[%s1382_s19 + $0x430] sm:$0xff]   ;;  %v260_v39 = vld [vmem:[%s1382_s19 + $0x438] sm:$0xff]  }
  0x22   : > { %245 = vst [vmem:[%s1390_s20 + $0x118] sm:$0xff] %v244_v35   ;;  %249 = vst [vmem:[%s1390_s20 + $0x120] sm:$0xff] %v248_v36   ;;  %v264_v40 = vld [vmem:[%s1382_s19 + $0x500] sm:$0xff]   ;;  %v268_v41 = vld [vmem:[%s1382_s19 + $0x508] sm:$0xff]  }
  0x23   : > { %253 = vst [vmem:[%s1390_s20 + $0x128] sm:$0xff] %v252_v37   ;;  %257 = vst [vmem:[%s1390_s20 + $0x130] sm:$0xff] %v256_v38   ;;  %v272_v42 = vld [vmem:[%s1382_s19 + $0x510] sm:$0xff]   ;;  %v276_v43 = vld [vmem:[%s1382_s19 + $0x518] sm:$0xff]  }
  0x24   : > { %261 = vst [vmem:[%s1390_s20 + $0x138] sm:$0xff] %v260_v39   ;;  %265 = vst [vmem:[%s1390_s20 + $0x140] sm:$0xff] %v264_v40   ;;  %v280_v44 = vld [vmem:[%s1382_s19 + $0x520] sm:$0xff]   ;;  %v284_v45 = vld [vmem:[%s1382_s19 + $0x528] sm:$0xff]  }
  0x25   : > { %269 = vst [vmem:[%s1390_s20 + $0x148] sm:$0xff] %v268_v41   ;;  %273 = vst [vmem:[%s1390_s20 + $0x150] sm:$0xff] %v272_v42   ;;  %v288_v46 = vld [vmem:[%s1382_s19 + $0x530] sm:$0xff]   ;;  %v292_v47 = vld [vmem:[%s1382_s19 + $0x538] sm:$0xff]  }
  0x26   : > { %277 = vst [vmem:[%s1390_s20 + $0x158] sm:$0xff] %v276_v43   ;;  %281 = vst [vmem:[%s1390_s20 + $0x160] sm:$0xff] %v280_v44   ;;  %v296_v48 = vld [vmem:[%s1382_s19 + $0x600] sm:$0xff]   ;;  %v300_v49 = vld [vmem:[%s1382_s19 + $0x608] sm:$0xff]  }
  0x27   : > { %285 = vst [vmem:[%s1390_s20 + $0x168] sm:$0xff] %v284_v45   ;;  %289 = vst [vmem:[%s1390_s20 + $0x170] sm:$0xff] %v288_v46   ;;  %v304_v50 = vld [vmem:[%s1382_s19 + $0x610] sm:$0xff]   ;;  %v308_v51 = vld [vmem:[%s1382_s19 + $0x618] sm:$0xff]  }
  0x28   : > { %293 = vst [vmem:[%s1390_s20 + $0x178] sm:$0xff] %v292_v47   ;;  %297 = vst [vmem:[%s1390_s20 + $0x180] sm:$0xff] %v296_v48   ;;  %v312_v52 = vld [vmem:[%s1382_s19 + $0x620] sm:$0xff]   ;;  %v316_v53 = vld [vmem:[%s1382_s19 + $0x628] sm:$0xff]  }
  0x29   : > { %301 = vst [vmem:[%s1390_s20 + $0x188] sm:$0xff] %v300_v49   ;;  %305 = vst [vmem:[%s1390_s20 + $0x190] sm:$0xff] %v304_v50   ;;  %v320_v54 = vld [vmem:[%s1382_s19 + $0x630] sm:$0xff]   ;;  %v324_v55 = vld [vmem:[%s1382_s19 + $0x638] sm:$0xff]  }
  0x2a   : > { %309 = vst [vmem:[%s1390_s20 + $0x198] sm:$0xff] %v308_v51   ;;  %313 = vst [vmem:[%s1390_s20 + $0x1a0] sm:$0xff] %v312_v52   ;;  %v328_v56 = vld [vmem:[%s1382_s19 + $0x700] sm:$0xff]   ;;  %v332_v57 = vld [vmem:[%s1382_s19 + $0x708] sm:$0xff]  }
  0x2b   : > { %317 = vst [vmem:[%s1390_s20 + $0x1a8] sm:$0xff] %v316_v53   ;;  %321 = vst [vmem:[%s1390_s20 + $0x1b0] sm:$0xff] %v320_v54   ;;  %v336_v58 = vld [vmem:[%s1382_s19 + $0x710] sm:$0xff]   ;;  %v340_v59 = vld [vmem:[%s1382_s19 + $0x718] sm:$0xff]  }
  0x2c   : > { %325 = vst [vmem:[%s1390_s20 + $0x1b8] sm:$0xff] %v324_v55   ;;  %329 = vst [vmem:[%s1390_s20 + $0x1c0] sm:$0xff] %v328_v56   ;;  %v344_v60 = vld [vmem:[%s1382_s19 + $0x720] sm:$0xff]   ;;  %v348_v61 = vld [vmem:[%s1382_s19 + $0x728] sm:$0xff]  }
  0x2d   : > { %333 = vst [vmem:[%s1390_s20 + $0x1c8] sm:$0xff] %v332_v57   ;;  %337 = vst [vmem:[%s1390_s20 + $0x1d0] sm:$0xff] %v336_v58   ;;  %v352_v62 = vld [vmem:[%s1382_s19 + $0x730] sm:$0xff]   ;;  %v356_v63 = vld [vmem:[%s1382_s19 + $0x738] sm:$0xff]  }
  0x2e   : > { %341 = vst [vmem:[%s1390_s20 + $0x1d8] sm:$0xff] %v340_v59   ;;  %345 = vst [vmem:[%s1390_s20 + $0x1e0] sm:$0xff] %v344_v60   ;;  %v360_v0 = vld [vmem:[%s1382_s19 + $0x800] sm:$0xff]   ;;  %v364_v1 = vld [vmem:[%s1382_s19 + $0x808] sm:$0xff]  }
  0x2f   : > { %349 = vst [vmem:[%s1390_s20 + $0x1e8] sm:$0xff] %v348_v61   ;;  %353 = vst [vmem:[%s1390_s20 + $0x1f0] sm:$0xff] %v352_v62   ;;  %v368_v2 = vld [vmem:[%s1382_s19 + $0x810] sm:$0xff]   ;;  %v372_v3 = vld [vmem:[%s1382_s19 + $0x818] sm:$0xff]  }
  0x30   : > { %357 = vst [vmem:[%s1390_s20 + $0x1f8] sm:$0xff] %v356_v63   ;;  %361 = vst [vmem:[%s1390_s20 + $0x200] sm:$0xff] %v360_v0   ;;  %v376_v4 = vld [vmem:[%s1382_s19 + $0x820] sm:$0xff]   ;;  %v380_v5 = vld [vmem:[%s1382_s19 + $0x828] sm:$0xff]  }
  0x31   : > { %365 = vst [vmem:[%s1390_s20 + $0x208] sm:$0xff] %v364_v1   ;;  %369 = vst [vmem:[%s1390_s20 + $0x210] sm:$0xff] %v368_v2   ;;  %v384_v6 = vld [vmem:[%s1382_s19 + $0x830] sm:$0xff]   ;;  %v388_v7 = vld [vmem:[%s1382_s19 + $0x838] sm:$0xff]  }
  0x32   : > { %373 = vst [vmem:[%s1390_s20 + $0x218] sm:$0xff] %v372_v3   ;;  %377 = vst [vmem:[%s1390_s20 + $0x220] sm:$0xff] %v376_v4  }
  0x33   : > { %381 = vst [vmem:[%s1390_s20 + $0x228] sm:$0xff] %v380_v5   ;;  %385 = vst [vmem:[%s1390_s20 + $0x230] sm:$0xff] %v384_v6  }
  0x34   : > { %389 = vst [vmem:[%s1390_s20 + $0x238] sm:$0xff] %v388_v7  }
  0x35 PF: > { %p1099_p5 = scmp.ge.s32.totalorder %s1336_s8, 1  ;;  %p702_p6 = scmp.lt.s32.totalorder %s1336_s8, 5 }
  0x37   : > { %p703_p7 = pnand %p1099_p5, %p702_p6 }
  0x38   : > { %s709_s21 = sand.u32 (!%p703_p7), 1, %s1328_s6   ;;  %s1100_s24 = sshll.u32 (!%p703_p7), %s1093_s9, 4 }
  0x39   : > { %706 = sbr.rel (%p703_p7) target bundleno = 125 (0x7d), region = 61  ;;  %p730_p8 = scmp.lt.s32.totalorder (!%p703_p7), %s1100_s24, 63 }
  0x3a   : > { %s1289_s22 = smul.u32 (!%p703_p7), 576, %s709_s21 }
  0x3c   : > { %s1533_s23 = scalar_lea.vmem (!%p703_p7), [#allocation2], %s1289_s22 }
  0x3e   : > { %v735_v8 = vld [vmem:[%s1533_s23] sm:$0xf]  ;;  %v736_v9 = vld [vmem:[%s1533_s23 + $0x4] sm:$0xf]  ;;  %v737_v26 = vld [vmem:[%s1533_s23 + $0x8] sm:$0xf] }
  0x3f   : > { %v1102_v10 = vld [vmem:[%s1533_s23 + $0x40] sm:$0xf]  ;;  %v1103_v11 = vld [vmem:[%s1533_s23 + $0x44] sm:$0xf]  ;;  %v738_v27 = vld [vmem:[%s1533_s23 + $0xc] sm:$0xf] }
  0x40   : > { %v1118_v12 = vld [vmem:[%s1533_s23 + $0x80] sm:$0xf]  ;;  %v768_v13 = vmax.bf16 %v1102_v10, %v735_v8  ;;  %v769_v14 = vmax.bf16 %v1103_v11, %v736_v9  ;;  %v1119_v15 = vld [vmem:[%s1533_s23 + $0x84] sm:$0xf]  ;;  %v1104_v28 = vld [vmem:[%s1533_s23 + $0x48] sm:$0xf] }
  0x41   : > { %v1134_v16 = vld [vmem:[%s1533_s23 + $0xc0] sm:$0xf]  ;;  %v1135_v17 = vld [vmem:[%s1533_s23 + $0xc4] sm:$0xf]  ;;  %v1105_v29 = vld [vmem:[%s1533_s23 + $0x4c] sm:$0xf]  ;;  %v770_v33 = vmax.bf16 %v1104_v28, %v737_v26 }
  0x42   : > { %v801_v18 = vmax.bf16 %v1118_v12, %v768_v13  ;;  %v802_v19 = vmax.bf16 %v1119_v15, %v769_v14  ;;  %v1150_v20 = vld [vmem:[%s1533_s23 + $0x100] sm:$0xf]  ;;  %v1151_v21 = vld [vmem:[%s1533_s23 + $0x104] sm:$0xf]  ;;  %v771_v34 = vmax.bf16 %v1105_v29, %v738_v27  ;;  %v1120_v35 = vld [vmem:[%s1533_s23 + $0x88] sm:$0xf] }
  0x43   : > { %v1166_v24 = vld [vmem:[%s1533_s23 + $0x140] sm:$0xf]  ;;  %v1167_v25 = vld [vmem:[%s1533_s23 + $0x144] sm:$0xf]  ;;  %v1121_v36 = vld [vmem:[%s1533_s23 + $0x8c] sm:$0xf]  ;;  %v803_v44 = vmax.bf16 %v1120_v35, %v770_v33 }
  0x44   : > { %v834_v22 = vmax.bf16 %v1134_v16, %v801_v18  ;;  %v835_v23 = vmax.bf16 %v1135_v17, %v802_v19  ;;  %v1182_v32 = vld [vmem:[%s1533_s23 + $0x180] sm:$0xf]  ;;  %v1183_v37 = vld [vmem:[%s1533_s23 + $0x184] sm:$0xf]  ;;  %v1136_v38 = vld [vmem:[%s1533_s23 + $0xc8] sm:$0xf]  ;;  %v804_v45 = vmax.bf16 %v1121_v36, %v771_v34 }
  0x45   : > { %v1137_v39 = vld [vmem:[%s1533_s23 + $0xcc] sm:$0xf]  ;;  %s1714_s24 = smov (!%p730_p8, %s1100_s24), 63  ;;  %v1198_v42 = vld [vmem:[%s1533_s23 + $0x1c0] sm:$0xf]  ;;  %v836_v52 = vmax.bf16 %v1136_v38, %v803_v44 }
  0x46   : > { %v867_v30 = vmax.bf16 %v1150_v20, %v834_v22  ;;  %v868_v31 = vmax.bf16 %v1151_v21, %v835_v23  ;;  %v1199_v43 = vld [vmem:[%s1533_s23 + $0x1c4] sm:$0xf]  ;;  %v1214_v46 = vld [vmem:[%s1533_s23 + $0x200] sm:$0xf]  ;;  %v1152_v48 = vld [vmem:[%s1533_s23 + $0x108] sm:$0xf]  ;;  %v837_v53 = vmax.bf16 %v1137_v39, %v804_v45 }
  0x47   : > { %v1215_v47 = vld [vmem:[%s1533_s23 + $0x204] sm:$0xf]  ;;  %v1153_v49 = vld [vmem:[%s1533_s23 + $0x10c] sm:$0xf]  ;;  %v1168_v54 = vld [vmem:[%s1533_s23 + $0x148] sm:$0xf]  ;;  %v869_v62 = vmax.bf16 %v1152_v48, %v836_v52 }
  0x48   : > { %v900_v40 = vmax.bf16 %v1166_v24, %v867_v30  ;;  %v901_v41 = vmax.bf16 %v1167_v25, %v868_v31  ;;  %v1169_v55 = vld [vmem:[%s1533_s23 + $0x14c] sm:$0xf]  ;;  %v739_v56 = vld [vmem:[%s1533_s23 + $0x10] sm:$0xf]  ;;  %v740_v57 = vld [vmem:[%s1533_s23 + $0x14] sm:$0xf]  ;;  %v870_v63 = vmax.bf16 %v1153_v49, %v837_v53 }
  0x49   : > { %v1106_v58 = vld [vmem:[%s1533_s23 + $0x50] sm:$0xf]  ;;  %v1107_v59 = vld [vmem:[%s1533_s23 + $0x54] sm:$0xf]  ;;  %s1101_s25 = sshll.u32 %s1714_s24, 2  ;;  %v902_v9 = vmax.bf16 %v1168_v54, %v869_v62 }
  0x4a   : > { %v933_v50 = vmax.bf16 %v1182_v32, %v900_v40  ;;  %v934_v51 = vmax.bf16 %v1183_v37, %v901_v41  ;;  %v1122_v0 = vld [vmem:[%s1533_s23 + $0x90] sm:$0xf]  ;;  %v1123_v1 = vld [vmem:[%s1533_s23 + $0x94] sm:$0xf]  ;;  %v1184_v2 = vld [vmem:[%s1533_s23 + $0x188] sm:$0xf]  ;;  %v772_v5 = vmax.bf16 %v1106_v58, %v739_v56  ;;  %v773_v6 = vmax.bf16 %v1107_v59, %v740_v57  ;;  %s1586_s28 = scalar_lea.vmem %s1709_s1, %s1101_s25 }
  0x4b   : > { %v1185_v3 = vld [vmem:[%s1533_s23 + $0x18c] sm:$0xf]  ;;  %v1200_v4 = vld [vmem:[%s1533_s23 + $0x1c8] sm:$0xf]  ;;  %v903_v10 = vmax.bf16 %v1169_v55, %v870_v63  ;;  %v1138_v12 = vld [vmem:[%s1533_s23 + $0xd0] sm:$0xf]  ;;  %v935_v20 = vmax.bf16 %v1184_v2, %v902_v9 }
  0x4c   : > { %v966_v60 = vmax.bf16 %v1198_v42, %v933_v50  ;;  %v967_v61 = vmax.bf16 %v1199_v43, %v934_v51  ;;  %v1201_v11 = vld [vmem:[%s1533_s23 + $0x1cc] sm:$0xf]  ;;  %v1139_v13 = vld [vmem:[%s1533_s23 + $0xd4] sm:$0xf]  ;;  %v1216_v14 = vld [vmem:[%s1533_s23 + $0x208] sm:$0xf]  ;;  %v805_v16 = vmax.bf16 %v1122_v0, %v772_v5  ;;  %v806_v17 = vmax.bf16 %v1123_v1, %v773_v6 }
  0x4d   : > { %v1217_v15 = vld [vmem:[%s1533_s23 + $0x20c] sm:$0xf]  ;;  %v1154_v18 = vld [vmem:[%s1533_s23 + $0x110] sm:$0xf]  ;;  %v936_v21 = vmax.bf16 %v1185_v3, %v903_v10  ;;  %v1155_v22 = vld [vmem:[%s1533_s23 + $0x114] sm:$0xf]  ;;  %v968_v30 = vmax.bf16 %v1200_v4, %v935_v20 }
  0x4e   : > { %v999_v7 = vmax.bf16 %v1214_v46, %v966_v60  ;;  %v1000_v8 = vmax.bf16 %v1215_v47, %v967_v61  ;;  %v1170_v23 = vld [vmem:[%s1533_s23 + $0x150] sm:$0xf]  ;;  %v741_v24 = vld [vmem:[%s1533_s23 + $0x18] sm:$0xf]  ;;  %v838_v25 = vmax.bf16 %v1138_v12, %v805_v16  ;;  %v839_v26 = vmax.bf16 %v1139_v13, %v806_v17  ;;  %v742_v27 = vld [vmem:[%s1533_s23 + $0x1c] sm:$0xf] }
  0x4f   : > { %v1108_v28 = vld [vmem:[%s1533_s23 + $0x58] sm:$0xf]  ;;  %v1109_v29 = vld [vmem:[%s1533_s23 + $0x5c] sm:$0xf]  ;;  %v969_v31 = vmax.bf16 %v1201_v11, %v936_v21  ;;  %v1171_v32 = vld [vmem:[%s1533_s23 + $0x154] sm:$0xf]  ;;  %v1001_v41 = vmax.bf16 %v1216_v14, %v968_v30 }
  0x50   : > { %v1273_v19 = vcombine.low %v999_v7, %v1000_v8  ;;  %v774_v33 = vmax.bf16 %v1108_v28, %v741_v24  ;;  %v775_v34 = vmax.bf16 %v1109_v29, %v742_v27  ;;  %v1124_v35 = vld [vmem:[%s1533_s23 + $0x98] sm:$0xf]  ;;  %v1125_v36 = vld [vmem:[%s1533_s23 + $0x9c] sm:$0xf]  ;;  %v871_v37 = vmax.bf16 %v1154_v18, %v838_v25  ;;  %v1186_v43 = vld [vmem:[%s1533_s23 + $0x190] sm:$0xf] }
  0x51   : > { %v872_v38 = vmax.bf16 %v1155_v22, %v839_v26  ;;  %v1140_v39 = vld [vmem:[%s1533_s23 + $0xd8] sm:$0xf]  ;;  %v1141_v40 = vld [vmem:[%s1533_s23 + $0xdc] sm:$0xf]  ;;  %v1002_v42 = vmax.bf16 %v1217_v15, %v969_v31  ;;  %v1187_v44 = vld [vmem:[%s1533_s23 + $0x194] sm:$0xf] }
  0x52   : > { %1237 = vst [vmem:[%s1586_s28] sm:$0xff] %v1273_v19   ;;  %v1202_v45 = vld [vmem:[%s1533_s23 + $0x1d0] sm:$0xf]  ;;  %v807_v46 = vmax.bf16 %v1124_v35, %v774_v33  ;;  %v808_v47 = vmax.bf16 %v1125_v36, %v775_v34  ;;  %v904_v48 = vmax.bf16 %v1170_v23, %v871_v37  ;;  %v1203_v50 = vld [vmem:[%s1533_s23 + $0x1d4] sm:$0xf]  ;;  %v1156_v51 = vld [vmem:[%s1533_s23 + $0x118] sm:$0xf] }
  0x53   : > { %v905_v49 = vmax.bf16 %v1171_v32, %v872_v38  ;;  %v1157_v52 = vld [vmem:[%s1533_s23 + $0x11c] sm:$0xf]  ;;  %v1274_v53 = vcombine.low %v1001_v41, %v1002_v42  ;;  %v1218_v54 = vld [vmem:[%s1533_s23 + $0x210] sm:$0xf]  ;;  %v1219_v55 = vld [vmem:[%s1533_s23 + $0x214] sm:$0xf] }
  0x54   : > { %v840_v56 = vmax.bf16 %v1140_v39, %v807_v46  ;;  %v841_v57 = vmax.bf16 %v1141_v40, %v808_v47  ;;  %v1172_v58 = vld [vmem:[%s1533_s23 + $0x158] sm:$0xf]  ;;  %v1173_v59 = vld [vmem:[%s1533_s23 + $0x15c] sm:$0xf]  ;;  %v743_v60 = vld [vmem:[%s1533_s23 + $0x20] sm:$0xf]  ;;  %v937_v61 = vmax.bf16 %v1186_v43, %v904_v48 }
  0x55   : > { %v938_v62 = vmax.bf16 %v1187_v44, %v905_v49  ;;  %v744_v63 = vld [vmem:[%s1533_s23 + $0x24] sm:$0xf]  ;;  %v1110_v0 = vld [vmem:[%s1533_s23 + $0x60] sm:$0xf]  ;;  %1275 = vst [vmem:[%s1586_s28 + $0x8] sm:$0xff] %v1274_v53  }
  0x56   : > { %v1111_v1 = vld [vmem:[%s1533_s23 + $0x64] sm:$0xf]  ;;  %v873_v2 = vmax.bf16 %v1156_v51, %v840_v56  ;;  %v874_v3 = vmax.bf16 %v1157_v52, %v841_v57  ;;  %v1188_v4 = vld [vmem:[%s1533_s23 + $0x198] sm:$0xf]  ;;  %v776_v5 = vmax.bf16 %v1110_v0, %v743_v60  ;;  %v1126_v7 = vld [vmem:[%s1533_s23 + $0xa0] sm:$0xf]  ;;  %v970_v9 = vmax.bf16 %v1202_v45, %v937_v61 }
  0x57   : > { %v777_v6 = vmax.bf16 %v1111_v1, %v744_v63  ;;  %v1127_v8 = vld [vmem:[%s1533_s23 + $0xa4] sm:$0xf]  ;;  %v971_v10 = vmax.bf16 %v1203_v50, %v938_v62  ;;  %v1189_v11 = vld [vmem:[%s1533_s23 + $0x19c] sm:$0xf]  ;;  %v1142_v12 = vld [vmem:[%s1533_s23 + $0xe0] sm:$0xf] }
  0x58   : > { %v1143_v13 = vld [vmem:[%s1533_s23 + $0xe4] sm:$0xf]  ;;  %v906_v14 = vmax.bf16 %v1172_v58, %v873_v2  ;;  %v907_v15 = vmax.bf16 %v1173_v59, %v874_v3  ;;  %v1204_v16 = vld [vmem:[%s1533_s23 + $0x1d8] sm:$0xf]  ;;  %v1205_v17 = vld [vmem:[%s1533_s23 + $0x1dc] sm:$0xf]  ;;  %v809_v18 = vmax.bf16 %v1126_v7, %v776_v5  ;;  %v1003_v20 = vmax.bf16 %v1218_v54, %v970_v9 }
  0x59   : > { %v810_v19 = vmax.bf16 %v1127_v8, %v777_v6  ;;  %v1004_v21 = vmax.bf16 %v1219_v55, %v971_v10  ;;  %v1220_v22 = vld [vmem:[%s1533_s23 + $0x218] sm:$0xf]  ;;  %v1221_v23 = vld [vmem:[%s1533_s23 + $0x21c] sm:$0xf]  ;;  %v1158_v24 = vld [vmem:[%s1533_s23 + $0x120] sm:$0xf] }
  0x5a   : > { %v1159_v25 = vld [vmem:[%s1533_s23 + $0x124] sm:$0xf]  ;;  %v939_v26 = vmax.bf16 %v1188_v4, %v906_v14  ;;  %v940_v27 = vmax.bf16 %v1189_v11, %v907_v15  ;;  %v842_v28 = vmax.bf16 %v1142_v12, %v809_v18  ;;  %v1174_v30 = vld [vmem:[%s1533_s23 + $0x160] sm:$0xf]  ;;  %v745_v32 = vld [vmem:[%s1533_s23 + $0x28] sm:$0xf] }
  0x5b   : > { %v843_v29 = vmax.bf16 %v1143_v13, %v810_v19  ;;  %v1175_v31 = vld [vmem:[%s1533_s23 + $0x164] sm:$0xf]  ;;  %v1276_v33 = vcombine.low %v1003_v20, %v1004_v21  ;;  %v746_v34 = vld [vmem:[%s1533_s23 + $0x2c] sm:$0xf]  ;;  %v1112_v35 = vld [vmem:[%s1533_s23 + $0x68] sm:$0xf] }
  0x5c   : > { %v1113_v36 = vld [vmem:[%s1533_s23 + $0x6c] sm:$0xf]  ;;  %v972_v37 = vmax.bf16 %v1204_v16, %v939_v26  ;;  %v973_v38 = vmax.bf16 %v1205_v17, %v940_v27  ;;  %v875_v39 = vmax.bf16 %v1158_v24, %v842_v28  ;;  %v1128_v41 = vld [vmem:[%s1533_s23 + $0xa8] sm:$0xf]  ;;  %v1190_v43 = vld [vmem:[%s1533_s23 + $0x1a0] sm:$0xf]  ;;  %v778_v46 = vmax.bf16 %v1112_v35, %v745_v32 }
  0x5d   : > { %v876_v40 = vmax.bf16 %v1159_v25, %v843_v29  ;;  %v1129_v42 = vld [vmem:[%s1533_s23 + $0xac] sm:$0xf]  ;;  %1277 = vst [vmem:[%s1586_s28 + $0x10] sm:$0xff] %v1276_v33   ;;  %v1191_v44 = vld [vmem:[%s1533_s23 + $0x1a4] sm:$0xf]  ;;  %v779_v47 = vmax.bf16 %v1113_v36, %v746_v34 }
  0x5e   : > { %v1206_v45 = vld [vmem:[%s1533_s23 + $0x1e0] sm:$0xf]  ;;  %v1005_v48 = vmax.bf16 %v1220_v22, %v972_v37  ;;  %v1006_v49 = vmax.bf16 %v1221_v23, %v973_v38  ;;  %v908_v50 = vmax.bf16 %v1174_v30, %v875_v39  ;;  %v1207_v52 = vld [vmem:[%s1533_s23 + $0x1e4] sm:$0xf]  ;;  %v1144_v53 = vld [vmem:[%s1533_s23 + $0xe8] sm:$0xf]  ;;  %v811_v57 = vmax.bf16 %v1128_v41, %v778_v46 }
  0x5f   : > { %v909_v51 = vmax.bf16 %v1175_v31, %v876_v40  ;;  %v1145_v54 = vld [vmem:[%s1533_s23 + $0xec] sm:$0xf]  ;;  %v1222_v55 = vld [vmem:[%s1533_s23 + $0x220] sm:$0xf]  ;;  %v1223_v56 = vld [vmem:[%s1533_s23 + $0x224] sm:$0xf]  ;;  %v812_v58 = vmax.bf16 %v1129_v42, %v779_v47 }
  0x60   : > { %v1160_v59 = vld [vmem:[%s1533_s23 + $0x128] sm:$0xf]  ;;  %v1278_v60 = vcombine.low %v1005_v48, %v1006_v49  ;;  %v941_v61 = vmax.bf16 %v1190_v43, %v908_v50  ;;  %v1161_v63 = vld [vmem:[%s1533_s23 + $0x12c] sm:$0xf]  ;;  %v747_v1 = vld [vmem:[%s1533_s23 + $0x30] sm:$0xf]  ;;  %v844_v2 = vmax.bf16 %v1144_v53, %v811_v57 }
  0x61   : > { %v942_v62 = vmax.bf16 %v1191_v44, %v909_v51  ;;  %v1176_v0 = vld [vmem:[%s1533_s23 + $0x168] sm:$0xf]  ;;  %v845_v3 = vmax.bf16 %v1145_v54, %v812_v58  ;;  %v748_v4 = vld [vmem:[%s1533_s23 + $0x34] sm:$0xf]  ;;  %v1114_v5 = vld [vmem:[%s1533_s23 + $0x70] sm:$0xf] }
  0x62   : > { %v1115_v6 = vld [vmem:[%s1533_s23 + $0x74] sm:$0xf]  ;;  %1279 = vst [vmem:[%s1586_s28 + $0x18] sm:$0xff] %v1278_v60   ;;  %v974_v7 = vmax.bf16 %v1206_v45, %v941_v61  ;;  %v1177_v9 = vld [vmem:[%s1533_s23 + $0x16c] sm:$0xf]  ;;  %v780_v10 = vmax.bf16 %v1114_v5, %v747_v1  ;;  %v877_v14 = vmax.bf16 %v1160_v59, %v844_v2 }
  0x63   : > { %v975_v8 = vmax.bf16 %v1207_v52, %v942_v62  ;;  %v781_v11 = vmax.bf16 %v1115_v6, %v748_v4  ;;  %v1130_v12 = vld [vmem:[%s1533_s23 + $0xb0] sm:$0xf]  ;;  %v1131_v13 = vld [vmem:[%s1533_s23 + $0xb4] sm:$0xf]  ;;  %v878_v15 = vmax.bf16 %v1161_v63, %v845_v3  ;;  %v1192_v20 = vld [vmem:[%s1533_s23 + $0x1a8] sm:$0xf] }
  0x64   : > { %v1146_v16 = vld [vmem:[%s1533_s23 + $0xf0] sm:$0xf]  ;;  %v1147_v17 = vld [vmem:[%s1533_s23 + $0xf4] sm:$0xf]  ;;  %v1007_v18 = vmax.bf16 %v1222_v55, %v974_v7  ;;  %v1193_v21 = vld [vmem:[%s1533_s23 + $0x1ac] sm:$0xf]  ;;  %v813_v23 = vmax.bf16 %v1130_v12, %v780_v10  ;;  %v910_v25 = vmax.bf16 %v1176_v0, %v877_v14 }
  0x65   : > { %v1008_v19 = vmax.bf16 %v1223_v56, %v975_v8  ;;  %v1208_v22 = vld [vmem:[%s1533_s23 + $0x1e8] sm:$0xf]  ;;  %v814_v24 = vmax.bf16 %v1131_v13, %v781_v11  ;;  %v911_v26 = vmax.bf16 %v1177_v9, %v878_v15  ;;  %v1209_v27 = vld [vmem:[%s1533_s23 + $0x1ec] sm:$0xf]  ;;  %v1162_v28 = vld [vmem:[%s1533_s23 + $0x130] sm:$0xf] }
  0x66   : > { %v1163_v29 = vld [vmem:[%s1533_s23 + $0x134] sm:$0xf]  ;;  %v1224_v31 = vld [vmem:[%s1533_s23 + $0x228] sm:$0xf]  ;;  %v1225_v32 = vld [vmem:[%s1533_s23 + $0x22c] sm:$0xf]  ;;  %v846_v33 = vmax.bf16 %v1146_v16, %v813_v23  ;;  %v943_v38 = vmax.bf16 %v1192_v20, %v910_v25 }
  0x67   : > { %v1280_v30 = vcombine.low %v1007_v18, %v1008_v19  ;;  %v847_v34 = vmax.bf16 %v1147_v17, %v814_v24  ;;  %v1178_v35 = vld [vmem:[%s1533_s23 + $0x170] sm:$0xf]  ;;  %v1179_v36 = vld [vmem:[%s1533_s23 + $0x174] sm:$0xf]  ;;  %v749_v37 = vld [vmem:[%s1533_s23 + $0x38] sm:$0xf]  ;;  %v944_v39 = vmax.bf16 %v1193_v21, %v911_v26 }
  0x68   : > { %v750_v40 = vld [vmem:[%s1533_s23 + $0x3c] sm:$0xf]  ;;  %v1116_v41 = vld [vmem:[%s1533_s23 + $0x78] sm:$0xf]  ;;  %v879_v43 = vmax.bf16 %v1162_v28, %v846_v33  ;;  %v1194_v45 = vld [vmem:[%s1533_s23 + $0x1b0] sm:$0xf]  ;;  %v976_v50 = vmax.bf16 %v1208_v22, %v943_v38 }
  0x69   : > { %v1117_v42 = vld [vmem:[%s1533_s23 + $0x7c] sm:$0xf]  ;;  %1281 = vst [vmem:[%s1586_s28 + $0x20] sm:$0xff] %v1280_v30   ;;  %v880_v44 = vmax.bf16 %v1163_v29, %v847_v34  ;;  %v782_v46 = vmax.bf16 %v1116_v41, %v749_v37  ;;  %v1132_v48 = vld [vmem:[%s1533_s23 + $0xb8] sm:$0xf]  ;;  %v977_v51 = vmax.bf16 %v1209_v27, %v944_v39 }
  0x6a   : > { %v783_v47 = vmax.bf16 %v1117_v42, %v750_v40  ;;  %v1133_v49 = vld [vmem:[%s1533_s23 + $0xbc] sm:$0xf]  ;;  %v1195_v52 = vld [vmem:[%s1533_s23 + $0x1b4] sm:$0xf]  ;;  %v1148_v53 = vld [vmem:[%s1533_s23 + $0xf8] sm:$0xf]  ;;  %v912_v55 = vmax.bf16 %v1178_v35, %v879_v43  ;;  %v1009_v60 = vmax.bf16 %v1224_v31, %v976_v50 }
  0x6b   : > { %v1149_v54 = vld [vmem:[%s1533_s23 + $0xfc] sm:$0xf]  ;;  %v913_v56 = vmax.bf16 %v1179_v36, %v880_v44  ;;  %v1210_v57 = vld [vmem:[%s1533_s23 + $0x1f0] sm:$0xf]  ;;  %v815_v58 = vmax.bf16 %v1132_v48, %v782_v46  ;;  %v1010_v61 = vmax.bf16 %v1225_v32, %v977_v51  ;;  %v1211_v62 = vld [vmem:[%s1533_s23 + $0x1f4] sm:$0xf] }
  0x6c   : > { %v816_v59 = vmax.bf16 %v1133_v49, %v783_v47  ;;  %v1164_v63 = vld [vmem:[%s1533_s23 + $0x138] sm:$0xf]  ;;  %v1165_v0 = vld [vmem:[%s1533_s23 + $0x13c] sm:$0xf]  ;;  %v945_v1 = vmax.bf16 %v1194_v45, %v912_v55  ;;  %v1226_v3 = vld [vmem:[%s1533_s23 + $0x230] sm:$0xf] }
  0x6d   : > { %v946_v2 = vmax.bf16 %v1195_v52, %v913_v56  ;;  %v848_v4 = vmax.bf16 %v1148_v53, %v815_v58  ;;  %v1282_v6 = vcombine.low %v1009_v60, %v1010_v61  ;;  %v1227_v7 = vld [vmem:[%s1533_s23 + $0x234] sm:$0xf]  ;;  %v1180_v8 = vld [vmem:[%s1533_s23 + $0x178] sm:$0xf]  ;;  %v1181_v9 = vld [vmem:[%s1533_s23 + $0x17c] sm:$0xf] }
  0x6e   : > { %v849_v5 = vmax.bf16 %v1149_v54, %v816_v59  ;;  %v978_v10 = vmax.bf16 %v1210_v57, %v945_v1  ;;  %v1196_v14 = vld [vmem:[%s1533_s23 + $0x1b8] sm:$0xf]  ;;  %v1197_v15 = vld [vmem:[%s1533_s23 + $0x1bc] sm:$0xf] }
  0x6f   : > { %v979_v11 = vmax.bf16 %v1211_v62, %v946_v2  ;;  %v881_v12 = vmax.bf16 %v1164_v63, %v848_v4  ;;  %1283 = vst [vmem:[%s1586_s28 + $0x28] sm:$0xff] %v1282_v6   ;;  %v1212_v20 = vld [vmem:[%s1533_s23 + $0x1f8] sm:$0xf]  ;;  %v1213_v21 = vld [vmem:[%s1533_s23 + $0x1fc] sm:$0xf] }
  0x70   : > { %v882_v13 = vmax.bf16 %v1165_v0, %v849_v5  ;;  %v1011_v16 = vmax.bf16 %v1226_v3, %v978_v10  ;;  %v1228_v25 = vld [vmem:[%s1533_s23 + $0x238] sm:$0xf]  ;;  %v1229_v26 = vld [vmem:[%s1533_s23 + $0x23c] sm:$0xf] }
  0x71   : > { %v1012_v17 = vmax.bf16 %v1227_v7, %v979_v11  ;;  %v914_v18 = vmax.bf16 %v1180_v8, %v881_v12 }
  0x72   : > { %v915_v19 = vmax.bf16 %v1181_v9, %v882_v13 }
  0x73   : > { %v1284_v22 = vcombine.low %v1011_v16, %v1012_v17  ;;  %v947_v23 = vmax.bf16 %v1196_v14, %v914_v18 }
  0x74   : > { %v948_v24 = vmax.bf16 %v1197_v15, %v915_v19 }
  0x75   : > { %1285 = vst [vmem:[%s1586_s28 + $0x30] sm:$0xff] %v1284_v22   ;;  %v980_v27 = vmax.bf16 %v1212_v20, %v947_v23 }
  0x76   : > { %v981_v28 = vmax.bf16 %v1213_v21, %v948_v24 }
  0x77   : > { %v1013_v29 = vmax.bf16 %v1228_v25, %v980_v27 }
  0x78   : > { %v1014_v30 = vmax.bf16 %v1229_v26, %v981_v28 }
  0x7a   : > { %v1286_v31 = vcombine.low %v1013_v29, %v1014_v30 }
  0x7c   : > { %1287 = vst [vmem:[%s1586_s28 + $0x38] sm:$0xff] %v1286_v31  }
  0x7d PF: > { %p8_p9 = scmp.ge.s32.totalorder %s1365_s10, 6   ;;  %s1710_s6 = smov %s1332_s7 }
  0x7e   : > { %s1711_s7 = smov %s1374_s13  ;;  %s1712_s8 = smov %s1365_s10 }
  0x7f   :  { %10 = sbr.rel (!%p8_p9) target bundleno = 2 (0x2), region = 108 }

// kernel: jersey_number_classifier_forward.22
= control target key start
LH: loop header
LB: loop body
LE: loop exit
PB: predicated region body
PF: predicated region fallthrough
CT: control target
= control target key end

     0   :  { %s2769_s15 = smov 0   ;;  %s3352_s0 = inlined_call_operand.vmem [shape: bf16[512,1152], index: 0, kind: input, shape index: {}]   ;;  %s3353_s1 = inlined_call_operand.vmem [shape: bf16[1152,128], index: 1, kind: input, shape index: {}]   ;;  %s3354_s2 = inlined_call_operand.vmem [shape: f32[1,128], index: 2, kind: input, shape index: {}]   ;;  %s3355_s3 = inlined_call_operand.vmem [shape: bf16[512,128], index: 3, kind: input, shape index: {}]   ;;  %s3356_s4 = inlined_call_operand.vmem [shape: bf16[512,128], index: 4, kind: output, shape index: {}]  }
   0x1 LB: > { %s1955_s16 = sadd.s32 4294967295, %s2742_s15   ;;  %p1959_p0 = scmp.ge.s32.totalorder %s2742_s15, 1  ;;  %s2742_s15 = sphi %s2769_s15, %s14_s15  }
   0x2   : > { %p175_p1 = scmp.lt.s32.totalorder %s2742_s15, 5 }
   0x4   : > { %p176_p2 = pnand %p1959_p0, %p175_p1 }
   0x6   : > { %179 = sbr.rel (%p176_p2) target bundleno = 390 (0x186), region = 36 }
   0xb   : > { %v2560_v0 = vld [vmem:[%s3353_s1 + $0x78] sm:$0xff]   ;;  %v2564_v4 = vld [vmem:[%s3353_s1 + $0x70] sm:$0xff]   ;;  %v2568_v8 = vld [vmem:[%s3353_s1 + $0x68] sm:$0xff]   ;;  %s1960_s23 = sshll.u32 %s1955_s16, 4 }
   0xc   : > { %v2561_v1 = vld [vmem:[%s3353_s1 + $0xf8] sm:$0xff]   ;;  %2231 = vmatprep.subr.bf16.mxu0 %v2560_v0  ;;  %v2565_v5 = vld [vmem:[%s3353_s1 + $0xf0] sm:$0xff]   ;;  %v2569_v9 = vld [vmem:[%s3353_s1 + $0xe8] sm:$0xff]   ;;  %p208_p3 = scmp.lt.s32.totalorder %s1960_s23, 63 }
   0xd   : > { %v2562_v2 = vld [vmem:[%s3353_s1 + $0x38] sm:$0xff]   ;;  %2295 = vmatprep.subr.bf16.mxu1 %v2561_v1  ;;  %v2566_v6 = vld [vmem:[%s3353_s1 + $0x30] sm:$0xff]   ;;  %v2570_v10 = vld [vmem:[%s3353_s1 + $0x28] sm:$0xff]  }
   0xe   : > { %v2563_v3 = vld [vmem:[%s3353_s1 + $0xb8] sm:$0xff]   ;;  %2232 = vmatpush3.bf16.msra.mxu0 %v2562_v2  ;;  %v2567_v7 = vld [vmem:[%s3353_s1 + $0xb0] sm:$0xff]   ;;  %v2571_v11 = vld [vmem:[%s3353_s1 + $0xa8] sm:$0xff]   ;;  %s3413_s23 = smov (!%p208_p3, %s1960_s23), 63 }
   0xf   : > { %2296 = vmatpush3.bf16.msra.mxu1 %v2563_v3  ;;  %2233 = vmatprep.subr.bf16.mxu0 %v2564_v4  ;;  %v2572_v12 = vld [vmem:[%s3353_s1 + $0x60] sm:$0xff]   ;;  %v2576_v16 = vld [vmem:[%s3353_s1 + $0x58] sm:$0xff]   ;;  %v2580_v20 = vld [vmem:[%s3353_s1 + $0x50] sm:$0xff]   ;;  %s2551_s21 = smul.u32 36, %s3413_s23 }
  0x10   : > { %2297 = vmatprep.subr.bf16.mxu1 %v2565_v5  ;;  %v2573_v13 = vld [vmem:[%s3353_s1 + $0xe0] sm:$0xff]   ;;  %v2577_v17 = vld [vmem:[%s3353_s1 + $0xd8] sm:$0xff]   ;;  %v2581_v21 = vld [vmem:[%s3353_s1 + $0xd0] sm:$0xff]  }
  0x11   : > { %v2574_v14 = vld [vmem:[%s3353_s1 + $0x20] sm:$0xff]   ;;  %v2578_v18 = vld [vmem:[%s3353_s1 + $0x18] sm:$0xff]   ;;  %v2582_v22 = vld [vmem:[%s3353_s1 + $0x10] sm:$0xff]   ;;  %s2875_s6 = scalar_lea.vmem %s3352_s0, %s2551_s21 }
  0x12   : > { %2234 = vmatpush3.bf16.msra.mxu0 %v2566_v6  ;;  %v2575_v15 = vld [vmem:[%s3353_s1 + $0xa0] sm:$0xff]   ;;  %v2579_v19 = vld [vmem:[%s3353_s1 + $0x98] sm:$0xff]   ;;  %v2583_v23 = vld [vmem:[%s3353_s1 + $0x90] sm:$0xff]  }
  0x13   : > { %2298 = vmatpush3.bf16.msra.mxu1 %v2567_v7  ;;  %2235 = vmatprep.subr.bf16.mxu0 %v2568_v8  ;;  %v2584_v24 = vld [vmem:[%s3353_s1 + $0x48] sm:$0xff]   ;;  %v2588_v28 = vld [vmem:[%s3353_s1 + $0x40] sm:$0xff]   ;;  %v2598_v36 = vld [vmem:[%s3353_s1 + $0x178] sm:$0xff]  }
  0x14   : > { %2299 = vmatprep.subr.bf16.mxu1 %v2569_v9  ;;  %v2585_v25 = vld [vmem:[%s3353_s1 + $0xc8] sm:$0xff]   ;;  %v2589_v29 = vld [vmem:[%s3353_s1 + $0xc0] sm:$0xff]   ;;  %v2599_v37 = vld [vmem:[%s3353_s1 + $0x1f8] sm:$0xff]  }
  0x15   : > { %v2586_v26 = vld [vmem:[%s3353_s1 + $0x8] sm:$0xff]   ;;  %v2590_v30 = vld [vmem:[%s3353_s1] sm:$0xff]   ;;  %v2600_v38 = vld [vmem:[%s3353_s1 + $0x138] sm:$0xff]  }
  0x16   : > { %2236 = vmatpush3.bf16.msra.mxu0 %v2570_v10  ;;  %v2587_v27 = vld [vmem:[%s3353_s1 + $0x88] sm:$0xff]   ;;  %v2591_v31 = vld [vmem:[%s3353_s1 + $0x80] sm:$0xff]   ;;  %v2601_v39 = vld [vmem:[%s3353_s1 + $0x1b8] sm:$0xff]  }
  0x17   : > { %2300 = vmatpush3.bf16.msra.mxu1 %v2571_v11  ;;  %2237 = vmatprep.subr.bf16.mxu0 %v2572_v12  ;;  %v2592_v32 = vld [vmem:[%s2875_s6] ss:$36 sps:$4 sm:$0xff]   ;;  %v2595_v34 = vld [vmem:[%s2875_s6 + $0x8] ss:$36 sps:$4 sm:$0xff]   ;;  %v2604_v41 = vld [vmem:[%s2875_s6 + $0x54] ss:$36 sps:$4 sm:$0xff]  }
  0x18   : > { %2301 = vmatprep.subr.bf16.mxu1 %v2573_v13  ;;  %v2594_v33 = vld [vmem:[%s2875_s6 + $0x4] ss:$36 sps:$4 sm:$0xff]   ;;  %v2597_v35 = vld [vmem:[%s2875_s6 + $0xc] ss:$36 sps:$4 sm:$0xff]   ;;  %v2612_v48 = vld [vmem:[%s2875_s6 + $0x94] ss:$36 sps:$4 sm:$0xff]  }
  0x19   : > { %1290 = vmatprep.mubr.bf16.mxu0 %v2594_v33  ;;  %1387 = vmatprep.mubr.bf16.mxu1 %v2597_v35  ;;  %v2602_v40 = vld [vmem:[%s2875_s6 + $0x4c] ss:$36 sps:$4 sm:$0xff]   ;;  %v2614_v49 = vld [vmem:[%s2875_s6 + $0x9c] ss:$36 sps:$4 sm:$0xff]   ;;  %v2624_v57 = vld [vmem:[%s2875_s6 + $0xe4] ss:$36 sps:$4 sm:$0xff]  }
  0x1a   : > { %2238 = vmatpush3.bf16.msra.mxu0 %v2574_v14  ;;  %v2606_v42 = vld [vmem:[%s2875_s6 + $0x48] ss:$36 sps:$4 sm:$0xff]   ;;  %v2607_v43 = vld [vmem:[%s2875_s6 + $0x50] ss:$36 sps:$4 sm:$0xff]   ;;  %v2617_v51 = vld [vmem:[%s2875_s6 + $0x98] ss:$36 sps:$4 sm:$0xff]  }
  0x1b   : > { %2302 = vmatpush3.bf16.msra.mxu1 %v2575_v15  ;;  %2239 = vmatprep.subr.bf16.mxu0 %v2576_v16  ;;  %v2608_v44 = vld [vmem:[%s3353_s1 + $0x170] sm:$0xff]   ;;  %v2618_v52 = vld [vmem:[%s3353_s1 + $0x168] sm:$0xff]   ;;  %v2622_v56 = vld [vmem:[%s2875_s6 + $0xdc] ss:$36 sps:$4 sm:$0xff]  }
  0x1c   : > { %2303 = vmatprep.subr.bf16.mxu1 %v2577_v17  ;;  %v2609_v45 = vld [vmem:[%s3353_s1 + $0x1f0] sm:$0xff]   ;;  %v2619_v53 = vld [vmem:[%s3353_s1 + $0x1e8] sm:$0xff]   ;;  %v2626_v58 = vld [vmem:[%s2875_s6 + $0xd8] ss:$36 sps:$4 sm:$0xff]  }
  0x1d   : > { %v2610_v46 = vld [vmem:[%s3353_s1 + $0x130] sm:$0xff]   ;;  %v2620_v54 = vld [vmem:[%s3353_s1 + $0x128] sm:$0xff]   ;;  %v2627_v59 = vld [vmem:[%s2875_s6 + $0xe0] ss:$36 sps:$4 sm:$0xff]  }
  0x1e   : > { %2240 = vmatpush3.bf16.msra.mxu0 %v2578_v18  ;;  %v2611_v47 = vld [vmem:[%s3353_s1 + $0x1b0] sm:$0xff]   ;;  %v2621_v55 = vld [vmem:[%s3353_s1 + $0x1a8] sm:$0xff]   ;;  %v2628_v60 = vld [vmem:[%s3353_s1 + $0x160] sm:$0xff]  }
  0x1f   : > { %2304 = vmatpush3.bf16.msra.mxu1 %v2579_v19  ;;  %2241 = vmatprep.subr.bf16.mxu0 %v2580_v20  ;;  %v2616_v50 = vld [vmem:[%s2875_s6 + $0x90] ss:$36 sps:$4 sm:$0xff]   ;;  %v2629_v61 = vld [vmem:[%s3353_s1 + $0x1e0] sm:$0xff]   ;;  %v2638_v3 = vld [vmem:[%s3353_s1 + $0x158] sm:$0xff]  }
  0x20   : > { %2305 = vmatprep.subr.bf16.mxu1 %v2581_v21  ;;  %v2630_v62 = vld [vmem:[%s3353_s1 + $0x120] sm:$0xff]   ;;  %v2634_v1 = vld [vmem:[%s2875_s6 + $0x12c] ss:$36 sps:$4 sm:$0xff]   ;;  %v2639_v5 = vld [vmem:[%s3353_s1 + $0x1d8] sm:$0xff]  }
  0x21   : > { %v2631_v63 = vld [vmem:[%s3353_s1 + $0x1a0] sm:$0xff]   ;;  %v2637_v4 = vld [vmem:[%s2875_s6 + $0x128] ss:$36 sps:$4 sm:$0xff]   ;;  %v2640_v6 = vld [vmem:[%s3353_s1 + $0x118] sm:$0xff]  }
  0x22   : > { %2242 = vmatpush3.bf16.msra.mxu0 %v2582_v22  ;;  %v2632_v0 = vld [vmem:[%s2875_s6 + $0x124] ss:$36 sps:$4 sm:$0xff]   ;;  %v2641_v7 = vld [vmem:[%s3353_s1 + $0x198] sm:$0xff]   ;;  %v2642_v8 = vld [vmem:[%s2875_s6 + $0x16c] ss:$36 sps:$4 sm:$0xff]  }
  0x23   : > { %2306 = vmatpush3.bf16.msra.mxu1 %v2583_v23  ;;  %2243 = vmatprep.subr.bf16.mxu0 %v2584_v24  ;;  %v2636_v2 = vld [vmem:[%s2875_s6 + $0x120] ss:$36 sps:$4 sm:$0xff]   ;;  %v2644_v9 = vld [vmem:[%s2875_s6 + $0x174] ss:$36 sps:$4 sm:$0xff]   ;;  %v2646_v12 = vld [vmem:[%s2875_s6 + $0x168] ss:$36 sps:$4 sm:$0xff]  }
  0x24   : > { %2307 = vmatprep.subr.bf16.mxu1 %v2585_v25  ;;  %v2648_v10 = vld [vmem:[%s3353_s1 + $0x150] sm:$0xff]   ;;  %v2654_v17 = vld [vmem:[%s2875_s6 + $0x1bc] ss:$36 sps:$4 sm:$0xff]   ;;  %v2658_v18 = vld [vmem:[%s3353_s1 + $0x148] sm:$0xff]  }
  0x25   : > { %v2649_v11 = vld [vmem:[%s3353_s1 + $0x1d0] sm:$0xff]   ;;  %v2659_v19 = vld [vmem:[%s3353_s1 + $0x1c8] sm:$0xff]   ;;  %v2657_v23 = vld [vmem:[%s2875_s6 + $0x1b8] ss:$36 sps:$4 sm:$0xff]  }
  0x26   : > { %2244 = vmatpush3.bf16.msra.mxu0 %v2586_v26  ;;  %v2650_v13 = vld [vmem:[%s3353_s1 + $0x110] sm:$0xff]   ;;  %v2660_v20 = vld [vmem:[%s3353_s1 + $0x108] sm:$0xff]   ;;  %v2662_v24 = vld [vmem:[%s2875_s6 + $0x1fc] ss:$36 sps:$4 sm:$0xff]  }
  0x27   : > { %2308 = vmatpush3.bf16.msra.mxu1 %v2587_v27  ;;  %2245 = vmatprep.subr.bf16.mxu0 %v2588_v28  ;;  %v2651_v14 = vld [vmem:[%s3353_s1 + $0x190] sm:$0xff]   ;;  %v2661_v21 = vld [vmem:[%s3353_s1 + $0x188] sm:$0xff]   ;;  %v2668_v26 = vld [vmem:[%s3353_s1 + $0x140] sm:$0xff]  }
  0x28   : > { %2309 = vmatprep.subr.bf16.mxu1 %v2589_v29  ;;  %v2647_v15 = vld [vmem:[%s2875_s6 + $0x170] ss:$36 sps:$4 sm:$0xff]   ;;  %v2664_v25 = vld [vmem:[%s2875_s6 + $0x204] ss:$36 sps:$4 sm:$0xff]  }
  0x29   : > { %v2652_v16 = vld [vmem:[%s2875_s6 + $0x1b4] ss:$36 sps:$4 sm:$0xff]   ;;  %v2669_v27 = vld [vmem:[%s3353_s1 + $0x1c0] sm:$0xff]  }
  0x2a   : > { %2246 = vmatpush3.bf16.msra.mxu0 %v2590_v30  ;;  %v2656_v22 = vld [vmem:[%s2875_s6 + $0x1b0] ss:$36 sps:$4 sm:$0xff]   ;;  %v2670_v28 = vld [vmem:[%s3353_s1 + $0x100] sm:$0xff]   ;;  %v2666_v30 = vld [vmem:[%s2875_s6 + $0x1f8] ss:$36 sps:$4 sm:$0xff]  }
  0x2b   : > { %2310 = vmatpush3.bf16.msra.mxu1 %v2591_v31  ;;  %2359 = vmatprep.subr.bf16.mxu0 %v2598_v36  ;;  %v2671_v29 = vld [vmem:[%s3353_s1 + $0x180] sm:$0xff]   ;;  %v2674_v33 = vld [vmem:[%s2875_s6 + $0x14] ss:$36 sps:$4 sm:$0xff]  }
  0x2c   : > { %2423 = vmatprep.subr.bf16.mxu1 %v2599_v37  ;;  %v2667_v31 = vld [vmem:[%s2875_s6 + $0x200] ss:$36 sps:$4 sm:$0xff]   ;;  %v2672_v35 = vld [vmem:[%s2875_s6 + $0x10] ss:$36 sps:$4 sm:$0xff]   ;;  %v2675_v36 = vld [vmem:[%s2875_s6 + $0x18] ss:$36 sps:$4 sm:$0xff]  }
  0x2d   : > { %1291 = vmatmul.mubr.bf16.vlgmr.msra.gmra.mxu0 %v2592_v32  ;;  %v2678_v32 = vld [vmem:[%s3353_s1 + $0x238] sm:$0xff]  }
  0x2e   : > { %1388 = vmatmul.mubr.bf16.vlgmr.msra.gmra.mxu1 %v2595_v34  ;;  %2360 = vmatpush3.bf16.msra.mxu0 %v2600_v38  ;;  %v2677_v34 = vld [vmem:[%s2875_s6 + $0x1c] ss:$36 sps:$4 sm:$0xff]   ;;  %v2681_v38 = vld [vmem:[%s2875_s6 + $0x64] ss:$36 sps:$4 sm:$0xff]  }
  0x2f   : > { %2424 = vmatpush3.bf16.msra.mxu1 %v2601_v39  ;;  %1298 = vmatprep.mubr.bf16.mxu0 %v2602_v40  ;;  %v2679_v37 = vld [vmem:[%s2875_s6 + $0x5c] ss:$36 sps:$4 sm:$0xff]   ;;  %v2685_v39 = vld [vmem:[%s3353_s1 + $0x230] sm:$0xff]   ;;  %v2692_v40 = vld [vmem:[%s3353_s1 + $0x228] sm:$0xff]  }
  0x30   : > { %1395 = vmatprep.mubr.bf16.mxu1 %v2604_v41  ;;  %2361 = vmatprep.subr.bf16.mxu0 %v2608_v44  ;;  %v2683_v41 = vld [vmem:[%s2875_s6 + $0x58] ss:$36 sps:$4 sm:$0xff]   ;;  %v2688_v44 = vld [vmem:[%s2875_s6 + $0xac] ss:$36 sps:$4 sm:$0xff]  }
  0x31   : > { %2425 = vmatprep.subr.bf16.mxu1 %v2609_v45  ;;  %v2699_v45 = vld [vmem:[%s3353_s1 + $0x220] sm:$0xff]  }
  0x32   : > { %2362 = vmatpush3.bf16.msra.mxu0 %v2610_v46  ;;  %v2706_v46 = vld [vmem:[%s3353_s1 + $0x218] sm:$0xff]  }
  0x33   : > { %2426 = vmatpush3.bf16.msra.mxu1 %v2611_v47  ;;  %2363 = vmatprep.subr.bf16.mxu0 %v2618_v52  ;;  %v2690_v47 = vld [vmem:[%s2875_s6 + $0xa0] ss:$36 sps:$4 sm:$0xff]   ;;  %v2697_v52 = vld [vmem:[%s2875_s6 + $0xe8] ss:$36 sps:$4 sm:$0xff]  }
  0x34   : > { %2427 = vmatprep.subr.bf16.mxu1 %v2619_v53  ;;  %v2720_v53 = vld [vmem:[%s3353_s1 + $0x208] sm:$0xff]  }
  0x35   : > { %1299 = vmatmul.mubr.bf16.gmra.mxu0 %v2606_v42  ;;  %v2684_v42 = vld [vmem:[%s2875_s6 + $0x60] ss:$36 sps:$4 sm:$0xff]  }
  0x36   : > { %1396 = vmatmul.mubr.bf16.gmra.mxu1 %v2607_v43  ;;  %1306 = vmatprep.mubr.bf16.mxu0 %v2612_v48  ;;  %v2686_v43 = vld [vmem:[%s2875_s6 + $0xa4] ss:$36 sps:$4 sm:$0xff]  }
  0x37   : > { %1403 = vmatprep.mubr.bf16.mxu1 %v2614_v49  ;;  %2364 = vmatpush3.bf16.msra.mxu0 %v2620_v54  ;;  %v2691_v48 = vld [vmem:[%s2875_s6 + $0xa8] ss:$36 sps:$4 sm:$0xff]   ;;  %v2698_v54 = vld [vmem:[%s2875_s6 + $0xf0] ss:$36 sps:$4 sm:$0xff]  }
  0x38   : > { %2428 = vmatpush3.bf16.msra.mxu1 %v2621_v55  ;;  %2365 = vmatprep.subr.bf16.mxu0 %v2628_v60  ;;  %v2693_v49 = vld [vmem:[%s2875_s6 + $0xec] ss:$36 sps:$4 sm:$0xff]   ;;  %v2700_v55 = vld [vmem:[%s2875_s6 + $0x134] ss:$36 sps:$4 sm:$0xff]   ;;  %v2707_v60 = vld [vmem:[%s2875_s6 + $0x17c] ss:$36 sps:$4 sm:$0xff]  }
  0x39   : > { %2429 = vmatprep.subr.bf16.mxu1 %v2629_v61  ;;  %v2709_v61 = vld [vmem:[%s2875_s6 + $0x184] ss:$36 sps:$4 sm:$0xff]  }
  0x3b   : > { %2366 = vmatpush3.bf16.msra.mxu0 %v2630_v62  ;;  %v2711_v62 = vld [vmem:[%s2875_s6 + $0x178] ss:$36 sps:$4 sm:$0xff]  }
  0x3c   : > { %2430 = vmatpush3.bf16.msra.mxu1 %v2631_v63  ;;  %2367 = vmatprep.subr.bf16.mxu0 %v2638_v3  ;;  %v2712_v63 = vld [vmem:[%s2875_s6 + $0x180] ss:$36 sps:$4 sm:$0xff]   ;;  %v2719_v3 = vld [vmem:[%s2875_s6 + $0x1c8] ss:$36 sps:$4 sm:$0xff]  }
  0x3d   : > { %1307 = vmatmul.mubr.bf16.gmra.mxu0 %v2616_v50  ;;  %2431 = vmatprep.subr.bf16.mxu1 %v2639_v5  ;;  %v2695_v50 = vld [vmem:[%s2875_s6 + $0xf4] ss:$36 sps:$4 sm:$0xff]  }
  0x3e   : > { %1404 = vmatmul.mubr.bf16.gmra.mxu1 %v2617_v51  ;;  %1314 = vmatprep.mubr.bf16.mxu0 %v2622_v56  ;;  %v2713_v51 = vld [vmem:[%s3353_s1 + $0x210] sm:$0xff]   ;;  %v2702_v56 = vld [vmem:[%s2875_s6 + $0x13c] ss:$36 sps:$4 sm:$0xff]  }
  0x3f   : > { %1411 = vmatprep.mubr.bf16.mxu1 %v2624_v57  ;;  %2368 = vmatpush3.bf16.msra.mxu0 %v2640_v6  ;;  %v2727_v57 = vld [vmem:[%s3353_s1 + $0x200] sm:$0xff]   ;;  %v2723_v5 = vld [vmem:[%s2875_s6 + $0x214] ss:$36 sps:$4 sm:$0xff]   ;;  %v2725_v6 = vld [vmem:[%s2875_s6 + $0x208] ss:$36 sps:$4 sm:$0xff]  }
  0x40   : > { %2432 = vmatpush3.bf16.msra.mxu1 %v2641_v7  ;;  %2369 = vmatprep.subr.bf16.mxu0 %v2648_v10  ;;  %v2726_v7 = vld [vmem:[%s2875_s6 + $0x210] ss:$36 sps:$4 sm:$0xff]   ;;  %v2730_v10 = vld [vmem:[%s2875_s6 + $0x68] ss:$36 sps:$4 sm:$0xff]  }
  0x41   : > { %2433 = vmatprep.subr.bf16.mxu1 %v2649_v11  ;;  %v2731_v11 = vld [vmem:[%s2875_s6 + $0x188] ss:$36 sps:$4 sm:$0xff]  }
  0x43   : > { %2370 = vmatpush3.bf16.msra.mxu0 %v2650_v13  ;;  %v2733_v13 = vld [vmem:[%s2875_s6 + $0x1d0] ss:$36 sps:$4 sm:$0xff]  }
  0x44   : > { %2434 = vmatpush3.bf16.msra.mxu1 %v2651_v14  ;;  %2371 = vmatprep.subr.bf16.mxu0 %v2658_v18  ;;  %v2734_v14 = vld [vmem:[%s2875_s6 + $0xf8] ss:$36 sps:$4 sm:$0xff]   ;;  %v3078_v18 = vld [vmem:[%s3354_s2] ss:$0 sm:$0xff] }
  0x45   : > { %1315 = vmatmul.mubr.bf16.gmra.mxu0 %v2626_v58  ;;  %2435 = vmatprep.subr.bf16.mxu1 %v2659_v19  ;;  %v2704_v58 = vld [vmem:[%s2875_s6 + $0x130] ss:$36 sps:$4 sm:$0xff]  }
  0x46   : > { %1412 = vmatmul.mubr.bf16.gmra.mxu1 %v2627_v59  ;;  %1322 = vmatprep.mubr.bf16.mxu0 %v2632_v0  ;;  %v2705_v59 = vld [vmem:[%s2875_s6 + $0x138] ss:$36 sps:$4 sm:$0xff]   ;;  %v2714_v0 = vld [vmem:[%s2875_s6 + $0x1c4] ss:$36 sps:$4 sm:$0xff]  }
  0x47   : > { %1419 = vmatprep.mubr.bf16.mxu1 %v2634_v1  ;;  %2372 = vmatpush3.bf16.msra.mxu0 %v2660_v20  ;;  %v2716_v1 = vld [vmem:[%s2875_s6 + $0x1cc] ss:$36 sps:$4 sm:$0xff]  }
  0x48   : > { %2436 = vmatpush3.bf16.msra.mxu1 %v2661_v21  ;;  %2373 = vmatprep.subr.bf16.mxu0 %v2668_v26 }
  0x49   : > { %2437 = vmatprep.subr.bf16.mxu1 %v2669_v27 }
  0x4b   : > { %2374 = vmatpush3.bf16.msra.mxu0 %v2670_v28 }
  0x4c   : > { %2438 = vmatpush3.bf16.msra.mxu1 %v2671_v29  ;;  %2503 = vmatprep.subr.bf16.mxu0 %v2678_v32 }
  0x4d   : > { %1323 = vmatmul.mubr.bf16.gmra.mxu0 %v2636_v2  ;;  %2535 = vmatprep.subr.bf16.mxu1 %v2678_v32  ;;  %v2718_v2 = vld [vmem:[%s2875_s6 + $0x1c0] ss:$36 sps:$4 sm:$0xff]  }
  0x4e   : > { %1420 = vmatmul.mubr.bf16.gmra.mxu1 %v2637_v4  ;;  %1330 = vmatprep.mubr.bf16.mxu0 %v2642_v8  ;;  %v2721_v4 = vld [vmem:[%s2875_s6 + $0x20c] ss:$36 sps:$4 sm:$0xff]   ;;  %v2728_v8 = vld [vmem:[%s2875_s6 + $0x20] ss:$36 sps:$4 sm:$0xff]  }
  0x4f   : > { %1427 = vmatprep.mubr.bf16.mxu1 %v2644_v9  ;;  %v2729_v9 = vld [vmem:[%s2875_s6 + $0x140] ss:$36 sps:$4 sm:$0xff]  }
  0x55   : > { %1331 = vmatmul.mubr.bf16.gmra.mxu0 %v2646_v12  ;;  %v2732_v12 = vld [vmem:[%s2875_s6 + $0xb0] ss:$36 sps:$4 sm:$0xff]  }
  0x56   : > { %1428 = vmatmul.mubr.bf16.gmra.mxu1 %v2647_v15  ;;  %1338 = vmatprep.mubr.bf16.mxu0 %v2652_v16  ;;  %v2735_v15 = vld [vmem:[%s2875_s6 + $0x218] ss:$36 sps:$4 sm:$0xff]   ;;  %s1963_s6 = sshll.u32 %s3413_s23, 2 }
  0x57   : > { %1435 = vmatprep.mubr.bf16.mxu1 %v2654_v17  ;;  %s218_s29 = scalar_lea.vmem %s3355_s3, %s1963_s6  ;;  %s3318_s16 = scalar_lea.vmem %s3356_s4, %s1963_s6 }
  0x5d   : > { %1339 = vmatmul.mubr.bf16.gmra.mxu0 %v2656_v22 }
  0x5e   : > { %1436 = vmatmul.mubr.bf16.gmra.mxu1 %v2657_v23  ;;  %1346 = vmatprep.mubr.bf16.mxu0 %v2662_v24 }
  0x5f   : > { %1443 = vmatprep.mubr.bf16.mxu1 %v2664_v25 }
  0x65   : > { %1347 = vmatmul.mubr.bf16.gmra.mxu0 %v2666_v30 }
  0x66   : > { %1444 = vmatmul.mubr.bf16.gmra.mxu1 %v2667_v31  ;;  %1484 = vmatprep.mubr.bf16.mxu0 %v2674_v33 }
  0x67   : > { %1581 = vmatprep.mubr.bf16.mxu1 %v2677_v34 }
  0x6d   : > { %1485 = vmatmul.mubr.bf16.vlgmr.msra.gmra.mxu0 %v2672_v35 }
  0x6e   : > { %1582 = vmatmul.mubr.bf16.vlgmr.msra.gmra.mxu1 %v2675_v36  ;;  %2504 = vmatpush3.bf16.msra.mxu0 %v2678_v32 }
  0x6f   : > { %2543 = vmatpush3.bf16.msra.mxu1 %v2678_v32  ;;  %1492 = vmatprep.mubr.bf16.mxu0 %v2679_v37 }
  0x70   : > { %1589 = vmatprep.mubr.bf16.mxu1 %v2681_v38  ;;  %2505 = vmatprep.subr.bf16.mxu0 %v2685_v39 }
  0x71   : > { %2536 = vmatprep.subr.bf16.mxu1 %v2685_v39 }
  0x72   : > { %2506 = vmatpush3.bf16.msra.mxu0 %v2685_v39 }
  0x73   : > { %2544 = vmatpush3.bf16.msra.mxu1 %v2685_v39  ;;  %2507 = vmatprep.subr.bf16.mxu0 %v2692_v40 }
  0x74   : > { %2537 = vmatprep.subr.bf16.mxu1 %v2692_v40 }
  0x75   : > { %1493 = vmatmul.mubr.bf16.gmra.mxu0 %v2683_v41 }
  0x76   : > { %1590 = vmatmul.mubr.bf16.gmra.mxu1 %v2684_v42  ;;  %1500 = vmatprep.mubr.bf16.mxu0 %v2686_v43 }
  0x77   : > { %1597 = vmatprep.mubr.bf16.mxu1 %v2688_v44  ;;  %2508 = vmatpush3.bf16.msra.mxu0 %v2692_v40 }
  0x78   : > { %2545 = vmatpush3.bf16.msra.mxu1 %v2692_v40  ;;  %2509 = vmatprep.subr.bf16.mxu0 %v2699_v45 }
  0x79   : > { %2538 = vmatprep.subr.bf16.mxu1 %v2699_v45 }
  0x7b   : > { %2510 = vmatpush3.bf16.msra.mxu0 %v2699_v45 }
  0x7c   : > { %2546 = vmatpush3.bf16.msra.mxu1 %v2699_v45  ;;  %2511 = vmatprep.subr.bf16.mxu0 %v2706_v46 }
  0x7d   : > { %1501 = vmatmul.mubr.bf16.gmra.mxu0 %v2690_v47  ;;  %2539 = vmatprep.subr.bf16.mxu1 %v2706_v46 }
  0x7e   : > { %1598 = vmatmul.mubr.bf16.gmra.mxu1 %v2691_v48  ;;  %1508 = vmatprep.mubr.bf16.mxu0 %v2693_v49 }
  0x7f   : > { %1605 = vmatprep.mubr.bf16.mxu1 %v2695_v50  ;;  %2512 = vmatpush3.bf16.msra.mxu0 %v2706_v46 }
  0x80   : > { %2547 = vmatpush3.bf16.msra.mxu1 %v2706_v46  ;;  %2513 = vmatprep.subr.bf16.mxu0 %v2713_v51 }
  0x81   : > { %2540 = vmatprep.subr.bf16.mxu1 %v2713_v51 }
  0x83   : > { %2514 = vmatpush3.bf16.msra.mxu0 %v2713_v51 }
  0x84   : > { %2548 = vmatpush3.bf16.msra.mxu1 %v2713_v51  ;;  %2515 = vmatprep.subr.bf16.mxu0 %v2720_v53 }
  0x85   : > { %1509 = vmatmul.mubr.bf16.gmra.mxu0 %v2697_v52  ;;  %2541 = vmatprep.subr.bf16.mxu1 %v2720_v53 }
  0x86   : > { %1606 = vmatmul.mubr.bf16.gmra.mxu1 %v2698_v54  ;;  %1516 = vmatprep.mubr.bf16.mxu0 %v2700_v55 }
  0x87   : > { %1613 = vmatprep.mubr.bf16.mxu1 %v2702_v56  ;;  %2516 = vmatpush3.bf16.msra.mxu0 %v2720_v53 }
  0x88   : > { %2549 = vmatpush3.bf16.msra.mxu1 %v2720_v53  ;;  %2517 = vmatprep.subr.bf16.mxu0 %v2727_v57 }
  0x89   : > { %2542 = vmatprep.subr.bf16.mxu1 %v2727_v57 }
  0x8b   : > { %2518 = vmatpush3.bf16.msra.mxu0 %v2727_v57 }
  0x8c   : > { %2550 = vmatpush3.bf16.msra.mxu1 %v2727_v57 }
  0x8d   : > { %1517 = vmatmul.mubr.bf16.gmra.mxu0 %v2704_v58 }
  0x8e   : > { %1614 = vmatmul.mubr.bf16.gmra.mxu1 %v2705_v59  ;;  %1524 = vmatprep.mubr.bf16.mxu0 %v2707_v60 }
  0x8f   : > { %1621 = vmatprep.mubr.bf16.mxu1 %v2709_v61 }
  0x95   : > { %1525 = vmatmul.mubr.bf16.gmra.mxu0 %v2711_v62 }
  0x96   : > { %1622 = vmatmul.mubr.bf16.gmra.mxu1 %v2712_v63  ;;  %1532 = vmatprep.mubr.bf16.mxu0 %v2714_v0 }
  0x97   : > { %1629 = vmatprep.mubr.bf16.mxu1 %v2716_v1 }
  0x9d   : > { %1533 = vmatmul.mubr.bf16.gmra.mxu0 %v2718_v2 }
  0x9e   : > { %1630 = vmatmul.mubr.bf16.gmra.mxu1 %v2719_v3  ;;  %1540 = vmatprep.mubr.bf16.mxu0 %v2721_v4 }
  0x9f   : > { %1637 = vmatprep.mubr.bf16.mxu1 %v2723_v5 }
  0xa5   : > { %1541 = vmatmul.mubr.bf16.gmra.mxu0 %v2725_v6 }
  0xa6   : > { %1638 = vmatmul.mubr.bf16.gmra.mxu1 %v2726_v7  ;;  %2519 = vmatprep.mubr.bf16.mxu0 %v2728_v8 }
  0xa7   : > { %2527 = vmatprep.mubr.bf16.mxu1 %v2729_v9 }
  0xad   : > { %2520 = vmatmul.mubr.bf16.vlgmr.msra.gmra.mxu0 %v2730_v10 }
  0xae   : > { %2528 = vmatmul.mubr.bf16.vlgmr.msra.gmra.mxu1 %v2731_v11  ;;  %2523 = vmatprep.mubr.bf16.mxu0 %v2732_v12 }
  0xaf   : > { %2531 = vmatprep.mubr.bf16.mxu1 %v2733_v13 }
  0xb5   : > { %2524 = vmatmul.mubr.bf16.gmra.mxu0 %v2734_v14 }
  0xb6   : > { %2532 = vmatmul.mubr.bf16.gmra.mxu1 %v2735_v15 }
  0xed   : > { %v2247_v16 = vpop.f32.mrf.mxu0 }
  0xee   : > { %v2311_v17 = vpop.f32.mrf.mxu1 }
  0xef   : > { %v2248_v19 = vpop.f32.mrf.mxu0 }
  0xf0   : > { %v2249_v20 = vadd.f32 %v2248_v19, %v2247_v16  ;;  %v2312_v21 = vpop.f32.mrf.mxu1 }
  0xf1   : > { %v2313_v22 = vadd.f32 %v2312_v21, %v2311_v17  ;;  %v2250_v23 = vpop.f32.mrf.mxu0 }
  0xf2   : > { %v1293_v24 = vadd.f32 %v2249_v20, %v3078_v18  ;;  %v2314_v25 = vpop.f32.mrf.mxu1 }
  0xf3   : > { %v2251_v26 = vpop.f32.mrf.mxu0 }
  0xf4   : > { %v3081_v27 = vadd.f32 %v2313_v22, %v1293_v24  ;;  %v2252_v28 = vadd.f32 %v2251_v26, %v2250_v23  ;;  %v2315_v29 = vpop.f32.mrf.mxu1 }
  0xf5   : > { %v2316_v30 = vadd.f32 %v2315_v29, %v2314_v25  ;;  %v2253_v31 = vpop.f32.mrf.mxu0 }
  0xf6   : > { %v1296_v32 = vadd.f32 %v2252_v28, %v3078_v18  ;;  %v2317_v33 = vpop.f32.mrf.mxu1 }
  0xf7   : > { %v2254_v34 = vpop.f32.mrf.mxu0 }
  0xf8   : > { %v3084_v35 = vadd.f32 %v2316_v30, %v1296_v32  ;;  %v2255_v36 = vadd.f32 %v2254_v34, %v2253_v31  ;;  %v2318_v37 = vpop.f32.mrf.mxu1 }
  0xf9   : > { %v2319_v38 = vadd.f32 %v2318_v37, %v2317_v33  ;;  %v2256_v39 = vpop.f32.mrf.mxu0 }
  0xfa   : > { %v1301_v40 = vadd.f32 %v2255_v36, %v3078_v18  ;;  %v2320_v41 = vpop.f32.mrf.mxu1 }
  0xfb   : > { %v2257_v42 = vpop.f32.mrf.mxu0 }
  0xfc   : > { %v3087_v43 = vadd.f32 %v2319_v38, %v1301_v40  ;;  %v2258_v44 = vadd.f32 %v2257_v42, %v2256_v39  ;;  %v2321_v45 = vpop.f32.mrf.mxu1 }
  0xfd   : > { %v2322_v46 = vadd.f32 %v2321_v45, %v2320_v41  ;;  %v2259_v47 = vpop.f32.mrf.mxu0 }
  0xfe   : > { %v1304_v48 = vadd.f32 %v2258_v44, %v3078_v18  ;;  %v2323_v49 = vpop.f32.mrf.mxu1 }
  0xff   : > { %v2260_v50 = vpop.f32.mrf.mxu0 }
 0x100   : > { %v3090_v51 = vadd.f32 %v2322_v46, %v1304_v48  ;;  %v2261_v52 = vadd.f32 %v2260_v50, %v2259_v47  ;;  %v2324_v53 = vpop.f32.mrf.mxu1 }
 0x101   : > { %v2325_v54 = vadd.f32 %v2324_v53, %v2323_v49  ;;  %v2262_v55 = vpop.f32.mrf.mxu0 }
 0x102   : > { %v1309_v56 = vadd.f32 %v2261_v52, %v3078_v18  ;;  %v2326_v57 = vpop.f32.mrf.mxu1 }
 0x103   : > { %v2263_v58 = vpop.f32.mrf.mxu0 }
 0x104   : > { %v3093_v59 = vadd.f32 %v2325_v54, %v1309_v56  ;;  %v2264_v60 = vadd.f32 %v2263_v58, %v2262_v55  ;;  %v2327_v61 = vpop.f32.mrf.mxu1 }
 0x105   : > { %v2328_v62 = vadd.f32 %v2327_v61, %v2326_v57  ;;  %v2265_v63 = vpop.f32.mrf.mxu0 }
 0x106   : > { %v1312_v0 = vadd.f32 %v2264_v60, %v3078_v18  ;;  %v2329_v1 = vpop.f32.mrf.mxu1 }
 0x107   : > { %v2266_v2 = vpop.f32.mrf.mxu0 }
 0x108   : > { %v3096_v3 = vadd.f32 %v2328_v62, %v1312_v0  ;;  %v2267_v4 = vadd.f32 %v2266_v2, %v2265_v63  ;;  %v2330_v5 = vpop.f32.mrf.mxu1 }
 0x109   : > { %v2331_v6 = vadd.f32 %v2330_v5, %v2329_v1  ;;  %v2268_v7 = vpop.f32.mrf.mxu0 }
 0x10a   : > { %v1317_v8 = vadd.f32 %v2267_v4, %v3078_v18  ;;  %v2332_v9 = vpop.f32.mrf.mxu1 }
 0x10b   : > { %v2269_v10 = vpop.f32.mrf.mxu0 }
 0x10c   : > { %v3099_v11 = vadd.f32 %v2331_v6, %v1317_v8  ;;  %v2270_v12 = vadd.f32 %v2269_v10, %v2268_v7  ;;  %v2333_v13 = vpop.f32.mrf.mxu1 }
 0x10d   : > { %v2334_v14 = vadd.f32 %v2333_v13, %v2332_v9  ;;  %v2271_v15 = vpop.f32.mrf.mxu0 }
 0x10e   : > { %v1320_v16 = vadd.f32 %v2270_v12, %v3078_v18  ;;  %v2335_v17 = vpop.f32.mrf.mxu1 }
 0x10f   : > { %v2272_v19 = vpop.f32.mrf.mxu0 }
 0x110   : > { %v3102_v20 = vadd.f32 %v2334_v14, %v1320_v16  ;;  %v2273_v21 = vadd.f32 %v2272_v19, %v2271_v15  ;;  %v2336_v22 = vpop.f32.mrf.mxu1 }
 0x111   : > { %v2337_v23 = vadd.f32 %v2336_v22, %v2335_v17  ;;  %v2274_v24 = vpop.f32.mrf.mxu0 }
 0x112   : > { %v1325_v25 = vadd.f32 %v2273_v21, %v3078_v18  ;;  %v2338_v26 = vpop.f32.mrf.mxu1 }
 0x113   : > { %v2275_v28 = vpop.f32.mrf.mxu0 }
 0x114   : > { %v3105_v29 = vadd.f32 %v2337_v23, %v1325_v25  ;;  %v2276_v30 = vadd.f32 %v2275_v28, %v2274_v24  ;;  %v2339_v31 = vpop.f32.mrf.mxu1 }
 0x115   : > { %v2340_v32 = vadd.f32 %v2339_v31, %v2338_v26  ;;  %v2277_v33 = vpop.f32.mrf.mxu0 }
 0x116   : > { %v1328_v34 = vadd.f32 %v2276_v30, %v3078_v18  ;;  %v2341_v36 = vpop.f32.mrf.mxu1 }
 0x117   : > { %v2278_v37 = vpop.f32.mrf.mxu0 }
 0x118   : > { %v3108_v38 = vadd.f32 %v2340_v32, %v1328_v34  ;;  %v2279_v39 = vadd.f32 %v2278_v37, %v2277_v33  ;;  %v2342_v40 = vpop.f32.mrf.mxu1 }
 0x119   : > { %v2343_v41 = vadd.f32 %v2342_v40, %v2341_v36  ;;  %v2280_v42 = vpop.f32.mrf.mxu0 }
 0x11a   : > { %3361 = vst [vmem:[#allocation2_spill] sm:$0xff] %v3108_v38  ;;  %v1333_v44 = vadd.f32 %v2279_v39, %v3078_v18  ;;  %v2344_v45 = vpop.f32.mrf.mxu1 }
 0x11b   : > { %v2281_v46 = vpop.f32.mrf.mxu0 }
 0x11c   : > { %v3111_v47 = vadd.f32 %v2343_v41, %v1333_v44  ;;  %v2282_v48 = vadd.f32 %v2281_v46, %v2280_v42  ;;  %v2345_v49 = vpop.f32.mrf.mxu1 }
 0x11d   : > { %v2346_v50 = vadd.f32 %v2345_v49, %v2344_v45  ;;  %v2283_v52 = vpop.f32.mrf.mxu0 }
 0x11e   : > { %v1336_v53 = vadd.f32 %v2282_v48, %v3078_v18  ;;  %v2347_v54 = vpop.f32.mrf.mxu1 }
 0x11f   : > { %v2284_v55 = vpop.f32.mrf.mxu0 }
 0x120   : > { %v3114_v56 = vadd.f32 %v2346_v50, %v1336_v53  ;;  %v2285_v57 = vadd.f32 %v2284_v55, %v2283_v52  ;;  %v2348_v58 = vpop.f32.mrf.mxu1 }
 0x121   : > { %v2349_v60 = vadd.f32 %v2348_v58, %v2347_v54  ;;  %v2286_v61 = vpop.f32.mrf.mxu0 }
 0x122   : > { %3362 = vst [vmem:[#allocation3_spill] sm:$0xff] %v3114_v56  ;;  %v1341_v62 = vadd.f32 %v2285_v57, %v3078_v18  ;;  %v2350_v63 = vpop.f32.mrf.mxu1 }
 0x123   : > { %v2287_v0 = vpop.f32.mrf.mxu0 }
 0x124   : > { %v3117_v1 = vadd.f32 %v2349_v60, %v1341_v62  ;;  %v2288_v2 = vadd.f32 %v2287_v0, %v2286_v61  ;;  %v2351_v4 = vpop.f32.mrf.mxu1 }
 0x125   : > { %v2352_v5 = vadd.f32 %v2351_v4, %v2350_v63  ;;  %v2289_v6 = vpop.f32.mrf.mxu0 }
 0x126   : > { %3363 = vst [vmem:[#allocation4_spill] sm:$0xff] %v3117_v1  ;;  %v1344_v7 = vadd.f32 %v2288_v2, %v3078_v18  ;;  %v2353_v8 = vpop.f32.mrf.mxu1 }
 0x127   : > { %v2290_v9 = vpop.f32.mrf.mxu0 }
 0x128   : > { %v3120_v10 = vadd.f32 %v2352_v5, %v1344_v7  ;;  %v2291_v12 = vadd.f32 %v2290_v9, %v2289_v6  ;;  %v2354_v13 = vpop.f32.mrf.mxu1 }
 0x129   : > { %v2355_v14 = vadd.f32 %v2354_v13, %v2353_v8  ;;  %v2292_v15 = vpop.f32.mrf.mxu0 }
 0x12a   : > { %3364 = vst [vmem:[#allocation5_spill] sm:$0xff] %v3120_v10  ;;  %v1349_v16 = vadd.f32 %v2291_v12, %v3078_v18  ;;  %v2356_v17 = vpop.f32.mrf.mxu1 }
 0x12b   : > { %v2293_v19 = vpop.f32.mrf.mxu0 }
 0x12c   : > { %v3123_v21 = vadd.f32 %v2355_v14, %v1349_v16  ;;  %v2294_v22 = vadd.f32 %v2293_v19, %v2292_v15  ;;  %v2357_v23 = vpop.f32.mrf.mxu1 }
 0x12d   : > { %v2358_v24 = vadd.f32 %v2357_v23, %v2356_v17  ;;  %v2375_v25 = vpop.f32.mrf.mxu0 }
 0x12e   : > { %3365 = vst [vmem:[#allocation6_spill] sm:$0xff] %v3123_v21  ;;  %v1352_v26 = vadd.f32 %v2294_v22, %v3078_v18  ;;  %v2439_v28 = vpop.f32.mrf.mxu1 }
 0x12f   : > { %v2376_v30 = vpop.f32.mrf.mxu0 }
 0x130   : > { %v3126_v31 = vadd.f32 %v2358_v24, %v1352_v26  ;;  %v2377_v32 = vadd.f32 %v2376_v30, %v2375_v25  ;;  %v2440_v33 = vpop.f32.mrf.mxu1 }
 0x131   : > { %v2378_v34 = vpop.f32.mrf.mxu0  ;;  %v2441_v37 = vadd.f32 %v2440_v33, %v2439_v28  ;;  %v3197_v33 = vld [vmem:[%s218_s29 + $0x8] sm:$0xff]  }
 0x132   : > { %3366 = vst [vmem:[#allocation7_spill] sm:$0xff] %v3126_v31  ;;  %v1487_v36 = vadd.f32 %v2377_v32, %v3081_v27  ;;  %v3129_v39 = vpop.f32.mrf.mxu1  ;;  %v3205_v31 = vld [vmem:[%s218_s29 + $0x20] sm:$0xff]  }
 0x133   : > { %v2379_v40 = vpop.f32.mrf.mxu0 }
 0x134   : > { %v3131_v41 = vpop.f32.mrf.mxu1  ;;  %v3133_v42 = vadd.f32 %v2441_v37, %v1487_v36  ;;  %v3199_v36 = vld [vmem:[%s218_s29 + $0x28] sm:$0xff]   ;;  %v3201_v37 = vld [vmem:[%s218_s29] sm:$0xff]  }
 0x135   : > { %v3135_v44 = vpop.f32.mrf.mxu0  ;;  %3376 = vst [vmem:[#allocation17_spill] sm:$0xff] %v3199_v36  ;;  %3377 = vst [vmem:[#allocation18_spill] sm:$0xff] %v3201_v37 }
 0x136   : > { %3367 = vst [vmem:[#allocation8_spill] sm:$0xff] %v3133_v42  ;;  %v3137_v18 = vpop.f32.mrf.mxu1  ;;  %v2380_v42 = vadd.f32 %v2379_v40, %v2378_v34 }
 0x137   : > { %v2382_v45 = vpop.f32.mrf.mxu0 }
 0x138   : > { %v3139_v46 = vpop.f32.mrf.mxu1 }
 0x139   : > { %v2384_v48 = vpop.f32.mrf.mxu0 }
 0x13a   : > { %v3141_v49 = vpop.f32.mrf.mxu1 }
 0x13b   : > { %v2385_v50 = vpop.f32.mrf.mxu0 }
 0x13c   : > { %v3143_v27 = vpop.f32.mrf.mxu1 }
 0x13d   : > { %v2387_v52 = vpop.f32.mrf.mxu0 }
 0x13e   : > { %v3145_v53 = vpop.f32.mrf.mxu1 }
 0x13f   : > { %v2388_v54 = vpop.f32.mrf.mxu0 }
 0x140   : > { %v3147_v55 = vpop.f32.mrf.mxu1  ;;  %v2389_v38 = vadd.f32 %v2388_v54, %v2387_v52 }
 0x141   : > { %v3149_v57 = vpop.f32.mrf.mxu0 }
 0x142   : > { %v3151_v58 = vpop.f32.mrf.mxu1  ;;  %v1503_v36 = vadd.f32 %v2389_v38, %v3093_v59 }
 0x143   : > { %v3153_v60 = vpop.f32.mrf.mxu0 }
 0x144   : > { %v3155_v61 = vpop.f32.mrf.mxu1 }
 0x145   : > { %v2393_v62 = vpop.f32.mrf.mxu0 }
 0x146   : > { %v3157_v63 = vpop.f32.mrf.mxu1 }
 0x147   : > { %v2394_v0 = vpop.f32.mrf.mxu0 }
 0x148   : > { %v3159_v2 = vpop.f32.mrf.mxu1 }
 0x149   : > { %v3161_v4 = vpop.f32.mrf.mxu0 }
 0x14a   : > { %v3163_v5 = vpop.f32.mrf.mxu1 }
 0x14b   : > { %3368 = vst [vmem:[#allocation9_spill] sm:$0xff] %v3163_v5  ;;  %v3165_v6 = vpop.f32.mrf.mxu0  ;;  %v3214_v5 = vld [vmem:[%s218_s29 + $0x38] sm:$0xff]  }
 0x14c   : > { %v3167_v7 = vpop.f32.mrf.mxu1  ;;  %v2398_v59 = vadd.f32 %v3165_v6, %v3161_v4  ;;  %v3273_v6 = vadd.f32 %v3155_v61, %v3151_v58 }
 0x14d   : > { %3369 = vst [vmem:[#allocation10_spill] sm:$0xff] %v3167_v7  ;;  %v2399_v8 = vpop.f32.mrf.mxu0  ;;  %v3212_v7 = vld [vmem:[%s218_s29 + $0x18] sm:$0xff]  }
 0x14e   : > { %v3169_v9 = vpop.f32.mrf.mxu1  ;;  %v2159_v34 = vunpack.c.l.bf16 %v3212_v7 }
 0x14f   : > { %3370 = vst [vmem:[#allocation11_spill] sm:$0xff] %v3169_v9  ;;  %v2400_v12 = vpop.f32.mrf.mxu0  ;;  %v2395_v9 = vadd.f32 %v2394_v0, %v2393_v62 }
 0x150   : > { %v3171_v13 = vpop.f32.mrf.mxu1 }
 0x151   : > { %3371 = vst [vmem:[#allocation12_spill] sm:$0xff] %v3171_v13  ;;  %v3173_v14 = vpop.f32.mrf.mxu0 }
 0x152   : > { %v3175_v15 = vpop.f32.mrf.mxu1 }
 0x153   : > { %3372 = vst [vmem:[#allocation13_spill] sm:$0xff] %v3175_v15  ;;  %v3177_v16 = vpop.f32.mrf.mxu0  ;;  %v2386_v15 = vadd.f32 %v2385_v50, %v2384_v48  ;;  %v2444_v50 = vadd.f32 %v3131_v41, %v3129_v39  ;;  %v2447_v48 = vadd.f32 %v3139_v46, %v3137_v18  ;;  %v2392_v39 = vadd.f32 %v3153_v60, %v3149_v57 }
 0x154   : > { %v3179_v17 = vpop.f32.mrf.mxu1  ;;  %v1511_v41 = vadd.f32 %v2395_v9, %v3099_v11  ;;  %v2404_v38 = vadd.f32 %v3177_v16, %v3173_v14  ;;  %v2459_v46 = vadd.f32 %v3159_v2, %v3157_v63  ;;  %v1514_v2 = vadd.f32 %v2398_v59, %v3102_v20  ;;  %v3383_v14 = vld [vmem:[#allocation2_spill] sm:$0xff] }
 0x155   : > { %3373 = vst [vmem:[#allocation14_spill] sm:$0xff] %v3179_v17  ;;  %v2405_v19 = vpop.f32.mrf.mxu0  ;;  %v3224_v17 = vld [vmem:[%s218_s29 + $0x30] sm:$0xff]   ;;  %v1498_v0 = vadd.f32 %v2386_v15, %v3090_v51  ;;  %v2453_v51 = vadd.f32 %v3147_v55, %v3145_v53  ;;  %v3269_v4 = vadd.f32 %v2392_v39, %v3096_v3  ;;  %v3384_v3 = vld [vmem:[#allocation3_spill] sm:$0xff] }
 0x156   : > { %v3181_v22 = vpop.f32.mrf.mxu1  ;;  %v2172_v54 = vunpack.c.h.bf16 %v3224_v17  ;;  %v1522_v15 = vadd.f32 %v2404_v38, %v3383_v14 }
 0x157   : > { %v2406_v23 = vpop.f32.mrf.mxu0 }
 0x158   : > { %v3184_v24 = vpop.f32.mrf.mxu1  ;;  %v3382_v9 = vld [vmem:[#allocation12_spill] sm:$0xff] }
 0x159   : > { %v3186_v25 = vpop.f32.mrf.mxu0 }
 0x15a   : > { %v3188_v26 = vpop.f32.mrf.mxu1 }
 0x15b   : > { %3374 = vst [vmem:[#allocation15_spill] sm:$0xff] %v3188_v26  ;;  %v2409_v28 = vpop.f32.mrf.mxu0 }
 0x15c   : > { %v3195_v30 = vpop.f32.mrf.mxu1 }
 0x15d   : > { %3375 = vst [vmem:[#allocation16_spill] sm:$0xff] %v3195_v30  ;;  %v2411_v32 = vpop.f32.mrf.mxu0  ;;  %v2383_v30 = vadd.f32 %v2382_v45, %v3135_v44  ;;  %v2160_v45 = vunpack.c.h.bf16 %v3212_v7  ;;  %v2401_v44 = vadd.f32 %v2400_v12, %v2399_v8  ;;  %v3266_v8 = vadd.f32 %v2453_v51, %v1503_v36 }
 0x15e   : > { %v3203_v10 = vpop.f32.mrf.mxu1 }
 0x15f   : > { %3378 = vst [vmem:[#allocation19_spill] sm:$0xff] %v3203_v10  ;;  %v2412_v21 = vpop.f32.mrf.mxu0  ;;  %v1490_v10 = vadd.f32 %v2380_v42, %v3084_v35  ;;  %v2407_v35 = vadd.f32 %v2406_v23, %v2405_v19  ;;  %v1495_v62 = vadd.f32 %v2383_v30, %v3087_v43  ;;  %v2450_v43 = vadd.f32 %v3143_v27, %v3141_v49  ;;  %v3385_v30 = vld [vmem:[#allocation4_spill] sm:$0xff] }
 0x160   : > { %v3207_v26 = vpop.f32.mrf.mxu1  ;;  %v2413_v57 = vadd.f32 %v2412_v21, %v2411_v32  ;;  %v1519_v49 = vadd.f32 %v2401_v44, %v3105_v29  ;;  %v1608_v21 = vadd.f32 %v2459_v46, %v1511_v41  ;;  %v3381_v29 = vld [vmem:[#allocation11_spill] sm:$0xff]  ;;  %v3386_v44 = vld [vmem:[#allocation9_spill] sm:$0xff] }
 0x161   : > { %3379 = vst [vmem:[#allocation20_spill] sm:$0xff] %v3207_v26  ;;  %v3216_v1 = vpop.f32.mrf.mxu0  ;;  %v3222_v26 = vld [vmem:[%s218_s29 + $0x10] sm:$0xff]   ;;  %v3251_v23 = vadd.f32 %v2444_v50, %v1490_v10  ;;  %v1527_v11 = vadd.f32 %v2407_v35, %v3111_v47  ;;  %v2410_v10 = vadd.f32 %v2409_v28, %v3186_v25  ;;  %v1592_v53 = vadd.f32 %v2447_v48, %v1495_v62  ;;  %v3388_v48 = vld [vmem:[#allocation13_spill] sm:$0xff]  ;;  %v3389_v50 = vld [vmem:[#allocation14_spill] sm:$0xff] }
 0x162   : > { %3380 = vst [vmem:[#allocation21_spill] sm:$0xff] %v3216_v1  ;;  %v3227_v13 = vpop.f32.mrf.mxu1  ;;  %v2164_v1 = vunpack.c.h.bf16 %v3205_v31  ;;  %v2156_v52 = vunpack.c.h.bf16 %v3222_v26  ;;  %v1595_v55 = vadd.f32 %v2450_v43, %v1498_v0  ;;  %v2471_v47 = vadd.f32 %v3184_v24, %v3181_v22  ;;  %v3387_v22 = vld [vmem:[#allocation10_spill] sm:$0xff]  ;;  %v3390_v39 = vld [vmem:[#allocation15_spill] sm:$0xff] }
 0x163   : > { %v2415_v56 = vpop.f32.mrf.mxu0  ;;  %v2465_v12 = vadd.f32 %v3382_v9, %v3381_v29  ;;  %v1530_v28 = vadd.f32 %v2410_v10, %v3384_v3  ;;  %v1535_v32 = vadd.f32 %v2413_v57, %v3385_v30  ;;  %v2462_v24 = vadd.f32 %v3387_v22, %v3386_v44 }
 0x164   : > { %v3233_v37 = vpop.f32.mrf.mxu1  ;;  %v1624_v36 = vadd.f32 %v2471_v47, %v1527_v11  ;;  %v2468_v20 = vadd.f32 %v3389_v50, %v3388_v48  ;;  %v3391_v41 = vld [vmem:[#allocation16_spill] sm:$0xff]  ;;  %v3395_v11 = vld [vmem:[#allocation6_spill] sm:$0xff]  ;;  %v3399_v48 = vld [vmem:[#allocation5_spill] sm:$0xff] }
 0x165   : > { %v2417_v42 = vpop.f32.mrf.mxu0  ;;  %v1616_v0 = vadd.f32 %v2465_v12, %v1519_v49  ;;  %v1611_v9 = vadd.f32 %v2462_v24, %v1514_v2 }
 0x166   : > { %v2481_v40 = vpop.f32.mrf.mxu1  ;;  %v1619_v29 = vadd.f32 %v2468_v20, %v1522_v15  ;;  %v3400_v15 = vld [vmem:[#allocation17_spill] sm:$0xff] }
 0x167   : > { %v2418_v19 = vpop.f32.mrf.mxu0  ;;  %v3401_v2 = vunpack.c.l.bf16 %v3400_v15 }
 0x168   : > { %v2482_v18 = vpop.f32.mrf.mxu1  ;;  %v2419_v16 = vadd.f32 %v2418_v19, %v2417_v42  ;;  %v2474_v42 = vadd.f32 %v3391_v41, %v3390_v39  ;;  %v3392_v19 = vld [vmem:[#allocation19_spill] sm:$0xff]  ;;  %v3393_v43 = vld [vmem:[#allocation20_spill] sm:$0xff]  ;;  %v3404_v39 = vunpack.c.h.bf16 %v3197_v33 }
 0x169   : > { %v2420_v60 = vpop.f32.mrf.mxu0  ;;  %v2477_v51 = vadd.f32 %v3393_v43, %v3392_v19  ;;  %v3394_v59 = vld [vmem:[#allocation21_spill] sm:$0xff]  ;;  %v2483_v44 = vadd.f32 %v2482_v18, %v2481_v40 }
 0x16a   : > { %v2484_v27 = vpop.f32.mrf.mxu1  ;;  %v2416_v38 = vadd.f32 %v2415_v56, %v3394_v59  ;;  %v1543_v57 = vadd.f32 %v2419_v16, %v3395_v11  ;;  %v1627_v3 = vadd.f32 %v2474_v42, %v1530_v28  ;;  %v3398_v56 = vunpack.c.l.bf16 %v3197_v33 }
 0x16b   : > { %v2421_v63 = vpop.f32.mrf.mxu0  ;;  %v1632_v30 = vadd.f32 %v2477_v51, %v1535_v32 }
 0x16c   : > { %v2485_v25 = vpop.f32.mrf.mxu1  ;;  %v2422_v58 = vadd.f32 %v2421_v63, %v2420_v60  ;;  %v3396_v60 = vld [vmem:[#allocation8_spill] sm:$0xff]  ;;  %v1538_v50 = vadd.f32 %v2416_v38, %v3399_v48  ;;  %v1640_v18 = vadd.f32 %v2483_v44, %v1543_v57 }
 0x16d   : > { %v2521_v61 = vpop.f32.mrf.mxu0 }
 0x16e   : > { %v1689_v35 = vadd.f32 %v2521_v61, %v1592_v53  ;;  %v2529_v62 = vpop.f32.mrf.mxu1  ;;  %v3397_v53 = vld [vmem:[#allocation7_spill] sm:$0xff]  ;;  %v2480_v61 = vadd.f32 %v3233_v37, %v3227_v13 }
 0x16f   : > { %v1721_v46 = vadd.f32 %v2529_v62, %v1624_v36  ;;  %v1680_v10 = vpop.f32.mrf.mxu0  ;;  %v1546_v14 = vadd.f32 %v2422_v58, %v3397_v53  ;;  %v2486_v62 = vadd.f32 %v2485_v25, %v2484_v27  ;;  %v3406_v27 = vunpack.c.h.bf16 %v3400_v15 }
 0x170   : > { %v1681_v47 = vadd.f32 %v1680_v10, %v3396_v60  ;;  %v1712_v63 = vpop.f32.mrf.mxu1  ;;  %v1777_v36 = vadd.f32 %v3398_v56, %v1689_v35 }
 0x171   : > { %v1713_v49 = vadd.f32 %v1712_v63, %v1616_v0  ;;  %v2522_v12 = vpop.f32.mrf.mxu0  ;;  %v1785_v24 = vadd.f32 %v3401_v2, %v1721_v46  ;;  %v3402_v0 = vld [vmem:[#allocation18_spill] sm:$0xff]  ;;  %v1643_v19 = vadd.f32 %v2486_v62, %v1546_v14  ;;  %v3409_v2 = vunpack.c.l.bf16 %v3222_v26 }
 0x172   : > { %v1692_v22 = vadd.f32 %v2522_v12, %v1595_v55  ;;  %v2530_v16 = vpop.f32.mrf.mxu1  ;;  %v3403_v28 = vunpack.c.l.bf16 %v3402_v0  ;;  %v3405_v55 = vunpack.c.l.bf16 %v3205_v31  ;;  %v1793_v43 = vmax.f32 %v1777_v36, 0.0 }
 0x173   : > { %v1724_v58 = vadd.f32 %v2530_v16, %v1627_v3  ;;  %v1683_v20 = vpop.f32.mrf.mxu0  ;;  %v3407_v59 = vunpack.c.h.bf16 %v3402_v0  ;;  %v1801_v10 = vmax.f32 %v1785_v24, 0.0  ;;  %v3408_v16 = vunpack.c.l.bf16 %v3214_v5 }
 0x174   : > { %v1775_v32 = vadd.f32 %v3403_v28, %v1681_v47  ;;  %v1778_v13 = vadd.f32 %v3404_v39, %v1692_v22  ;;  %v1684_v37 = vadd.f32 %v1683_v20, %v3251_v23  ;;  %v1715_v40 = vpop.f32.mrf.mxu1  ;;  %v1783_v35 = vadd.f32 %v3405_v55, %v1713_v49 }
 0x175   : > { %v1786_v25 = vadd.f32 %v3406_v27, %v1724_v58  ;;  %v1716_v41 = vadd.f32 %v1715_v40, %v1619_v29  ;;  %v2525_v42 = vpop.f32.mrf.mxu0  ;;  %v1603_v22 = vadd.f32 %v3273_v6, %v3269_v4  ;;  %v3410_v4 = vunpack.c.l.bf16 %v3224_v17 }
 0x176   : > { %v1794_v51 = vmax.f32 %v1778_v13, 0.0  ;;  %v1776_v33 = vadd.f32 %v3407_v59, %v1684_v37  ;;  %v1705_v38 = vadd.f32 %v2525_v42, %v1608_v21  ;;  %v2533_v46 = vpop.f32.mrf.mxu1  ;;  %v1791_v47 = vmax.f32 %v1775_v32, 0.0 }
 0x177   : > { %v1802_v23 = vmax.f32 %v1786_v25, 0.0  ;;  %v1784_v11 = vadd.f32 %v2164_v1, %v1716_v41  ;;  %v1737_v57 = vadd.f32 %v2533_v46, %v1640_v18  ;;  %v1696_v60 = vpop.f32.mrf.mxu0  ;;  %v1799_v14 = vmax.f32 %v1783_v35, 0.0 }
 0x178   : > { %v2185_v63 = vpack.c.bf16 %v1794_v51, %v1793_v43  ;;  %v1792_v29 = vmax.f32 %v1776_v33, 0.0  ;;  %v1697_v21 = vadd.f32 %v1696_v60, %v3266_v8  ;;  %v1728_v53 = vpop.f32.mrf.mxu1  ;;  %v1781_v1 = vadd.f32 %v2159_v34, %v1705_v38 }
 0x179   : > { %v2205_v49 = vpack.c.bf16 %v1802_v23, %v1801_v10  ;;  %v1800_v12 = vmax.f32 %v1784_v11, 0.0  ;;  %v1729_v3 = vadd.f32 %v1728_v53, %v1632_v30  ;;  %v2526_v44 = vpop.f32.mrf.mxu0  ;;  %v1789_v48 = vadd.f32 %v3408_v16, %v1737_v57 }
 0x17a   : > { %2224 = vst [vmem:[%s3318_s16 + $0x8] sm:$0xff] %v2185_v63   ;;  %v2180_v56 = vpack.c.bf16 %v1792_v29, %v1791_v47  ;;  %v1708_v31 = vadd.f32 %v2526_v44, %v1611_v9  ;;  %v2534_v36 = vpop.f32.mrf.mxu1  ;;  %v1635_v30 = vadd.f32 %v2480_v61, %v1538_v50  ;;  %v1779_v24 = vadd.f32 %v3409_v2, %v1697_v21 }
 0x17b   : > { %2228 = vst [vmem:[%s3318_s16 + $0x28] sm:$0xff] %v2205_v49   ;;  %v2200_v8 = vpack.c.bf16 %v1800_v12, %v1799_v14  ;;  %v1740_v62 = vadd.f32 %v2534_v36, %v1643_v19  ;;  %v1699_v15 = vpop.f32.mrf.mxu0  ;;  %v1787_v6 = vadd.f32 %v3410_v4, %v1729_v3  ;;  %v3411_v20 = vunpack.c.h.bf16 %v3214_v5 }
 0x17c   : > { %2181 = vst [vmem:[%s3318_s16] sm:$0xff] %v2180_v56   ;;  %v1782_v34 = vadd.f32 %v2160_v45, %v1708_v31  ;;  %v1700_v9 = vadd.f32 %v1699_v15, %v1603_v22  ;;  %v1731_v58 = vpop.f32.mrf.mxu1  ;;  %v1797_v61 = vmax.f32 %v1781_v1, 0.0  ;;  %v1805_v45 = vmax.f32 %v1789_v48, 0.0 }
 0x17d   : > { %2227 = vst [vmem:[%s3318_s16 + $0x20] sm:$0xff] %v2200_v8   ;;  %v1790_v0 = vadd.f32 %v3411_v20, %v1740_v62  ;;  %v1732_v28 = vadd.f32 %v1731_v58, %v1635_v30  ;;  %v1795_v13 = vmax.f32 %v1779_v24, 0.0  ;;  %v1803_v18 = vmax.f32 %v1787_v6, 0.0 }
 0x17e   : > { %v1798_v50 = vmax.f32 %v1782_v34, 0.0  ;;  %v1780_v7 = vadd.f32 %v2156_v52, %v1700_v9 }
 0x17f   : > { %v1806_v32 = vmax.f32 %v1790_v0, 0.0  ;;  %v1788_v39 = vadd.f32 %v2172_v54, %v1732_v28 }
 0x180   : > { %v2195_v37 = vpack.c.bf16 %v1798_v50, %v1797_v61  ;;  %v1796_v40 = vmax.f32 %v1780_v7, 0.0 }
 0x181   : > { %v2215_v5 = vpack.c.bf16 %v1806_v32, %v1805_v45  ;;  %v1804_v55 = vmax.f32 %v1788_v39, 0.0 }
 0x182   : > { %2226 = vst [vmem:[%s3318_s16 + $0x18] sm:$0xff] %v2195_v37   ;;  %v2190_v35 = vpack.c.bf16 %v1796_v40, %v1795_v13 }
 0x183   : > { %2230 = vst [vmem:[%s3318_s16 + $0x38] sm:$0xff] %v2215_v5   ;;  %v2210_v27 = vpack.c.bf16 %v1804_v55, %v1803_v18 }
 0x184   : > { %2225 = vst [vmem:[%s3318_s16 + $0x10] sm:$0xff] %v2190_v35  }
 0x185   : > { %2229 = vst [vmem:[%s3318_s16 + $0x30] sm:$0xff] %v2210_v27  }
 0x186 PF: > { %s14_s15 = sadd.s32 1, %s2742_s15  }
 0x187   : > { %p11_p4 = scmp.ge.s32.totalorder %s14_s15, 6  }
 0x189   :  { %13 = sbr.rel (!%p11_p4) target bundleno = 1 (0x1), region = 69 }

// kernel: jersey_number_classifier_forward.21
= control target key start
LH: loop header
LB: loop body
LE: loop exit
PB: predicated region body
PF: predicated region fallthrough
CT: control target
= control target key end

     0   :  { %s2614_s12 = smov 0   ;;  %s3060_s0 = inlined_call_operand.vmem [shape: bf16[512,1152], index: 0, kind: input, shape index: {}]   ;;  %s3061_s1 = inlined_call_operand.vmem [shape: bf16[1152,128], index: 1, kind: input, shape index: {}]   ;;  %s3062_s2 = inlined_call_operand.vmem [shape: f32[1,128], index: 2, kind: input, shape index: {}]   ;;  %s3063_s3 = inlined_call_operand.vmem [shape: bf16[512,128], index: 3, kind: output, shape index: {}]  }
   0x1 LB: > { %s1846_s13 = sadd.s32 4294967295, %s2592_s12   ;;  %p1850_p0 = scmp.ge.s32.totalorder %s2592_s12, 1  ;;  %s2592_s12 = sphi %s2614_s12, %s13_s12  }
   0x2   : > { %p139_p1 = scmp.lt.s32.totalorder %s2592_s12, 5 }
   0x4   : > { %p140_p2 = pnand %p1850_p0, %p139_p1 }
   0x6   : > { %143 = sbr.rel (%p140_p2) target bundleno = 388 (0x184), region = 32 }
   0xb   : > { %v2410_v0 = vld [vmem:[%s3061_s1 + $0x78] sm:$0xff]   ;;  %v2414_v4 = vld [vmem:[%s3061_s1 + $0x70] sm:$0xff]   ;;  %v2418_v8 = vld [vmem:[%s3061_s1 + $0x68] sm:$0xff]   ;;  %s1851_s19 = sshll.u32 %s1846_s13, 4 }
   0xc   : > { %v2411_v1 = vld [vmem:[%s3061_s1 + $0xf8] sm:$0xff]   ;;  %2081 = vmatprep.subr.bf16.mxu0 %v2410_v0  ;;  %v2415_v5 = vld [vmem:[%s3061_s1 + $0xf0] sm:$0xff]   ;;  %v2419_v9 = vld [vmem:[%s3061_s1 + $0xe8] sm:$0xff]   ;;  %p165_p3 = scmp.lt.s32.totalorder %s1851_s19, 63 }
   0xd   : > { %v2412_v2 = vld [vmem:[%s3061_s1 + $0x38] sm:$0xff]   ;;  %2145 = vmatprep.subr.bf16.mxu1 %v2411_v1  ;;  %v2416_v6 = vld [vmem:[%s3061_s1 + $0x30] sm:$0xff]   ;;  %v2420_v10 = vld [vmem:[%s3061_s1 + $0x28] sm:$0xff]  }
   0xe   : > { %v2413_v3 = vld [vmem:[%s3061_s1 + $0xb8] sm:$0xff]   ;;  %2082 = vmatpush3.bf16.msra.mxu0 %v2412_v2  ;;  %v2417_v7 = vld [vmem:[%s3061_s1 + $0xb0] sm:$0xff]   ;;  %v2421_v11 = vld [vmem:[%s3061_s1 + $0xa8] sm:$0xff]   ;;  %s3095_s19 = smov (!%p165_p3, %s1851_s19), 63 }
   0xf   : > { %2146 = vmatpush3.bf16.msra.mxu1 %v2413_v3  ;;  %2083 = vmatprep.subr.bf16.mxu0 %v2414_v4  ;;  %v2422_v12 = vld [vmem:[%s3061_s1 + $0x60] sm:$0xff]   ;;  %v2426_v16 = vld [vmem:[%s3061_s1 + $0x58] sm:$0xff]   ;;  %v2430_v20 = vld [vmem:[%s3061_s1 + $0x50] sm:$0xff]   ;;  %s2401_s16 = smul.u32 36, %s3095_s19 }
  0x10   : > { %2147 = vmatprep.subr.bf16.mxu1 %v2415_v5  ;;  %v2423_v13 = vld [vmem:[%s3061_s1 + $0xe0] sm:$0xff]   ;;  %v2427_v17 = vld [vmem:[%s3061_s1 + $0xd8] sm:$0xff]   ;;  %v2431_v21 = vld [vmem:[%s3061_s1 + $0xd0] sm:$0xff]  }
  0x11   : > { %v2424_v14 = vld [vmem:[%s3061_s1 + $0x20] sm:$0xff]   ;;  %v2428_v18 = vld [vmem:[%s3061_s1 + $0x18] sm:$0xff]   ;;  %v2432_v22 = vld [vmem:[%s3061_s1 + $0x10] sm:$0xff]   ;;  %s2720_s13 = scalar_lea.vmem %s3060_s0, %s2401_s16 }
  0x12   : > { %2084 = vmatpush3.bf16.msra.mxu0 %v2416_v6  ;;  %v2425_v15 = vld [vmem:[%s3061_s1 + $0xa0] sm:$0xff]   ;;  %v2429_v19 = vld [vmem:[%s3061_s1 + $0x98] sm:$0xff]   ;;  %v2433_v23 = vld [vmem:[%s3061_s1 + $0x90] sm:$0xff]  }
  0x13   : > { %2148 = vmatpush3.bf16.msra.mxu1 %v2417_v7  ;;  %2085 = vmatprep.subr.bf16.mxu0 %v2418_v8  ;;  %v2434_v24 = vld [vmem:[%s3061_s1 + $0x48] sm:$0xff]   ;;  %v2438_v28 = vld [vmem:[%s3061_s1 + $0x40] sm:$0xff]   ;;  %v2448_v36 = vld [vmem:[%s3061_s1 + $0x178] sm:$0xff]  }
  0x14   : > { %2149 = vmatprep.subr.bf16.mxu1 %v2419_v9  ;;  %v2435_v25 = vld [vmem:[%s3061_s1 + $0xc8] sm:$0xff]   ;;  %v2439_v29 = vld [vmem:[%s3061_s1 + $0xc0] sm:$0xff]   ;;  %v2449_v37 = vld [vmem:[%s3061_s1 + $0x1f8] sm:$0xff]  }
  0x15   : > { %v2436_v26 = vld [vmem:[%s3061_s1 + $0x8] sm:$0xff]   ;;  %v2440_v30 = vld [vmem:[%s3061_s1] sm:$0xff]   ;;  %v2450_v38 = vld [vmem:[%s3061_s1 + $0x138] sm:$0xff]  }
  0x16   : > { %2086 = vmatpush3.bf16.msra.mxu0 %v2420_v10  ;;  %v2437_v27 = vld [vmem:[%s3061_s1 + $0x88] sm:$0xff]   ;;  %v2441_v31 = vld [vmem:[%s3061_s1 + $0x80] sm:$0xff]   ;;  %v2451_v39 = vld [vmem:[%s3061_s1 + $0x1b8] sm:$0xff]  }
  0x17   : > { %2150 = vmatpush3.bf16.msra.mxu1 %v2421_v11  ;;  %2087 = vmatprep.subr.bf16.mxu0 %v2422_v12  ;;  %v2442_v32 = vld [vmem:[%s2720_s13] ss:$36 sps:$4 sm:$0xff]   ;;  %v2445_v34 = vld [vmem:[%s2720_s13 + $0x8] ss:$36 sps:$4 sm:$0xff]   ;;  %v2454_v41 = vld [vmem:[%s2720_s13 + $0x54] ss:$36 sps:$4 sm:$0xff]  }
  0x18   : > { %2151 = vmatprep.subr.bf16.mxu1 %v2423_v13  ;;  %v2444_v33 = vld [vmem:[%s2720_s13 + $0x4] ss:$36 sps:$4 sm:$0xff]   ;;  %v2447_v35 = vld [vmem:[%s2720_s13 + $0xc] ss:$36 sps:$4 sm:$0xff]   ;;  %v2462_v48 = vld [vmem:[%s2720_s13 + $0x94] ss:$36 sps:$4 sm:$0xff]  }
  0x19   : > { %1241 = vmatprep.mubr.bf16.mxu0 %v2444_v33  ;;  %1338 = vmatprep.mubr.bf16.mxu1 %v2447_v35  ;;  %v2452_v40 = vld [vmem:[%s2720_s13 + $0x4c] ss:$36 sps:$4 sm:$0xff]   ;;  %v2464_v49 = vld [vmem:[%s2720_s13 + $0x9c] ss:$36 sps:$4 sm:$0xff]   ;;  %v2474_v57 = vld [vmem:[%s2720_s13 + $0xe4] ss:$36 sps:$4 sm:$0xff]  }
  0x1a   : > { %2088 = vmatpush3.bf16.msra.mxu0 %v2424_v14  ;;  %v2456_v42 = vld [vmem:[%s2720_s13 + $0x48] ss:$36 sps:$4 sm:$0xff]   ;;  %v2457_v43 = vld [vmem:[%s2720_s13 + $0x50] ss:$36 sps:$4 sm:$0xff]   ;;  %v2467_v51 = vld [vmem:[%s2720_s13 + $0x98] ss:$36 sps:$4 sm:$0xff]  }
  0x1b   : > { %2152 = vmatpush3.bf16.msra.mxu1 %v2425_v15  ;;  %2089 = vmatprep.subr.bf16.mxu0 %v2426_v16  ;;  %v2458_v44 = vld [vmem:[%s3061_s1 + $0x170] sm:$0xff]   ;;  %v2468_v52 = vld [vmem:[%s3061_s1 + $0x168] sm:$0xff]   ;;  %v2472_v56 = vld [vmem:[%s2720_s13 + $0xdc] ss:$36 sps:$4 sm:$0xff]  }
  0x1c   : > { %2153 = vmatprep.subr.bf16.mxu1 %v2427_v17  ;;  %v2459_v45 = vld [vmem:[%s3061_s1 + $0x1f0] sm:$0xff]   ;;  %v2469_v53 = vld [vmem:[%s3061_s1 + $0x1e8] sm:$0xff]   ;;  %v2476_v58 = vld [vmem:[%s2720_s13 + $0xd8] ss:$36 sps:$4 sm:$0xff]  }
  0x1d   : > { %v2460_v46 = vld [vmem:[%s3061_s1 + $0x130] sm:$0xff]   ;;  %v2470_v54 = vld [vmem:[%s3061_s1 + $0x128] sm:$0xff]   ;;  %v2477_v59 = vld [vmem:[%s2720_s13 + $0xe0] ss:$36 sps:$4 sm:$0xff]  }
  0x1e   : > { %2090 = vmatpush3.bf16.msra.mxu0 %v2428_v18  ;;  %v2461_v47 = vld [vmem:[%s3061_s1 + $0x1b0] sm:$0xff]   ;;  %v2471_v55 = vld [vmem:[%s3061_s1 + $0x1a8] sm:$0xff]   ;;  %v2478_v60 = vld [vmem:[%s3061_s1 + $0x160] sm:$0xff]  }
  0x1f   : > { %2154 = vmatpush3.bf16.msra.mxu1 %v2429_v19  ;;  %2091 = vmatprep.subr.bf16.mxu0 %v2430_v20  ;;  %v2466_v50 = vld [vmem:[%s2720_s13 + $0x90] ss:$36 sps:$4 sm:$0xff]   ;;  %v2479_v61 = vld [vmem:[%s3061_s1 + $0x1e0] sm:$0xff]   ;;  %v2488_v3 = vld [vmem:[%s3061_s1 + $0x158] sm:$0xff]  }
  0x20   : > { %2155 = vmatprep.subr.bf16.mxu1 %v2431_v21  ;;  %v2480_v62 = vld [vmem:[%s3061_s1 + $0x120] sm:$0xff]   ;;  %v2484_v1 = vld [vmem:[%s2720_s13 + $0x12c] ss:$36 sps:$4 sm:$0xff]   ;;  %v2489_v5 = vld [vmem:[%s3061_s1 + $0x1d8] sm:$0xff]  }
  0x21   : > { %v2481_v63 = vld [vmem:[%s3061_s1 + $0x1a0] sm:$0xff]   ;;  %v2487_v4 = vld [vmem:[%s2720_s13 + $0x128] ss:$36 sps:$4 sm:$0xff]   ;;  %v2490_v6 = vld [vmem:[%s3061_s1 + $0x118] sm:$0xff]  }
  0x22   : > { %2092 = vmatpush3.bf16.msra.mxu0 %v2432_v22  ;;  %v2482_v0 = vld [vmem:[%s2720_s13 + $0x124] ss:$36 sps:$4 sm:$0xff]   ;;  %v2491_v7 = vld [vmem:[%s3061_s1 + $0x198] sm:$0xff]   ;;  %v2492_v8 = vld [vmem:[%s2720_s13 + $0x16c] ss:$36 sps:$4 sm:$0xff]  }
  0x23   : > { %2156 = vmatpush3.bf16.msra.mxu1 %v2433_v23  ;;  %2093 = vmatprep.subr.bf16.mxu0 %v2434_v24  ;;  %v2486_v2 = vld [vmem:[%s2720_s13 + $0x120] ss:$36 sps:$4 sm:$0xff]   ;;  %v2494_v9 = vld [vmem:[%s2720_s13 + $0x174] ss:$36 sps:$4 sm:$0xff]   ;;  %v2496_v12 = vld [vmem:[%s2720_s13 + $0x168] ss:$36 sps:$4 sm:$0xff]  }
  0x24   : > { %2157 = vmatprep.subr.bf16.mxu1 %v2435_v25  ;;  %v2498_v10 = vld [vmem:[%s3061_s1 + $0x150] sm:$0xff]   ;;  %v2504_v17 = vld [vmem:[%s2720_s13 + $0x1bc] ss:$36 sps:$4 sm:$0xff]   ;;  %v2508_v18 = vld [vmem:[%s3061_s1 + $0x148] sm:$0xff]  }
  0x25   : > { %v2499_v11 = vld [vmem:[%s3061_s1 + $0x1d0] sm:$0xff]   ;;  %v2509_v19 = vld [vmem:[%s3061_s1 + $0x1c8] sm:$0xff]   ;;  %v2507_v23 = vld [vmem:[%s2720_s13 + $0x1b8] ss:$36 sps:$4 sm:$0xff]  }
  0x26   : > { %2094 = vmatpush3.bf16.msra.mxu0 %v2436_v26  ;;  %v2500_v13 = vld [vmem:[%s3061_s1 + $0x110] sm:$0xff]   ;;  %v2510_v20 = vld [vmem:[%s3061_s1 + $0x108] sm:$0xff]   ;;  %v2512_v24 = vld [vmem:[%s2720_s13 + $0x1fc] ss:$36 sps:$4 sm:$0xff]  }
  0x27   : > { %2158 = vmatpush3.bf16.msra.mxu1 %v2437_v27  ;;  %2095 = vmatprep.subr.bf16.mxu0 %v2438_v28  ;;  %v2501_v14 = vld [vmem:[%s3061_s1 + $0x190] sm:$0xff]   ;;  %v2511_v21 = vld [vmem:[%s3061_s1 + $0x188] sm:$0xff]   ;;  %v2518_v26 = vld [vmem:[%s3061_s1 + $0x140] sm:$0xff]  }
  0x28   : > { %2159 = vmatprep.subr.bf16.mxu1 %v2439_v29  ;;  %v2497_v15 = vld [vmem:[%s2720_s13 + $0x170] ss:$36 sps:$4 sm:$0xff]   ;;  %v2514_v25 = vld [vmem:[%s2720_s13 + $0x204] ss:$36 sps:$4 sm:$0xff]  }
  0x29   : > { %v2502_v16 = vld [vmem:[%s2720_s13 + $0x1b4] ss:$36 sps:$4 sm:$0xff]   ;;  %v2519_v27 = vld [vmem:[%s3061_s1 + $0x1c0] sm:$0xff]  }
  0x2a   : > { %2096 = vmatpush3.bf16.msra.mxu0 %v2440_v30  ;;  %v2506_v22 = vld [vmem:[%s2720_s13 + $0x1b0] ss:$36 sps:$4 sm:$0xff]   ;;  %v2520_v28 = vld [vmem:[%s3061_s1 + $0x100] sm:$0xff]   ;;  %v2516_v30 = vld [vmem:[%s2720_s13 + $0x1f8] ss:$36 sps:$4 sm:$0xff]  }
  0x2b   : > { %2160 = vmatpush3.bf16.msra.mxu1 %v2441_v31  ;;  %2209 = vmatprep.subr.bf16.mxu0 %v2448_v36  ;;  %v2521_v29 = vld [vmem:[%s3061_s1 + $0x180] sm:$0xff]   ;;  %v2524_v33 = vld [vmem:[%s2720_s13 + $0x14] ss:$36 sps:$4 sm:$0xff]  }
  0x2c   : > { %2273 = vmatprep.subr.bf16.mxu1 %v2449_v37  ;;  %v2517_v31 = vld [vmem:[%s2720_s13 + $0x200] ss:$36 sps:$4 sm:$0xff]   ;;  %v2522_v35 = vld [vmem:[%s2720_s13 + $0x10] ss:$36 sps:$4 sm:$0xff]   ;;  %v2525_v36 = vld [vmem:[%s2720_s13 + $0x18] ss:$36 sps:$4 sm:$0xff]  }
  0x2d   : > { %1242 = vmatmul.mubr.bf16.vlgmr.msra.gmra.mxu0 %v2442_v32  ;;  %v2528_v32 = vld [vmem:[%s3061_s1 + $0x238] sm:$0xff]  }
  0x2e   : > { %1339 = vmatmul.mubr.bf16.vlgmr.msra.gmra.mxu1 %v2445_v34  ;;  %2210 = vmatpush3.bf16.msra.mxu0 %v2450_v38  ;;  %v2527_v34 = vld [vmem:[%s2720_s13 + $0x1c] ss:$36 sps:$4 sm:$0xff]   ;;  %v2531_v38 = vld [vmem:[%s2720_s13 + $0x64] ss:$36 sps:$4 sm:$0xff]  }
  0x2f   : > { %2274 = vmatpush3.bf16.msra.mxu1 %v2451_v39  ;;  %1249 = vmatprep.mubr.bf16.mxu0 %v2452_v40  ;;  %v2529_v37 = vld [vmem:[%s2720_s13 + $0x5c] ss:$36 sps:$4 sm:$0xff]   ;;  %v2535_v39 = vld [vmem:[%s3061_s1 + $0x230] sm:$0xff]   ;;  %v2542_v40 = vld [vmem:[%s3061_s1 + $0x228] sm:$0xff]  }
  0x30   : > { %1346 = vmatprep.mubr.bf16.mxu1 %v2454_v41  ;;  %2211 = vmatprep.subr.bf16.mxu0 %v2458_v44  ;;  %v2533_v41 = vld [vmem:[%s2720_s13 + $0x58] ss:$36 sps:$4 sm:$0xff]   ;;  %v2538_v44 = vld [vmem:[%s2720_s13 + $0xac] ss:$36 sps:$4 sm:$0xff]  }
  0x31   : > { %2275 = vmatprep.subr.bf16.mxu1 %v2459_v45  ;;  %v2549_v45 = vld [vmem:[%s3061_s1 + $0x220] sm:$0xff]  }
  0x32   : > { %2212 = vmatpush3.bf16.msra.mxu0 %v2460_v46  ;;  %v2556_v46 = vld [vmem:[%s3061_s1 + $0x218] sm:$0xff]  }
  0x33   : > { %2276 = vmatpush3.bf16.msra.mxu1 %v2461_v47  ;;  %2213 = vmatprep.subr.bf16.mxu0 %v2468_v52  ;;  %v2540_v47 = vld [vmem:[%s2720_s13 + $0xa0] ss:$36 sps:$4 sm:$0xff]   ;;  %v2547_v52 = vld [vmem:[%s2720_s13 + $0xe8] ss:$36 sps:$4 sm:$0xff]  }
  0x34   : > { %2277 = vmatprep.subr.bf16.mxu1 %v2469_v53  ;;  %v2570_v53 = vld [vmem:[%s3061_s1 + $0x208] sm:$0xff]  }
  0x35   : > { %1250 = vmatmul.mubr.bf16.gmra.mxu0 %v2456_v42  ;;  %v2534_v42 = vld [vmem:[%s2720_s13 + $0x60] ss:$36 sps:$4 sm:$0xff]  }
  0x36   : > { %1347 = vmatmul.mubr.bf16.gmra.mxu1 %v2457_v43  ;;  %1257 = vmatprep.mubr.bf16.mxu0 %v2462_v48  ;;  %v2536_v43 = vld [vmem:[%s2720_s13 + $0xa4] ss:$36 sps:$4 sm:$0xff]  }
  0x37   : > { %1354 = vmatprep.mubr.bf16.mxu1 %v2464_v49  ;;  %2214 = vmatpush3.bf16.msra.mxu0 %v2470_v54  ;;  %v2541_v48 = vld [vmem:[%s2720_s13 + $0xa8] ss:$36 sps:$4 sm:$0xff]   ;;  %v2548_v54 = vld [vmem:[%s2720_s13 + $0xf0] ss:$36 sps:$4 sm:$0xff]  }
  0x38   : > { %2278 = vmatpush3.bf16.msra.mxu1 %v2471_v55  ;;  %2215 = vmatprep.subr.bf16.mxu0 %v2478_v60  ;;  %v2543_v49 = vld [vmem:[%s2720_s13 + $0xec] ss:$36 sps:$4 sm:$0xff]   ;;  %v2550_v55 = vld [vmem:[%s2720_s13 + $0x134] ss:$36 sps:$4 sm:$0xff]   ;;  %v2557_v60 = vld [vmem:[%s2720_s13 + $0x17c] ss:$36 sps:$4 sm:$0xff]  }
  0x39   : > { %2279 = vmatprep.subr.bf16.mxu1 %v2479_v61  ;;  %v2559_v61 = vld [vmem:[%s2720_s13 + $0x184] ss:$36 sps:$4 sm:$0xff]  }
  0x3b   : > { %2216 = vmatpush3.bf16.msra.mxu0 %v2480_v62  ;;  %v2561_v62 = vld [vmem:[%s2720_s13 + $0x178] ss:$36 sps:$4 sm:$0xff]  }
  0x3c   : > { %2280 = vmatpush3.bf16.msra.mxu1 %v2481_v63  ;;  %2217 = vmatprep.subr.bf16.mxu0 %v2488_v3  ;;  %v2562_v63 = vld [vmem:[%s2720_s13 + $0x180] ss:$36 sps:$4 sm:$0xff]   ;;  %v2569_v3 = vld [vmem:[%s2720_s13 + $0x1c8] ss:$36 sps:$4 sm:$0xff]  }
  0x3d   : > { %1258 = vmatmul.mubr.bf16.gmra.mxu0 %v2466_v50  ;;  %2281 = vmatprep.subr.bf16.mxu1 %v2489_v5  ;;  %v2545_v50 = vld [vmem:[%s2720_s13 + $0xf4] ss:$36 sps:$4 sm:$0xff]  }
  0x3e   : > { %1355 = vmatmul.mubr.bf16.gmra.mxu1 %v2467_v51  ;;  %1265 = vmatprep.mubr.bf16.mxu0 %v2472_v56  ;;  %v2563_v51 = vld [vmem:[%s3061_s1 + $0x210] sm:$0xff]   ;;  %v2552_v56 = vld [vmem:[%s2720_s13 + $0x13c] ss:$36 sps:$4 sm:$0xff]  }
  0x3f   : > { %1362 = vmatprep.mubr.bf16.mxu1 %v2474_v57  ;;  %2218 = vmatpush3.bf16.msra.mxu0 %v2490_v6  ;;  %v2577_v57 = vld [vmem:[%s3061_s1 + $0x200] sm:$0xff]   ;;  %v2573_v5 = vld [vmem:[%s2720_s13 + $0x214] ss:$36 sps:$4 sm:$0xff]   ;;  %v2575_v6 = vld [vmem:[%s2720_s13 + $0x208] ss:$36 sps:$4 sm:$0xff]  }
  0x40   : > { %2282 = vmatpush3.bf16.msra.mxu1 %v2491_v7  ;;  %2219 = vmatprep.subr.bf16.mxu0 %v2498_v10  ;;  %v2576_v7 = vld [vmem:[%s2720_s13 + $0x210] ss:$36 sps:$4 sm:$0xff]   ;;  %v2580_v10 = vld [vmem:[%s2720_s13 + $0x68] ss:$36 sps:$4 sm:$0xff]  }
  0x41   : > { %2283 = vmatprep.subr.bf16.mxu1 %v2499_v11  ;;  %v2581_v11 = vld [vmem:[%s2720_s13 + $0x188] ss:$36 sps:$4 sm:$0xff]  }
  0x43   : > { %2220 = vmatpush3.bf16.msra.mxu0 %v2500_v13  ;;  %v2583_v13 = vld [vmem:[%s2720_s13 + $0x1d0] ss:$36 sps:$4 sm:$0xff]  }
  0x44   : > { %2284 = vmatpush3.bf16.msra.mxu1 %v2501_v14  ;;  %2221 = vmatprep.subr.bf16.mxu0 %v2508_v18  ;;  %v2584_v14 = vld [vmem:[%s2720_s13 + $0xf8] ss:$36 sps:$4 sm:$0xff]   ;;  %v2923_v18 = vld [vmem:[%s3062_s2] ss:$0 sm:$0xff] }
  0x45   : > { %1266 = vmatmul.mubr.bf16.gmra.mxu0 %v2476_v58  ;;  %2285 = vmatprep.subr.bf16.mxu1 %v2509_v19  ;;  %v2554_v58 = vld [vmem:[%s2720_s13 + $0x130] ss:$36 sps:$4 sm:$0xff]  }
  0x46   : > { %1363 = vmatmul.mubr.bf16.gmra.mxu1 %v2477_v59  ;;  %1273 = vmatprep.mubr.bf16.mxu0 %v2482_v0  ;;  %v2555_v59 = vld [vmem:[%s2720_s13 + $0x138] ss:$36 sps:$4 sm:$0xff]   ;;  %v2564_v0 = vld [vmem:[%s2720_s13 + $0x1c4] ss:$36 sps:$4 sm:$0xff]  }
  0x47   : > { %1370 = vmatprep.mubr.bf16.mxu1 %v2484_v1  ;;  %2222 = vmatpush3.bf16.msra.mxu0 %v2510_v20  ;;  %v2566_v1 = vld [vmem:[%s2720_s13 + $0x1cc] ss:$36 sps:$4 sm:$0xff]  }
  0x48   : > { %2286 = vmatpush3.bf16.msra.mxu1 %v2511_v21  ;;  %2223 = vmatprep.subr.bf16.mxu0 %v2518_v26 }
  0x49   : > { %2287 = vmatprep.subr.bf16.mxu1 %v2519_v27 }
  0x4b   : > { %2224 = vmatpush3.bf16.msra.mxu0 %v2520_v28 }
  0x4c   : > { %2288 = vmatpush3.bf16.msra.mxu1 %v2521_v29  ;;  %2353 = vmatprep.subr.bf16.mxu0 %v2528_v32 }
  0x4d   : > { %1274 = vmatmul.mubr.bf16.gmra.mxu0 %v2486_v2  ;;  %2385 = vmatprep.subr.bf16.mxu1 %v2528_v32  ;;  %v2568_v2 = vld [vmem:[%s2720_s13 + $0x1c0] ss:$36 sps:$4 sm:$0xff]  }
  0x4e   : > { %1371 = vmatmul.mubr.bf16.gmra.mxu1 %v2487_v4  ;;  %1281 = vmatprep.mubr.bf16.mxu0 %v2492_v8  ;;  %v2571_v4 = vld [vmem:[%s2720_s13 + $0x20c] ss:$36 sps:$4 sm:$0xff]   ;;  %v2578_v8 = vld [vmem:[%s2720_s13 + $0x20] ss:$36 sps:$4 sm:$0xff]  }
  0x4f   : > { %1378 = vmatprep.mubr.bf16.mxu1 %v2494_v9  ;;  %v2579_v9 = vld [vmem:[%s2720_s13 + $0x140] ss:$36 sps:$4 sm:$0xff]  }
  0x55   : > { %1282 = vmatmul.mubr.bf16.gmra.mxu0 %v2496_v12  ;;  %v2582_v12 = vld [vmem:[%s2720_s13 + $0xb0] ss:$36 sps:$4 sm:$0xff]  }
  0x56   : > { %1379 = vmatmul.mubr.bf16.gmra.mxu1 %v2497_v15  ;;  %1289 = vmatprep.mubr.bf16.mxu0 %v2502_v16  ;;  %v2585_v15 = vld [vmem:[%s2720_s13 + $0x218] ss:$36 sps:$4 sm:$0xff]   ;;  %s1854_s13 = sshll.u32 %s3095_s19, 2 }
  0x57   : > { %1386 = vmatprep.mubr.bf16.mxu1 %v2504_v17  ;;  %s3041_s18 = scalar_lea.vmem %s3063_s3, %s1854_s13 }
  0x5d   : > { %1290 = vmatmul.mubr.bf16.gmra.mxu0 %v2506_v22 }
  0x5e   : > { %1387 = vmatmul.mubr.bf16.gmra.mxu1 %v2507_v23  ;;  %1297 = vmatprep.mubr.bf16.mxu0 %v2512_v24 }
  0x5f   : > { %1394 = vmatprep.mubr.bf16.mxu1 %v2514_v25 }
  0x65   : > { %1298 = vmatmul.mubr.bf16.gmra.mxu0 %v2516_v30 }
  0x66   : > { %1395 = vmatmul.mubr.bf16.gmra.mxu1 %v2517_v31  ;;  %1435 = vmatprep.mubr.bf16.mxu0 %v2524_v33 }
  0x67   : > { %1532 = vmatprep.mubr.bf16.mxu1 %v2527_v34 }
  0x6d   : > { %1436 = vmatmul.mubr.bf16.vlgmr.msra.gmra.mxu0 %v2522_v35 }
  0x6e   : > { %1533 = vmatmul.mubr.bf16.vlgmr.msra.gmra.mxu1 %v2525_v36  ;;  %2354 = vmatpush3.bf16.msra.mxu0 %v2528_v32 }
  0x6f   : > { %2393 = vmatpush3.bf16.msra.mxu1 %v2528_v32  ;;  %1443 = vmatprep.mubr.bf16.mxu0 %v2529_v37 }
  0x70   : > { %1540 = vmatprep.mubr.bf16.mxu1 %v2531_v38  ;;  %2355 = vmatprep.subr.bf16.mxu0 %v2535_v39 }
  0x71   : > { %2386 = vmatprep.subr.bf16.mxu1 %v2535_v39 }
  0x72   : > { %2356 = vmatpush3.bf16.msra.mxu0 %v2535_v39 }
  0x73   : > { %2394 = vmatpush3.bf16.msra.mxu1 %v2535_v39  ;;  %2357 = vmatprep.subr.bf16.mxu0 %v2542_v40 }
  0x74   : > { %2387 = vmatprep.subr.bf16.mxu1 %v2542_v40 }
  0x75   : > { %1444 = vmatmul.mubr.bf16.gmra.mxu0 %v2533_v41 }
  0x76   : > { %1541 = vmatmul.mubr.bf16.gmra.mxu1 %v2534_v42  ;;  %1451 = vmatprep.mubr.bf16.mxu0 %v2536_v43 }
  0x77   : > { %1548 = vmatprep.mubr.bf16.mxu1 %v2538_v44  ;;  %2358 = vmatpush3.bf16.msra.mxu0 %v2542_v40 }
  0x78   : > { %2395 = vmatpush3.bf16.msra.mxu1 %v2542_v40  ;;  %2359 = vmatprep.subr.bf16.mxu0 %v2549_v45 }
  0x79   : > { %2388 = vmatprep.subr.bf16.mxu1 %v2549_v45 }
  0x7b   : > { %2360 = vmatpush3.bf16.msra.mxu0 %v2549_v45 }
  0x7c   : > { %2396 = vmatpush3.bf16.msra.mxu1 %v2549_v45  ;;  %2361 = vmatprep.subr.bf16.mxu0 %v2556_v46 }
  0x7d   : > { %1452 = vmatmul.mubr.bf16.gmra.mxu0 %v2540_v47  ;;  %2389 = vmatprep.subr.bf16.mxu1 %v2556_v46 }
  0x7e   : > { %1549 = vmatmul.mubr.bf16.gmra.mxu1 %v2541_v48  ;;  %1459 = vmatprep.mubr.bf16.mxu0 %v2543_v49 }
  0x7f   : > { %1556 = vmatprep.mubr.bf16.mxu1 %v2545_v50  ;;  %2362 = vmatpush3.bf16.msra.mxu0 %v2556_v46 }
  0x80   : > { %2397 = vmatpush3.bf16.msra.mxu1 %v2556_v46  ;;  %2363 = vmatprep.subr.bf16.mxu0 %v2563_v51 }
  0x81   : > { %2390 = vmatprep.subr.bf16.mxu1 %v2563_v51 }
  0x83   : > { %2364 = vmatpush3.bf16.msra.mxu0 %v2563_v51 }
  0x84   : > { %2398 = vmatpush3.bf16.msra.mxu1 %v2563_v51  ;;  %2365 = vmatprep.subr.bf16.mxu0 %v2570_v53 }
  0x85   : > { %1460 = vmatmul.mubr.bf16.gmra.mxu0 %v2547_v52  ;;  %2391 = vmatprep.subr.bf16.mxu1 %v2570_v53 }
  0x86   : > { %1557 = vmatmul.mubr.bf16.gmra.mxu1 %v2548_v54  ;;  %1467 = vmatprep.mubr.bf16.mxu0 %v2550_v55 }
  0x87   : > { %1564 = vmatprep.mubr.bf16.mxu1 %v2552_v56  ;;  %2366 = vmatpush3.bf16.msra.mxu0 %v2570_v53 }
  0x88   : > { %2399 = vmatpush3.bf16.msra.mxu1 %v2570_v53  ;;  %2367 = vmatprep.subr.bf16.mxu0 %v2577_v57 }
  0x89   : > { %2392 = vmatprep.subr.bf16.mxu1 %v2577_v57 }
  0x8b   : > { %2368 = vmatpush3.bf16.msra.mxu0 %v2577_v57 }
  0x8c   : > { %2400 = vmatpush3.bf16.msra.mxu1 %v2577_v57 }
  0x8d   : > { %1468 = vmatmul.mubr.bf16.gmra.mxu0 %v2554_v58 }
  0x8e   : > { %1565 = vmatmul.mubr.bf16.gmra.mxu1 %v2555_v59  ;;  %1475 = vmatprep.mubr.bf16.mxu0 %v2557_v60 }
  0x8f   : > { %1572 = vmatprep.mubr.bf16.mxu1 %v2559_v61 }
  0x95   : > { %1476 = vmatmul.mubr.bf16.gmra.mxu0 %v2561_v62 }
  0x96   : > { %1573 = vmatmul.mubr.bf16.gmra.mxu1 %v2562_v63  ;;  %1483 = vmatprep.mubr.bf16.mxu0 %v2564_v0 }
  0x97   : > { %1580 = vmatprep.mubr.bf16.mxu1 %v2566_v1 }
  0x9d   : > { %1484 = vmatmul.mubr.bf16.gmra.mxu0 %v2568_v2 }
  0x9e   : > { %1581 = vmatmul.mubr.bf16.gmra.mxu1 %v2569_v3  ;;  %1491 = vmatprep.mubr.bf16.mxu0 %v2571_v4 }
  0x9f   : > { %1588 = vmatprep.mubr.bf16.mxu1 %v2573_v5 }
  0xa5   : > { %1492 = vmatmul.mubr.bf16.gmra.mxu0 %v2575_v6 }
  0xa6   : > { %1589 = vmatmul.mubr.bf16.gmra.mxu1 %v2576_v7  ;;  %2369 = vmatprep.mubr.bf16.mxu0 %v2578_v8 }
  0xa7   : > { %2377 = vmatprep.mubr.bf16.mxu1 %v2579_v9 }
  0xad   : > { %2370 = vmatmul.mubr.bf16.vlgmr.msra.gmra.mxu0 %v2580_v10 }
  0xae   : > { %2378 = vmatmul.mubr.bf16.vlgmr.msra.gmra.mxu1 %v2581_v11  ;;  %2373 = vmatprep.mubr.bf16.mxu0 %v2582_v12 }
  0xaf   : > { %2381 = vmatprep.mubr.bf16.mxu1 %v2583_v13 }
  0xb5   : > { %2374 = vmatmul.mubr.bf16.gmra.mxu0 %v2584_v14 }
  0xb6   : > { %2382 = vmatmul.mubr.bf16.gmra.mxu1 %v2585_v15 }
  0xed   : > { %v2097_v16 = vpop.f32.mrf.mxu0 }
  0xee   : > { %v2161_v17 = vpop.f32.mrf.mxu1 }
  0xef   : > { %v2098_v19 = vpop.f32.mrf.mxu0 }
  0xf0   : > { %v2099_v20 = vadd.f32 %v2098_v19, %v2097_v16  ;;  %v2162_v21 = vpop.f32.mrf.mxu1 }
  0xf1   : > { %v2163_v22 = vadd.f32 %v2162_v21, %v2161_v17  ;;  %v2100_v23 = vpop.f32.mrf.mxu0 }
  0xf2   : > { %v1244_v24 = vadd.f32 %v2099_v20, %v2923_v18  ;;  %v2164_v25 = vpop.f32.mrf.mxu1 }
  0xf3   : > { %v2101_v26 = vpop.f32.mrf.mxu0 }
  0xf4   : > { %v2926_v27 = vadd.f32 %v2163_v22, %v1244_v24  ;;  %v2102_v28 = vadd.f32 %v2101_v26, %v2100_v23  ;;  %v2165_v29 = vpop.f32.mrf.mxu1 }
  0xf5   : > { %v2166_v30 = vadd.f32 %v2165_v29, %v2164_v25  ;;  %v2103_v31 = vpop.f32.mrf.mxu0 }
  0xf6   : > { %v1247_v32 = vadd.f32 %v2102_v28, %v2923_v18  ;;  %v2167_v33 = vpop.f32.mrf.mxu1 }
  0xf7   : > { %v2104_v34 = vpop.f32.mrf.mxu0 }
  0xf8   : > { %v2929_v35 = vadd.f32 %v2166_v30, %v1247_v32  ;;  %v2105_v36 = vadd.f32 %v2104_v34, %v2103_v31  ;;  %v2168_v37 = vpop.f32.mrf.mxu1 }
  0xf9   : > { %v2169_v38 = vadd.f32 %v2168_v37, %v2167_v33  ;;  %v2106_v39 = vpop.f32.mrf.mxu0 }
  0xfa   : > { %v1252_v40 = vadd.f32 %v2105_v36, %v2923_v18  ;;  %v2170_v41 = vpop.f32.mrf.mxu1 }
  0xfb   : > { %v2107_v42 = vpop.f32.mrf.mxu0 }
  0xfc   : > { %v2932_v43 = vadd.f32 %v2169_v38, %v1252_v40  ;;  %v2108_v44 = vadd.f32 %v2107_v42, %v2106_v39  ;;  %v2171_v45 = vpop.f32.mrf.mxu1 }
  0xfd   : > { %v2172_v46 = vadd.f32 %v2171_v45, %v2170_v41  ;;  %v2109_v47 = vpop.f32.mrf.mxu0 }
  0xfe   : > { %v1255_v48 = vadd.f32 %v2108_v44, %v2923_v18  ;;  %v2173_v49 = vpop.f32.mrf.mxu1 }
  0xff   : > { %v2110_v50 = vpop.f32.mrf.mxu0 }
 0x100   : > { %v2935_v51 = vadd.f32 %v2172_v46, %v1255_v48  ;;  %v2111_v52 = vadd.f32 %v2110_v50, %v2109_v47  ;;  %v2174_v53 = vpop.f32.mrf.mxu1 }
 0x101   : > { %v2175_v54 = vadd.f32 %v2174_v53, %v2173_v49  ;;  %v2112_v55 = vpop.f32.mrf.mxu0 }
 0x102   : > { %v1260_v56 = vadd.f32 %v2111_v52, %v2923_v18  ;;  %v2176_v57 = vpop.f32.mrf.mxu1 }
 0x103   : > { %v2113_v58 = vpop.f32.mrf.mxu0 }
 0x104   : > { %v2938_v59 = vadd.f32 %v2175_v54, %v1260_v56  ;;  %v2114_v60 = vadd.f32 %v2113_v58, %v2112_v55  ;;  %v2177_v61 = vpop.f32.mrf.mxu1 }
 0x105   : > { %v2178_v62 = vadd.f32 %v2177_v61, %v2176_v57  ;;  %v2115_v63 = vpop.f32.mrf.mxu0 }
 0x106   : > { %v1263_v0 = vadd.f32 %v2114_v60, %v2923_v18  ;;  %v2179_v1 = vpop.f32.mrf.mxu1 }
 0x107   : > { %v2116_v2 = vpop.f32.mrf.mxu0 }
 0x108   : > { %v2941_v3 = vadd.f32 %v2178_v62, %v1263_v0  ;;  %v2117_v4 = vadd.f32 %v2116_v2, %v2115_v63  ;;  %v2180_v5 = vpop.f32.mrf.mxu1 }
 0x109   : > { %v2181_v6 = vadd.f32 %v2180_v5, %v2179_v1  ;;  %v2118_v7 = vpop.f32.mrf.mxu0 }
 0x10a   : > { %3064 = vst [vmem:[#allocation2_spill] sm:$0xff] %v2941_v3  ;;  %v1268_v8 = vadd.f32 %v2117_v4, %v2923_v18  ;;  %v2182_v9 = vpop.f32.mrf.mxu1 }
 0x10b   : > { %v2119_v10 = vpop.f32.mrf.mxu0 }
 0x10c   : > { %v2944_v11 = vadd.f32 %v2181_v6, %v1268_v8  ;;  %v2120_v12 = vadd.f32 %v2119_v10, %v2118_v7  ;;  %v2183_v13 = vpop.f32.mrf.mxu1 }
 0x10d   : > { %v2184_v14 = vadd.f32 %v2183_v13, %v2182_v9  ;;  %v2121_v15 = vpop.f32.mrf.mxu0 }
 0x10e   : > { %v1271_v16 = vadd.f32 %v2120_v12, %v2923_v18  ;;  %v2185_v17 = vpop.f32.mrf.mxu1 }
 0x10f   : > { %v2122_v19 = vpop.f32.mrf.mxu0 }
 0x110   : > { %v2947_v20 = vadd.f32 %v2184_v14, %v1271_v16  ;;  %v2123_v21 = vadd.f32 %v2122_v19, %v2121_v15  ;;  %v2186_v22 = vpop.f32.mrf.mxu1 }
 0x111   : > { %v2187_v23 = vadd.f32 %v2186_v22, %v2185_v17  ;;  %v2124_v24 = vpop.f32.mrf.mxu0 }
 0x112   : > { %3065 = vst [vmem:[#allocation3_spill] sm:$0xff] %v2947_v20  ;;  %v1276_v25 = vadd.f32 %v2123_v21, %v2923_v18  ;;  %v2188_v26 = vpop.f32.mrf.mxu1 }
 0x113   : > { %v2125_v28 = vpop.f32.mrf.mxu0 }
 0x114   : > { %v2950_v29 = vadd.f32 %v2187_v23, %v1276_v25  ;;  %v2126_v30 = vadd.f32 %v2125_v28, %v2124_v24  ;;  %v2189_v31 = vpop.f32.mrf.mxu1 }
 0x115   : > { %v2190_v32 = vadd.f32 %v2189_v31, %v2188_v26  ;;  %v2127_v33 = vpop.f32.mrf.mxu0 }
 0x116   : > { %v1279_v34 = vadd.f32 %v2126_v30, %v2923_v18  ;;  %v2191_v36 = vpop.f32.mrf.mxu1 }
 0x117   : > { %v2128_v37 = vpop.f32.mrf.mxu0 }
 0x118   : > { %v2953_v38 = vadd.f32 %v2190_v32, %v1279_v34  ;;  %v2129_v39 = vadd.f32 %v2128_v37, %v2127_v33  ;;  %v2192_v40 = vpop.f32.mrf.mxu1 }
 0x119   : > { %v2193_v41 = vadd.f32 %v2192_v40, %v2191_v36  ;;  %v2130_v42 = vpop.f32.mrf.mxu0 }
 0x11a   : > { %3066 = vst [vmem:[#allocation4_spill] sm:$0xff] %v2953_v38  ;;  %v1284_v44 = vadd.f32 %v2129_v39, %v2923_v18  ;;  %v2194_v45 = vpop.f32.mrf.mxu1 }
 0x11b   : > { %v2131_v46 = vpop.f32.mrf.mxu0 }
 0x11c   : > { %v2956_v47 = vadd.f32 %v2193_v41, %v1284_v44  ;;  %v2132_v48 = vadd.f32 %v2131_v46, %v2130_v42  ;;  %v2195_v49 = vpop.f32.mrf.mxu1 }
 0x11d   : > { %v2196_v50 = vadd.f32 %v2195_v49, %v2194_v45  ;;  %v2133_v52 = vpop.f32.mrf.mxu0 }
 0x11e   : > { %v1287_v53 = vadd.f32 %v2132_v48, %v2923_v18  ;;  %v2197_v54 = vpop.f32.mrf.mxu1 }
 0x11f   : > { %v2134_v55 = vpop.f32.mrf.mxu0 }
 0x120   : > { %v2959_v56 = vadd.f32 %v2196_v50, %v1287_v53  ;;  %v2135_v57 = vadd.f32 %v2134_v55, %v2133_v52  ;;  %v2198_v58 = vpop.f32.mrf.mxu1 }
 0x121   : > { %v2199_v60 = vadd.f32 %v2198_v58, %v2197_v54  ;;  %v2136_v61 = vpop.f32.mrf.mxu0 }
 0x122   : > { %3067 = vst [vmem:[#allocation5_spill] sm:$0xff] %v2959_v56  ;;  %v1292_v62 = vadd.f32 %v2135_v57, %v2923_v18  ;;  %v2200_v63 = vpop.f32.mrf.mxu1 }
 0x123   : > { %v2137_v0 = vpop.f32.mrf.mxu0 }
 0x124   : > { %v2962_v1 = vadd.f32 %v2199_v60, %v1292_v62  ;;  %v2138_v2 = vadd.f32 %v2137_v0, %v2136_v61  ;;  %v2201_v4 = vpop.f32.mrf.mxu1 }
 0x125   : > { %v2202_v5 = vadd.f32 %v2201_v4, %v2200_v63  ;;  %v2139_v6 = vpop.f32.mrf.mxu0 }
 0x126   : > { %3068 = vst [vmem:[#allocation6_spill] sm:$0xff] %v2962_v1  ;;  %v1295_v7 = vadd.f32 %v2138_v2, %v2923_v18  ;;  %v2203_v8 = vpop.f32.mrf.mxu1 }
 0x127   : > { %v2140_v9 = vpop.f32.mrf.mxu0 }
 0x128   : > { %v2965_v10 = vadd.f32 %v2202_v5, %v1295_v7  ;;  %v2141_v12 = vadd.f32 %v2140_v9, %v2139_v6  ;;  %v2204_v13 = vpop.f32.mrf.mxu1 }
 0x129   : > { %v2205_v14 = vadd.f32 %v2204_v13, %v2203_v8  ;;  %v2142_v15 = vpop.f32.mrf.mxu0 }
 0x12a   : > { %3069 = vst [vmem:[#allocation7_spill] sm:$0xff] %v2965_v10  ;;  %v1300_v16 = vadd.f32 %v2141_v12, %v2923_v18  ;;  %v2206_v17 = vpop.f32.mrf.mxu1 }
 0x12b   : > { %v2143_v19 = vpop.f32.mrf.mxu0 }
 0x12c   : > { %v2968_v21 = vadd.f32 %v2205_v14, %v1300_v16  ;;  %v2144_v22 = vadd.f32 %v2143_v19, %v2142_v15  ;;  %v2207_v23 = vpop.f32.mrf.mxu1 }
 0x12d   : > { %v2208_v24 = vadd.f32 %v2207_v23, %v2206_v17  ;;  %v2225_v25 = vpop.f32.mrf.mxu0 }
 0x12e   : > { %3070 = vst [vmem:[#allocation8_spill] sm:$0xff] %v2968_v21  ;;  %v1303_v26 = vadd.f32 %v2144_v22, %v2923_v18  ;;  %v2289_v28 = vpop.f32.mrf.mxu1 }
 0x12f   : > { %v2226_v30 = vpop.f32.mrf.mxu0 }
 0x130   : > { %v2971_v31 = vadd.f32 %v2208_v24, %v1303_v26  ;;  %v2227_v32 = vadd.f32 %v2226_v30, %v2225_v25  ;;  %v2290_v33 = vpop.f32.mrf.mxu1 }
 0x131   : > { %v2228_v34 = vpop.f32.mrf.mxu0  ;;  %v2291_v37 = vadd.f32 %v2290_v33, %v2289_v28 }
 0x132   : > { %3071 = vst [vmem:[#allocation9_spill] sm:$0xff] %v2971_v31  ;;  %v1438_v36 = vadd.f32 %v2227_v32, %v2926_v27  ;;  %v2974_v39 = vpop.f32.mrf.mxu1 }
 0x133   : > { %v2229_v40 = vpop.f32.mrf.mxu0 }
 0x134   : > { %v2976_v41 = vpop.f32.mrf.mxu1  ;;  %v2978_v42 = vadd.f32 %v2291_v37, %v1438_v36  ;;  %v2230_v10 = vadd.f32 %v2229_v40, %v2228_v34 }
 0x135   : > { %v2231_v44 = vpop.f32.mrf.mxu0 }
 0x136   : > { %3072 = vst [vmem:[#allocation10_spill] sm:$0xff] %v2978_v42  ;;  %v2295_v45 = vpop.f32.mrf.mxu1  ;;  %v1441_v56 = vadd.f32 %v2230_v10, %v2929_v35 }
 0x137   : > { %v2232_v18 = vpop.f32.mrf.mxu0 }
 0x138   : > { %v2296_v46 = vpop.f32.mrf.mxu1  ;;  %v2233_v42 = vadd.f32 %v2232_v18, %v2231_v44  ;;  %v2294_v44 = vadd.f32 %v2976_v41, %v2974_v39 }
 0x139   : > { %v2234_v48 = vpop.f32.mrf.mxu0  ;;  %v2297_v18 = vadd.f32 %v2296_v46, %v2295_v45 }
 0x13a   : > { %v2298_v49 = vpop.f32.mrf.mxu1 }
 0x13b   : > { %v2235_v50 = vpop.f32.mrf.mxu0 }
 0x13c   : > { %v2299_v52 = vpop.f32.mrf.mxu1  ;;  %v2236_v21 = vadd.f32 %v2235_v50, %v2234_v48 }
 0x13d   : > { %v2237_v53 = vpop.f32.mrf.mxu0  ;;  %v2300_v48 = vadd.f32 %v2299_v52, %v2298_v49 }
 0x13e   : > { %v2301_v54 = vpop.f32.mrf.mxu1 }
 0x13f   : > { %v2238_v55 = vpop.f32.mrf.mxu0 }
 0x140   : > { %v2302_v27 = vpop.f32.mrf.mxu1 }
 0x141   : > { %v2240_v57 = vpop.f32.mrf.mxu0 }
 0x142   : > { %v2980_v58 = vpop.f32.mrf.mxu1 }
 0x143   : > { %v2241_v60 = vpop.f32.mrf.mxu0 }
 0x144   : > { %v2982_v61 = vpop.f32.mrf.mxu1  ;;  %v2242_v35 = vadd.f32 %v2241_v60, %v2240_v57 }
 0x145   : > { %v2243_v62 = vpop.f32.mrf.mxu0  ;;  %v3016_v41 = vadd.f32 %v2982_v61, %v2980_v58 }
 0x146   : > { %v2984_v63 = vpop.f32.mrf.mxu1 }
 0x147   : > { %v2244_v0 = vpop.f32.mrf.mxu0 }
 0x148   : > { %v2308_v2 = vpop.f32.mrf.mxu1  ;;  %v2245_v38 = vadd.f32 %v2244_v0, %v2243_v62 }
 0x149   : > { %v2246_v4 = vpop.f32.mrf.mxu0  ;;  %v2309_v45 = vadd.f32 %v2308_v2, %v2984_v63 }
 0x14a   : > { %v2986_v5 = vpop.f32.mrf.mxu1 }
 0x14b   : > { %3073 = vst [vmem:[#allocation11_spill] sm:$0xff] %v2986_v5  ;;  %v2247_v6 = vpop.f32.mrf.mxu0 }
 0x14c   : > { %v2988_v7 = vpop.f32.mrf.mxu1  ;;  %v2248_v46 = vadd.f32 %v2247_v6, %v2246_v4 }
 0x14d   : > { %3074 = vst [vmem:[#allocation12_spill] sm:$0xff] %v2988_v7  ;;  %v2249_v8 = vpop.f32.mrf.mxu0  ;;  %v2239_v7 = vadd.f32 %v2238_v55, %v2237_v53  ;;  %v2303_v55 = vadd.f32 %v2302_v27, %v2301_v54  ;;  %v3081_v27 = vld [vmem:[#allocation5_spill] sm:$0xff] }
 0x14e   : > { %v2990_v9 = vpop.f32.mrf.mxu1 }
 0x14f   : > { %3075 = vst [vmem:[#allocation13_spill] sm:$0xff] %v2990_v9  ;;  %v2250_v12 = vpop.f32.mrf.mxu0  ;;  %v1454_v34 = vadd.f32 %v2239_v7, %v2938_v59 }
 0x150   : > { %v2314_v13 = vpop.f32.mrf.mxu1  ;;  %v2251_v50 = vadd.f32 %v2250_v12, %v2249_v8 }
 0x151   : > { %v2252_v14 = vpop.f32.mrf.mxu0  ;;  %v3012_v39 = vadd.f32 %v2303_v55, %v1454_v34  ;;  %v3091_v55 = vld [vmem:[#allocation7_spill] sm:$0xff] }
 0x152   : > { %v2316_v15 = vpop.f32.mrf.mxu1  ;;  %v1470_v49 = vadd.f32 %v2251_v50, %v2950_v29 }
 0x153   : > { %v2253_v16 = vpop.f32.mrf.mxu0 }
 0x154   : > { %v2317_v17 = vpop.f32.mrf.mxu1  ;;  %v2254_v10 = vadd.f32 %v2253_v16, %v2252_v14 }
 0x155   : > { %v2255_v19 = vpop.f32.mrf.mxu0  ;;  %v2318_v14 = vadd.f32 %v2317_v17, %v2316_v15 }
 0x156   : > { %v2319_v22 = vpop.f32.mrf.mxu1  ;;  %v3082_v8 = vld [vmem:[#allocation13_spill] sm:$0xff] }
 0x157   : > { %v2256_v23 = vpop.f32.mrf.mxu0  ;;  %v2315_v12 = vadd.f32 %v2314_v13, %v3082_v8 }
 0x158   : > { %v2320_v24 = vpop.f32.mrf.mxu1  ;;  %v2257_v40 = vadd.f32 %v2256_v23, %v2255_v19  ;;  %v3083_v23 = vld [vmem:[#allocation3_spill] sm:$0xff] }
 0x159   : > { %v2258_v25 = vpop.f32.mrf.mxu0  ;;  %v2321_v54 = vadd.f32 %v2320_v24, %v2319_v22 }
 0x15a   : > { %v2322_v26 = vpop.f32.mrf.mxu1  ;;  %v1478_v59 = vadd.f32 %v2257_v40, %v2956_v47 }
 0x15b   : > { %v2259_v28 = vpop.f32.mrf.mxu0 }
 0x15c   : > { %v2323_v30 = vpop.f32.mrf.mxu1  ;;  %v2260_v62 = vadd.f32 %v2259_v28, %v2258_v25  ;;  %v1575_v29 = vadd.f32 %v2321_v54, %v1478_v59  ;;  %v1465_v25 = vadd.f32 %v2248_v46, %v3083_v23  ;;  %v3084_v28 = vld [vmem:[#allocation11_spill] sm:$0xff]  ;;  %v3092_v46 = vld [vmem:[#allocation9_spill] sm:$0xff] }
 0x15d   : > { %v2261_v32 = vpop.f32.mrf.mxu0  ;;  %v2324_v63 = vadd.f32 %v2323_v30, %v2322_v26 }
 0x15e   : > { %v2992_v33 = vpop.f32.mrf.mxu1  ;;  %v1481_v57 = vadd.f32 %v2260_v62, %v3081_v27 }
 0x15f   : > { %3076 = vst [vmem:[#allocation14_spill] sm:$0xff] %v2992_v33  ;;  %v2262_v36 = vpop.f32.mrf.mxu0  ;;  %v1446_v33 = vadd.f32 %v2233_v42, %v2932_v43  ;;  %v1462_v43 = vadd.f32 %v2245_v38, %v2944_v11  ;;  %v3079_v38 = vld [vmem:[#allocation2_spill] sm:$0xff] }
 0x160   : > { %v2994_v37 = vpop.f32.mrf.mxu1  ;;  %v3021_v52 = vadd.f32 %v2242_v35, %v3079_v38  ;;  %v2263_v2 = vadd.f32 %v2262_v36, %v2261_v32  ;;  %v3089_v32 = vld [vmem:[#allocation10_spill] sm:$0xff] }
 0x161   : > { %3077 = vst [vmem:[#allocation15_spill] sm:$0xff] %v2994_v37  ;;  %v2264_v31 = vpop.f32.mrf.mxu0  ;;  %v1449_v37 = vadd.f32 %v2236_v21, %v2935_v51  ;;  %v1538_v51 = vadd.f32 %v2294_v44, %v1441_v56  ;;  %v1543_v7 = vadd.f32 %v2297_v18, %v1446_v33  ;;  %v3080_v56 = vld [vmem:[#allocation4_spill] sm:$0xff]  ;;  %v1559_v16 = vadd.f32 %v2309_v45, %v1462_v43 }
 0x162   : > { %v2996_v1 = vpop.f32.mrf.mxu1  ;;  %v1473_v47 = vadd.f32 %v2254_v10, %v3080_v56  ;;  %v3085_v33 = vld [vmem:[#allocation12_spill] sm:$0xff] }
 0x163   : > { %3078 = vst [vmem:[#allocation16_spill] sm:$0xff] %v2996_v1  ;;  %v2265_v5 = vpop.f32.mrf.mxu0  ;;  %v1546_v19 = vadd.f32 %v2300_v48, %v1449_v37  ;;  %v2312_v22 = vadd.f32 %v3085_v33, %v3084_v28  ;;  %v1567_v37 = vadd.f32 %v2315_v12, %v1470_v49  ;;  %v3090_v48 = vld [vmem:[#allocation6_spill] sm:$0xff] }
 0x164   : > { %v2998_v20 = vpop.f32.mrf.mxu1  ;;  %v2266_v4 = vadd.f32 %v2265_v5, %v2264_v31  ;;  %v3088_v31 = vld [vmem:[#allocation8_spill] sm:$0xff]  ;;  %v1486_v50 = vadd.f32 %v2263_v2, %v3090_v48 }
 0x165   : > { %v2267_v9 = vpop.f32.mrf.mxu0 }
 0x166   : > { %v3001_v3 = vpop.f32.mrf.mxu1  ;;  %v3086_v17 = vld [vmem:[#allocation14_spill] sm:$0xff]  ;;  %v1489_v35 = vadd.f32 %v2266_v4, %v3091_v55  ;;  %v1562_v4 = vadd.f32 %v2312_v22, %v1465_v25 }
 0x167   : > { %v2268_v1 = vpop.f32.mrf.mxu0 }
 0x168   : > { %v2332_v53 = vpop.f32.mrf.mxu1  ;;  %v2269_v58 = vadd.f32 %v2268_v1, %v2267_v9  ;;  %v1578_v1 = vadd.f32 %v2324_v63, %v1481_v57  ;;  %v1570_v9 = vadd.f32 %v2318_v14, %v1473_v47  ;;  %v3087_v26 = vld [vmem:[#allocation15_spill] sm:$0xff] }
 0x169   : > { %v2270_v0 = vpop.f32.mrf.mxu0  ;;  %v2327_v30 = vadd.f32 %v3087_v26, %v3086_v17  ;;  %v2333_v43 = vadd.f32 %v2332_v53, %v3001_v3 }
 0x16a   : > { %v3009_v42 = vpop.f32.mrf.mxu1  ;;  %v1494_v5 = vadd.f32 %v2269_v58, %v3088_v31 }
 0x16b   : > { %v2271_v21 = vpop.f32.mrf.mxu0  ;;  %v1583_v63 = vadd.f32 %v2327_v30, %v1486_v50 }
 0x16c   : > { %v2335_v11 = vpop.f32.mrf.mxu1  ;;  %v2272_v40 = vadd.f32 %v2271_v21, %v2270_v0  ;;  %v1591_v53 = vadd.f32 %v2333_v43, %v1494_v5 }
 0x16d   : > { %v2371_v60 = vpop.f32.mrf.mxu0 }
 0x16e   : > { %v2379_v61 = vpop.f32.mrf.mxu1  ;;  %v1640_v24 = vadd.f32 %v2371_v60, %v1543_v7  ;;  %v1497_v49 = vadd.f32 %v2272_v40, %v3092_v46 }
 0x16f   : > { %v1631_v6 = vpop.f32.mrf.mxu0  ;;  %v1672_v13 = vadd.f32 %v2379_v61, %v1575_v29  ;;  %v3093_v29 = vld [vmem:[#allocation16_spill] sm:$0xff] }
 0x170   : > { %v1663_v34 = vpop.f32.mrf.mxu1  ;;  %v1632_v36 = vadd.f32 %v1631_v6, %v3089_v32  ;;  %v1696_v59 = vmax.f32 %v1640_v24, 0.0  ;;  %v2330_v6 = vadd.f32 %v2998_v20, %v3093_v29 }
 0x171   : > { %v2372_v15 = vpop.f32.mrf.mxu0  ;;  %v1664_v10 = vadd.f32 %v1663_v34, %v1567_v37  ;;  %v1704_v38 = vmax.f32 %v1672_v13, 0.0  ;;  %v1554_v34 = vadd.f32 %v3016_v41, %v3021_v52 }
 0x172   : > { %v1643_v44 = vadd.f32 %v2372_v15, %v1546_v19  ;;  %v2380_v18 = vpop.f32.mrf.mxu1  ;;  %v1694_v54 = vmax.f32 %v1632_v36, 0.0  ;;  %v1586_v22 = vadd.f32 %v2330_v6, %v1489_v35 }
 0x173   : > { %v1675_v62 = vadd.f32 %v2380_v18, %v1578_v1  ;;  %v1634_v0 = vpop.f32.mrf.mxu0  ;;  %v1702_v60 = vmax.f32 %v1664_v10, 0.0 }
 0x174   : > { %v1697_v21 = vmax.f32 %v1643_v44, 0.0  ;;  %v1635_v7 = vadd.f32 %v1634_v0, %v1538_v51  ;;  %v1666_v45 = vpop.f32.mrf.mxu1  ;;  %v2336_v51 = vadd.f32 %v2335_v11, %v3009_v42 }
 0x175   : > { %v1705_v19 = vmax.f32 %v1675_v62, 0.0  ;;  %v1667_v56 = vadd.f32 %v1666_v45, %v1570_v9  ;;  %v2375_v47 = vpop.f32.mrf.mxu0 }
 0x176   : > { %v2042_v27 = vpack.c.bf16 %v1697_v21, %v1696_v59  ;;  %v1695_v3 = vmax.f32 %v1635_v7, 0.0  ;;  %v2383_v57 = vpop.f32.mrf.mxu1  ;;  %v1656_v61 = vadd.f32 %v2375_v47, %v1559_v16  ;;  %v1594_v42 = vadd.f32 %v2336_v51, %v1497_v49 }
 0x177   : > { %v2062_v8 = vpack.c.bf16 %v1705_v19, %v1704_v38  ;;  %v1703_v12 = vmax.f32 %v1667_v56, 0.0  ;;  %v1647_v14 = vpop.f32.mrf.mxu0  ;;  %v1688_v28 = vadd.f32 %v2383_v57, %v1591_v53 }
 0x178   : > { %2074 = vst [vmem:[%s3041_s18 + $0x8] sm:$0xff] %v2042_v27   ;;  %v2037_v58 = vpack.c.bf16 %v1695_v3, %v1694_v54  ;;  %v1679_v2 = vpop.f32.mrf.mxu1  ;;  %v1648_v11 = vadd.f32 %v1647_v14, %v3012_v39  ;;  %v1700_v20 = vmax.f32 %v1656_v61, 0.0 }
 0x179   : > { %2078 = vst [vmem:[%s3041_s18 + $0x28] sm:$0xff] %v2062_v8   ;;  %v2057_v23 = vpack.c.bf16 %v1703_v12, %v1702_v60  ;;  %v2376_v33 = vpop.f32.mrf.mxu0  ;;  %v1680_v16 = vadd.f32 %v1679_v2, %v1583_v63  ;;  %v1708_v9 = vmax.f32 %v1688_v28, 0.0 }
 0x17a   : > { %2038 = vst [vmem:[%s3041_s18] sm:$0xff] %v2037_v58   ;;  %v1659_v24 = vadd.f32 %v2376_v33, %v1562_v4  ;;  %v2384_v37 = vpop.f32.mrf.mxu1  ;;  %v1698_v26 = vmax.f32 %v1648_v11, 0.0 }
 0x17b   : > { %2077 = vst [vmem:[%s3041_s18 + $0x20] sm:$0xff] %v2057_v23   ;;  %v1691_v40 = vadd.f32 %v2384_v37, %v1594_v42  ;;  %v1650_v25 = vpop.f32.mrf.mxu0  ;;  %v1706_v41 = vmax.f32 %v1680_v16, 0.0 }
 0x17c   : > { %v1701_v13 = vmax.f32 %v1659_v24, 0.0  ;;  %v1651_v15 = vadd.f32 %v1650_v25, %v1554_v34  ;;  %v1682_v1 = vpop.f32.mrf.mxu1 }
 0x17d   : > { %v1709_v39 = vmax.f32 %v1691_v40, 0.0  ;;  %v1683_v17 = vadd.f32 %v1682_v1, %v1586_v22 }
 0x17e   : > { %v2052_v30 = vpack.c.bf16 %v1701_v13, %v1700_v20  ;;  %v1699_v31 = vmax.f32 %v1651_v15, 0.0 }
 0x17f   : > { %v2072_v52 = vpack.c.bf16 %v1709_v39, %v1708_v9  ;;  %v1707_v5 = vmax.f32 %v1683_v17, 0.0 }
 0x180   : > { %2076 = vst [vmem:[%s3041_s18 + $0x18] sm:$0xff] %v2052_v30   ;;  %v2047_v32 = vpack.c.bf16 %v1699_v31, %v1698_v26 }
 0x181   : > { %2080 = vst [vmem:[%s3041_s18 + $0x38] sm:$0xff] %v2072_v52   ;;  %v2067_v36 = vpack.c.bf16 %v1707_v5, %v1706_v41 }
 0x182   : > { %2075 = vst [vmem:[%s3041_s18 + $0x10] sm:$0xff] %v2047_v32  }
 0x183   : > { %2079 = vst [vmem:[%s3041_s18 + $0x30] sm:$0xff] %v2067_v36  }
 0x184 PF: > { %s13_s12 = sadd.s32 1, %s2592_s12  }
 0x185   : > { %p10_p4 = scmp.ge.s32.totalorder %s13_s12, 6  }
 0x187   :  { %12 = sbr.rel (!%p10_p4) target bundleno = 1 (0x1), region = 62 }

// kernel: jersey_number_classifier_forward.25
= control target key start
LH: loop header
LB: loop body
LE: loop exit
PB: predicated region body
PF: predicated region fallthrough
CT: control target
= control target key end

     0   :  { %s2950_s1 = inlined_call_operand.vmem [shape: bf16[1152,128], index: 1, kind: input, shape index: {}]   ;;  %s2951_s0 = inlined_call_operand.vmem [shape: bf16[128,1152], index: 0, kind: input, shape index: {}]   ;;  %s2952_s2 = inlined_call_operand.vmem [shape: f32[1,128], index: 2, kind: input, shape index: {}]   ;;  %s2953_s3 = inlined_call_operand.vmem [shape: bf16[128,128], index: 3, kind: output, shape index: {}]  }
   0x1   :  { %v2175_v0 = vld [vmem:[%s2950_s1 + $0x78] sm:$0xff]   ;;  %v2179_v4 = vld [vmem:[%s2950_s1 + $0x70] sm:$0xff]   ;;  %v2183_v8 = vld [vmem:[%s2950_s1 + $0x68] sm:$0xff]  }
   0x2   :  { %v2176_v1 = vld [vmem:[%s2950_s1 + $0xf8] sm:$0xff]   ;;  %1855 = vmatprep.subr.bf16.mxu0 %v2175_v0  ;;  %v2180_v5 = vld [vmem:[%s2950_s1 + $0xf0] sm:$0xff]   ;;  %v2184_v9 = vld [vmem:[%s2950_s1 + $0xe8] sm:$0xff]  }
   0x3   :  { %v2177_v2 = vld [vmem:[%s2950_s1 + $0x38] sm:$0xff]   ;;  %1919 = vmatprep.subr.bf16.mxu1 %v2176_v1  ;;  %v2181_v6 = vld [vmem:[%s2950_s1 + $0x30] sm:$0xff]   ;;  %v2185_v10 = vld [vmem:[%s2950_s1 + $0x28] sm:$0xff]  }
   0x4   :  { %v2178_v3 = vld [vmem:[%s2950_s1 + $0xb8] sm:$0xff]   ;;  %1856 = vmatpush3.bf16.msra.mxu0 %v2177_v2  ;;  %v2182_v7 = vld [vmem:[%s2950_s1 + $0xb0] sm:$0xff]   ;;  %v2186_v11 = vld [vmem:[%s2950_s1 + $0xa8] sm:$0xff]  }
   0x5   :  { %1920 = vmatpush3.bf16.msra.mxu1 %v2178_v3  ;;  %1857 = vmatprep.subr.bf16.mxu0 %v2179_v4  ;;  %v2187_v12 = vld [vmem:[%s2950_s1 + $0x60] sm:$0xff]   ;;  %v2191_v16 = vld [vmem:[%s2950_s1 + $0x58] sm:$0xff]   ;;  %v2195_v20 = vld [vmem:[%s2950_s1 + $0x50] sm:$0xff]  }
   0x6   :  { %1921 = vmatprep.subr.bf16.mxu1 %v2180_v5  ;;  %v2188_v13 = vld [vmem:[%s2950_s1 + $0xe0] sm:$0xff]   ;;  %v2192_v17 = vld [vmem:[%s2950_s1 + $0xd8] sm:$0xff]   ;;  %v2196_v21 = vld [vmem:[%s2950_s1 + $0xd0] sm:$0xff]  }
   0x7   :  { %v2189_v14 = vld [vmem:[%s2950_s1 + $0x20] sm:$0xff]   ;;  %v2193_v18 = vld [vmem:[%s2950_s1 + $0x18] sm:$0xff]   ;;  %v2197_v22 = vld [vmem:[%s2950_s1 + $0x10] sm:$0xff]  }
   0x8   :  { %1858 = vmatpush3.bf16.msra.mxu0 %v2181_v6  ;;  %v2190_v15 = vld [vmem:[%s2950_s1 + $0xa0] sm:$0xff]   ;;  %v2194_v19 = vld [vmem:[%s2950_s1 + $0x98] sm:$0xff]   ;;  %v2198_v23 = vld [vmem:[%s2950_s1 + $0x90] sm:$0xff]  }
   0x9   :  { %1922 = vmatpush3.bf16.msra.mxu1 %v2182_v7  ;;  %1859 = vmatprep.subr.bf16.mxu0 %v2183_v8  ;;  %v2199_v24 = vld [vmem:[%s2950_s1 + $0x48] sm:$0xff]   ;;  %v2203_v28 = vld [vmem:[%s2950_s1 + $0x40] sm:$0xff]   ;;  %v2213_v36 = vld [vmem:[%s2950_s1 + $0x178] sm:$0xff]  }
   0xa   :  { %1923 = vmatprep.subr.bf16.mxu1 %v2184_v9  ;;  %v2200_v25 = vld [vmem:[%s2950_s1 + $0xc8] sm:$0xff]   ;;  %v2204_v29 = vld [vmem:[%s2950_s1 + $0xc0] sm:$0xff]   ;;  %v2214_v37 = vld [vmem:[%s2950_s1 + $0x1f8] sm:$0xff]  }
   0xb   :  { %v2201_v26 = vld [vmem:[%s2950_s1 + $0x8] sm:$0xff]   ;;  %v2205_v30 = vld [vmem:[%s2950_s1] sm:$0xff]   ;;  %v2215_v38 = vld [vmem:[%s2950_s1 + $0x138] sm:$0xff]  }
   0xc   :  { %1860 = vmatpush3.bf16.msra.mxu0 %v2185_v10  ;;  %v2202_v27 = vld [vmem:[%s2950_s1 + $0x88] sm:$0xff]   ;;  %v2206_v31 = vld [vmem:[%s2950_s1 + $0x80] sm:$0xff]   ;;  %v2216_v39 = vld [vmem:[%s2950_s1 + $0x1b8] sm:$0xff]  }
   0xd   :  { %1924 = vmatpush3.bf16.msra.mxu1 %v2186_v11  ;;  %1861 = vmatprep.subr.bf16.mxu0 %v2187_v12  ;;  %v2207_v32 = vld [vmem:[%s2951_s0] ss:$36 sps:$4 sm:$0xff]   ;;  %v2210_v34 = vld [vmem:[%s2951_s0 + $0x8] ss:$36 sps:$4 sm:$0xff]   ;;  %v2219_v41 = vld [vmem:[%s2951_s0 + $0x54] ss:$36 sps:$4 sm:$0xff]  }
   0xe   :  { %1925 = vmatprep.subr.bf16.mxu1 %v2188_v13  ;;  %v2209_v33 = vld [vmem:[%s2951_s0 + $0x4] ss:$36 sps:$4 sm:$0xff]   ;;  %v2212_v35 = vld [vmem:[%s2951_s0 + $0xc] ss:$36 sps:$4 sm:$0xff]   ;;  %v2227_v48 = vld [vmem:[%s2951_s0 + $0x94] ss:$36 sps:$4 sm:$0xff]  }
   0xf   :  { %1078 = vmatprep.mubr.bf16.mxu0 %v2209_v33  ;;  %1175 = vmatprep.mubr.bf16.mxu1 %v2212_v35  ;;  %v2217_v40 = vld [vmem:[%s2951_s0 + $0x4c] ss:$36 sps:$4 sm:$0xff]   ;;  %v2229_v49 = vld [vmem:[%s2951_s0 + $0x9c] ss:$36 sps:$4 sm:$0xff]   ;;  %v2239_v57 = vld [vmem:[%s2951_s0 + $0xe4] ss:$36 sps:$4 sm:$0xff]  }
  0x10   :  { %1862 = vmatpush3.bf16.msra.mxu0 %v2189_v14  ;;  %v2221_v42 = vld [vmem:[%s2951_s0 + $0x48] ss:$36 sps:$4 sm:$0xff]   ;;  %v2222_v43 = vld [vmem:[%s2951_s0 + $0x50] ss:$36 sps:$4 sm:$0xff]   ;;  %v2232_v51 = vld [vmem:[%s2951_s0 + $0x98] ss:$36 sps:$4 sm:$0xff]  }
  0x11   :  { %1926 = vmatpush3.bf16.msra.mxu1 %v2190_v15  ;;  %1863 = vmatprep.subr.bf16.mxu0 %v2191_v16  ;;  %v2223_v44 = vld [vmem:[%s2950_s1 + $0x170] sm:$0xff]   ;;  %v2233_v52 = vld [vmem:[%s2950_s1 + $0x168] sm:$0xff]   ;;  %v2237_v56 = vld [vmem:[%s2951_s0 + $0xdc] ss:$36 sps:$4 sm:$0xff]  }
  0x12   :  { %1927 = vmatprep.subr.bf16.mxu1 %v2192_v17  ;;  %v2224_v45 = vld [vmem:[%s2950_s1 + $0x1f0] sm:$0xff]   ;;  %v2234_v53 = vld [vmem:[%s2950_s1 + $0x1e8] sm:$0xff]   ;;  %v2241_v58 = vld [vmem:[%s2951_s0 + $0xd8] ss:$36 sps:$4 sm:$0xff]  }
  0x13   :  { %v2225_v46 = vld [vmem:[%s2950_s1 + $0x130] sm:$0xff]   ;;  %v2235_v54 = vld [vmem:[%s2950_s1 + $0x128] sm:$0xff]   ;;  %v2242_v59 = vld [vmem:[%s2951_s0 + $0xe0] ss:$36 sps:$4 sm:$0xff]  }
  0x14   :  { %1864 = vmatpush3.bf16.msra.mxu0 %v2193_v18  ;;  %v2226_v47 = vld [vmem:[%s2950_s1 + $0x1b0] sm:$0xff]   ;;  %v2236_v55 = vld [vmem:[%s2950_s1 + $0x1a8] sm:$0xff]   ;;  %v2243_v60 = vld [vmem:[%s2950_s1 + $0x160] sm:$0xff]  }
  0x15   :  { %1928 = vmatpush3.bf16.msra.mxu1 %v2194_v19  ;;  %1865 = vmatprep.subr.bf16.mxu0 %v2195_v20  ;;  %v2231_v50 = vld [vmem:[%s2951_s0 + $0x90] ss:$36 sps:$4 sm:$0xff]   ;;  %v2244_v61 = vld [vmem:[%s2950_s1 + $0x1e0] sm:$0xff]   ;;  %v2253_v3 = vld [vmem:[%s2950_s1 + $0x158] sm:$0xff]  }
  0x16   :  { %1929 = vmatprep.subr.bf16.mxu1 %v2196_v21  ;;  %v2245_v62 = vld [vmem:[%s2950_s1 + $0x120] sm:$0xff]   ;;  %v2249_v1 = vld [vmem:[%s2951_s0 + $0x12c] ss:$36 sps:$4 sm:$0xff]   ;;  %v2254_v5 = vld [vmem:[%s2950_s1 + $0x1d8] sm:$0xff]  }
  0x17   :  { %v2246_v63 = vld [vmem:[%s2950_s1 + $0x1a0] sm:$0xff]   ;;  %v2252_v4 = vld [vmem:[%s2951_s0 + $0x128] ss:$36 sps:$4 sm:$0xff]   ;;  %v2255_v6 = vld [vmem:[%s2950_s1 + $0x118] sm:$0xff]  }
  0x18   :  { %1866 = vmatpush3.bf16.msra.mxu0 %v2197_v22  ;;  %v2247_v0 = vld [vmem:[%s2951_s0 + $0x124] ss:$36 sps:$4 sm:$0xff]   ;;  %v2256_v7 = vld [vmem:[%s2950_s1 + $0x198] sm:$0xff]   ;;  %v2257_v8 = vld [vmem:[%s2951_s0 + $0x16c] ss:$36 sps:$4 sm:$0xff]  }
  0x19   :  { %1930 = vmatpush3.bf16.msra.mxu1 %v2198_v23  ;;  %1867 = vmatprep.subr.bf16.mxu0 %v2199_v24  ;;  %v2251_v2 = vld [vmem:[%s2951_s0 + $0x120] ss:$36 sps:$4 sm:$0xff]   ;;  %v2259_v9 = vld [vmem:[%s2951_s0 + $0x174] ss:$36 sps:$4 sm:$0xff]   ;;  %v2261_v12 = vld [vmem:[%s2951_s0 + $0x168] ss:$36 sps:$4 sm:$0xff]  }
  0x1a   :  { %1931 = vmatprep.subr.bf16.mxu1 %v2200_v25  ;;  %v2263_v10 = vld [vmem:[%s2950_s1 + $0x150] sm:$0xff]   ;;  %v2269_v17 = vld [vmem:[%s2951_s0 + $0x1bc] ss:$36 sps:$4 sm:$0xff]   ;;  %v2273_v18 = vld [vmem:[%s2950_s1 + $0x148] sm:$0xff]  }
  0x1b   :  { %v2264_v11 = vld [vmem:[%s2950_s1 + $0x1d0] sm:$0xff]   ;;  %v2274_v19 = vld [vmem:[%s2950_s1 + $0x1c8] sm:$0xff]   ;;  %v2272_v23 = vld [vmem:[%s2951_s0 + $0x1b8] ss:$36 sps:$4 sm:$0xff]  }
  0x1c   :  { %1868 = vmatpush3.bf16.msra.mxu0 %v2201_v26  ;;  %v2265_v13 = vld [vmem:[%s2950_s1 + $0x110] sm:$0xff]   ;;  %v2275_v20 = vld [vmem:[%s2950_s1 + $0x108] sm:$0xff]   ;;  %v2277_v24 = vld [vmem:[%s2951_s0 + $0x1fc] ss:$36 sps:$4 sm:$0xff]  }
  0x1d   :  { %1932 = vmatpush3.bf16.msra.mxu1 %v2202_v27  ;;  %1869 = vmatprep.subr.bf16.mxu0 %v2203_v28  ;;  %v2266_v14 = vld [vmem:[%s2950_s1 + $0x190] sm:$0xff]   ;;  %v2276_v21 = vld [vmem:[%s2950_s1 + $0x188] sm:$0xff]   ;;  %v2283_v26 = vld [vmem:[%s2950_s1 + $0x140] sm:$0xff]  }
  0x1e   :  { %1933 = vmatprep.subr.bf16.mxu1 %v2204_v29  ;;  %v2262_v15 = vld [vmem:[%s2951_s0 + $0x170] ss:$36 sps:$4 sm:$0xff]   ;;  %v2279_v25 = vld [vmem:[%s2951_s0 + $0x204] ss:$36 sps:$4 sm:$0xff]  }
  0x1f   :  { %v2267_v16 = vld [vmem:[%s2951_s0 + $0x1b4] ss:$36 sps:$4 sm:$0xff]   ;;  %v2284_v27 = vld [vmem:[%s2950_s1 + $0x1c0] sm:$0xff]  }
  0x20   :  { %1870 = vmatpush3.bf16.msra.mxu0 %v2205_v30  ;;  %v2271_v22 = vld [vmem:[%s2951_s0 + $0x1b0] ss:$36 sps:$4 sm:$0xff]   ;;  %v2285_v28 = vld [vmem:[%s2950_s1 + $0x100] sm:$0xff]   ;;  %v2281_v30 = vld [vmem:[%s2951_s0 + $0x1f8] ss:$36 sps:$4 sm:$0xff]  }
  0x21   :  { %1934 = vmatpush3.bf16.msra.mxu1 %v2206_v31  ;;  %1983 = vmatprep.subr.bf16.mxu0 %v2213_v36  ;;  %v2286_v29 = vld [vmem:[%s2950_s1 + $0x180] sm:$0xff]   ;;  %v2289_v33 = vld [vmem:[%s2951_s0 + $0x14] ss:$36 sps:$4 sm:$0xff]  }
  0x22   :  { %2047 = vmatprep.subr.bf16.mxu1 %v2214_v37  ;;  %v2282_v31 = vld [vmem:[%s2951_s0 + $0x200] ss:$36 sps:$4 sm:$0xff]   ;;  %v2287_v35 = vld [vmem:[%s2951_s0 + $0x10] ss:$36 sps:$4 sm:$0xff]   ;;  %v2290_v36 = vld [vmem:[%s2951_s0 + $0x18] ss:$36 sps:$4 sm:$0xff]  }
  0x23   :  { %1079 = vmatmul.mubr.bf16.vlgmr.msra.gmra.mxu0 %v2207_v32  ;;  %v2293_v32 = vld [vmem:[%s2950_s1 + $0x238] sm:$0xff]  }
  0x24   :  { %1176 = vmatmul.mubr.bf16.vlgmr.msra.gmra.mxu1 %v2210_v34  ;;  %1984 = vmatpush3.bf16.msra.mxu0 %v2215_v38  ;;  %v2292_v34 = vld [vmem:[%s2951_s0 + $0x1c] ss:$36 sps:$4 sm:$0xff]   ;;  %v2296_v38 = vld [vmem:[%s2951_s0 + $0x64] ss:$36 sps:$4 sm:$0xff]  }
  0x25   :  { %2048 = vmatpush3.bf16.msra.mxu1 %v2216_v39  ;;  %1086 = vmatprep.mubr.bf16.mxu0 %v2217_v40  ;;  %v2294_v37 = vld [vmem:[%s2951_s0 + $0x5c] ss:$36 sps:$4 sm:$0xff]   ;;  %v2300_v39 = vld [vmem:[%s2950_s1 + $0x230] sm:$0xff]   ;;  %v2307_v40 = vld [vmem:[%s2950_s1 + $0x228] sm:$0xff]  }
  0x26   :  { %1183 = vmatprep.mubr.bf16.mxu1 %v2219_v41  ;;  %1985 = vmatprep.subr.bf16.mxu0 %v2223_v44  ;;  %v2298_v41 = vld [vmem:[%s2951_s0 + $0x58] ss:$36 sps:$4 sm:$0xff]   ;;  %v2303_v44 = vld [vmem:[%s2951_s0 + $0xac] ss:$36 sps:$4 sm:$0xff]  }
  0x27   :  { %2049 = vmatprep.subr.bf16.mxu1 %v2224_v45  ;;  %v2314_v45 = vld [vmem:[%s2950_s1 + $0x220] sm:$0xff]  }
  0x28   :  { %1986 = vmatpush3.bf16.msra.mxu0 %v2225_v46  ;;  %v2321_v46 = vld [vmem:[%s2950_s1 + $0x218] sm:$0xff]  }
  0x29   :  { %2050 = vmatpush3.bf16.msra.mxu1 %v2226_v47  ;;  %1987 = vmatprep.subr.bf16.mxu0 %v2233_v52  ;;  %v2305_v47 = vld [vmem:[%s2951_s0 + $0xa0] ss:$36 sps:$4 sm:$0xff]   ;;  %v2312_v52 = vld [vmem:[%s2951_s0 + $0xe8] ss:$36 sps:$4 sm:$0xff]  }
  0x2a   :  { %2051 = vmatprep.subr.bf16.mxu1 %v2234_v53  ;;  %v2335_v53 = vld [vmem:[%s2950_s1 + $0x208] sm:$0xff]  }
  0x2b   :  { %1087 = vmatmul.mubr.bf16.gmra.mxu0 %v2221_v42  ;;  %v2299_v42 = vld [vmem:[%s2951_s0 + $0x60] ss:$36 sps:$4 sm:$0xff]  }
  0x2c   :  { %1184 = vmatmul.mubr.bf16.gmra.mxu1 %v2222_v43  ;;  %1094 = vmatprep.mubr.bf16.mxu0 %v2227_v48  ;;  %v2301_v43 = vld [vmem:[%s2951_s0 + $0xa4] ss:$36 sps:$4 sm:$0xff]  }
  0x2d   :  { %1191 = vmatprep.mubr.bf16.mxu1 %v2229_v49  ;;  %1988 = vmatpush3.bf16.msra.mxu0 %v2235_v54  ;;  %v2306_v48 = vld [vmem:[%s2951_s0 + $0xa8] ss:$36 sps:$4 sm:$0xff]   ;;  %v2313_v54 = vld [vmem:[%s2951_s0 + $0xf0] ss:$36 sps:$4 sm:$0xff]  }
  0x2e   :  { %2052 = vmatpush3.bf16.msra.mxu1 %v2236_v55  ;;  %1989 = vmatprep.subr.bf16.mxu0 %v2243_v60  ;;  %v2308_v49 = vld [vmem:[%s2951_s0 + $0xec] ss:$36 sps:$4 sm:$0xff]   ;;  %v2315_v55 = vld [vmem:[%s2951_s0 + $0x134] ss:$36 sps:$4 sm:$0xff]   ;;  %v2322_v60 = vld [vmem:[%s2951_s0 + $0x17c] ss:$36 sps:$4 sm:$0xff]  }
  0x2f   :  { %2053 = vmatprep.subr.bf16.mxu1 %v2244_v61  ;;  %v2324_v61 = vld [vmem:[%s2951_s0 + $0x184] ss:$36 sps:$4 sm:$0xff]  }
  0x31   :  { %1990 = vmatpush3.bf16.msra.mxu0 %v2245_v62  ;;  %v2326_v62 = vld [vmem:[%s2951_s0 + $0x178] ss:$36 sps:$4 sm:$0xff]  }
  0x32   :  { %2054 = vmatpush3.bf16.msra.mxu1 %v2246_v63  ;;  %1991 = vmatprep.subr.bf16.mxu0 %v2253_v3  ;;  %v2327_v63 = vld [vmem:[%s2951_s0 + $0x180] ss:$36 sps:$4 sm:$0xff]   ;;  %v2334_v3 = vld [vmem:[%s2951_s0 + $0x1c8] ss:$36 sps:$4 sm:$0xff]  }
  0x33   :  { %1095 = vmatmul.mubr.bf16.gmra.mxu0 %v2231_v50  ;;  %2055 = vmatprep.subr.bf16.mxu1 %v2254_v5  ;;  %v2310_v50 = vld [vmem:[%s2951_s0 + $0xf4] ss:$36 sps:$4 sm:$0xff]  }
  0x34   :  { %1192 = vmatmul.mubr.bf16.gmra.mxu1 %v2232_v51  ;;  %1102 = vmatprep.mubr.bf16.mxu0 %v2237_v56  ;;  %v2328_v51 = vld [vmem:[%s2950_s1 + $0x210] sm:$0xff]   ;;  %v2317_v56 = vld [vmem:[%s2951_s0 + $0x13c] ss:$36 sps:$4 sm:$0xff]  }
  0x35   :  { %1199 = vmatprep.mubr.bf16.mxu1 %v2239_v57  ;;  %1992 = vmatpush3.bf16.msra.mxu0 %v2255_v6  ;;  %v2342_v57 = vld [vmem:[%s2950_s1 + $0x200] sm:$0xff]   ;;  %v2338_v5 = vld [vmem:[%s2951_s0 + $0x214] ss:$36 sps:$4 sm:$0xff]   ;;  %v2340_v6 = vld [vmem:[%s2951_s0 + $0x208] ss:$36 sps:$4 sm:$0xff]  }
  0x36   :  { %2056 = vmatpush3.bf16.msra.mxu1 %v2256_v7  ;;  %1993 = vmatprep.subr.bf16.mxu0 %v2263_v10  ;;  %v2341_v7 = vld [vmem:[%s2951_s0 + $0x210] ss:$36 sps:$4 sm:$0xff]   ;;  %v2345_v10 = vld [vmem:[%s2951_s0 + $0x68] ss:$36 sps:$4 sm:$0xff]  }
  0x37   :  { %2057 = vmatprep.subr.bf16.mxu1 %v2264_v11  ;;  %v2346_v11 = vld [vmem:[%s2951_s0 + $0x188] ss:$36 sps:$4 sm:$0xff]  }
  0x39   :  { %1994 = vmatpush3.bf16.msra.mxu0 %v2265_v13  ;;  %v2348_v13 = vld [vmem:[%s2951_s0 + $0x1d0] ss:$36 sps:$4 sm:$0xff]  }
  0x3a   :  { %2058 = vmatpush3.bf16.msra.mxu1 %v2266_v14  ;;  %1995 = vmatprep.subr.bf16.mxu0 %v2273_v18  ;;  %v2349_v14 = vld [vmem:[%s2951_s0 + $0xf8] ss:$36 sps:$4 sm:$0xff]   ;;  %v2806_v18 = vld [vmem:[%s2952_s2] ss:$0 sm:$0xff] }
  0x3b   :  { %1103 = vmatmul.mubr.bf16.gmra.mxu0 %v2241_v58  ;;  %2059 = vmatprep.subr.bf16.mxu1 %v2274_v19  ;;  %v2319_v58 = vld [vmem:[%s2951_s0 + $0x130] ss:$36 sps:$4 sm:$0xff]  }
  0x3c   :  { %1200 = vmatmul.mubr.bf16.gmra.mxu1 %v2242_v59  ;;  %1110 = vmatprep.mubr.bf16.mxu0 %v2247_v0  ;;  %v2320_v59 = vld [vmem:[%s2951_s0 + $0x138] ss:$36 sps:$4 sm:$0xff]   ;;  %v2329_v0 = vld [vmem:[%s2951_s0 + $0x1c4] ss:$36 sps:$4 sm:$0xff]  }
  0x3d   :  { %1207 = vmatprep.mubr.bf16.mxu1 %v2249_v1  ;;  %1996 = vmatpush3.bf16.msra.mxu0 %v2275_v20  ;;  %v2331_v1 = vld [vmem:[%s2951_s0 + $0x1cc] ss:$36 sps:$4 sm:$0xff]  }
  0x3e   :  { %2060 = vmatpush3.bf16.msra.mxu1 %v2276_v21  ;;  %1997 = vmatprep.subr.bf16.mxu0 %v2283_v26 }
  0x3f   :  { %2061 = vmatprep.subr.bf16.mxu1 %v2284_v27 }
  0x41   :  { %1998 = vmatpush3.bf16.msra.mxu0 %v2285_v28 }
  0x42   :  { %2062 = vmatpush3.bf16.msra.mxu1 %v2286_v29  ;;  %2127 = vmatprep.subr.bf16.mxu0 %v2293_v32 }
  0x43   :  { %1111 = vmatmul.mubr.bf16.gmra.mxu0 %v2251_v2  ;;  %2159 = vmatprep.subr.bf16.mxu1 %v2293_v32  ;;  %v2333_v2 = vld [vmem:[%s2951_s0 + $0x1c0] ss:$36 sps:$4 sm:$0xff]  }
  0x44   :  { %1208 = vmatmul.mubr.bf16.gmra.mxu1 %v2252_v4  ;;  %1118 = vmatprep.mubr.bf16.mxu0 %v2257_v8  ;;  %v2336_v4 = vld [vmem:[%s2951_s0 + $0x20c] ss:$36 sps:$4 sm:$0xff]   ;;  %v2343_v8 = vld [vmem:[%s2951_s0 + $0x20] ss:$36 sps:$4 sm:$0xff]  }
  0x45   :  { %1215 = vmatprep.mubr.bf16.mxu1 %v2259_v9  ;;  %v2344_v9 = vld [vmem:[%s2951_s0 + $0x140] ss:$36 sps:$4 sm:$0xff]  }
  0x4b   :  { %1119 = vmatmul.mubr.bf16.gmra.mxu0 %v2261_v12  ;;  %v2347_v12 = vld [vmem:[%s2951_s0 + $0xb0] ss:$36 sps:$4 sm:$0xff]  }
  0x4c   :  { %1216 = vmatmul.mubr.bf16.gmra.mxu1 %v2262_v15  ;;  %1126 = vmatprep.mubr.bf16.mxu0 %v2267_v16  ;;  %v2350_v15 = vld [vmem:[%s2951_s0 + $0x218] ss:$36 sps:$4 sm:$0xff]  }
  0x4d   :  { %1223 = vmatprep.mubr.bf16.mxu1 %v2269_v17 }
  0x53   :  { %1127 = vmatmul.mubr.bf16.gmra.mxu0 %v2271_v22 }
  0x54   :  { %1224 = vmatmul.mubr.bf16.gmra.mxu1 %v2272_v23  ;;  %1134 = vmatprep.mubr.bf16.mxu0 %v2277_v24 }
  0x55   :  { %1231 = vmatprep.mubr.bf16.mxu1 %v2279_v25 }
  0x5b   :  { %1135 = vmatmul.mubr.bf16.gmra.mxu0 %v2281_v30 }
  0x5c   :  { %1232 = vmatmul.mubr.bf16.gmra.mxu1 %v2282_v31  ;;  %1272 = vmatprep.mubr.bf16.mxu0 %v2289_v33 }
  0x5d   :  { %1369 = vmatprep.mubr.bf16.mxu1 %v2292_v34 }
  0x63   :  { %1273 = vmatmul.mubr.bf16.vlgmr.msra.gmra.mxu0 %v2287_v35 }
  0x64   :  { %1370 = vmatmul.mubr.bf16.vlgmr.msra.gmra.mxu1 %v2290_v36  ;;  %2128 = vmatpush3.bf16.msra.mxu0 %v2293_v32 }
  0x65   :  { %2167 = vmatpush3.bf16.msra.mxu1 %v2293_v32  ;;  %1280 = vmatprep.mubr.bf16.mxu0 %v2294_v37 }
  0x66   :  { %1377 = vmatprep.mubr.bf16.mxu1 %v2296_v38  ;;  %2129 = vmatprep.subr.bf16.mxu0 %v2300_v39 }
  0x67   :  { %2160 = vmatprep.subr.bf16.mxu1 %v2300_v39 }
  0x68   :  { %2130 = vmatpush3.bf16.msra.mxu0 %v2300_v39 }
  0x69   :  { %2168 = vmatpush3.bf16.msra.mxu1 %v2300_v39  ;;  %2131 = vmatprep.subr.bf16.mxu0 %v2307_v40 }
  0x6a   :  { %2161 = vmatprep.subr.bf16.mxu1 %v2307_v40 }
  0x6b   :  { %1281 = vmatmul.mubr.bf16.gmra.mxu0 %v2298_v41 }
  0x6c   :  { %1378 = vmatmul.mubr.bf16.gmra.mxu1 %v2299_v42  ;;  %1288 = vmatprep.mubr.bf16.mxu0 %v2301_v43 }
  0x6d   :  { %1385 = vmatprep.mubr.bf16.mxu1 %v2303_v44  ;;  %2132 = vmatpush3.bf16.msra.mxu0 %v2307_v40 }
  0x6e   :  { %2169 = vmatpush3.bf16.msra.mxu1 %v2307_v40  ;;  %2133 = vmatprep.subr.bf16.mxu0 %v2314_v45 }
  0x6f   :  { %2162 = vmatprep.subr.bf16.mxu1 %v2314_v45 }
  0x71   :  { %2134 = vmatpush3.bf16.msra.mxu0 %v2314_v45 }
  0x72   :  { %2170 = vmatpush3.bf16.msra.mxu1 %v2314_v45  ;;  %2135 = vmatprep.subr.bf16.mxu0 %v2321_v46 }
  0x73   :  { %1289 = vmatmul.mubr.bf16.gmra.mxu0 %v2305_v47  ;;  %2163 = vmatprep.subr.bf16.mxu1 %v2321_v46 }
  0x74   :  { %1386 = vmatmul.mubr.bf16.gmra.mxu1 %v2306_v48  ;;  %1296 = vmatprep.mubr.bf16.mxu0 %v2308_v49 }
  0x75   :  { %1393 = vmatprep.mubr.bf16.mxu1 %v2310_v50  ;;  %2136 = vmatpush3.bf16.msra.mxu0 %v2321_v46 }
  0x76   :  { %2171 = vmatpush3.bf16.msra.mxu1 %v2321_v46  ;;  %2137 = vmatprep.subr.bf16.mxu0 %v2328_v51 }
  0x77   :  { %2164 = vmatprep.subr.bf16.mxu1 %v2328_v51 }
  0x79   :  { %2138 = vmatpush3.bf16.msra.mxu0 %v2328_v51 }
  0x7a   :  { %2172 = vmatpush3.bf16.msra.mxu1 %v2328_v51  ;;  %2139 = vmatprep.subr.bf16.mxu0 %v2335_v53 }
  0x7b   :  { %1297 = vmatmul.mubr.bf16.gmra.mxu0 %v2312_v52  ;;  %2165 = vmatprep.subr.bf16.mxu1 %v2335_v53 }
  0x7c   :  { %1394 = vmatmul.mubr.bf16.gmra.mxu1 %v2313_v54  ;;  %1304 = vmatprep.mubr.bf16.mxu0 %v2315_v55 }
  0x7d   :  { %1401 = vmatprep.mubr.bf16.mxu1 %v2317_v56  ;;  %2140 = vmatpush3.bf16.msra.mxu0 %v2335_v53 }
  0x7e   :  { %2173 = vmatpush3.bf16.msra.mxu1 %v2335_v53  ;;  %2141 = vmatprep.subr.bf16.mxu0 %v2342_v57 }
  0x7f   :  { %2166 = vmatprep.subr.bf16.mxu1 %v2342_v57 }
  0x81   :  { %2142 = vmatpush3.bf16.msra.mxu0 %v2342_v57 }
  0x82   :  { %2174 = vmatpush3.bf16.msra.mxu1 %v2342_v57 }
  0x83   :  { %1305 = vmatmul.mubr.bf16.gmra.mxu0 %v2319_v58 }
  0x84   :  { %1402 = vmatmul.mubr.bf16.gmra.mxu1 %v2320_v59  ;;  %1312 = vmatprep.mubr.bf16.mxu0 %v2322_v60 }
  0x85   :  { %1409 = vmatprep.mubr.bf16.mxu1 %v2324_v61 }
  0x8b   :  { %1313 = vmatmul.mubr.bf16.gmra.mxu0 %v2326_v62 }
  0x8c   :  { %1410 = vmatmul.mubr.bf16.gmra.mxu1 %v2327_v63  ;;  %1320 = vmatprep.mubr.bf16.mxu0 %v2329_v0 }
  0x8d   :  { %1417 = vmatprep.mubr.bf16.mxu1 %v2331_v1 }
  0x93   :  { %1321 = vmatmul.mubr.bf16.gmra.mxu0 %v2333_v2 }
  0x94   :  { %1418 = vmatmul.mubr.bf16.gmra.mxu1 %v2334_v3  ;;  %1328 = vmatprep.mubr.bf16.mxu0 %v2336_v4 }
  0x95   :  { %1425 = vmatprep.mubr.bf16.mxu1 %v2338_v5 }
  0x9b   :  { %1329 = vmatmul.mubr.bf16.gmra.mxu0 %v2340_v6 }
  0x9c   :  { %1426 = vmatmul.mubr.bf16.gmra.mxu1 %v2341_v7  ;;  %2143 = vmatprep.mubr.bf16.mxu0 %v2343_v8 }
  0x9d   :  { %2151 = vmatprep.mubr.bf16.mxu1 %v2344_v9 }
  0xa3   :  { %2144 = vmatmul.mubr.bf16.vlgmr.msra.gmra.mxu0 %v2345_v10 }
  0xa4   :  { %2152 = vmatmul.mubr.bf16.vlgmr.msra.gmra.mxu1 %v2346_v11  ;;  %2147 = vmatprep.mubr.bf16.mxu0 %v2347_v12 }
  0xa5   :  { %2155 = vmatprep.mubr.bf16.mxu1 %v2348_v13 }
  0xab   :  { %2148 = vmatmul.mubr.bf16.gmra.mxu0 %v2349_v14 }
  0xac   :  { %2156 = vmatmul.mubr.bf16.gmra.mxu1 %v2350_v15 }
  0xe3   :  { %v1871_v16 = vpop.f32.mrf.mxu0 }
  0xe4   :  { %v1935_v17 = vpop.f32.mrf.mxu1 }
  0xe5   :  { %v1872_v19 = vpop.f32.mrf.mxu0 }
  0xe6   :  { %v1873_v20 = vadd.f32 %v1872_v19, %v1871_v16  ;;  %v1936_v21 = vpop.f32.mrf.mxu1 }
  0xe7   :  { %v1937_v22 = vadd.f32 %v1936_v21, %v1935_v17  ;;  %v1874_v23 = vpop.f32.mrf.mxu0 }
  0xe8   :  { %v1081_v24 = vadd.f32 %v1873_v20, %v2806_v18  ;;  %v1938_v25 = vpop.f32.mrf.mxu1 }
  0xe9   :  { %v1875_v26 = vpop.f32.mrf.mxu0 }
  0xea   :  { %v2809_v27 = vadd.f32 %v1937_v22, %v1081_v24  ;;  %v1876_v28 = vadd.f32 %v1875_v26, %v1874_v23  ;;  %v1939_v29 = vpop.f32.mrf.mxu1 }
  0xeb   :  { %v1940_v30 = vadd.f32 %v1939_v29, %v1938_v25  ;;  %v1877_v31 = vpop.f32.mrf.mxu0 }
  0xec   :  { %v1084_v32 = vadd.f32 %v1876_v28, %v2806_v18  ;;  %v1941_v33 = vpop.f32.mrf.mxu1 }
  0xed   :  { %v1878_v34 = vpop.f32.mrf.mxu0 }
  0xee   :  { %v2812_v35 = vadd.f32 %v1940_v30, %v1084_v32  ;;  %v1879_v36 = vadd.f32 %v1878_v34, %v1877_v31  ;;  %v1942_v37 = vpop.f32.mrf.mxu1 }
  0xef   :  { %v1943_v38 = vadd.f32 %v1942_v37, %v1941_v33  ;;  %v1880_v39 = vpop.f32.mrf.mxu0 }
  0xf0   :  { %v1089_v40 = vadd.f32 %v1879_v36, %v2806_v18  ;;  %v1944_v41 = vpop.f32.mrf.mxu1 }
  0xf1   :  { %v1881_v42 = vpop.f32.mrf.mxu0 }
  0xf2   :  { %v2815_v43 = vadd.f32 %v1943_v38, %v1089_v40  ;;  %v1882_v44 = vadd.f32 %v1881_v42, %v1880_v39  ;;  %v1945_v45 = vpop.f32.mrf.mxu1 }
  0xf3   :  { %v1946_v46 = vadd.f32 %v1945_v45, %v1944_v41  ;;  %v1883_v47 = vpop.f32.mrf.mxu0 }
  0xf4   :  { %v1092_v48 = vadd.f32 %v1882_v44, %v2806_v18  ;;  %v1947_v49 = vpop.f32.mrf.mxu1 }
  0xf5   :  { %v1884_v50 = vpop.f32.mrf.mxu0 }
  0xf6   :  { %v2818_v51 = vadd.f32 %v1946_v46, %v1092_v48  ;;  %v1885_v52 = vadd.f32 %v1884_v50, %v1883_v47  ;;  %v1948_v53 = vpop.f32.mrf.mxu1 }
  0xf7   :  { %v1949_v54 = vadd.f32 %v1948_v53, %v1947_v49  ;;  %v1886_v55 = vpop.f32.mrf.mxu0 }
  0xf8   :  { %v1097_v56 = vadd.f32 %v1885_v52, %v2806_v18  ;;  %v1950_v57 = vpop.f32.mrf.mxu1 }
  0xf9   :  { %v1887_v58 = vpop.f32.mrf.mxu0 }
  0xfa   :  { %v2821_v59 = vadd.f32 %v1949_v54, %v1097_v56  ;;  %v1888_v60 = vadd.f32 %v1887_v58, %v1886_v55  ;;  %v1951_v61 = vpop.f32.mrf.mxu1 }
  0xfb   :  { %v1952_v62 = vadd.f32 %v1951_v61, %v1950_v57  ;;  %v1889_v63 = vpop.f32.mrf.mxu0 }
  0xfc   :  { %v1100_v0 = vadd.f32 %v1888_v60, %v2806_v18  ;;  %v1953_v1 = vpop.f32.mrf.mxu1 }
  0xfd   :  { %v1890_v2 = vpop.f32.mrf.mxu0 }
  0xfe   :  { %v2824_v3 = vadd.f32 %v1952_v62, %v1100_v0  ;;  %v1891_v4 = vadd.f32 %v1890_v2, %v1889_v63  ;;  %v1954_v5 = vpop.f32.mrf.mxu1 }
  0xff   :  { %v1955_v6 = vadd.f32 %v1954_v5, %v1953_v1  ;;  %v1892_v7 = vpop.f32.mrf.mxu0 }
 0x100   :  { %2954 = vst [vmem:[#allocation2_spill] sm:$0xff] %v2824_v3  ;;  %v1105_v8 = vadd.f32 %v1891_v4, %v2806_v18  ;;  %v1956_v9 = vpop.f32.mrf.mxu1 }
 0x101   :  { %v1893_v10 = vpop.f32.mrf.mxu0 }
 0x102   :  { %v2827_v11 = vadd.f32 %v1955_v6, %v1105_v8  ;;  %v1894_v12 = vadd.f32 %v1893_v10, %v1892_v7  ;;  %v1957_v13 = vpop.f32.mrf.mxu1 }
 0x103   :  { %v1958_v14 = vadd.f32 %v1957_v13, %v1956_v9  ;;  %v1895_v15 = vpop.f32.mrf.mxu0 }
 0x104   :  { %v1108_v16 = vadd.f32 %v1894_v12, %v2806_v18  ;;  %v1959_v17 = vpop.f32.mrf.mxu1 }
 0x105   :  { %v1896_v19 = vpop.f32.mrf.mxu0 }
 0x106   :  { %v2830_v20 = vadd.f32 %v1958_v14, %v1108_v16  ;;  %v1897_v21 = vadd.f32 %v1896_v19, %v1895_v15  ;;  %v1960_v22 = vpop.f32.mrf.mxu1 }
 0x107   :  { %v1961_v23 = vadd.f32 %v1960_v22, %v1959_v17  ;;  %v1898_v24 = vpop.f32.mrf.mxu0 }
 0x108   :  { %2955 = vst [vmem:[#allocation3_spill] sm:$0xff] %v2830_v20  ;;  %v1113_v25 = vadd.f32 %v1897_v21, %v2806_v18  ;;  %v1962_v26 = vpop.f32.mrf.mxu1 }
 0x109   :  { %v1899_v28 = vpop.f32.mrf.mxu0 }
 0x10a   :  { %v2833_v29 = vadd.f32 %v1961_v23, %v1113_v25  ;;  %v1900_v30 = vadd.f32 %v1899_v28, %v1898_v24  ;;  %v1963_v31 = vpop.f32.mrf.mxu1 }
 0x10b   :  { %v1964_v32 = vadd.f32 %v1963_v31, %v1962_v26  ;;  %v1901_v33 = vpop.f32.mrf.mxu0 }
 0x10c   :  { %v1116_v34 = vadd.f32 %v1900_v30, %v2806_v18  ;;  %v1965_v36 = vpop.f32.mrf.mxu1 }
 0x10d   :  { %v1902_v37 = vpop.f32.mrf.mxu0 }
 0x10e   :  { %v2836_v38 = vadd.f32 %v1964_v32, %v1116_v34  ;;  %v1903_v39 = vadd.f32 %v1902_v37, %v1901_v33  ;;  %v1966_v40 = vpop.f32.mrf.mxu1 }
 0x10f   :  { %v1967_v41 = vadd.f32 %v1966_v40, %v1965_v36  ;;  %v1904_v42 = vpop.f32.mrf.mxu0 }
 0x110   :  { %2956 = vst [vmem:[#allocation4_spill] sm:$0xff] %v2836_v38  ;;  %v1121_v44 = vadd.f32 %v1903_v39, %v2806_v18  ;;  %v1968_v45 = vpop.f32.mrf.mxu1 }
 0x111   :  { %v1905_v46 = vpop.f32.mrf.mxu0 }
 0x112   :  { %v2839_v47 = vadd.f32 %v1967_v41, %v1121_v44  ;;  %v1906_v48 = vadd.f32 %v1905_v46, %v1904_v42  ;;  %v1969_v49 = vpop.f32.mrf.mxu1 }
 0x113   :  { %v1970_v50 = vadd.f32 %v1969_v49, %v1968_v45  ;;  %v1907_v52 = vpop.f32.mrf.mxu0 }
 0x114   :  { %v1124_v53 = vadd.f32 %v1906_v48, %v2806_v18  ;;  %v1971_v54 = vpop.f32.mrf.mxu1 }
 0x115   :  { %v1908_v55 = vpop.f32.mrf.mxu0 }
 0x116   :  { %v2842_v56 = vadd.f32 %v1970_v50, %v1124_v53  ;;  %v1909_v57 = vadd.f32 %v1908_v55, %v1907_v52  ;;  %v1972_v58 = vpop.f32.mrf.mxu1 }
 0x117   :  { %v1973_v60 = vadd.f32 %v1972_v58, %v1971_v54  ;;  %v1910_v61 = vpop.f32.mrf.mxu0 }
 0x118   :  { %2957 = vst [vmem:[#allocation5_spill] sm:$0xff] %v2842_v56  ;;  %v1129_v62 = vadd.f32 %v1909_v57, %v2806_v18  ;;  %v1974_v63 = vpop.f32.mrf.mxu1 }
 0x119   :  { %v1911_v0 = vpop.f32.mrf.mxu0 }
 0x11a   :  { %v2845_v1 = vadd.f32 %v1973_v60, %v1129_v62  ;;  %v1912_v2 = vadd.f32 %v1911_v0, %v1910_v61  ;;  %v1975_v4 = vpop.f32.mrf.mxu1 }
 0x11b   :  { %v1976_v5 = vadd.f32 %v1975_v4, %v1974_v63  ;;  %v1913_v6 = vpop.f32.mrf.mxu0 }
 0x11c   :  { %2958 = vst [vmem:[#allocation6_spill] sm:$0xff] %v2845_v1  ;;  %v1132_v7 = vadd.f32 %v1912_v2, %v2806_v18  ;;  %v1977_v8 = vpop.f32.mrf.mxu1 }
 0x11d   :  { %v1914_v9 = vpop.f32.mrf.mxu0 }
 0x11e   :  { %v2848_v10 = vadd.f32 %v1976_v5, %v1132_v7  ;;  %v1915_v12 = vadd.f32 %v1914_v9, %v1913_v6  ;;  %v1978_v13 = vpop.f32.mrf.mxu1 }
 0x11f   :  { %v1979_v14 = vadd.f32 %v1978_v13, %v1977_v8  ;;  %v1916_v15 = vpop.f32.mrf.mxu0 }
 0x120   :  { %2959 = vst [vmem:[#allocation7_spill] sm:$0xff] %v2848_v10  ;;  %v1137_v16 = vadd.f32 %v1915_v12, %v2806_v18  ;;  %v1980_v17 = vpop.f32.mrf.mxu1 }
 0x121   :  { %v1917_v19 = vpop.f32.mrf.mxu0 }
 0x122   :  { %v2851_v21 = vadd.f32 %v1979_v14, %v1137_v16  ;;  %v1918_v22 = vadd.f32 %v1917_v19, %v1916_v15  ;;  %v1981_v23 = vpop.f32.mrf.mxu1 }
 0x123   :  { %v1982_v24 = vadd.f32 %v1981_v23, %v1980_v17  ;;  %v1999_v25 = vpop.f32.mrf.mxu0 }
 0x124   :  { %2960 = vst [vmem:[#allocation8_spill] sm:$0xff] %v2851_v21  ;;  %v1140_v26 = vadd.f32 %v1918_v22, %v2806_v18  ;;  %v2063_v28 = vpop.f32.mrf.mxu1 }
 0x125   :  { %v2000_v30 = vpop.f32.mrf.mxu0 }
 0x126   :  { %v2854_v31 = vadd.f32 %v1982_v24, %v1140_v26  ;;  %v2001_v32 = vadd.f32 %v2000_v30, %v1999_v25  ;;  %v2064_v33 = vpop.f32.mrf.mxu1 }
 0x127   :  { %v2002_v34 = vpop.f32.mrf.mxu0  ;;  %v2065_v37 = vadd.f32 %v2064_v33, %v2063_v28 }
 0x128   :  { %2961 = vst [vmem:[#allocation9_spill] sm:$0xff] %v2854_v31  ;;  %v1275_v36 = vadd.f32 %v2001_v32, %v2809_v27  ;;  %v2857_v39 = vpop.f32.mrf.mxu1 }
 0x129   :  { %v2003_v40 = vpop.f32.mrf.mxu0 }
 0x12a   :  { %v2859_v41 = vpop.f32.mrf.mxu1  ;;  %v2861_v42 = vadd.f32 %v2065_v37, %v1275_v36  ;;  %v2004_v10 = vadd.f32 %v2003_v40, %v2002_v34 }
 0x12b   :  { %v2005_v44 = vpop.f32.mrf.mxu0 }
 0x12c   :  { %2962 = vst [vmem:[#allocation10_spill] sm:$0xff] %v2861_v42  ;;  %v2069_v45 = vpop.f32.mrf.mxu1  ;;  %v1278_v56 = vadd.f32 %v2004_v10, %v2812_v35 }
 0x12d   :  { %v2006_v18 = vpop.f32.mrf.mxu0 }
 0x12e   :  { %v2070_v46 = vpop.f32.mrf.mxu1  ;;  %v2007_v42 = vadd.f32 %v2006_v18, %v2005_v44  ;;  %v2068_v44 = vadd.f32 %v2859_v41, %v2857_v39 }
 0x12f   :  { %v2008_v48 = vpop.f32.mrf.mxu0  ;;  %v2071_v18 = vadd.f32 %v2070_v46, %v2069_v45 }
 0x130   :  { %v2072_v49 = vpop.f32.mrf.mxu1 }
 0x131   :  { %v2009_v50 = vpop.f32.mrf.mxu0 }
 0x132   :  { %v2073_v52 = vpop.f32.mrf.mxu1  ;;  %v2010_v21 = vadd.f32 %v2009_v50, %v2008_v48 }
 0x133   :  { %v2011_v53 = vpop.f32.mrf.mxu0  ;;  %v2074_v48 = vadd.f32 %v2073_v52, %v2072_v49 }
 0x134   :  { %v2075_v54 = vpop.f32.mrf.mxu1 }
 0x135   :  { %v2012_v55 = vpop.f32.mrf.mxu0 }
 0x136   :  { %v2076_v27 = vpop.f32.mrf.mxu1 }
 0x137   :  { %v2014_v57 = vpop.f32.mrf.mxu0 }
 0x138   :  { %v2863_v58 = vpop.f32.mrf.mxu1 }
 0x139   :  { %v2015_v60 = vpop.f32.mrf.mxu0 }
 0x13a   :  { %v2865_v61 = vpop.f32.mrf.mxu1  ;;  %v2016_v35 = vadd.f32 %v2015_v60, %v2014_v57 }
 0x13b   :  { %v2017_v62 = vpop.f32.mrf.mxu0  ;;  %v2899_v41 = vadd.f32 %v2865_v61, %v2863_v58 }
 0x13c   :  { %v2867_v63 = vpop.f32.mrf.mxu1 }
 0x13d   :  { %v2018_v0 = vpop.f32.mrf.mxu0 }
 0x13e   :  { %v2082_v2 = vpop.f32.mrf.mxu1  ;;  %v2019_v38 = vadd.f32 %v2018_v0, %v2017_v62 }
 0x13f   :  { %v2020_v4 = vpop.f32.mrf.mxu0  ;;  %v2083_v45 = vadd.f32 %v2082_v2, %v2867_v63 }
 0x140   :  { %v2869_v5 = vpop.f32.mrf.mxu1 }
 0x141   :  { %2963 = vst [vmem:[#allocation11_spill] sm:$0xff] %v2869_v5  ;;  %v2021_v6 = vpop.f32.mrf.mxu0 }
 0x142   :  { %v2871_v7 = vpop.f32.mrf.mxu1  ;;  %v2022_v46 = vadd.f32 %v2021_v6, %v2020_v4 }
 0x143   :  { %2964 = vst [vmem:[#allocation12_spill] sm:$0xff] %v2871_v7  ;;  %v2023_v8 = vpop.f32.mrf.mxu0  ;;  %v2013_v7 = vadd.f32 %v2012_v55, %v2011_v53  ;;  %v2077_v55 = vadd.f32 %v2076_v27, %v2075_v54  ;;  %v2971_v27 = vld [vmem:[#allocation5_spill] sm:$0xff] }
 0x144   :  { %v2873_v9 = vpop.f32.mrf.mxu1 }
 0x145   :  { %2965 = vst [vmem:[#allocation13_spill] sm:$0xff] %v2873_v9  ;;  %v2024_v12 = vpop.f32.mrf.mxu0  ;;  %v1291_v34 = vadd.f32 %v2013_v7, %v2821_v59 }
 0x146   :  { %v2088_v13 = vpop.f32.mrf.mxu1  ;;  %v2025_v50 = vadd.f32 %v2024_v12, %v2023_v8 }
 0x147   :  { %v2026_v14 = vpop.f32.mrf.mxu0  ;;  %v2895_v39 = vadd.f32 %v2077_v55, %v1291_v34  ;;  %v2981_v55 = vld [vmem:[#allocation7_spill] sm:$0xff] }
 0x148   :  { %v2090_v15 = vpop.f32.mrf.mxu1  ;;  %v1307_v49 = vadd.f32 %v2025_v50, %v2833_v29 }
 0x149   :  { %v2027_v16 = vpop.f32.mrf.mxu0 }
 0x14a   :  { %v2091_v17 = vpop.f32.mrf.mxu1  ;;  %v2028_v10 = vadd.f32 %v2027_v16, %v2026_v14 }
 0x14b   :  { %v2029_v19 = vpop.f32.mrf.mxu0  ;;  %v2092_v14 = vadd.f32 %v2091_v17, %v2090_v15 }
 0x14c   :  { %v2093_v22 = vpop.f32.mrf.mxu1  ;;  %v2972_v8 = vld [vmem:[#allocation13_spill] sm:$0xff] }
 0x14d   :  { %v2030_v23 = vpop.f32.mrf.mxu0  ;;  %v2089_v12 = vadd.f32 %v2088_v13, %v2972_v8 }
 0x14e   :  { %v2094_v24 = vpop.f32.mrf.mxu1  ;;  %v2031_v40 = vadd.f32 %v2030_v23, %v2029_v19  ;;  %v2973_v23 = vld [vmem:[#allocation3_spill] sm:$0xff] }
 0x14f   :  { %v2032_v25 = vpop.f32.mrf.mxu0  ;;  %v2095_v54 = vadd.f32 %v2094_v24, %v2093_v22  ;;  %v1404_v24 = vadd.f32 %v2089_v12, %v1307_v49 }
 0x150   :  { %v2096_v26 = vpop.f32.mrf.mxu1  ;;  %v1315_v59 = vadd.f32 %v2031_v40, %v2839_v47 }
 0x151   :  { %v2033_v28 = vpop.f32.mrf.mxu0 }
 0x152   :  { %v2097_v30 = vpop.f32.mrf.mxu1  ;;  %v2034_v62 = vadd.f32 %v2033_v28, %v2032_v25  ;;  %v1412_v29 = vadd.f32 %v2095_v54, %v1315_v59  ;;  %v1302_v25 = vadd.f32 %v2022_v46, %v2973_v23  ;;  %v2974_v28 = vld [vmem:[#allocation11_spill] sm:$0xff]  ;;  %v2982_v46 = vld [vmem:[#allocation9_spill] sm:$0xff] }
 0x153   :  { %v2035_v32 = vpop.f32.mrf.mxu0  ;;  %v2098_v63 = vadd.f32 %v2097_v30, %v2096_v26  ;;  %v2978_v30 = vld [vmem:[#allocation8_spill] sm:$0xff] }
 0x154   :  { %v2875_v33 = vpop.f32.mrf.mxu1  ;;  %v1318_v57 = vadd.f32 %v2034_v62, %v2971_v27 }
 0x155   :  { %2966 = vst [vmem:[#allocation14_spill] sm:$0xff] %v2875_v33  ;;  %v2036_v36 = vpop.f32.mrf.mxu0  ;;  %v1283_v33 = vadd.f32 %v2007_v42, %v2815_v43  ;;  %v1299_v43 = vadd.f32 %v2019_v38, %v2827_v11  ;;  %v2969_v38 = vld [vmem:[#allocation2_spill] sm:$0xff] }
 0x156   :  { %v2877_v37 = vpop.f32.mrf.mxu1  ;;  %v2904_v52 = vadd.f32 %v2016_v35, %v2969_v38  ;;  %v2037_v2 = vadd.f32 %v2036_v36, %v2035_v32  ;;  %v1415_v15 = vadd.f32 %v2098_v63, %v1318_v57 }
 0x157   :  { %2967 = vst [vmem:[#allocation15_spill] sm:$0xff] %v2877_v37  ;;  %v2038_v31 = vpop.f32.mrf.mxu0  ;;  %v1286_v37 = vadd.f32 %v2010_v21, %v2818_v51  ;;  %v1375_v51 = vadd.f32 %v2068_v44, %v1278_v56  ;;  %v1380_v7 = vadd.f32 %v2071_v18, %v1283_v33  ;;  %v2970_v56 = vld [vmem:[#allocation4_spill] sm:$0xff]  ;;  %v1396_v16 = vadd.f32 %v2083_v45, %v1299_v43 }
 0x158   :  { %v2879_v1 = vpop.f32.mrf.mxu1  ;;  %v1310_v47 = vadd.f32 %v2028_v10, %v2970_v56  ;;  %v2975_v33 = vld [vmem:[#allocation12_spill] sm:$0xff] }
 0x159   :  { %2968 = vst [vmem:[#allocation16_spill] sm:$0xff] %v2879_v1  ;;  %v2039_v5 = vpop.f32.mrf.mxu0  ;;  %v1383_v19 = vadd.f32 %v2074_v48, %v1286_v37  ;;  %v2086_v37 = vadd.f32 %v2975_v33, %v2974_v28  ;;  %v2980_v48 = vld [vmem:[#allocation6_spill] sm:$0xff] }
 0x15a   :  { %v2881_v20 = vpop.f32.mrf.mxu1  ;;  %v2040_v4 = vadd.f32 %v2039_v5, %v2038_v31  ;;  %v2979_v5 = vld [vmem:[#allocation10_spill] sm:$0xff]  ;;  %v1323_v50 = vadd.f32 %v2037_v2, %v2980_v48 }
 0x15b   :  { %v2041_v9 = vpop.f32.mrf.mxu0 }
 0x15c   :  { %v2884_v3 = vpop.f32.mrf.mxu1  ;;  %v1326_v35 = vadd.f32 %v2040_v4, %v2981_v55  ;;  %v1399_v4 = vadd.f32 %v2086_v37, %v1302_v25  ;;  %v1391_v25 = vadd.f32 %v2899_v41, %v2904_v52 }
 0x15d   :  { %v2042_v1 = vpop.f32.mrf.mxu0 }
 0x15e   :  { %v2106_v53 = vpop.f32.mrf.mxu1  ;;  %v2043_v58 = vadd.f32 %v2042_v1, %v2041_v9  ;;  %v1407_v1 = vadd.f32 %v2092_v14, %v1310_v47  ;;  %v2976_v9 = vld [vmem:[#allocation14_spill] sm:$0xff]  ;;  %v2977_v17 = vld [vmem:[#allocation15_spill] sm:$0xff] }
 0x15f   :  { %v2044_v0 = vpop.f32.mrf.mxu0  ;;  %v2101_v26 = vadd.f32 %v2977_v17, %v2976_v9  ;;  %v2107_v43 = vadd.f32 %v2106_v53, %v2884_v3 }
 0x160   :  { %v2892_v42 = vpop.f32.mrf.mxu1  ;;  %v1331_v31 = vadd.f32 %v2043_v58, %v2978_v30 }
 0x161   :  { %v2045_v21 = vpop.f32.mrf.mxu0  ;;  %v1420_v63 = vadd.f32 %v2101_v26, %v1323_v50 }
 0x162   :  { %v2109_v11 = vpop.f32.mrf.mxu1  ;;  %v2046_v40 = vadd.f32 %v2045_v21, %v2044_v0 }
 0x163   :  { %v2145_v60 = vpop.f32.mrf.mxu0  ;;  %v2110_v12 = vadd.f32 %v2109_v11, %v2892_v42 }
 0x164   :  { %v2153_v61 = vpop.f32.mrf.mxu1  ;;  %v1477_v22 = vadd.f32 %v2145_v60, %v1380_v7  ;;  %v1334_v49 = vadd.f32 %v2046_v40, %v2982_v46  ;;  %v1428_v60 = vadd.f32 %v2107_v43, %v1331_v31 }
 0x165   :  { %v1468_v6 = vpop.f32.mrf.mxu0  ;;  %v1509_v44 = vadd.f32 %v2153_v61, %v1412_v29  ;;  %v2983_v29 = vld [vmem:[#allocation16_spill] sm:$0xff] }
 0x166   :  { %v1500_v34 = vpop.f32.mrf.mxu1  ;;  %v1469_v32 = vadd.f32 %v1468_v6, %v2979_v5  ;;  %v1533_v59 = vmax.f32 %v1477_v22, 0.0  ;;  %v2104_v6 = vadd.f32 %v2881_v20, %v2983_v29  ;;  %v1431_v28 = vadd.f32 %v2110_v12, %v1334_v49 }
 0x167   :  { %v2146_v13 = vpop.f32.mrf.mxu0  ;;  %v1501_v10 = vadd.f32 %v1500_v34, %v1404_v24  ;;  %v1541_v38 = vmax.f32 %v1509_v44, 0.0 }
 0x168   :  { %v1480_v36 = vadd.f32 %v2146_v13, %v1383_v19  ;;  %v2154_v18 = vpop.f32.mrf.mxu1  ;;  %v1531_v54 = vmax.f32 %v1469_v32, 0.0  ;;  %v1423_v34 = vadd.f32 %v2104_v6, %v1326_v35 }
 0x169   :  { %v1512_v62 = vadd.f32 %v2154_v18, %v1415_v15  ;;  %v1471_v0 = vpop.f32.mrf.mxu0  ;;  %v1539_v14 = vmax.f32 %v1501_v10, 0.0 }
 0x16a   :  { %v1534_v21 = vmax.f32 %v1480_v36, 0.0  ;;  %v1472_v7 = vadd.f32 %v1471_v0, %v1375_v51  ;;  %v1503_v45 = vpop.f32.mrf.mxu1 }
 0x16b   :  { %v1542_v56 = vmax.f32 %v1512_v62, 0.0  ;;  %v1504_v47 = vadd.f32 %v1503_v45, %v1407_v1  ;;  %v2149_v19 = vpop.f32.mrf.mxu0 }
 0x16c   :  { %v1816_v27 = vpack.c.bf16 %v1534_v21, %v1533_v59  ;;  %v1532_v57 = vmax.f32 %v1472_v7, 0.0  ;;  %v2157_v8 = vpop.f32.mrf.mxu1  ;;  %v1493_v61 = vadd.f32 %v2149_v19, %v1396_v16 }
 0x16d   :  { %v1836_v58 = vpack.c.bf16 %v1542_v56, %v1541_v38  ;;  %v1540_v3 = vmax.f32 %v1504_v47, 0.0  ;;  %v1484_v53 = vpop.f32.mrf.mxu0  ;;  %v1525_v11 = vadd.f32 %v2157_v8, %v1428_v60 }
 0x16e   :  { %1848 = vst [vmem:[%s2953_s3 + $0x8] sm:$0xff] %v1816_v27   ;;  %v1811_v51 = vpack.c.bf16 %v1532_v57, %v1531_v54  ;;  %v1516_v2 = vpop.f32.mrf.mxu1  ;;  %v1485_v16 = vadd.f32 %v1484_v53, %v2895_v39  ;;  %v1537_v40 = vmax.f32 %v1493_v61, 0.0 }
 0x16f   :  { %1852 = vst [vmem:[%s2953_s3 + $0x28] sm:$0xff] %v1836_v58   ;;  %v1831_v42 = vpack.c.bf16 %v1540_v3, %v1539_v14  ;;  %v2150_v23 = vpop.f32.mrf.mxu0  ;;  %v1517_v20 = vadd.f32 %v1516_v2, %v1420_v63  ;;  %v1545_v1 = vmax.f32 %v1525_v11, 0.0 }
 0x170   :  { %1812 = vst [vmem:[%s2953_s3] sm:$0xff] %v1811_v51   ;;  %v1496_v33 = vadd.f32 %v2150_v23, %v1399_v4  ;;  %v2158_v22 = vpop.f32.mrf.mxu1  ;;  %v1535_v17 = vmax.f32 %v1485_v16, 0.0 }
 0x171   :  { %1851 = vst [vmem:[%s2953_s3 + $0x20] sm:$0xff] %v1831_v42   ;;  %v1528_v37 = vadd.f32 %v2158_v22, %v1431_v28  ;;  %v1487_v24 = vpop.f32.mrf.mxu0  ;;  %v1543_v31 = vmax.f32 %v1517_v20, 0.0 }
 0x172   :  { %v1538_v44 = vmax.f32 %v1496_v33, 0.0  ;;  %v1488_v13 = vadd.f32 %v1487_v24, %v1391_v25  ;;  %v1519_v15 = vpop.f32.mrf.mxu1 }
 0x173   :  { %v1546_v9 = vmax.f32 %v1528_v37, 0.0  ;;  %v1520_v39 = vadd.f32 %v1519_v15, %v1423_v34 }
 0x174   :  { %v1826_v26 = vpack.c.bf16 %v1538_v44, %v1537_v40  ;;  %v1536_v30 = vmax.f32 %v1488_v13, 0.0 }
 0x175   :  { %v1846_v41 = vpack.c.bf16 %v1546_v9, %v1545_v1  ;;  %v1544_v52 = vmax.f32 %v1520_v39, 0.0 }
 0x176   :  { %1850 = vst [vmem:[%s2953_s3 + $0x18] sm:$0xff] %v1826_v26   ;;  %v1821_v5 = vpack.c.bf16 %v1536_v30, %v1535_v17 }
 0x177   :  { %1854 = vst [vmem:[%s2953_s3 + $0x38] sm:$0xff] %v1846_v41   ;;  %v1841_v32 = vpack.c.bf16 %v1544_v52, %v1543_v31 }
 0x178   :  { %1849 = vst [vmem:[%s2953_s3 + $0x10] sm:$0xff] %v1821_v5  }
 0x179   :  { %1853 = vst [vmem:[%s2953_s3 + $0x30] sm:$0xff] %v1841_v32  }

// kernel: jersey_number_classifier_forward.26
= control target key start
LH: loop header
LB: loop body
LE: loop exit
PB: predicated region body
PF: predicated region fallthrough
CT: control target
= control target key end

     0   :  { %s3437_s1 = inlined_call_operand.vmem [shape: bf16[1152,128], index: 1, kind: input, shape index: {}]   ;;  %s3438_s0 = inlined_call_operand.vmem [shape: bf16[128,1152], index: 0, kind: input, shape index: {}]   ;;  %s3439_s4 = inlined_call_operand.vmem [shape: bf16[128,128], index: 4, kind: input, shape index: {}]   ;;  %s3440_s3 = inlined_call_operand.vmem [shape: bf16[128,128], index: 3, kind: input, shape index: {}]   ;;  %s3441_s2 = inlined_call_operand.vmem [shape: f32[1,128], index: 2, kind: input, shape index: {}]   ;;  %s3442_s5 = inlined_call_operand.vmem [shape: f32[1,128], index: 5, kind: input, shape index: {}]   ;;  %s3443_s6 = inlined_call_operand.vmem [shape: bf16[128,128], index: 6, kind: output, shape index: {}]  }
   0x1   :  { %v2481_v0 = vld [vmem:[%s3437_s1 + $0x78] sm:$0xff]   ;;  %v2485_v4 = vld [vmem:[%s3437_s1 + $0x70] sm:$0xff]   ;;  %v2489_v8 = vld [vmem:[%s3437_s1 + $0x68] sm:$0xff]  }
   0x2   :  { %v2482_v1 = vld [vmem:[%s3437_s1 + $0xf8] sm:$0xff]   ;;  %2129 = vmatprep.subr.bf16.mxu0 %v2481_v0  ;;  %v2486_v5 = vld [vmem:[%s3437_s1 + $0xf0] sm:$0xff]   ;;  %v2490_v9 = vld [vmem:[%s3437_s1 + $0xe8] sm:$0xff]  }
   0x3   :  { %v2483_v2 = vld [vmem:[%s3437_s1 + $0x38] sm:$0xff]   ;;  %2193 = vmatprep.subr.bf16.mxu1 %v2482_v1  ;;  %v2487_v6 = vld [vmem:[%s3437_s1 + $0x30] sm:$0xff]   ;;  %v2491_v10 = vld [vmem:[%s3437_s1 + $0x28] sm:$0xff]  }
   0x4   :  { %v2484_v3 = vld [vmem:[%s3437_s1 + $0xb8] sm:$0xff]   ;;  %2130 = vmatpush3.bf16.msra.mxu0 %v2483_v2  ;;  %v2488_v7 = vld [vmem:[%s3437_s1 + $0xb0] sm:$0xff]   ;;  %v2492_v11 = vld [vmem:[%s3437_s1 + $0xa8] sm:$0xff]  }
   0x5   :  { %2194 = vmatpush3.bf16.msra.mxu1 %v2484_v3  ;;  %2131 = vmatprep.subr.bf16.mxu0 %v2485_v4  ;;  %v2493_v12 = vld [vmem:[%s3437_s1 + $0x60] sm:$0xff]   ;;  %v2497_v16 = vld [vmem:[%s3437_s1 + $0x58] sm:$0xff]   ;;  %v2501_v20 = vld [vmem:[%s3437_s1 + $0x50] sm:$0xff]  }
   0x6   :  { %2195 = vmatprep.subr.bf16.mxu1 %v2486_v5  ;;  %v2494_v13 = vld [vmem:[%s3437_s1 + $0xe0] sm:$0xff]   ;;  %v2498_v17 = vld [vmem:[%s3437_s1 + $0xd8] sm:$0xff]   ;;  %v2502_v21 = vld [vmem:[%s3437_s1 + $0xd0] sm:$0xff]  }
   0x7   :  { %v2495_v14 = vld [vmem:[%s3437_s1 + $0x20] sm:$0xff]   ;;  %v2499_v18 = vld [vmem:[%s3437_s1 + $0x18] sm:$0xff]   ;;  %v2503_v22 = vld [vmem:[%s3437_s1 + $0x10] sm:$0xff]  }
   0x8   :  { %2132 = vmatpush3.bf16.msra.mxu0 %v2487_v6  ;;  %v2496_v15 = vld [vmem:[%s3437_s1 + $0xa0] sm:$0xff]   ;;  %v2500_v19 = vld [vmem:[%s3437_s1 + $0x98] sm:$0xff]   ;;  %v2504_v23 = vld [vmem:[%s3437_s1 + $0x90] sm:$0xff]  }
   0x9   :  { %2196 = vmatpush3.bf16.msra.mxu1 %v2488_v7  ;;  %2133 = vmatprep.subr.bf16.mxu0 %v2489_v8  ;;  %v2505_v24 = vld [vmem:[%s3437_s1 + $0x48] sm:$0xff]   ;;  %v2509_v28 = vld [vmem:[%s3437_s1 + $0x40] sm:$0xff]   ;;  %v2519_v36 = vld [vmem:[%s3437_s1 + $0x178] sm:$0xff]  }
   0xa   :  { %2197 = vmatprep.subr.bf16.mxu1 %v2490_v9  ;;  %v2506_v25 = vld [vmem:[%s3437_s1 + $0xc8] sm:$0xff]   ;;  %v2510_v29 = vld [vmem:[%s3437_s1 + $0xc0] sm:$0xff]   ;;  %v2520_v37 = vld [vmem:[%s3437_s1 + $0x1f8] sm:$0xff]  }
   0xb   :  { %v2507_v26 = vld [vmem:[%s3437_s1 + $0x8] sm:$0xff]   ;;  %v2511_v30 = vld [vmem:[%s3437_s1] sm:$0xff]   ;;  %v2521_v38 = vld [vmem:[%s3437_s1 + $0x138] sm:$0xff]  }
   0xc   :  { %2134 = vmatpush3.bf16.msra.mxu0 %v2491_v10  ;;  %v2508_v27 = vld [vmem:[%s3437_s1 + $0x88] sm:$0xff]   ;;  %v2512_v31 = vld [vmem:[%s3437_s1 + $0x80] sm:$0xff]   ;;  %v2522_v39 = vld [vmem:[%s3437_s1 + $0x1b8] sm:$0xff]  }
   0xd   :  { %2198 = vmatpush3.bf16.msra.mxu1 %v2492_v11  ;;  %2135 = vmatprep.subr.bf16.mxu0 %v2493_v12  ;;  %v2513_v32 = vld [vmem:[%s3438_s0] ss:$36 sps:$4 sm:$0xff]   ;;  %v2516_v34 = vld [vmem:[%s3438_s0 + $0x8] ss:$36 sps:$4 sm:$0xff]   ;;  %v2525_v41 = vld [vmem:[%s3438_s0 + $0x54] ss:$36 sps:$4 sm:$0xff]  }
   0xe   :  { %2199 = vmatprep.subr.bf16.mxu1 %v2494_v13  ;;  %v2515_v33 = vld [vmem:[%s3438_s0 + $0x4] ss:$36 sps:$4 sm:$0xff]   ;;  %v2518_v35 = vld [vmem:[%s3438_s0 + $0xc] ss:$36 sps:$4 sm:$0xff]   ;;  %v2533_v48 = vld [vmem:[%s3438_s0 + $0x94] ss:$36 sps:$4 sm:$0xff]  }
   0xf   :  { %1087 = vmatprep.mubr.bf16.mxu0 %v2515_v33  ;;  %1184 = vmatprep.mubr.bf16.mxu1 %v2518_v35  ;;  %v2523_v40 = vld [vmem:[%s3438_s0 + $0x4c] ss:$36 sps:$4 sm:$0xff]   ;;  %v2535_v49 = vld [vmem:[%s3438_s0 + $0x9c] ss:$36 sps:$4 sm:$0xff]   ;;  %v2545_v57 = vld [vmem:[%s3438_s0 + $0xe4] ss:$36 sps:$4 sm:$0xff]  }
  0x10   :  { %2136 = vmatpush3.bf16.msra.mxu0 %v2495_v14  ;;  %v2527_v42 = vld [vmem:[%s3438_s0 + $0x48] ss:$36 sps:$4 sm:$0xff]   ;;  %v2528_v43 = vld [vmem:[%s3438_s0 + $0x50] ss:$36 sps:$4 sm:$0xff]   ;;  %v2538_v51 = vld [vmem:[%s3438_s0 + $0x98] ss:$36 sps:$4 sm:$0xff]  }
  0x11   :  { %2200 = vmatpush3.bf16.msra.mxu1 %v2496_v15  ;;  %2137 = vmatprep.subr.bf16.mxu0 %v2497_v16  ;;  %v2529_v44 = vld [vmem:[%s3437_s1 + $0x170] sm:$0xff]   ;;  %v2539_v52 = vld [vmem:[%s3437_s1 + $0x168] sm:$0xff]   ;;  %v2543_v56 = vld [vmem:[%s3438_s0 + $0xdc] ss:$36 sps:$4 sm:$0xff]  }
  0x12   :  { %2201 = vmatprep.subr.bf16.mxu1 %v2498_v17  ;;  %v2530_v45 = vld [vmem:[%s3437_s1 + $0x1f0] sm:$0xff]   ;;  %v2540_v53 = vld [vmem:[%s3437_s1 + $0x1e8] sm:$0xff]   ;;  %v2547_v58 = vld [vmem:[%s3438_s0 + $0xd8] ss:$36 sps:$4 sm:$0xff]  }
  0x13   :  { %v2531_v46 = vld [vmem:[%s3437_s1 + $0x130] sm:$0xff]   ;;  %v2541_v54 = vld [vmem:[%s3437_s1 + $0x128] sm:$0xff]   ;;  %v2548_v59 = vld [vmem:[%s3438_s0 + $0xe0] ss:$36 sps:$4 sm:$0xff]  }
  0x14   :  { %2138 = vmatpush3.bf16.msra.mxu0 %v2499_v18  ;;  %v2532_v47 = vld [vmem:[%s3437_s1 + $0x1b0] sm:$0xff]   ;;  %v2542_v55 = vld [vmem:[%s3437_s1 + $0x1a8] sm:$0xff]   ;;  %v2549_v60 = vld [vmem:[%s3437_s1 + $0x160] sm:$0xff]  }
  0x15   :  { %2202 = vmatpush3.bf16.msra.mxu1 %v2500_v19  ;;  %2139 = vmatprep.subr.bf16.mxu0 %v2501_v20  ;;  %v2537_v50 = vld [vmem:[%s3438_s0 + $0x90] ss:$36 sps:$4 sm:$0xff]   ;;  %v2550_v61 = vld [vmem:[%s3437_s1 + $0x1e0] sm:$0xff]   ;;  %v2559_v3 = vld [vmem:[%s3437_s1 + $0x158] sm:$0xff]  }
  0x16   :  { %2203 = vmatprep.subr.bf16.mxu1 %v2502_v21  ;;  %v2551_v62 = vld [vmem:[%s3437_s1 + $0x120] sm:$0xff]   ;;  %v2555_v1 = vld [vmem:[%s3438_s0 + $0x12c] ss:$36 sps:$4 sm:$0xff]   ;;  %v2560_v5 = vld [vmem:[%s3437_s1 + $0x1d8] sm:$0xff]  }
  0x17   :  { %v2552_v63 = vld [vmem:[%s3437_s1 + $0x1a0] sm:$0xff]   ;;  %v2558_v4 = vld [vmem:[%s3438_s0 + $0x128] ss:$36 sps:$4 sm:$0xff]   ;;  %v2561_v6 = vld [vmem:[%s3437_s1 + $0x118] sm:$0xff]  }
  0x18   :  { %2140 = vmatpush3.bf16.msra.mxu0 %v2503_v22  ;;  %v2553_v0 = vld [vmem:[%s3438_s0 + $0x124] ss:$36 sps:$4 sm:$0xff]   ;;  %v2562_v7 = vld [vmem:[%s3437_s1 + $0x198] sm:$0xff]   ;;  %v2563_v8 = vld [vmem:[%s3438_s0 + $0x16c] ss:$36 sps:$4 sm:$0xff]  }
  0x19   :  { %2204 = vmatpush3.bf16.msra.mxu1 %v2504_v23  ;;  %2141 = vmatprep.subr.bf16.mxu0 %v2505_v24  ;;  %v2557_v2 = vld [vmem:[%s3438_s0 + $0x120] ss:$36 sps:$4 sm:$0xff]   ;;  %v2565_v9 = vld [vmem:[%s3438_s0 + $0x174] ss:$36 sps:$4 sm:$0xff]   ;;  %v2567_v12 = vld [vmem:[%s3438_s0 + $0x168] ss:$36 sps:$4 sm:$0xff]  }
  0x1a   :  { %2205 = vmatprep.subr.bf16.mxu1 %v2506_v25  ;;  %v2569_v10 = vld [vmem:[%s3437_s1 + $0x150] sm:$0xff]   ;;  %v2575_v17 = vld [vmem:[%s3438_s0 + $0x1bc] ss:$36 sps:$4 sm:$0xff]   ;;  %v2579_v18 = vld [vmem:[%s3437_s1 + $0x148] sm:$0xff]  }
  0x1b   :  { %v2570_v11 = vld [vmem:[%s3437_s1 + $0x1d0] sm:$0xff]   ;;  %v2580_v19 = vld [vmem:[%s3437_s1 + $0x1c8] sm:$0xff]   ;;  %v2578_v23 = vld [vmem:[%s3438_s0 + $0x1b8] ss:$36 sps:$4 sm:$0xff]  }
  0x1c   :  { %2142 = vmatpush3.bf16.msra.mxu0 %v2507_v26  ;;  %v2571_v13 = vld [vmem:[%s3437_s1 + $0x110] sm:$0xff]   ;;  %v2581_v20 = vld [vmem:[%s3437_s1 + $0x108] sm:$0xff]   ;;  %v2583_v24 = vld [vmem:[%s3438_s0 + $0x1fc] ss:$36 sps:$4 sm:$0xff]  }
  0x1d   :  { %2206 = vmatpush3.bf16.msra.mxu1 %v2508_v27  ;;  %2143 = vmatprep.subr.bf16.mxu0 %v2509_v28  ;;  %v2572_v14 = vld [vmem:[%s3437_s1 + $0x190] sm:$0xff]   ;;  %v2582_v21 = vld [vmem:[%s3437_s1 + $0x188] sm:$0xff]   ;;  %v2589_v26 = vld [vmem:[%s3437_s1 + $0x140] sm:$0xff]  }
  0x1e   :  { %2207 = vmatprep.subr.bf16.mxu1 %v2510_v29  ;;  %v2568_v15 = vld [vmem:[%s3438_s0 + $0x170] ss:$36 sps:$4 sm:$0xff]   ;;  %v2585_v25 = vld [vmem:[%s3438_s0 + $0x204] ss:$36 sps:$4 sm:$0xff]   ;;  %v2599_v33 = vld [vmem:[%s3437_s1 + $0x238] sm:$0xff]  }
  0x1f   :  { %v2573_v16 = vld [vmem:[%s3438_s0 + $0x1b4] ss:$36 sps:$4 sm:$0xff]   ;;  %v2590_v27 = vld [vmem:[%s3437_s1 + $0x1c0] sm:$0xff]  }
  0x20   :  { %2144 = vmatpush3.bf16.msra.mxu0 %v2511_v30  ;;  %v2577_v22 = vld [vmem:[%s3438_s0 + $0x1b0] ss:$36 sps:$4 sm:$0xff]   ;;  %v2591_v28 = vld [vmem:[%s3437_s1 + $0x100] sm:$0xff]   ;;  %v2587_v30 = vld [vmem:[%s3438_s0 + $0x1f8] ss:$36 sps:$4 sm:$0xff]  }
  0x21   :  { %2208 = vmatpush3.bf16.msra.mxu1 %v2512_v31  ;;  %2257 = vmatprep.subr.bf16.mxu0 %v2519_v36  ;;  %v2592_v29 = vld [vmem:[%s3437_s1 + $0x180] sm:$0xff]   ;;  %v2593_v36 = vld [vmem:[%s3438_s0 + $0x10] ss:$36 sps:$4 sm:$0xff]  }
  0x22   :  { %2321 = vmatprep.subr.bf16.mxu1 %v2520_v37  ;;  %v2588_v31 = vld [vmem:[%s3438_s0 + $0x200] ss:$36 sps:$4 sm:$0xff]   ;;  %v2596_v37 = vld [vmem:[%s3438_s0 + $0x18] ss:$36 sps:$4 sm:$0xff]  }
  0x23   :  { %1088 = vmatmul.mubr.bf16.vlgmr.msra.gmra.mxu0 %v2513_v32  ;;  %v2595_v32 = vld [vmem:[%s3438_s0 + $0x14] ss:$36 sps:$4 sm:$0xff]   ;;  %v2598_v35 = vld [vmem:[%s3438_s0 + $0x1c] ss:$36 sps:$4 sm:$0xff]  }
  0x24   :  { %1185 = vmatmul.mubr.bf16.vlgmr.msra.gmra.mxu1 %v2516_v34  ;;  %2258 = vmatpush3.bf16.msra.mxu0 %v2521_v38  ;;  %v2600_v34 = vld [vmem:[%s3439_s4 + $0x38] sm:$0xff]  }
  0x25   :  { %2322 = vmatpush3.bf16.msra.mxu1 %v2522_v39  ;;  %1095 = vmatprep.mubr.bf16.mxu0 %v2523_v40  ;;  %v2601_v38 = vld [vmem:[%s3438_s0 + $0x5c] ss:$36 sps:$4 sm:$0xff]   ;;  %v2603_v39 = vld [vmem:[%s3438_s0 + $0x64] ss:$36 sps:$4 sm:$0xff]   ;;  %v2607_v40 = vld [vmem:[%s3437_s1 + $0x230] sm:$0xff]  }
  0x26   :  { %1192 = vmatprep.mubr.bf16.mxu1 %v2525_v41  ;;  %2259 = vmatprep.subr.bf16.mxu0 %v2529_v44  ;;  %v2608_v41 = vld [vmem:[%s3439_s4 + $0x30] sm:$0xff]   ;;  %v2616_v44 = vld [vmem:[%s3439_s4 + $0x28] sm:$0xff]  }
  0x27   :  { %2323 = vmatprep.subr.bf16.mxu1 %v2530_v45  ;;  %v2606_v45 = vld [vmem:[%s3438_s0 + $0x60] ss:$36 sps:$4 sm:$0xff]  }
  0x28   :  { %2260 = vmatpush3.bf16.msra.mxu0 %v2531_v46  ;;  %v2609_v46 = vld [vmem:[%s3438_s0 + $0xa4] ss:$36 sps:$4 sm:$0xff]  }
  0x29   :  { %2324 = vmatpush3.bf16.msra.mxu1 %v2532_v47  ;;  %2261 = vmatprep.subr.bf16.mxu0 %v2539_v52  ;;  %v2611_v47 = vld [vmem:[%s3438_s0 + $0xac] ss:$36 sps:$4 sm:$0xff]   ;;  %v2631_v52 = vld [vmem:[%s3437_s1 + $0x218] sm:$0xff]  }
  0x2a   :  { %2325 = vmatprep.subr.bf16.mxu1 %v2540_v53  ;;  %v2632_v53 = vld [vmem:[%s3439_s4 + $0x18] sm:$0xff]  }
  0x2b   :  { %1096 = vmatmul.mubr.bf16.gmra.mxu0 %v2527_v42  ;;  %v2605_v42 = vld [vmem:[%s3438_s0 + $0x58] ss:$36 sps:$4 sm:$0xff]  }
  0x2c   :  { %1193 = vmatmul.mubr.bf16.gmra.mxu1 %v2528_v43  ;;  %1103 = vmatprep.mubr.bf16.mxu0 %v2533_v48  ;;  %v2615_v43 = vld [vmem:[%s3437_s1 + $0x228] sm:$0xff]   ;;  %v2623_v48 = vld [vmem:[%s3437_s1 + $0x220] sm:$0xff]  }
  0x2d   :  { %1200 = vmatprep.mubr.bf16.mxu1 %v2535_v49  ;;  %2262 = vmatpush3.bf16.msra.mxu0 %v2541_v54  ;;  %v2624_v49 = vld [vmem:[%s3439_s4 + $0x20] sm:$0xff]   ;;  %v2617_v54 = vld [vmem:[%s3438_s0 + $0xec] ss:$36 sps:$4 sm:$0xff]  }
  0x2e   :  { %2326 = vmatpush3.bf16.msra.mxu1 %v2542_v55  ;;  %2263 = vmatprep.subr.bf16.mxu0 %v2549_v60  ;;  %v2619_v55 = vld [vmem:[%s3438_s0 + $0xf4] ss:$36 sps:$4 sm:$0xff]  }
  0x2f   :  { %2327 = vmatprep.subr.bf16.mxu1 %v2550_v61  ;;  %v2622_v60 = vld [vmem:[%s3438_s0 + $0xf0] ss:$36 sps:$4 sm:$0xff]   ;;  %v2648_v61 = vld [vmem:[%s3439_s4 + $0x8] sm:$0xff]  }
  0x31   :  { %2264 = vmatpush3.bf16.msra.mxu0 %v2551_v62  ;;  %v2625_v62 = vld [vmem:[%s3438_s0 + $0x134] ss:$36 sps:$4 sm:$0xff]  }
  0x32   :  { %2328 = vmatpush3.bf16.msra.mxu1 %v2552_v63  ;;  %2265 = vmatprep.subr.bf16.mxu0 %v2559_v3  ;;  %v2627_v63 = vld [vmem:[%s3438_s0 + $0x13c] ss:$36 sps:$4 sm:$0xff]  }
  0x33   :  { %1104 = vmatmul.mubr.bf16.gmra.mxu0 %v2537_v50  ;;  %2329 = vmatprep.subr.bf16.mxu1 %v2560_v5  ;;  %v2613_v50 = vld [vmem:[%s3438_s0 + $0xa0] ss:$36 sps:$4 sm:$0xff]   ;;  %v2630_v3 = vld [vmem:[%s3438_s0 + $0x138] ss:$36 sps:$4 sm:$0xff]  }
  0x34   :  { %1201 = vmatmul.mubr.bf16.gmra.mxu1 %v2538_v51  ;;  %1111 = vmatprep.mubr.bf16.mxu0 %v2543_v56  ;;  %v2614_v51 = vld [vmem:[%s3438_s0 + $0xa8] ss:$36 sps:$4 sm:$0xff]   ;;  %v2639_v56 = vld [vmem:[%s3437_s1 + $0x210] sm:$0xff]  }
  0x35   :  { %1208 = vmatprep.mubr.bf16.mxu1 %v2545_v57  ;;  %2266 = vmatpush3.bf16.msra.mxu0 %v2561_v6  ;;  %v2640_v57 = vld [vmem:[%s3439_s4 + $0x10] sm:$0xff]   ;;  %v2635_v5 = vld [vmem:[%s3438_s0 + $0x184] ss:$36 sps:$4 sm:$0xff]   ;;  %v2637_v6 = vld [vmem:[%s3438_s0 + $0x178] ss:$36 sps:$4 sm:$0xff]  }
  0x36   :  { %2330 = vmatpush3.bf16.msra.mxu1 %v2562_v7  ;;  %2267 = vmatprep.subr.bf16.mxu0 %v2569_v10  ;;  %v2638_v7 = vld [vmem:[%s3438_s0 + $0x180] ss:$36 sps:$4 sm:$0xff]  }
  0x37   :  { %2331 = vmatprep.subr.bf16.mxu1 %v2570_v11  ;;  %v2645_v10 = vld [vmem:[%s3438_s0 + $0x1c0] ss:$36 sps:$4 sm:$0xff]   ;;  %v2646_v11 = vld [vmem:[%s3438_s0 + $0x1c8] ss:$36 sps:$4 sm:$0xff]  }
  0x39   :  { %2268 = vmatpush3.bf16.msra.mxu0 %v2571_v13  ;;  %v2651_v13 = vld [vmem:[%s3438_s0 + $0x214] ss:$36 sps:$4 sm:$0xff]  }
  0x3a   :  { %2332 = vmatpush3.bf16.msra.mxu1 %v2572_v14  ;;  %2269 = vmatprep.subr.bf16.mxu0 %v2579_v18  ;;  %v2653_v14 = vld [vmem:[%s3438_s0 + $0x208] ss:$36 sps:$4 sm:$0xff]  }
  0x3b   :  { %1112 = vmatmul.mubr.bf16.gmra.mxu0 %v2547_v58  ;;  %2333 = vmatprep.subr.bf16.mxu1 %v2580_v19  ;;  %v2621_v58 = vld [vmem:[%s3438_s0 + $0xe8] ss:$36 sps:$4 sm:$0xff]  }
  0x3c   :  { %1209 = vmatmul.mubr.bf16.gmra.mxu1 %v2548_v59  ;;  %1119 = vmatprep.mubr.bf16.mxu0 %v2553_v0  ;;  %v2647_v59 = vld [vmem:[%s3437_s1 + $0x208] sm:$0xff]   ;;  %v2655_v0 = vld [vmem:[%s3437_s1 + $0x200] sm:$0xff]  }
  0x3d   :  { %1216 = vmatprep.mubr.bf16.mxu1 %v2555_v1  ;;  %2270 = vmatpush3.bf16.msra.mxu0 %v2581_v20  ;;  %v2656_v1 = vld [vmem:[%s3439_s4] sm:$0xff]   ;;  %v2659_v18 = vld [vmem:[%s3438_s0 + $0x68] ss:$36 sps:$4 sm:$0xff]   ;;  %v2661_v20 = vld [vmem:[%s3438_s0 + $0xb0] ss:$36 sps:$4 sm:$0xff]  }
  0x3e   :  { %2334 = vmatpush3.bf16.msra.mxu1 %v2582_v21  ;;  %2271 = vmatprep.subr.bf16.mxu0 %v2589_v26  ;;  %v2660_v19 = vld [vmem:[%s3440_s3 + $0x8] sm:$0xff]   ;;  %v2662_v21 = vld [vmem:[%s3440_s3 + $0x10] sm:$0xff]  }
  0x3f   :  { %2335 = vmatprep.subr.bf16.mxu1 %v2590_v27  ;;  %v2667_v26 = vld [vmem:[%s3438_s0 + $0x188] ss:$36 sps:$4 sm:$0xff]  }
  0x40   :  { %v2668_v27 = vld [vmem:[%s3440_s3 + $0x28] sm:$0xff]  }
  0x41   :  { %2272 = vmatpush3.bf16.msra.mxu0 %v2591_v28  ;;  %v2669_v28 = vld [vmem:[%s3438_s0 + $0x1d0] ss:$36 sps:$4 sm:$0xff]  }
  0x42   :  { %2336 = vmatpush3.bf16.msra.mxu1 %v2592_v29  ;;  %2417 = vmatprep.subr.bf16.mxu0 %v2599_v33  ;;  %v2670_v29 = vld [vmem:[%s3440_s3 + $0x30] sm:$0xff]  }
  0x43   :  { %1120 = vmatmul.mubr.bf16.gmra.mxu0 %v2557_v2  ;;  %2449 = vmatprep.subr.bf16.mxu1 %v2600_v34  ;;  %v2629_v2 = vld [vmem:[%s3438_s0 + $0x130] ss:$36 sps:$4 sm:$0xff]  }
  0x44   :  { %1217 = vmatmul.mubr.bf16.gmra.mxu1 %v2558_v4  ;;  %1127 = vmatprep.mubr.bf16.mxu0 %v2563_v8  ;;  %v2633_v4 = vld [vmem:[%s3438_s0 + $0x17c] ss:$36 sps:$4 sm:$0xff]   ;;  %v2641_v8 = vld [vmem:[%s3438_s0 + $0x1c4] ss:$36 sps:$4 sm:$0xff]  }
  0x45   :  { %1224 = vmatprep.mubr.bf16.mxu1 %v2565_v9  ;;  %v2643_v9 = vld [vmem:[%s3438_s0 + $0x1cc] ss:$36 sps:$4 sm:$0xff]  }
  0x4b   :  { %1128 = vmatmul.mubr.bf16.gmra.mxu0 %v2567_v12  ;;  %v2649_v12 = vld [vmem:[%s3438_s0 + $0x20c] ss:$36 sps:$4 sm:$0xff]  }
  0x4c   :  { %1225 = vmatmul.mubr.bf16.gmra.mxu1 %v2568_v15  ;;  %1135 = vmatprep.mubr.bf16.mxu0 %v2573_v16  ;;  %v2654_v15 = vld [vmem:[%s3438_s0 + $0x210] ss:$36 sps:$4 sm:$0xff]   ;;  %v2657_v16 = vld [vmem:[%s3438_s0 + $0x20] ss:$36 sps:$4 sm:$0xff]  }
  0x4d   :  { %1232 = vmatprep.mubr.bf16.mxu1 %v2575_v17  ;;  %v2658_v17 = vld [vmem:[%s3440_s3] sm:$0xff]  }
  0x53   :  { %1136 = vmatmul.mubr.bf16.gmra.mxu0 %v2577_v22  ;;  %v2663_v22 = vld [vmem:[%s3438_s0 + $0xf8] ss:$36 sps:$4 sm:$0xff]  }
  0x54   :  { %1233 = vmatmul.mubr.bf16.gmra.mxu1 %v2578_v23  ;;  %1143 = vmatprep.mubr.bf16.mxu0 %v2583_v24  ;;  %v2664_v23 = vld [vmem:[%s3440_s3 + $0x18] sm:$0xff]   ;;  %v2665_v24 = vld [vmem:[%s3438_s0 + $0x140] ss:$36 sps:$4 sm:$0xff]  }
  0x55   :  { %1240 = vmatprep.mubr.bf16.mxu1 %v2585_v25  ;;  %v2666_v25 = vld [vmem:[%s3440_s3 + $0x20] sm:$0xff]  }
  0x5b   :  { %1144 = vmatmul.mubr.bf16.gmra.mxu0 %v2587_v30  ;;  %v2671_v30 = vld [vmem:[%s3438_s0 + $0x218] ss:$36 sps:$4 sm:$0xff]  }
  0x5c   :  { %1241 = vmatmul.mubr.bf16.gmra.mxu1 %v2588_v31  ;;  %1281 = vmatprep.mubr.bf16.mxu0 %v2595_v32  ;;  %v2672_v31 = vld [vmem:[%s3440_s3 + $0x38] sm:$0xff]  }
  0x5d   :  { %1378 = vmatprep.mubr.bf16.mxu1 %v2598_v35 }
  0x63   :  { %1282 = vmatmul.mubr.bf16.vlgmr.msra.gmra.mxu0 %v2593_v36 }
  0x64   :  { %1379 = vmatmul.mubr.bf16.vlgmr.msra.gmra.mxu1 %v2596_v37  ;;  %2418 = vmatpush3.bf16.msra.mxu0 %v2599_v33 }
  0x65   :  { %2450 = vmatpush3.bf16.msra.mxu1 %v2600_v34  ;;  %1289 = vmatprep.mubr.bf16.mxu0 %v2601_v38  ;;  %v3191_v34 = vld [vmem:[%s3441_s2] ss:$0 sm:$0xff] }
  0x66   :  { %1386 = vmatprep.mubr.bf16.mxu1 %v2603_v39  ;;  %2419 = vmatprep.subr.bf16.mxu0 %v2607_v40 }
  0x67   :  { %2451 = vmatprep.subr.bf16.mxu1 %v2608_v41 }
  0x68   :  { %2420 = vmatpush3.bf16.msra.mxu0 %v2607_v40 }
  0x69   :  { %2452 = vmatpush3.bf16.msra.mxu1 %v2608_v41  ;;  %2421 = vmatprep.subr.bf16.mxu0 %v2615_v43 }
  0x6a   :  { %2453 = vmatprep.subr.bf16.mxu1 %v2616_v44 }
  0x6b   :  { %1290 = vmatmul.mubr.bf16.gmra.mxu0 %v2605_v42 }
  0x6c   :  { %1387 = vmatmul.mubr.bf16.gmra.mxu1 %v2606_v45  ;;  %1297 = vmatprep.mubr.bf16.mxu0 %v2609_v46 }
  0x6d   :  { %1394 = vmatprep.mubr.bf16.mxu1 %v2611_v47  ;;  %2422 = vmatpush3.bf16.msra.mxu0 %v2615_v43 }
  0x6e   :  { %2454 = vmatpush3.bf16.msra.mxu1 %v2616_v44  ;;  %2423 = vmatprep.subr.bf16.mxu0 %v2623_v48 }
  0x6f   :  { %2455 = vmatprep.subr.bf16.mxu1 %v2624_v49 }
  0x71   :  { %2424 = vmatpush3.bf16.msra.mxu0 %v2623_v48 }
  0x72   :  { %2456 = vmatpush3.bf16.msra.mxu1 %v2624_v49  ;;  %2425 = vmatprep.subr.bf16.mxu0 %v2631_v52 }
  0x73   :  { %1298 = vmatmul.mubr.bf16.gmra.mxu0 %v2613_v50  ;;  %2457 = vmatprep.subr.bf16.mxu1 %v2632_v53 }
  0x74   :  { %1395 = vmatmul.mubr.bf16.gmra.mxu1 %v2614_v51  ;;  %1305 = vmatprep.mubr.bf16.mxu0 %v2617_v54 }
  0x75   :  { %1402 = vmatprep.mubr.bf16.mxu1 %v2619_v55  ;;  %2426 = vmatpush3.bf16.msra.mxu0 %v2631_v52 }
  0x76   :  { %2458 = vmatpush3.bf16.msra.mxu1 %v2632_v53  ;;  %2427 = vmatprep.subr.bf16.mxu0 %v2639_v56 }
  0x77   :  { %2459 = vmatprep.subr.bf16.mxu1 %v2640_v57 }
  0x79   :  { %2428 = vmatpush3.bf16.msra.mxu0 %v2639_v56 }
  0x7a   :  { %2460 = vmatpush3.bf16.msra.mxu1 %v2640_v57  ;;  %2429 = vmatprep.subr.bf16.mxu0 %v2647_v59 }
  0x7b   :  { %1306 = vmatmul.mubr.bf16.gmra.mxu0 %v2621_v58  ;;  %2461 = vmatprep.subr.bf16.mxu1 %v2648_v61 }
  0x7c   :  { %1403 = vmatmul.mubr.bf16.gmra.mxu1 %v2622_v60  ;;  %1313 = vmatprep.mubr.bf16.mxu0 %v2625_v62 }
  0x7d   :  { %1410 = vmatprep.mubr.bf16.mxu1 %v2627_v63  ;;  %2430 = vmatpush3.bf16.msra.mxu0 %v2647_v59 }
  0x7e   :  { %2462 = vmatpush3.bf16.msra.mxu1 %v2648_v61  ;;  %2431 = vmatprep.subr.bf16.mxu0 %v2655_v0 }
  0x7f   :  { %2463 = vmatprep.subr.bf16.mxu1 %v2656_v1 }
  0x81   :  { %2432 = vmatpush3.bf16.msra.mxu0 %v2655_v0 }
  0x82   :  { %2464 = vmatpush3.bf16.msra.mxu1 %v2656_v1 }
  0x83   :  { %1314 = vmatmul.mubr.bf16.gmra.mxu0 %v2629_v2 }
  0x84   :  { %1411 = vmatmul.mubr.bf16.gmra.mxu1 %v2630_v3  ;;  %1321 = vmatprep.mubr.bf16.mxu0 %v2633_v4 }
  0x85   :  { %1418 = vmatprep.mubr.bf16.mxu1 %v2635_v5 }
  0x8b   :  { %1322 = vmatmul.mubr.bf16.gmra.mxu0 %v2637_v6 }
  0x8c   :  { %1419 = vmatmul.mubr.bf16.gmra.mxu1 %v2638_v7  ;;  %1329 = vmatprep.mubr.bf16.mxu0 %v2641_v8 }
  0x8d   :  { %1426 = vmatprep.mubr.bf16.mxu1 %v2643_v9 }
  0x93   :  { %1330 = vmatmul.mubr.bf16.gmra.mxu0 %v2645_v10 }
  0x94   :  { %1427 = vmatmul.mubr.bf16.gmra.mxu1 %v2646_v11  ;;  %1337 = vmatprep.mubr.bf16.mxu0 %v2649_v12 }
  0x95   :  { %1434 = vmatprep.mubr.bf16.mxu1 %v2651_v13 }
  0x9b   :  { %1338 = vmatmul.mubr.bf16.gmra.mxu0 %v2653_v14 }
  0x9c   :  { %1435 = vmatmul.mubr.bf16.gmra.mxu1 %v2654_v15  ;;  %2433 = vmatprep.mubr.bf16.mxu0 %v2657_v16 }
  0x9d   :  { %2465 = vmatprep.mubr.bf16.mxu1 %v2658_v17 }
  0xa3   :  { %2434 = vmatmul.mubr.bf16.vlgmr.msra.gmra.mxu0 %v2659_v18 }
  0xa4   :  { %2466 = vmatmul.mubr.bf16.vlgmr.msra.gmra.mxu1 %v2660_v19  ;;  %2437 = vmatprep.mubr.bf16.mxu0 %v2661_v20 }
  0xa5   :  { %2469 = vmatprep.mubr.bf16.mxu1 %v2662_v21 }
  0xab   :  { %2438 = vmatmul.mubr.bf16.gmra.mxu0 %v2663_v22 }
  0xac   :  { %2470 = vmatmul.mubr.bf16.gmra.mxu1 %v2664_v23  ;;  %2441 = vmatprep.mubr.bf16.mxu0 %v2665_v24 }
  0xad   :  { %2473 = vmatprep.mubr.bf16.mxu1 %v2666_v25 }
  0xb3   :  { %2442 = vmatmul.mubr.bf16.gmra.mxu0 %v2667_v26 }
  0xb4   :  { %2474 = vmatmul.mubr.bf16.gmra.mxu1 %v2668_v27  ;;  %2445 = vmatprep.mubr.bf16.mxu0 %v2669_v28 }
  0xb5   :  { %2477 = vmatprep.mubr.bf16.mxu1 %v2670_v29 }
  0xbb   :  { %2446 = vmatmul.mubr.bf16.gmra.mxu0 %v2671_v30 }
  0xbc   :  { %2478 = vmatmul.mubr.bf16.gmra.mxu1 %v2672_v31 }
  0xe3   :  { %v2145_v32 = vpop.f32.mrf.mxu0 }
  0xe4   :  { %v2209_v33 = vpop.f32.mrf.mxu1 }
  0xe5   :  { %v2146_v35 = vpop.f32.mrf.mxu0 }
  0xe6   :  { %v2147_v36 = vadd.f32 %v2146_v35, %v2145_v32  ;;  %v2210_v37 = vpop.f32.mrf.mxu1 }
  0xe7   :  { %v2211_v38 = vadd.f32 %v2210_v37, %v2209_v33  ;;  %v2148_v39 = vpop.f32.mrf.mxu0 }
  0xe8   :  { %v1090_v40 = vadd.f32 %v2147_v36, %v3191_v34  ;;  %v2212_v41 = vpop.f32.mrf.mxu1 }
  0xe9   :  { %v2149_v42 = vpop.f32.mrf.mxu0 }
  0xea   :  { %v3194_v43 = vadd.f32 %v2211_v38, %v1090_v40  ;;  %v2150_v44 = vadd.f32 %v2149_v42, %v2148_v39  ;;  %v2213_v45 = vpop.f32.mrf.mxu1 }
  0xeb   :  { %v2214_v46 = vadd.f32 %v2213_v45, %v2212_v41  ;;  %v2151_v47 = vpop.f32.mrf.mxu0 }
  0xec   :  { %v1093_v48 = vadd.f32 %v2150_v44, %v3191_v34  ;;  %v2215_v49 = vpop.f32.mrf.mxu1 }
  0xed   :  { %v2152_v50 = vpop.f32.mrf.mxu0 }
  0xee   :  { %v3197_v51 = vadd.f32 %v2214_v46, %v1093_v48  ;;  %v2153_v52 = vadd.f32 %v2152_v50, %v2151_v47  ;;  %v2216_v53 = vpop.f32.mrf.mxu1 }
  0xef   :  { %v2217_v54 = vadd.f32 %v2216_v53, %v2215_v49  ;;  %v2154_v55 = vpop.f32.mrf.mxu0 }
  0xf0   :  { %v1098_v56 = vadd.f32 %v2153_v52, %v3191_v34  ;;  %v2218_v57 = vpop.f32.mrf.mxu1 }
  0xf1   :  { %v2155_v58 = vpop.f32.mrf.mxu0 }
  0xf2   :  { %v3200_v59 = vadd.f32 %v2217_v54, %v1098_v56  ;;  %v2156_v60 = vadd.f32 %v2155_v58, %v2154_v55  ;;  %v2219_v61 = vpop.f32.mrf.mxu1 }
  0xf3   :  { %v2220_v62 = vadd.f32 %v2219_v61, %v2218_v57  ;;  %v2157_v63 = vpop.f32.mrf.mxu0 }
  0xf4   :  { %v1101_v0 = vadd.f32 %v2156_v60, %v3191_v34  ;;  %v2221_v1 = vpop.f32.mrf.mxu1 }
  0xf5   :  { %v2158_v2 = vpop.f32.mrf.mxu0 }
  0xf6   :  { %v3203_v3 = vadd.f32 %v2220_v62, %v1101_v0  ;;  %v2159_v4 = vadd.f32 %v2158_v2, %v2157_v63  ;;  %v2222_v5 = vpop.f32.mrf.mxu1 }
  0xf7   :  { %v2223_v6 = vadd.f32 %v2222_v5, %v2221_v1  ;;  %v2160_v7 = vpop.f32.mrf.mxu0 }
  0xf8   :  { %v1106_v8 = vadd.f32 %v2159_v4, %v3191_v34  ;;  %v2224_v9 = vpop.f32.mrf.mxu1 }
  0xf9   :  { %v2161_v10 = vpop.f32.mrf.mxu0 }
  0xfa   :  { %v3206_v11 = vadd.f32 %v2223_v6, %v1106_v8  ;;  %v2162_v12 = vadd.f32 %v2161_v10, %v2160_v7  ;;  %v2225_v13 = vpop.f32.mrf.mxu1 }
  0xfb   :  { %v2226_v14 = vadd.f32 %v2225_v13, %v2224_v9  ;;  %v2163_v15 = vpop.f32.mrf.mxu0 }
  0xfc   :  { %v1109_v16 = vadd.f32 %v2162_v12, %v3191_v34  ;;  %v2227_v17 = vpop.f32.mrf.mxu1 }
  0xfd   :  { %v2164_v18 = vpop.f32.mrf.mxu0 }
  0xfe   :  { %v3209_v19 = vadd.f32 %v2226_v14, %v1109_v16  ;;  %v2165_v20 = vadd.f32 %v2164_v18, %v2163_v15  ;;  %v2228_v21 = vpop.f32.mrf.mxu1 }
  0xff   :  { %v2229_v22 = vadd.f32 %v2228_v21, %v2227_v17  ;;  %v2166_v23 = vpop.f32.mrf.mxu0 }
 0x100   :  { %v1114_v24 = vadd.f32 %v2165_v20, %v3191_v34  ;;  %v2230_v25 = vpop.f32.mrf.mxu1 }
 0x101   :  { %v2167_v26 = vpop.f32.mrf.mxu0 }
 0x102   :  { %v3212_v27 = vadd.f32 %v2229_v22, %v1114_v24  ;;  %v2168_v28 = vadd.f32 %v2167_v26, %v2166_v23  ;;  %v2231_v29 = vpop.f32.mrf.mxu1 }
 0x103   :  { %v2232_v30 = vadd.f32 %v2231_v29, %v2230_v25  ;;  %v2169_v31 = vpop.f32.mrf.mxu0 }
 0x104   :  { %v1117_v32 = vadd.f32 %v2168_v28, %v3191_v34  ;;  %v2233_v33 = vpop.f32.mrf.mxu1 }
 0x105   :  { %v2170_v35 = vpop.f32.mrf.mxu0 }
 0x106   :  { %v3215_v36 = vadd.f32 %v2232_v30, %v1117_v32  ;;  %v2171_v37 = vadd.f32 %v2170_v35, %v2169_v31  ;;  %v2234_v38 = vpop.f32.mrf.mxu1 }
 0x107   :  { %v2235_v39 = vadd.f32 %v2234_v38, %v2233_v33  ;;  %v2172_v40 = vpop.f32.mrf.mxu0 }
 0x108   :  { %v1122_v41 = vadd.f32 %v2171_v37, %v3191_v34  ;;  %v2236_v42 = vpop.f32.mrf.mxu1 }
 0x109   :  { %v2173_v44 = vpop.f32.mrf.mxu0 }
 0x10a   :  { %v3218_v45 = vadd.f32 %v2235_v39, %v1122_v41  ;;  %v2174_v46 = vadd.f32 %v2173_v44, %v2172_v40  ;;  %v2237_v47 = vpop.f32.mrf.mxu1 }
 0x10b   :  { %v2238_v48 = vadd.f32 %v2237_v47, %v2236_v42  ;;  %v2175_v49 = vpop.f32.mrf.mxu0 }
 0x10c   :  { %v1125_v50 = vadd.f32 %v2174_v46, %v3191_v34  ;;  %v2239_v52 = vpop.f32.mrf.mxu1 }
 0x10d   :  { %v2176_v53 = vpop.f32.mrf.mxu0 }
 0x10e   :  { %v3221_v54 = vadd.f32 %v2238_v48, %v1125_v50  ;;  %v2177_v55 = vadd.f32 %v2176_v53, %v2175_v49  ;;  %v2240_v56 = vpop.f32.mrf.mxu1 }
 0x10f   :  { %v2241_v57 = vadd.f32 %v2240_v56, %v2239_v52  ;;  %v2178_v58 = vpop.f32.mrf.mxu0 }
 0x110   :  { %v1130_v60 = vadd.f32 %v2177_v55, %v3191_v34  ;;  %v2242_v61 = vpop.f32.mrf.mxu1 }
 0x111   :  { %v2179_v62 = vpop.f32.mrf.mxu0 }
 0x112   :  { %v3224_v63 = vadd.f32 %v2241_v57, %v1130_v60  ;;  %v2180_v0 = vadd.f32 %v2179_v62, %v2178_v58  ;;  %v2243_v1 = vpop.f32.mrf.mxu1 }
 0x113   :  { %v2244_v2 = vadd.f32 %v2243_v1, %v2242_v61  ;;  %v2181_v4 = vpop.f32.mrf.mxu0 }
 0x114   :  { %v1133_v5 = vadd.f32 %v2180_v0, %v3191_v34  ;;  %v2245_v6 = vpop.f32.mrf.mxu1 }
 0x115   :  { %v2182_v7 = vpop.f32.mrf.mxu0 }
 0x116   :  { %v3227_v8 = vadd.f32 %v2244_v2, %v1133_v5  ;;  %v2183_v9 = vadd.f32 %v2182_v7, %v2181_v4  ;;  %v2246_v10 = vpop.f32.mrf.mxu1 }
 0x117   :  { %v2247_v12 = vadd.f32 %v2246_v10, %v2245_v6  ;;  %v2184_v13 = vpop.f32.mrf.mxu0 }
 0x118   :  { %3444 = vst [vmem:[#allocation2_spill] sm:$0xff] %v3227_v8  ;;  %v1138_v14 = vadd.f32 %v2183_v9, %v3191_v34  ;;  %v2248_v15 = vpop.f32.mrf.mxu1 }
 0x119   :  { %v2185_v16 = vpop.f32.mrf.mxu0 }
 0x11a   :  { %v3230_v17 = vadd.f32 %v2247_v12, %v1138_v14  ;;  %v2186_v18 = vadd.f32 %v2185_v16, %v2184_v13  ;;  %v2249_v20 = vpop.f32.mrf.mxu1 }
 0x11b   :  { %v2250_v21 = vadd.f32 %v2249_v20, %v2248_v15  ;;  %v2187_v22 = vpop.f32.mrf.mxu0 }
 0x11c   :  { %3445 = vst [vmem:[#allocation3_spill] sm:$0xff] %v3230_v17  ;;  %v1141_v23 = vadd.f32 %v2186_v18, %v3191_v34  ;;  %v2251_v24 = vpop.f32.mrf.mxu1 }
 0x11d   :  { %v2188_v25 = vpop.f32.mrf.mxu0 }
 0x11e   :  { %v3233_v26 = vadd.f32 %v2250_v21, %v1141_v23  ;;  %v2189_v28 = vadd.f32 %v2188_v25, %v2187_v22  ;;  %v2252_v29 = vpop.f32.mrf.mxu1 }
 0x11f   :  { %v2253_v30 = vadd.f32 %v2252_v29, %v2251_v24  ;;  %v2190_v31 = vpop.f32.mrf.mxu0 }
 0x120   :  { %3446 = vst [vmem:[#allocation4_spill] sm:$0xff] %v3233_v26  ;;  %v1146_v32 = vadd.f32 %v2189_v28, %v3191_v34  ;;  %v2254_v33 = vpop.f32.mrf.mxu1 }
 0x121   :  { %v2191_v35 = vpop.f32.mrf.mxu0 }
 0x122   :  { %v3236_v37 = vadd.f32 %v2253_v30, %v1146_v32  ;;  %v2192_v38 = vadd.f32 %v2191_v35, %v2190_v31  ;;  %v2255_v39 = vpop.f32.mrf.mxu1 }
 0x123   :  { %v2256_v40 = vadd.f32 %v2255_v39, %v2254_v33  ;;  %v2273_v41 = vpop.f32.mrf.mxu0 }
 0x124   :  { %3447 = vst [vmem:[#allocation5_spill] sm:$0xff] %v3236_v37  ;;  %v1149_v42 = vadd.f32 %v2192_v38, %v3191_v34  ;;  %v2337_v44 = vpop.f32.mrf.mxu1 }
 0x125   :  { %v2274_v46 = vpop.f32.mrf.mxu0 }
 0x126   :  { %v3239_v47 = vadd.f32 %v2256_v40, %v1149_v42  ;;  %v2275_v48 = vadd.f32 %v2274_v46, %v2273_v41  ;;  %v2338_v49 = vpop.f32.mrf.mxu1 }
 0x127   :  { %v2339_v50 = vadd.f32 %v2338_v49, %v2337_v44  ;;  %v2276_v52 = vpop.f32.mrf.mxu0 }
 0x128   :  { %3448 = vst [vmem:[#allocation6_spill] sm:$0xff] %v3239_v47  ;;  %v1284_v53 = vadd.f32 %v2275_v48, %v3194_v43  ;;  %v3242_v55 = vpop.f32.mrf.mxu1 }
 0x129   :  { %v2277_v56 = vpop.f32.mrf.mxu0 }
 0x12a   :  { %v3244_v57 = vpop.f32.mrf.mxu1  ;;  %v3246_v58 = vadd.f32 %v2339_v50, %v1284_v53 }
 0x12b   :  { %v2279_v60 = vpop.f32.mrf.mxu0 }
 0x12c   :  { %v2343_v61 = vpop.f32.mrf.mxu1 }
 0x12d   :  { %v2280_v34 = vpop.f32.mrf.mxu0 }
 0x12e   :  { %v2344_v62 = vpop.f32.mrf.mxu1  ;;  %v2281_v37 = vadd.f32 %v2280_v34, %v2279_v60 }
 0x12f   :  { %v2282_v0 = vpop.f32.mrf.mxu0 }
 0x130   :  { %v3248_v1 = vpop.f32.mrf.mxu1 }
 0x131   :  { %v2283_v2 = vpop.f32.mrf.mxu0 }
 0x132   :  { %v3250_v4 = vpop.f32.mrf.mxu1 }
 0x133   :  { %v2285_v5 = vpop.f32.mrf.mxu0 }
 0x134   :  { %v3252_v6 = vpop.f32.mrf.mxu1 }
 0x135   :  { %v2286_v43 = vpop.f32.mrf.mxu0 }
 0x136   :  { %v3254_v7 = vpop.f32.mrf.mxu1 }
 0x137   :  { %v2288_v9 = vpop.f32.mrf.mxu0 }
 0x138   :  { %v3256_v10 = vpop.f32.mrf.mxu1 }
 0x139   :  { %v2289_v12 = vpop.f32.mrf.mxu0 }
 0x13a   :  { %v3258_v13 = vpop.f32.mrf.mxu1 }
 0x13b   :  { %v2291_v14 = vpop.f32.mrf.mxu0 }
 0x13c   :  { %v3260_v15 = vpop.f32.mrf.mxu1 }
 0x13d   :  { %v2292_v16 = vpop.f32.mrf.mxu0 }
 0x13e   :  { %v3262_v18 = vpop.f32.mrf.mxu1 }
 0x13f   :  { %v2294_v20 = vpop.f32.mrf.mxu0 }
 0x140   :  { %v3264_v21 = vpop.f32.mrf.mxu1 }
 0x141   :  { %v2295_v22 = vpop.f32.mrf.mxu0 }
 0x142   :  { %v3266_v23 = vpop.f32.mrf.mxu1 }
 0x143   :  { %v3268_v24 = vpop.f32.mrf.mxu0 }
 0x144   :  { %v3270_v25 = vpop.f32.mrf.mxu1 }
 0x145   :  { %v3272_v28 = vpop.f32.mrf.mxu0 }
 0x146   :  { %v3274_v29 = vpop.f32.mrf.mxu1 }
 0x147   :  { %v3276_v30 = vpop.f32.mrf.mxu0 }
 0x148   :  { %v3278_v31 = vpop.f32.mrf.mxu1 }
 0x149   :  { %3449 = vst [vmem:[#allocation7_spill] sm:$0xff] %v3278_v31  ;;  %v3280_v32 = vpop.f32.mrf.mxu0 }
 0x14a   :  { %v3282_v33 = vpop.f32.mrf.mxu1 }
 0x14b   :  { %3450 = vst [vmem:[#allocation8_spill] sm:$0xff] %v3282_v33  ;;  %v3284_v35 = vpop.f32.mrf.mxu0  ;;  %v2284_v33 = vadd.f32 %v2283_v2, %v2282_v0  ;;  %v2296_v0 = vadd.f32 %v2295_v22, %v2294_v20 }
 0x14c   :  { %v3286_v38 = vpop.f32.mrf.mxu1 }
 0x14d   :  { %v3288_v39 = vpop.f32.mrf.mxu0 }
 0x14e   :  { %v3290_v40 = vpop.f32.mrf.mxu1 }
 0x14f   :  { %v3292_v41 = vpop.f32.mrf.mxu0 }
 0x150   :  { %v3294_v42 = vpop.f32.mrf.mxu1 }
 0x151   :  { %3451 = vst [vmem:[#allocation9_spill] sm:$0xff] %v3294_v42  ;;  %v3296_v44 = vpop.f32.mrf.mxu0 }
 0x152   :  { %v3298_v46 = vpop.f32.mrf.mxu1 }
 0x153   :  { %3452 = vst [vmem:[#allocation10_spill] sm:$0xff] %v3298_v46  ;;  %v3300_v48 = vpop.f32.mrf.mxu0 }
 0x154   :  { %3453 = vst [vmem:[#allocation11_spill] sm:$0xff] %v3300_v48  ;;  %v3302_v49 = vpop.f32.mrf.mxu1 }
 0x155   :  { %3454 = vst [vmem:[#allocation12_spill] sm:$0xff] %v3302_v49  ;;  %v3304_v50 = vpop.f32.mrf.mxu0  ;;  %v2278_v49 = vadd.f32 %v2277_v56, %v2276_v52  ;;  %v2287_v52 = vadd.f32 %v2286_v43, %v2285_v5  ;;  %v2293_v56 = vadd.f32 %v2292_v16, %v2291_v14  ;;  %v1311_v43 = vadd.f32 %v2296_v0, %v3215_v36 }
 0x156   :  { %3455 = vst [vmem:[#allocation13_spill] sm:$0xff] %v3304_v50  ;;  %v3306_v53 = vpop.f32.mrf.mxu1  ;;  %v1292_v50 = vadd.f32 %v2281_v37, %v3200_v59  ;;  %v3338_v59 = vld [vmem:[%s3442_s5] ss:$0 sm:$0xff]  ;;  %v2342_v37 = vadd.f32 %v3244_v57, %v3242_v55  ;;  %v2351_v57 = vadd.f32 %v3254_v7, %v3252_v6  ;;  %v2354_v14 = vadd.f32 %v3258_v13, %v3256_v10 }
 0x157   :  { %3456 = vst [vmem:[#allocation14_spill] sm:$0xff] %v3306_v53  ;;  %v3308_v26 = vpop.f32.mrf.mxu0  ;;  %v1287_v34 = vadd.f32 %v2278_v49, %v3197_v51  ;;  %v2290_v51 = vadd.f32 %v2289_v12, %v2288_v9  ;;  %v1300_v55 = vadd.f32 %v2287_v52, %v3206_v11  ;;  %v1308_v5 = vadd.f32 %v2293_v56, %v3212_v27 }
 0x158   :  { %3457 = vst [vmem:[#allocation15_spill] sm:$0xff] %v3308_v26  ;;  %v3310_v47 = vpop.f32.mrf.mxu1  ;;  %v2357_v11 = vadd.f32 %v3262_v18, %v3260_v15  ;;  %v2360_v6 = vadd.f32 %v3266_v23, %v3264_v21  ;;  %v2305_v36 = vadd.f32 %v3288_v39, %v3284_v35  ;;  %v2302_v21 = vadd.f32 %v3280_v32, %v3276_v30 }
 0x159   :  { %3458 = vst [vmem:[#allocation16_spill] sm:$0xff] %v3310_v47  ;;  %v3312_v17 = vpop.f32.mrf.mxu0  ;;  %v2345_v47 = vadd.f32 %v2344_v62, %v2343_v61  ;;  %v2348_v62 = vadd.f32 %v3250_v4, %v3248_v1  ;;  %v1397_v18 = vadd.f32 %v2351_v57, %v1300_v55 }
 0x15a   :  { %3459 = vst [vmem:[#allocation17_spill] sm:$0xff] %v3312_v17  ;;  %v3314_v42 = vpop.f32.mrf.mxu1  ;;  %v1405_v13 = vadd.f32 %v2357_v11, %v1308_v5  ;;  %v1324_v56 = vadd.f32 %v2305_v36, %v3224_v63  ;;  %v3468_v11 = vld [vmem:[#allocation10_spill] sm:$0xff] }
 0x15b   :  { %3460 = vst [vmem:[#allocation18_spill] sm:$0xff] %v3314_v42  ;;  %v3316_v8 = vpop.f32.mrf.mxu0  ;;  %v1295_v42 = vadd.f32 %v2284_v33, %v3203_v3  ;;  %v1389_v17 = vadd.f32 %v2345_v47, %v1292_v50 }
 0x15c   :  { %v3318_v46 = vpop.f32.mrf.mxu1 }
 0x15d   :  { %3461 = vst [vmem:[#allocation19_spill] sm:$0xff] %v3318_v46  ;;  %v3320_v48 = vpop.f32.mrf.mxu0 }
 0x15e   :  { %v3323_v53 = vpop.f32.mrf.mxu1 }
 0x15f   :  { %v3325_v26 = vpop.f32.mrf.mxu0 }
 0x160   :  { %v3327_v31 = vpop.f32.mrf.mxu1 }
 0x161   :  { %3462 = vst [vmem:[#allocation20_spill] sm:$0xff] %v3327_v31  ;;  %v3329_v60 = vpop.f32.mrf.mxu0  ;;  %v1384_v31 = vadd.f32 %v2342_v37, %v1287_v34  ;;  %v1408_v34 = vadd.f32 %v2360_v6, %v1311_v43 }
 0x162   :  { %v3333_v46 = vpop.f32.mrf.mxu1 }
 0x163   :  { %3463 = vst [vmem:[#allocation21_spill] sm:$0xff] %v3333_v46  ;;  %v2435_v61 = vpop.f32.mrf.mxu0  ;;  %v1392_v46 = vadd.f32 %v2348_v62, %v1295_v42 }
 0x164   :  { %v1486_v3 = vadd.f32 %v2435_v61, %v1389_v17  ;;  %v2467_v2 = vpop.f32.mrf.mxu1  ;;  %v1303_v17 = vadd.f32 %v2290_v51, %v3209_v19  ;;  %v2299_v19 = vadd.f32 %v3272_v28, %v3268_v24  ;;  %v2308_v61 = vadd.f32 %v3296_v44, %v3292_v41  ;;  %v3465_v41 = vld [vmem:[#allocation8_spill] sm:$0xff] }
 0x165   :  { %v1718_v47 = vadd.f32 %v2467_v2, %v3338_v59  ;;  %v1477_v33 = vpop.f32.mrf.mxu0 }
 0x166   :  { %v1478_v49 = vadd.f32 %v1477_v33, %v3246_v58  ;;  %v1709_v50 = vpop.f32.mrf.mxu1  ;;  %v1400_v37 = vadd.f32 %v2354_v14, %v1303_v17  ;;  %v1316_v39 = vadd.f32 %v2299_v19, %v3218_v45  ;;  %v1319_v33 = vadd.f32 %v2302_v21, %v3221_v54  ;;  %v3467_v14 = vld [vmem:[#allocation9_spill] sm:$0xff] }
 0x167   :  { %v1710_v1 = vadd.f32 %v3338_v59, %v1709_v50  ;;  %v2436_v4 = vpop.f32.mrf.mxu0  ;;  %v1774_v9 = vadd.f32 %v1718_v47, %v1486_v3  ;;  %v2363_v47 = vadd.f32 %v3274_v29, %v3270_v25  ;;  %v2369_v45 = vadd.f32 %v3290_v40, %v3286_v38  ;;  %v3464_v50 = vld [vmem:[#allocation7_spill] sm:$0xff]  ;;  %v3466_v25 = vld [vmem:[#allocation2_spill] sm:$0xff] }
 0x168   :  { %v1489_v12 = vadd.f32 %v2436_v4, %v1392_v46  ;;  %v2468_v58 = vpop.f32.mrf.mxu1  ;;  %v2366_v44 = vadd.f32 %v3465_v41, %v3464_v50  ;;  %v1327_v29 = vadd.f32 %v2308_v61, %v3466_v25  ;;  %v2317_v54 = vadd.f32 %v3320_v48, %v3316_v8  ;;  %v3480_v25 = vld [vmem:[#allocation20_spill] sm:$0xff] }
 0x169   :  { %v1721_v27 = vadd.f32 %v2468_v58, %v3338_v59  ;;  %v1480_v7 = vpop.f32.mrf.mxu0  ;;  %v1772_v16 = vadd.f32 %v1710_v1, %v1478_v49  ;;  %v1790_v23 = vmax.f32 %v1774_v9, 0.0  ;;  %v1421_v4 = vadd.f32 %v2369_v45, %v1324_v56  ;;  %v3474_v56 = vld [vmem:[#allocation17_spill] sm:$0xff]  ;;  %v3478_v45 = vld [vmem:[#allocation6_spill] sm:$0xff] }
 0x16a   :  { %v1481_v20 = vadd.f32 %v1480_v7, %v1384_v31  ;;  %v1712_v22 = vpop.f32.mrf.mxu1  ;;  %v1413_v58 = vadd.f32 %v2363_v47, %v1316_v39  ;;  %v2372_v6 = vadd.f32 %v3468_v11, %v3467_v14  ;;  %v3470_v7 = vld [vmem:[#allocation13_spill] sm:$0xff]  ;;  %v1416_v36 = vadd.f32 %v2366_v44, %v1319_v33  ;;  %v3473_v39 = vld [vmem:[#allocation15_spill] sm:$0xff]  ;;  %v3477_v47 = vld [vmem:[#allocation14_spill] sm:$0xff] }
 0x16b   :  { %v1775_v42 = vadd.f32 %v1721_v27, %v1489_v12  ;;  %v1713_v10 = vadd.f32 %v3338_v59, %v1712_v22  ;;  %v2439_v15 = vpop.f32.mrf.mxu0  ;;  %v1788_v62 = vmax.f32 %v1772_v16, 0.0  ;;  %v3469_v27 = vld [vmem:[#allocation11_spill] sm:$0xff]  ;;  %v2314_v61 = vadd.f32 %v3474_v56, %v3473_v39  ;;  %v3482_v14 = vld [vmem:[#allocation16_spill] sm:$0xff]  ;;  %v3483_v11 = vld [vmem:[#allocation18_spill] sm:$0xff] }
 0x16c   :  { %v2471_v46 = vpop.f32.mrf.mxu1  ;;  %v1502_v52 = vadd.f32 %v2439_v15, %v1405_v13  ;;  %v2311_v19 = vadd.f32 %v3470_v7, %v3469_v27  ;;  %v3471_v13 = vld [vmem:[#allocation5_spill] sm:$0xff] }
 0x16d   :  { %v1791_v24 = vmax.f32 %v1775_v42, 0.0  ;;  %v1773_v28 = vadd.f32 %v1713_v10, %v1481_v20  ;;  %v1734_v35 = vadd.f32 %v2471_v46, %v3338_v59  ;;  %v1493_v31 = vpop.f32.mrf.mxu0  ;;  %v1340_v15 = vadd.f32 %v2317_v54, %v3471_v13 }
 0x16e   :  { %v1725_v51 = vpop.f32.mrf.mxu1  ;;  %v1494_v0 = vadd.f32 %v1493_v31, %v1397_v18  ;;  %v2320_v18 = vadd.f32 %v3329_v60, %v3325_v26  ;;  %v1424_v46 = vadd.f32 %v2372_v6, %v1327_v29  ;;  %v3481_v29 = vld [vmem:[#allocation21_spill] sm:$0xff]  ;;  %v2378_v6 = vadd.f32 %v3483_v11, %v3482_v14 }
 0x16f   :  { %v2090_v30 = vpack.c.bf16 %v1791_v24, %v1790_v23  ;;  %v1789_v32 = vmax.f32 %v1773_v28, 0.0  ;;  %v1726_v3 = vadd.f32 %v3338_v59, %v1725_v51  ;;  %v2440_v2 = vpop.f32.mrf.mxu0  ;;  %v1778_v57 = vadd.f32 %v1734_v35, %v1502_v52  ;;  %v3472_v35 = vld [vmem:[#allocation3_spill] sm:$0xff] }
 0x170   :  { %v1505_v63 = vadd.f32 %v2440_v2, %v1408_v34  ;;  %v2472_v49 = vpop.f32.mrf.mxu1  ;;  %v1332_v31 = vadd.f32 %v2311_v19, %v3472_v35  ;;  %v3476_v2 = vld [vmem:[#allocation12_spill] sm:$0xff]  ;;  %v2384_v54 = vadd.f32 %v3481_v29, %v3480_v25 }
 0x171   :  { %2122 = vst [vmem:[%s3443_s6 + $0x8] sm:$0xff] %v2090_v30   ;;  %v2085_v55 = vpack.c.bf16 %v1789_v32, %v1788_v62  ;;  %v1737_v5 = vadd.f32 %v2472_v49, %v3338_v59  ;;  %v1496_v1 = vpop.f32.mrf.mxu0  ;;  %v1776_v17 = vadd.f32 %v1726_v3, %v1494_v0  ;;  %v1794_v16 = vmax.f32 %v1778_v57, 0.0  ;;  %v3475_v32 = vld [vmem:[#allocation19_spill] sm:$0xff] }
 0x172   :  { %v1497_v38 = vadd.f32 %v1496_v1, %v1400_v37  ;;  %v1728_v40 = vpop.f32.mrf.mxu1  ;;  %v2381_v26 = vadd.f32 %v3323_v53, %v3475_v32  ;;  %v2375_v33 = vadd.f32 %v3477_v47, %v3476_v2 }
 0x173   :  { %2086 = vst [vmem:[%s3443_s6] sm:$0xff] %v2085_v55   ;;  %v1779_v43 = vadd.f32 %v1737_v5, %v1505_v63  ;;  %v1729_v9 = vadd.f32 %v3338_v59, %v1728_v40  ;;  %v2443_v12 = vpop.f32.mrf.mxu0  ;;  %v1792_v34 = vmax.f32 %v1776_v17, 0.0  ;;  %v1343_v63 = vadd.f32 %v2320_v18, %v3478_v45  ;;  %v3479_v5 = vld [vmem:[#allocation4_spill] sm:$0xff] }
 0x174   :  { %v1518_v8 = vadd.f32 %v2443_v12, %v1421_v4  ;;  %v2475_v48 = vpop.f32.mrf.mxu1  ;;  %v1437_v55 = vadd.f32 %v2381_v26, %v1340_v15  ;;  %v1335_v1 = vadd.f32 %v2314_v61, %v3479_v5  ;;  %v1429_v4 = vadd.f32 %v2375_v33, %v1332_v31 }
 0x175   :  { %v1795_v20 = vmax.f32 %v1779_v43, 0.0  ;;  %v1777_v22 = vadd.f32 %v1729_v9, %v1497_v38  ;;  %v1750_v42 = vadd.f32 %v2475_v48, %v3338_v59  ;;  %v1509_v10 = vpop.f32.mrf.mxu0  ;;  %v1440_v19 = vadd.f32 %v2384_v54, %v1343_v63 }
 0x176   :  { %v1510_v21 = vadd.f32 %v1509_v10, %v1413_v58  ;;  %v1741_v23 = vpop.f32.mrf.mxu1  ;;  %v1432_v10 = vadd.f32 %v2378_v6, %v1335_v1 }
 0x177   :  { %v2100_v37 = vpack.c.bf16 %v1795_v20, %v1794_v16  ;;  %v1793_v24 = vmax.f32 %v1777_v22, 0.0  ;;  %v1742_v28 = vadd.f32 %v3338_v59, %v1741_v23  ;;  %v2444_v52 = vpop.f32.mrf.mxu0  ;;  %v1782_v62 = vadd.f32 %v1750_v42, %v1518_v8 }
 0x178   :  { %v1521_v51 = vadd.f32 %v2444_v52, %v1424_v46  ;;  %v2476_v30 = vpop.f32.mrf.mxu1 }
 0x179   :  { %2124 = vst [vmem:[%s3443_s6 + $0x18] sm:$0xff] %v2100_v37   ;;  %v2095_v60 = vpack.c.bf16 %v1793_v24, %v1792_v34  ;;  %v1753_v0 = vadd.f32 %v2476_v30, %v3338_v59  ;;  %v1512_v3 = vpop.f32.mrf.mxu0  ;;  %v1780_v49 = vadd.f32 %v1742_v28, %v1510_v21  ;;  %v1798_v38 = vmax.f32 %v1782_v62, 0.0 }
 0x17a   :  { %v1513_v50 = vadd.f32 %v1512_v3, %v1416_v36  ;;  %v1744_v41 = vpop.f32.mrf.mxu1 }
 0x17b   :  { %2123 = vst [vmem:[%s3443_s6 + $0x10] sm:$0xff] %v2095_v60   ;;  %v1783_v53 = vadd.f32 %v1753_v0, %v1521_v51  ;;  %v1745_v44 = vadd.f32 %v3338_v59, %v1744_v41  ;;  %v2447_v57 = vpop.f32.mrf.mxu0  ;;  %v1796_v27 = vmax.f32 %v1780_v49, 0.0 }
 0x17c   :  { %v2479_v40 = vpop.f32.mrf.mxu1  ;;  %v1534_v9 = vadd.f32 %v2447_v57, %v1437_v55 }
 0x17d   :  { %v1799_v17 = vmax.f32 %v1783_v53, 0.0  ;;  %v1781_v43 = vadd.f32 %v1745_v44, %v1513_v50  ;;  %v1766_v12 = vadd.f32 %v2479_v40, %v3338_v59  ;;  %v1525_v58 = vpop.f32.mrf.mxu0 }
 0x17e   :  { %v1757_v7 = vpop.f32.mrf.mxu1  ;;  %v1526_v36 = vadd.f32 %v1525_v58, %v1429_v4 }
 0x17f   :  { %v2110_v8 = vpack.c.bf16 %v1799_v17, %v1798_v38  ;;  %v1797_v48 = vmax.f32 %v1781_v43, 0.0  ;;  %v1758_v16 = vadd.f32 %v3338_v59, %v1757_v7  ;;  %v2448_v20 = vpop.f32.mrf.mxu0  ;;  %v1786_v15 = vadd.f32 %v1766_v12, %v1534_v9 }
 0x180   :  { %v1537_v22 = vadd.f32 %v2448_v20, %v1440_v19  ;;  %v2480_v42 = vpop.f32.mrf.mxu1 }
 0x181   :  { %2126 = vst [vmem:[%s3443_s6 + $0x28] sm:$0xff] %v2110_v8   ;;  %v2105_v13 = vpack.c.bf16 %v1797_v48, %v1796_v27  ;;  %v1769_v18 = vadd.f32 %v2480_v42, %v3338_v59  ;;  %v1528_v21 = vpop.f32.mrf.mxu0  ;;  %v1784_v34 = vadd.f32 %v1758_v16, %v1526_v36  ;;  %v1802_v28 = vmax.f32 %v1786_v15, 0.0 }
 0x182   :  { %v1529_v23 = vadd.f32 %v1528_v21, %v1432_v10  ;;  %v1760_v46 = vpop.f32.mrf.mxu1 }
 0x183   :  { %2125 = vst [vmem:[%s3443_s6 + $0x20] sm:$0xff] %v2105_v13   ;;  %v1787_v37 = vadd.f32 %v1769_v18, %v1537_v22  ;;  %v1761_v24 = vadd.f32 %v3338_v59, %v1760_v46  ;;  %v1800_v31 = vmax.f32 %v1784_v34, 0.0 }
 0x185   :  { %v1803_v52 = vmax.f32 %v1787_v37, 0.0  ;;  %v1785_v35 = vadd.f32 %v1761_v24, %v1529_v23 }
 0x187   :  { %v2120_v39 = vpack.c.bf16 %v1803_v52, %v1802_v28  ;;  %v1801_v56 = vmax.f32 %v1785_v35, 0.0 }
 0x189   :  { %2128 = vst [vmem:[%s3443_s6 + $0x38] sm:$0xff] %v2120_v39   ;;  %v2115_v61 = vpack.c.bf16 %v1801_v56, %v1800_v31 }
 0x18b   :  { %2127 = vst [vmem:[%s3443_s6 + $0x30] sm:$0xff] %v2115_v61  }

// kernel: jersey_number_classifier_forward.28
= control target key start
LH: loop header
LB: loop body
LE: loop exit
PB: predicated region body
PF: predicated region fallthrough
CT: control target
= control target key end

     0   :  { %s3196_s1 = inlined_call_operand.vmem [shape: bf16[1152,128], index: 1, kind: input, shape index: {}]   ;;  %s3197_s0 = inlined_call_operand.vmem [shape: bf16[128,1152], index: 0, kind: input, shape index: {}]   ;;  %s3198_s2 = inlined_call_operand.vmem [shape: f32[1,128], index: 2, kind: input, shape index: {}]   ;;  %s3199_s3 = inlined_call_operand.vmem [shape: bf16[128,128], index: 3, kind: input, shape index: {}]   ;;  %s3200_s4 = inlined_call_operand.vmem [shape: bf16[128,128], index: 4, kind: output, shape index: {}]  }
   0x1   :  { %v2265_v0 = vld [vmem:[%s3196_s1 + $0x78] sm:$0xff]   ;;  %v2269_v4 = vld [vmem:[%s3196_s1 + $0x70] sm:$0xff]   ;;  %v2273_v8 = vld [vmem:[%s3196_s1 + $0x68] sm:$0xff]  }
   0x2   :  { %v2266_v1 = vld [vmem:[%s3196_s1 + $0xf8] sm:$0xff]   ;;  %1945 = vmatprep.subr.bf16.mxu0 %v2265_v0  ;;  %v2270_v5 = vld [vmem:[%s3196_s1 + $0xf0] sm:$0xff]   ;;  %v2274_v9 = vld [vmem:[%s3196_s1 + $0xe8] sm:$0xff]  }
   0x3   :  { %v2267_v2 = vld [vmem:[%s3196_s1 + $0x38] sm:$0xff]   ;;  %2009 = vmatprep.subr.bf16.mxu1 %v2266_v1  ;;  %v2271_v6 = vld [vmem:[%s3196_s1 + $0x30] sm:$0xff]   ;;  %v2275_v10 = vld [vmem:[%s3196_s1 + $0x28] sm:$0xff]  }
   0x4   :  { %v2268_v3 = vld [vmem:[%s3196_s1 + $0xb8] sm:$0xff]   ;;  %1946 = vmatpush3.bf16.msra.mxu0 %v2267_v2  ;;  %v2272_v7 = vld [vmem:[%s3196_s1 + $0xb0] sm:$0xff]   ;;  %v2276_v11 = vld [vmem:[%s3196_s1 + $0xa8] sm:$0xff]  }
   0x5   :  { %2010 = vmatpush3.bf16.msra.mxu1 %v2268_v3  ;;  %1947 = vmatprep.subr.bf16.mxu0 %v2269_v4  ;;  %v2277_v12 = vld [vmem:[%s3196_s1 + $0x60] sm:$0xff]   ;;  %v2281_v16 = vld [vmem:[%s3196_s1 + $0x58] sm:$0xff]   ;;  %v2285_v20 = vld [vmem:[%s3196_s1 + $0x50] sm:$0xff]  }
   0x6   :  { %2011 = vmatprep.subr.bf16.mxu1 %v2270_v5  ;;  %v2278_v13 = vld [vmem:[%s3196_s1 + $0xe0] sm:$0xff]   ;;  %v2282_v17 = vld [vmem:[%s3196_s1 + $0xd8] sm:$0xff]   ;;  %v2286_v21 = vld [vmem:[%s3196_s1 + $0xd0] sm:$0xff]  }
   0x7   :  { %v2279_v14 = vld [vmem:[%s3196_s1 + $0x20] sm:$0xff]   ;;  %v2283_v18 = vld [vmem:[%s3196_s1 + $0x18] sm:$0xff]   ;;  %v2287_v22 = vld [vmem:[%s3196_s1 + $0x10] sm:$0xff]  }
   0x8   :  { %1948 = vmatpush3.bf16.msra.mxu0 %v2271_v6  ;;  %v2280_v15 = vld [vmem:[%s3196_s1 + $0xa0] sm:$0xff]   ;;  %v2284_v19 = vld [vmem:[%s3196_s1 + $0x98] sm:$0xff]   ;;  %v2288_v23 = vld [vmem:[%s3196_s1 + $0x90] sm:$0xff]  }
   0x9   :  { %2012 = vmatpush3.bf16.msra.mxu1 %v2272_v7  ;;  %1949 = vmatprep.subr.bf16.mxu0 %v2273_v8  ;;  %v2289_v24 = vld [vmem:[%s3196_s1 + $0x48] sm:$0xff]   ;;  %v2293_v28 = vld [vmem:[%s3196_s1 + $0x40] sm:$0xff]   ;;  %v2303_v36 = vld [vmem:[%s3196_s1 + $0x178] sm:$0xff]  }
   0xa   :  { %2013 = vmatprep.subr.bf16.mxu1 %v2274_v9  ;;  %v2290_v25 = vld [vmem:[%s3196_s1 + $0xc8] sm:$0xff]   ;;  %v2294_v29 = vld [vmem:[%s3196_s1 + $0xc0] sm:$0xff]   ;;  %v2304_v37 = vld [vmem:[%s3196_s1 + $0x1f8] sm:$0xff]  }
   0xb   :  { %v2291_v26 = vld [vmem:[%s3196_s1 + $0x8] sm:$0xff]   ;;  %v2295_v30 = vld [vmem:[%s3196_s1] sm:$0xff]   ;;  %v2305_v38 = vld [vmem:[%s3196_s1 + $0x138] sm:$0xff]  }
   0xc   :  { %1950 = vmatpush3.bf16.msra.mxu0 %v2275_v10  ;;  %v2292_v27 = vld [vmem:[%s3196_s1 + $0x88] sm:$0xff]   ;;  %v2296_v31 = vld [vmem:[%s3196_s1 + $0x80] sm:$0xff]   ;;  %v2306_v39 = vld [vmem:[%s3196_s1 + $0x1b8] sm:$0xff]  }
   0xd   :  { %2014 = vmatpush3.bf16.msra.mxu1 %v2276_v11  ;;  %1951 = vmatprep.subr.bf16.mxu0 %v2277_v12  ;;  %v2297_v32 = vld [vmem:[%s3197_s0] ss:$36 sps:$4 sm:$0xff]   ;;  %v2300_v34 = vld [vmem:[%s3197_s0 + $0x8] ss:$36 sps:$4 sm:$0xff]   ;;  %v2309_v41 = vld [vmem:[%s3197_s0 + $0x54] ss:$36 sps:$4 sm:$0xff]  }
   0xe   :  { %2015 = vmatprep.subr.bf16.mxu1 %v2278_v13  ;;  %v2299_v33 = vld [vmem:[%s3197_s0 + $0x4] ss:$36 sps:$4 sm:$0xff]   ;;  %v2302_v35 = vld [vmem:[%s3197_s0 + $0xc] ss:$36 sps:$4 sm:$0xff]   ;;  %v2317_v48 = vld [vmem:[%s3197_s0 + $0x94] ss:$36 sps:$4 sm:$0xff]  }
   0xf   :  { %1081 = vmatprep.mubr.bf16.mxu0 %v2299_v33  ;;  %1178 = vmatprep.mubr.bf16.mxu1 %v2302_v35  ;;  %v2307_v40 = vld [vmem:[%s3197_s0 + $0x4c] ss:$36 sps:$4 sm:$0xff]   ;;  %v2319_v49 = vld [vmem:[%s3197_s0 + $0x9c] ss:$36 sps:$4 sm:$0xff]   ;;  %v2329_v57 = vld [vmem:[%s3197_s0 + $0xe4] ss:$36 sps:$4 sm:$0xff]  }
  0x10   :  { %1952 = vmatpush3.bf16.msra.mxu0 %v2279_v14  ;;  %v2311_v42 = vld [vmem:[%s3197_s0 + $0x48] ss:$36 sps:$4 sm:$0xff]   ;;  %v2312_v43 = vld [vmem:[%s3197_s0 + $0x50] ss:$36 sps:$4 sm:$0xff]   ;;  %v2322_v51 = vld [vmem:[%s3197_s0 + $0x98] ss:$36 sps:$4 sm:$0xff]  }
  0x11   :  { %2016 = vmatpush3.bf16.msra.mxu1 %v2280_v15  ;;  %1953 = vmatprep.subr.bf16.mxu0 %v2281_v16  ;;  %v2313_v44 = vld [vmem:[%s3196_s1 + $0x170] sm:$0xff]   ;;  %v2323_v52 = vld [vmem:[%s3196_s1 + $0x168] sm:$0xff]   ;;  %v2327_v56 = vld [vmem:[%s3197_s0 + $0xdc] ss:$36 sps:$4 sm:$0xff]  }
  0x12   :  { %2017 = vmatprep.subr.bf16.mxu1 %v2282_v17  ;;  %v2314_v45 = vld [vmem:[%s3196_s1 + $0x1f0] sm:$0xff]   ;;  %v2324_v53 = vld [vmem:[%s3196_s1 + $0x1e8] sm:$0xff]   ;;  %v2331_v58 = vld [vmem:[%s3197_s0 + $0xd8] ss:$36 sps:$4 sm:$0xff]  }
  0x13   :  { %v2315_v46 = vld [vmem:[%s3196_s1 + $0x130] sm:$0xff]   ;;  %v2325_v54 = vld [vmem:[%s3196_s1 + $0x128] sm:$0xff]   ;;  %v2332_v59 = vld [vmem:[%s3197_s0 + $0xe0] ss:$36 sps:$4 sm:$0xff]  }
  0x14   :  { %1954 = vmatpush3.bf16.msra.mxu0 %v2283_v18  ;;  %v2316_v47 = vld [vmem:[%s3196_s1 + $0x1b0] sm:$0xff]   ;;  %v2326_v55 = vld [vmem:[%s3196_s1 + $0x1a8] sm:$0xff]   ;;  %v2333_v60 = vld [vmem:[%s3196_s1 + $0x160] sm:$0xff]  }
  0x15   :  { %2018 = vmatpush3.bf16.msra.mxu1 %v2284_v19  ;;  %1955 = vmatprep.subr.bf16.mxu0 %v2285_v20  ;;  %v2321_v50 = vld [vmem:[%s3197_s0 + $0x90] ss:$36 sps:$4 sm:$0xff]   ;;  %v2334_v61 = vld [vmem:[%s3196_s1 + $0x1e0] sm:$0xff]   ;;  %v2343_v3 = vld [vmem:[%s3196_s1 + $0x158] sm:$0xff]  }
  0x16   :  { %2019 = vmatprep.subr.bf16.mxu1 %v2286_v21  ;;  %v2335_v62 = vld [vmem:[%s3196_s1 + $0x120] sm:$0xff]   ;;  %v2339_v1 = vld [vmem:[%s3197_s0 + $0x12c] ss:$36 sps:$4 sm:$0xff]   ;;  %v2344_v5 = vld [vmem:[%s3196_s1 + $0x1d8] sm:$0xff]  }
  0x17   :  { %v2336_v63 = vld [vmem:[%s3196_s1 + $0x1a0] sm:$0xff]   ;;  %v2342_v4 = vld [vmem:[%s3197_s0 + $0x128] ss:$36 sps:$4 sm:$0xff]   ;;  %v2345_v6 = vld [vmem:[%s3196_s1 + $0x118] sm:$0xff]  }
  0x18   :  { %1956 = vmatpush3.bf16.msra.mxu0 %v2287_v22  ;;  %v2337_v0 = vld [vmem:[%s3197_s0 + $0x124] ss:$36 sps:$4 sm:$0xff]   ;;  %v2346_v7 = vld [vmem:[%s3196_s1 + $0x198] sm:$0xff]   ;;  %v2347_v8 = vld [vmem:[%s3197_s0 + $0x16c] ss:$36 sps:$4 sm:$0xff]  }
  0x19   :  { %2020 = vmatpush3.bf16.msra.mxu1 %v2288_v23  ;;  %1957 = vmatprep.subr.bf16.mxu0 %v2289_v24  ;;  %v2341_v2 = vld [vmem:[%s3197_s0 + $0x120] ss:$36 sps:$4 sm:$0xff]   ;;  %v2349_v9 = vld [vmem:[%s3197_s0 + $0x174] ss:$36 sps:$4 sm:$0xff]   ;;  %v2351_v12 = vld [vmem:[%s3197_s0 + $0x168] ss:$36 sps:$4 sm:$0xff]  }
  0x1a   :  { %2021 = vmatprep.subr.bf16.mxu1 %v2290_v25  ;;  %v2353_v10 = vld [vmem:[%s3196_s1 + $0x150] sm:$0xff]   ;;  %v2359_v17 = vld [vmem:[%s3197_s0 + $0x1bc] ss:$36 sps:$4 sm:$0xff]   ;;  %v2363_v18 = vld [vmem:[%s3196_s1 + $0x148] sm:$0xff]  }
  0x1b   :  { %v2354_v11 = vld [vmem:[%s3196_s1 + $0x1d0] sm:$0xff]   ;;  %v2364_v19 = vld [vmem:[%s3196_s1 + $0x1c8] sm:$0xff]   ;;  %v2362_v23 = vld [vmem:[%s3197_s0 + $0x1b8] ss:$36 sps:$4 sm:$0xff]  }
  0x1c   :  { %1958 = vmatpush3.bf16.msra.mxu0 %v2291_v26  ;;  %v2355_v13 = vld [vmem:[%s3196_s1 + $0x110] sm:$0xff]   ;;  %v2365_v20 = vld [vmem:[%s3196_s1 + $0x108] sm:$0xff]   ;;  %v2367_v24 = vld [vmem:[%s3197_s0 + $0x1fc] ss:$36 sps:$4 sm:$0xff]  }
  0x1d   :  { %2022 = vmatpush3.bf16.msra.mxu1 %v2292_v27  ;;  %1959 = vmatprep.subr.bf16.mxu0 %v2293_v28  ;;  %v2356_v14 = vld [vmem:[%s3196_s1 + $0x190] sm:$0xff]   ;;  %v2366_v21 = vld [vmem:[%s3196_s1 + $0x188] sm:$0xff]   ;;  %v2373_v26 = vld [vmem:[%s3196_s1 + $0x140] sm:$0xff]  }
  0x1e   :  { %2023 = vmatprep.subr.bf16.mxu1 %v2294_v29  ;;  %v2352_v15 = vld [vmem:[%s3197_s0 + $0x170] ss:$36 sps:$4 sm:$0xff]   ;;  %v2369_v25 = vld [vmem:[%s3197_s0 + $0x204] ss:$36 sps:$4 sm:$0xff]  }
  0x1f   :  { %v2357_v16 = vld [vmem:[%s3197_s0 + $0x1b4] ss:$36 sps:$4 sm:$0xff]   ;;  %v2374_v27 = vld [vmem:[%s3196_s1 + $0x1c0] sm:$0xff]  }
  0x20   :  { %1960 = vmatpush3.bf16.msra.mxu0 %v2295_v30  ;;  %v2361_v22 = vld [vmem:[%s3197_s0 + $0x1b0] ss:$36 sps:$4 sm:$0xff]   ;;  %v2375_v28 = vld [vmem:[%s3196_s1 + $0x100] sm:$0xff]   ;;  %v2371_v30 = vld [vmem:[%s3197_s0 + $0x1f8] ss:$36 sps:$4 sm:$0xff]  }
  0x21   :  { %2024 = vmatpush3.bf16.msra.mxu1 %v2296_v31  ;;  %2073 = vmatprep.subr.bf16.mxu0 %v2303_v36  ;;  %v2376_v29 = vld [vmem:[%s3196_s1 + $0x180] sm:$0xff]   ;;  %v2379_v33 = vld [vmem:[%s3197_s0 + $0x14] ss:$36 sps:$4 sm:$0xff]  }
  0x22   :  { %2137 = vmatprep.subr.bf16.mxu1 %v2304_v37  ;;  %v2372_v31 = vld [vmem:[%s3197_s0 + $0x200] ss:$36 sps:$4 sm:$0xff]   ;;  %v2377_v35 = vld [vmem:[%s3197_s0 + $0x10] ss:$36 sps:$4 sm:$0xff]   ;;  %v2380_v36 = vld [vmem:[%s3197_s0 + $0x18] ss:$36 sps:$4 sm:$0xff]  }
  0x23   :  { %1082 = vmatmul.mubr.bf16.vlgmr.msra.gmra.mxu0 %v2297_v32  ;;  %v2383_v32 = vld [vmem:[%s3196_s1 + $0x238] sm:$0xff]  }
  0x24   :  { %1179 = vmatmul.mubr.bf16.vlgmr.msra.gmra.mxu1 %v2300_v34  ;;  %2074 = vmatpush3.bf16.msra.mxu0 %v2305_v38  ;;  %v2382_v34 = vld [vmem:[%s3197_s0 + $0x1c] ss:$36 sps:$4 sm:$0xff]   ;;  %v2386_v38 = vld [vmem:[%s3197_s0 + $0x64] ss:$36 sps:$4 sm:$0xff]  }
  0x25   :  { %2138 = vmatpush3.bf16.msra.mxu1 %v2306_v39  ;;  %1089 = vmatprep.mubr.bf16.mxu0 %v2307_v40  ;;  %v2384_v37 = vld [vmem:[%s3197_s0 + $0x5c] ss:$36 sps:$4 sm:$0xff]   ;;  %v2390_v39 = vld [vmem:[%s3196_s1 + $0x230] sm:$0xff]   ;;  %v2397_v40 = vld [vmem:[%s3196_s1 + $0x228] sm:$0xff]  }
  0x26   :  { %1186 = vmatprep.mubr.bf16.mxu1 %v2309_v41  ;;  %2075 = vmatprep.subr.bf16.mxu0 %v2313_v44  ;;  %v2388_v41 = vld [vmem:[%s3197_s0 + $0x58] ss:$36 sps:$4 sm:$0xff]   ;;  %v2393_v44 = vld [vmem:[%s3197_s0 + $0xac] ss:$36 sps:$4 sm:$0xff]  }
  0x27   :  { %2139 = vmatprep.subr.bf16.mxu1 %v2314_v45  ;;  %v2404_v45 = vld [vmem:[%s3196_s1 + $0x220] sm:$0xff]  }
  0x28   :  { %2076 = vmatpush3.bf16.msra.mxu0 %v2315_v46  ;;  %v2411_v46 = vld [vmem:[%s3196_s1 + $0x218] sm:$0xff]  }
  0x29   :  { %2140 = vmatpush3.bf16.msra.mxu1 %v2316_v47  ;;  %2077 = vmatprep.subr.bf16.mxu0 %v2323_v52  ;;  %v2395_v47 = vld [vmem:[%s3197_s0 + $0xa0] ss:$36 sps:$4 sm:$0xff]   ;;  %v2402_v52 = vld [vmem:[%s3197_s0 + $0xe8] ss:$36 sps:$4 sm:$0xff]  }
  0x2a   :  { %2141 = vmatprep.subr.bf16.mxu1 %v2324_v53  ;;  %v2425_v53 = vld [vmem:[%s3196_s1 + $0x208] sm:$0xff]  }
  0x2b   :  { %1090 = vmatmul.mubr.bf16.gmra.mxu0 %v2311_v42  ;;  %v2389_v42 = vld [vmem:[%s3197_s0 + $0x60] ss:$36 sps:$4 sm:$0xff]  }
  0x2c   :  { %1187 = vmatmul.mubr.bf16.gmra.mxu1 %v2312_v43  ;;  %1097 = vmatprep.mubr.bf16.mxu0 %v2317_v48  ;;  %v2391_v43 = vld [vmem:[%s3197_s0 + $0xa4] ss:$36 sps:$4 sm:$0xff]  }
  0x2d   :  { %1194 = vmatprep.mubr.bf16.mxu1 %v2319_v49  ;;  %2078 = vmatpush3.bf16.msra.mxu0 %v2325_v54  ;;  %v2396_v48 = vld [vmem:[%s3197_s0 + $0xa8] ss:$36 sps:$4 sm:$0xff]   ;;  %v2403_v54 = vld [vmem:[%s3197_s0 + $0xf0] ss:$36 sps:$4 sm:$0xff]  }
  0x2e   :  { %2142 = vmatpush3.bf16.msra.mxu1 %v2326_v55  ;;  %2079 = vmatprep.subr.bf16.mxu0 %v2333_v60  ;;  %v2398_v49 = vld [vmem:[%s3197_s0 + $0xec] ss:$36 sps:$4 sm:$0xff]   ;;  %v2405_v55 = vld [vmem:[%s3197_s0 + $0x134] ss:$36 sps:$4 sm:$0xff]   ;;  %v2412_v60 = vld [vmem:[%s3197_s0 + $0x17c] ss:$36 sps:$4 sm:$0xff]  }
  0x2f   :  { %2143 = vmatprep.subr.bf16.mxu1 %v2334_v61  ;;  %v2414_v61 = vld [vmem:[%s3197_s0 + $0x184] ss:$36 sps:$4 sm:$0xff]  }
  0x31   :  { %2080 = vmatpush3.bf16.msra.mxu0 %v2335_v62  ;;  %v2416_v62 = vld [vmem:[%s3197_s0 + $0x178] ss:$36 sps:$4 sm:$0xff]  }
  0x32   :  { %2144 = vmatpush3.bf16.msra.mxu1 %v2336_v63  ;;  %2081 = vmatprep.subr.bf16.mxu0 %v2343_v3  ;;  %v2417_v63 = vld [vmem:[%s3197_s0 + $0x180] ss:$36 sps:$4 sm:$0xff]   ;;  %v2424_v3 = vld [vmem:[%s3197_s0 + $0x1c8] ss:$36 sps:$4 sm:$0xff]  }
  0x33   :  { %1098 = vmatmul.mubr.bf16.gmra.mxu0 %v2321_v50  ;;  %2145 = vmatprep.subr.bf16.mxu1 %v2344_v5  ;;  %v2400_v50 = vld [vmem:[%s3197_s0 + $0xf4] ss:$36 sps:$4 sm:$0xff]  }
  0x34   :  { %1195 = vmatmul.mubr.bf16.gmra.mxu1 %v2322_v51  ;;  %1105 = vmatprep.mubr.bf16.mxu0 %v2327_v56  ;;  %v2418_v51 = vld [vmem:[%s3196_s1 + $0x210] sm:$0xff]   ;;  %v2407_v56 = vld [vmem:[%s3197_s0 + $0x13c] ss:$36 sps:$4 sm:$0xff]  }
  0x35   :  { %1202 = vmatprep.mubr.bf16.mxu1 %v2329_v57  ;;  %2082 = vmatpush3.bf16.msra.mxu0 %v2345_v6  ;;  %v2432_v57 = vld [vmem:[%s3196_s1 + $0x200] sm:$0xff]   ;;  %v2428_v5 = vld [vmem:[%s3197_s0 + $0x214] ss:$36 sps:$4 sm:$0xff]   ;;  %v2430_v6 = vld [vmem:[%s3197_s0 + $0x208] ss:$36 sps:$4 sm:$0xff]  }
  0x36   :  { %2146 = vmatpush3.bf16.msra.mxu1 %v2346_v7  ;;  %2083 = vmatprep.subr.bf16.mxu0 %v2353_v10  ;;  %v2431_v7 = vld [vmem:[%s3197_s0 + $0x210] ss:$36 sps:$4 sm:$0xff]   ;;  %v2435_v10 = vld [vmem:[%s3197_s0 + $0x68] ss:$36 sps:$4 sm:$0xff]  }
  0x37   :  { %2147 = vmatprep.subr.bf16.mxu1 %v2354_v11  ;;  %v2436_v11 = vld [vmem:[%s3197_s0 + $0x188] ss:$36 sps:$4 sm:$0xff]  }
  0x39   :  { %2084 = vmatpush3.bf16.msra.mxu0 %v2355_v13  ;;  %v2438_v13 = vld [vmem:[%s3197_s0 + $0x1d0] ss:$36 sps:$4 sm:$0xff]  }
  0x3a   :  { %2148 = vmatpush3.bf16.msra.mxu1 %v2356_v14  ;;  %2085 = vmatprep.subr.bf16.mxu0 %v2363_v18  ;;  %v2439_v14 = vld [vmem:[%s3197_s0 + $0xf8] ss:$36 sps:$4 sm:$0xff]   ;;  %v2901_v18 = vld [vmem:[%s3198_s2] ss:$0 sm:$0xff] }
  0x3b   :  { %1106 = vmatmul.mubr.bf16.gmra.mxu0 %v2331_v58  ;;  %2149 = vmatprep.subr.bf16.mxu1 %v2364_v19  ;;  %v2409_v58 = vld [vmem:[%s3197_s0 + $0x130] ss:$36 sps:$4 sm:$0xff]  }
  0x3c   :  { %1203 = vmatmul.mubr.bf16.gmra.mxu1 %v2332_v59  ;;  %1113 = vmatprep.mubr.bf16.mxu0 %v2337_v0  ;;  %v2410_v59 = vld [vmem:[%s3197_s0 + $0x138] ss:$36 sps:$4 sm:$0xff]   ;;  %v2419_v0 = vld [vmem:[%s3197_s0 + $0x1c4] ss:$36 sps:$4 sm:$0xff]  }
  0x3d   :  { %1210 = vmatprep.mubr.bf16.mxu1 %v2339_v1  ;;  %2086 = vmatpush3.bf16.msra.mxu0 %v2365_v20  ;;  %v2421_v1 = vld [vmem:[%s3197_s0 + $0x1cc] ss:$36 sps:$4 sm:$0xff]  }
  0x3e   :  { %2150 = vmatpush3.bf16.msra.mxu1 %v2366_v21  ;;  %2087 = vmatprep.subr.bf16.mxu0 %v2373_v26 }
  0x3f   :  { %2151 = vmatprep.subr.bf16.mxu1 %v2374_v27 }
  0x41   :  { %2088 = vmatpush3.bf16.msra.mxu0 %v2375_v28 }
  0x42   :  { %2152 = vmatpush3.bf16.msra.mxu1 %v2376_v29  ;;  %2217 = vmatprep.subr.bf16.mxu0 %v2383_v32 }
  0x43   :  { %1114 = vmatmul.mubr.bf16.gmra.mxu0 %v2341_v2  ;;  %2249 = vmatprep.subr.bf16.mxu1 %v2383_v32  ;;  %v2423_v2 = vld [vmem:[%s3197_s0 + $0x1c0] ss:$36 sps:$4 sm:$0xff]  }
  0x44   :  { %1211 = vmatmul.mubr.bf16.gmra.mxu1 %v2342_v4  ;;  %1121 = vmatprep.mubr.bf16.mxu0 %v2347_v8  ;;  %v2426_v4 = vld [vmem:[%s3197_s0 + $0x20c] ss:$36 sps:$4 sm:$0xff]   ;;  %v2433_v8 = vld [vmem:[%s3197_s0 + $0x20] ss:$36 sps:$4 sm:$0xff]  }
  0x45   :  { %1218 = vmatprep.mubr.bf16.mxu1 %v2349_v9  ;;  %v2434_v9 = vld [vmem:[%s3197_s0 + $0x140] ss:$36 sps:$4 sm:$0xff]  }
  0x4b   :  { %1122 = vmatmul.mubr.bf16.gmra.mxu0 %v2351_v12  ;;  %v2437_v12 = vld [vmem:[%s3197_s0 + $0xb0] ss:$36 sps:$4 sm:$0xff]  }
  0x4c   :  { %1219 = vmatmul.mubr.bf16.gmra.mxu1 %v2352_v15  ;;  %1129 = vmatprep.mubr.bf16.mxu0 %v2357_v16  ;;  %v2440_v15 = vld [vmem:[%s3197_s0 + $0x218] ss:$36 sps:$4 sm:$0xff]  }
  0x4d   :  { %1226 = vmatprep.mubr.bf16.mxu1 %v2359_v17 }
  0x53   :  { %1130 = vmatmul.mubr.bf16.gmra.mxu0 %v2361_v22 }
  0x54   :  { %1227 = vmatmul.mubr.bf16.gmra.mxu1 %v2362_v23  ;;  %1137 = vmatprep.mubr.bf16.mxu0 %v2367_v24 }
  0x55   :  { %1234 = vmatprep.mubr.bf16.mxu1 %v2369_v25 }
  0x5b   :  { %1138 = vmatmul.mubr.bf16.gmra.mxu0 %v2371_v30 }
  0x5c   :  { %1235 = vmatmul.mubr.bf16.gmra.mxu1 %v2372_v31  ;;  %1275 = vmatprep.mubr.bf16.mxu0 %v2379_v33 }
  0x5d   :  { %1372 = vmatprep.mubr.bf16.mxu1 %v2382_v34 }
  0x63   :  { %1276 = vmatmul.mubr.bf16.vlgmr.msra.gmra.mxu0 %v2377_v35 }
  0x64   :  { %1373 = vmatmul.mubr.bf16.vlgmr.msra.gmra.mxu1 %v2380_v36  ;;  %2218 = vmatpush3.bf16.msra.mxu0 %v2383_v32 }
  0x65   :  { %2257 = vmatpush3.bf16.msra.mxu1 %v2383_v32  ;;  %1283 = vmatprep.mubr.bf16.mxu0 %v2384_v37 }
  0x66   :  { %1380 = vmatprep.mubr.bf16.mxu1 %v2386_v38  ;;  %2219 = vmatprep.subr.bf16.mxu0 %v2390_v39 }
  0x67   :  { %2250 = vmatprep.subr.bf16.mxu1 %v2390_v39 }
  0x68   :  { %2220 = vmatpush3.bf16.msra.mxu0 %v2390_v39 }
  0x69   :  { %2258 = vmatpush3.bf16.msra.mxu1 %v2390_v39  ;;  %2221 = vmatprep.subr.bf16.mxu0 %v2397_v40 }
  0x6a   :  { %2251 = vmatprep.subr.bf16.mxu1 %v2397_v40 }
  0x6b   :  { %1284 = vmatmul.mubr.bf16.gmra.mxu0 %v2388_v41 }
  0x6c   :  { %1381 = vmatmul.mubr.bf16.gmra.mxu1 %v2389_v42  ;;  %1291 = vmatprep.mubr.bf16.mxu0 %v2391_v43 }
  0x6d   :  { %1388 = vmatprep.mubr.bf16.mxu1 %v2393_v44  ;;  %2222 = vmatpush3.bf16.msra.mxu0 %v2397_v40 }
  0x6e   :  { %2259 = vmatpush3.bf16.msra.mxu1 %v2397_v40  ;;  %2223 = vmatprep.subr.bf16.mxu0 %v2404_v45 }
  0x6f   :  { %2252 = vmatprep.subr.bf16.mxu1 %v2404_v45 }
  0x71   :  { %2224 = vmatpush3.bf16.msra.mxu0 %v2404_v45 }
  0x72   :  { %2260 = vmatpush3.bf16.msra.mxu1 %v2404_v45  ;;  %2225 = vmatprep.subr.bf16.mxu0 %v2411_v46 }
  0x73   :  { %1292 = vmatmul.mubr.bf16.gmra.mxu0 %v2395_v47  ;;  %2253 = vmatprep.subr.bf16.mxu1 %v2411_v46 }
  0x74   :  { %1389 = vmatmul.mubr.bf16.gmra.mxu1 %v2396_v48  ;;  %1299 = vmatprep.mubr.bf16.mxu0 %v2398_v49 }
  0x75   :  { %1396 = vmatprep.mubr.bf16.mxu1 %v2400_v50  ;;  %2226 = vmatpush3.bf16.msra.mxu0 %v2411_v46 }
  0x76   :  { %2261 = vmatpush3.bf16.msra.mxu1 %v2411_v46  ;;  %2227 = vmatprep.subr.bf16.mxu0 %v2418_v51 }
  0x77   :  { %2254 = vmatprep.subr.bf16.mxu1 %v2418_v51 }
  0x79   :  { %2228 = vmatpush3.bf16.msra.mxu0 %v2418_v51 }
  0x7a   :  { %2262 = vmatpush3.bf16.msra.mxu1 %v2418_v51  ;;  %2229 = vmatprep.subr.bf16.mxu0 %v2425_v53 }
  0x7b   :  { %1300 = vmatmul.mubr.bf16.gmra.mxu0 %v2402_v52  ;;  %2255 = vmatprep.subr.bf16.mxu1 %v2425_v53 }
  0x7c   :  { %1397 = vmatmul.mubr.bf16.gmra.mxu1 %v2403_v54  ;;  %1307 = vmatprep.mubr.bf16.mxu0 %v2405_v55 }
  0x7d   :  { %1404 = vmatprep.mubr.bf16.mxu1 %v2407_v56  ;;  %2230 = vmatpush3.bf16.msra.mxu0 %v2425_v53 }
  0x7e   :  { %2263 = vmatpush3.bf16.msra.mxu1 %v2425_v53  ;;  %2231 = vmatprep.subr.bf16.mxu0 %v2432_v57 }
  0x7f   :  { %2256 = vmatprep.subr.bf16.mxu1 %v2432_v57 }
  0x81   :  { %2232 = vmatpush3.bf16.msra.mxu0 %v2432_v57 }
  0x82   :  { %2264 = vmatpush3.bf16.msra.mxu1 %v2432_v57 }
  0x83   :  { %1308 = vmatmul.mubr.bf16.gmra.mxu0 %v2409_v58 }
  0x84   :  { %1405 = vmatmul.mubr.bf16.gmra.mxu1 %v2410_v59  ;;  %1315 = vmatprep.mubr.bf16.mxu0 %v2412_v60 }
  0x85   :  { %1412 = vmatprep.mubr.bf16.mxu1 %v2414_v61 }
  0x8b   :  { %1316 = vmatmul.mubr.bf16.gmra.mxu0 %v2416_v62 }
  0x8c   :  { %1413 = vmatmul.mubr.bf16.gmra.mxu1 %v2417_v63  ;;  %1323 = vmatprep.mubr.bf16.mxu0 %v2419_v0 }
  0x8d   :  { %1420 = vmatprep.mubr.bf16.mxu1 %v2421_v1 }
  0x93   :  { %1324 = vmatmul.mubr.bf16.gmra.mxu0 %v2423_v2 }
  0x94   :  { %1421 = vmatmul.mubr.bf16.gmra.mxu1 %v2424_v3  ;;  %1331 = vmatprep.mubr.bf16.mxu0 %v2426_v4 }
  0x95   :  { %1428 = vmatprep.mubr.bf16.mxu1 %v2428_v5 }
  0x9b   :  { %1332 = vmatmul.mubr.bf16.gmra.mxu0 %v2430_v6 }
  0x9c   :  { %1429 = vmatmul.mubr.bf16.gmra.mxu1 %v2431_v7  ;;  %2233 = vmatprep.mubr.bf16.mxu0 %v2433_v8 }
  0x9d   :  { %2241 = vmatprep.mubr.bf16.mxu1 %v2434_v9 }
  0xa3   :  { %2234 = vmatmul.mubr.bf16.vlgmr.msra.gmra.mxu0 %v2435_v10 }
  0xa4   :  { %2242 = vmatmul.mubr.bf16.vlgmr.msra.gmra.mxu1 %v2436_v11  ;;  %2237 = vmatprep.mubr.bf16.mxu0 %v2437_v12 }
  0xa5   :  { %2245 = vmatprep.mubr.bf16.mxu1 %v2438_v13 }
  0xab   :  { %2238 = vmatmul.mubr.bf16.gmra.mxu0 %v2439_v14 }
  0xac   :  { %2246 = vmatmul.mubr.bf16.gmra.mxu1 %v2440_v15 }
  0xe3   :  { %v1961_v16 = vpop.f32.mrf.mxu0 }
  0xe4   :  { %v2025_v17 = vpop.f32.mrf.mxu1 }
  0xe5   :  { %v1962_v19 = vpop.f32.mrf.mxu0 }
  0xe6   :  { %v1963_v20 = vadd.f32 %v1962_v19, %v1961_v16  ;;  %v2026_v21 = vpop.f32.mrf.mxu1 }
  0xe7   :  { %v2027_v22 = vadd.f32 %v2026_v21, %v2025_v17  ;;  %v1964_v23 = vpop.f32.mrf.mxu0 }
  0xe8   :  { %v1084_v24 = vadd.f32 %v1963_v20, %v2901_v18  ;;  %v2028_v25 = vpop.f32.mrf.mxu1 }
  0xe9   :  { %v1965_v26 = vpop.f32.mrf.mxu0 }
  0xea   :  { %v2904_v27 = vadd.f32 %v2027_v22, %v1084_v24  ;;  %v1966_v28 = vadd.f32 %v1965_v26, %v1964_v23  ;;  %v2029_v29 = vpop.f32.mrf.mxu1 }
  0xeb   :  { %v2030_v30 = vadd.f32 %v2029_v29, %v2028_v25  ;;  %v1967_v31 = vpop.f32.mrf.mxu0 }
  0xec   :  { %v1087_v32 = vadd.f32 %v1966_v28, %v2901_v18  ;;  %v2031_v33 = vpop.f32.mrf.mxu1 }
  0xed   :  { %v1968_v34 = vpop.f32.mrf.mxu0 }
  0xee   :  { %v2907_v35 = vadd.f32 %v2030_v30, %v1087_v32  ;;  %v1969_v36 = vadd.f32 %v1968_v34, %v1967_v31  ;;  %v2032_v37 = vpop.f32.mrf.mxu1 }
  0xef   :  { %v2033_v38 = vadd.f32 %v2032_v37, %v2031_v33  ;;  %v1970_v39 = vpop.f32.mrf.mxu0 }
  0xf0   :  { %v1092_v40 = vadd.f32 %v1969_v36, %v2901_v18  ;;  %v2034_v41 = vpop.f32.mrf.mxu1 }
  0xf1   :  { %v1971_v42 = vpop.f32.mrf.mxu0 }
  0xf2   :  { %v2910_v43 = vadd.f32 %v2033_v38, %v1092_v40  ;;  %v1972_v44 = vadd.f32 %v1971_v42, %v1970_v39  ;;  %v2035_v45 = vpop.f32.mrf.mxu1 }
  0xf3   :  { %v2036_v46 = vadd.f32 %v2035_v45, %v2034_v41  ;;  %v1973_v47 = vpop.f32.mrf.mxu0 }
  0xf4   :  { %v1095_v48 = vadd.f32 %v1972_v44, %v2901_v18  ;;  %v2037_v49 = vpop.f32.mrf.mxu1 }
  0xf5   :  { %v1974_v50 = vpop.f32.mrf.mxu0 }
  0xf6   :  { %v2913_v51 = vadd.f32 %v2036_v46, %v1095_v48  ;;  %v1975_v52 = vadd.f32 %v1974_v50, %v1973_v47  ;;  %v2038_v53 = vpop.f32.mrf.mxu1 }
  0xf7   :  { %v2039_v54 = vadd.f32 %v2038_v53, %v2037_v49  ;;  %v1976_v55 = vpop.f32.mrf.mxu0 }
  0xf8   :  { %v1100_v56 = vadd.f32 %v1975_v52, %v2901_v18  ;;  %v2040_v57 = vpop.f32.mrf.mxu1 }
  0xf9   :  { %v1977_v58 = vpop.f32.mrf.mxu0 }
  0xfa   :  { %v2916_v59 = vadd.f32 %v2039_v54, %v1100_v56  ;;  %v1978_v60 = vadd.f32 %v1977_v58, %v1976_v55  ;;  %v2041_v61 = vpop.f32.mrf.mxu1 }
  0xfb   :  { %v2042_v62 = vadd.f32 %v2041_v61, %v2040_v57  ;;  %v1979_v63 = vpop.f32.mrf.mxu0 }
  0xfc   :  { %v1103_v0 = vadd.f32 %v1978_v60, %v2901_v18  ;;  %v2043_v1 = vpop.f32.mrf.mxu1 }
  0xfd   :  { %v1980_v2 = vpop.f32.mrf.mxu0 }
  0xfe   :  { %v2919_v3 = vadd.f32 %v2042_v62, %v1103_v0  ;;  %v1981_v4 = vadd.f32 %v1980_v2, %v1979_v63  ;;  %v2044_v5 = vpop.f32.mrf.mxu1 }
  0xff   :  { %v2045_v6 = vadd.f32 %v2044_v5, %v2043_v1  ;;  %v1982_v7 = vpop.f32.mrf.mxu0 }
 0x100   :  { %v1108_v8 = vadd.f32 %v1981_v4, %v2901_v18  ;;  %v2046_v9 = vpop.f32.mrf.mxu1 }
 0x101   :  { %v1983_v10 = vpop.f32.mrf.mxu0 }
 0x102   :  { %v2922_v11 = vadd.f32 %v2045_v6, %v1108_v8  ;;  %v1984_v12 = vadd.f32 %v1983_v10, %v1982_v7  ;;  %v2047_v13 = vpop.f32.mrf.mxu1 }
 0x103   :  { %v2048_v14 = vadd.f32 %v2047_v13, %v2046_v9  ;;  %v1985_v15 = vpop.f32.mrf.mxu0 }
 0x104   :  { %v1111_v16 = vadd.f32 %v1984_v12, %v2901_v18  ;;  %v2049_v17 = vpop.f32.mrf.mxu1 }
 0x105   :  { %v1986_v19 = vpop.f32.mrf.mxu0 }
 0x106   :  { %v2925_v20 = vadd.f32 %v2048_v14, %v1111_v16  ;;  %v1987_v21 = vadd.f32 %v1986_v19, %v1985_v15  ;;  %v2050_v22 = vpop.f32.mrf.mxu1 }
 0x107   :  { %v2051_v23 = vadd.f32 %v2050_v22, %v2049_v17  ;;  %v1988_v24 = vpop.f32.mrf.mxu0 }
 0x108   :  { %v1116_v25 = vadd.f32 %v1987_v21, %v2901_v18  ;;  %v2052_v26 = vpop.f32.mrf.mxu1 }
 0x109   :  { %v1989_v28 = vpop.f32.mrf.mxu0 }
 0x10a   :  { %v2928_v29 = vadd.f32 %v2051_v23, %v1116_v25  ;;  %v1990_v30 = vadd.f32 %v1989_v28, %v1988_v24  ;;  %v2053_v31 = vpop.f32.mrf.mxu1 }
 0x10b   :  { %v2054_v32 = vadd.f32 %v2053_v31, %v2052_v26  ;;  %v1991_v33 = vpop.f32.mrf.mxu0 }
 0x10c   :  { %v1119_v34 = vadd.f32 %v1990_v30, %v2901_v18  ;;  %v2055_v36 = vpop.f32.mrf.mxu1 }
 0x10d   :  { %v1992_v37 = vpop.f32.mrf.mxu0 }
 0x10e   :  { %v2931_v38 = vadd.f32 %v2054_v32, %v1119_v34  ;;  %v1993_v39 = vadd.f32 %v1992_v37, %v1991_v33  ;;  %v2056_v40 = vpop.f32.mrf.mxu1 }
 0x10f   :  { %v2057_v41 = vadd.f32 %v2056_v40, %v2055_v36  ;;  %v1994_v42 = vpop.f32.mrf.mxu0 }
 0x110   :  { %3207 = vst [vmem:[#allocation2_spill] sm:$0xff] %v2931_v38  ;;  %v1124_v44 = vadd.f32 %v1993_v39, %v2901_v18  ;;  %v2058_v45 = vpop.f32.mrf.mxu1 }
 0x111   :  { %v1995_v46 = vpop.f32.mrf.mxu0 }
 0x112   :  { %v2934_v47 = vadd.f32 %v2057_v41, %v1124_v44  ;;  %v1996_v48 = vadd.f32 %v1995_v46, %v1994_v42  ;;  %v2059_v49 = vpop.f32.mrf.mxu1 }
 0x113   :  { %v2060_v50 = vadd.f32 %v2059_v49, %v2058_v45  ;;  %v1997_v52 = vpop.f32.mrf.mxu0 }
 0x114   :  { %v1127_v53 = vadd.f32 %v1996_v48, %v2901_v18  ;;  %v2061_v54 = vpop.f32.mrf.mxu1 }
 0x115   :  { %v1998_v55 = vpop.f32.mrf.mxu0 }
 0x116   :  { %v2937_v56 = vadd.f32 %v2060_v50, %v1127_v53  ;;  %v1999_v57 = vadd.f32 %v1998_v55, %v1997_v52  ;;  %v2062_v58 = vpop.f32.mrf.mxu1 }
 0x117   :  { %v2063_v60 = vadd.f32 %v2062_v58, %v2061_v54  ;;  %v2000_v61 = vpop.f32.mrf.mxu0 }
 0x118   :  { %3208 = vst [vmem:[#allocation3_spill] sm:$0xff] %v2937_v56  ;;  %v1132_v62 = vadd.f32 %v1999_v57, %v2901_v18  ;;  %v2064_v63 = vpop.f32.mrf.mxu1 }
 0x119   :  { %v2001_v0 = vpop.f32.mrf.mxu0 }
 0x11a   :  { %v2940_v1 = vadd.f32 %v2063_v60, %v1132_v62  ;;  %v2002_v2 = vadd.f32 %v2001_v0, %v2000_v61  ;;  %v2065_v4 = vpop.f32.mrf.mxu1 }
 0x11b   :  { %v2066_v5 = vadd.f32 %v2065_v4, %v2064_v63  ;;  %v2003_v6 = vpop.f32.mrf.mxu0 }
 0x11c   :  { %3209 = vst [vmem:[#allocation4_spill] sm:$0xff] %v2940_v1  ;;  %v1135_v7 = vadd.f32 %v2002_v2, %v2901_v18  ;;  %v2067_v8 = vpop.f32.mrf.mxu1 }
 0x11d   :  { %v2004_v9 = vpop.f32.mrf.mxu0 }
 0x11e   :  { %v2943_v10 = vadd.f32 %v2066_v5, %v1135_v7  ;;  %v2005_v12 = vadd.f32 %v2004_v9, %v2003_v6  ;;  %v2068_v13 = vpop.f32.mrf.mxu1 }
 0x11f   :  { %v2069_v14 = vadd.f32 %v2068_v13, %v2067_v8  ;;  %v2006_v15 = vpop.f32.mrf.mxu0 }
 0x120   :  { %3210 = vst [vmem:[#allocation5_spill] sm:$0xff] %v2943_v10  ;;  %v1140_v16 = vadd.f32 %v2005_v12, %v2901_v18  ;;  %v2070_v17 = vpop.f32.mrf.mxu1 }
 0x121   :  { %v2007_v19 = vpop.f32.mrf.mxu0 }
 0x122   :  { %v2946_v21 = vadd.f32 %v2069_v14, %v1140_v16  ;;  %v2008_v22 = vadd.f32 %v2007_v19, %v2006_v15  ;;  %v2071_v23 = vpop.f32.mrf.mxu1 }
 0x123   :  { %v2072_v24 = vadd.f32 %v2071_v23, %v2070_v17  ;;  %v2089_v25 = vpop.f32.mrf.mxu0 }
 0x124   :  { %3211 = vst [vmem:[#allocation6_spill] sm:$0xff] %v2946_v21  ;;  %v1143_v26 = vadd.f32 %v2008_v22, %v2901_v18  ;;  %v2153_v28 = vpop.f32.mrf.mxu1 }
 0x125   :  { %v2090_v30 = vpop.f32.mrf.mxu0 }
 0x126   :  { %v2949_v31 = vadd.f32 %v2072_v24, %v1143_v26  ;;  %v2091_v32 = vadd.f32 %v2090_v30, %v2089_v25  ;;  %v2154_v33 = vpop.f32.mrf.mxu1 }
 0x127   :  { %v2092_v34 = vpop.f32.mrf.mxu0  ;;  %v2155_v37 = vadd.f32 %v2154_v33, %v2153_v28  ;;  %v3015_v33 = vld [vmem:[%s3199_s3 + $0x8] sm:$0xff]  }
 0x128   :  { %3212 = vst [vmem:[#allocation7_spill] sm:$0xff] %v2949_v31  ;;  %v1278_v36 = vadd.f32 %v2091_v32, %v2904_v27  ;;  %v2952_v39 = vpop.f32.mrf.mxu1  ;;  %3221 = vst [vmem:[#allocation16_spill] sm:$0xff] %v3015_v33  ;;  %v3032_v31 = vld [vmem:[%s3199_s3 + $0x20] sm:$0xff]  }
 0x129   :  { %v2093_v40 = vpop.f32.mrf.mxu0 }
 0x12a   :  { %v2954_v41 = vpop.f32.mrf.mxu1  ;;  %v2956_v42 = vadd.f32 %v2155_v37, %v1278_v36  ;;  %v3020_v36 = vld [vmem:[%s3199_s3 + $0x28] sm:$0xff]   ;;  %v3025_v37 = vld [vmem:[%s3199_s3] sm:$0xff]  }
 0x12b   :  { %v2095_v44 = vpop.f32.mrf.mxu0  ;;  %3222 = vst [vmem:[#allocation17_spill] sm:$0xff] %v3020_v36  ;;  %3223 = vst [vmem:[#allocation18_spill] sm:$0xff] %v3025_v37 }
 0x12c   :  { %3213 = vst [vmem:[#allocation8_spill] sm:$0xff] %v2956_v42  ;;  %v2958_v45 = vpop.f32.mrf.mxu1  ;;  %v2094_v42 = vadd.f32 %v2093_v40, %v2092_v34 }
 0x12d   :  { %v2096_v18 = vpop.f32.mrf.mxu0 }
 0x12e   :  { %v2960_v46 = vpop.f32.mrf.mxu1  ;;  %v2097_v1 = vadd.f32 %v2096_v18, %v2095_v44 }
 0x12f   :  { %v2098_v48 = vpop.f32.mrf.mxu0 }
 0x130   :  { %v2962_v49 = vpop.f32.mrf.mxu1 }
 0x131   :  { %v2099_v50 = vpop.f32.mrf.mxu0 }
 0x132   :  { %v2964_v52 = vpop.f32.mrf.mxu1 }
 0x133   :  { %v2101_v27 = vpop.f32.mrf.mxu0 }
 0x134   :  { %v2966_v53 = vpop.f32.mrf.mxu1 }
 0x135   :  { %v2102_v54 = vpop.f32.mrf.mxu0 }
 0x136   :  { %v2968_v55 = vpop.f32.mrf.mxu1  ;;  %v2103_v56 = vadd.f32 %v2102_v54, %v2101_v27 }
 0x137   :  { %v2970_v57 = vpop.f32.mrf.mxu0 }
 0x138   :  { %v2972_v58 = vpop.f32.mrf.mxu1 }
 0x139   :  { %v2974_v60 = vpop.f32.mrf.mxu0 }
 0x13a   :  { %v2976_v61 = vpop.f32.mrf.mxu1 }
 0x13b   :  { %v2107_v62 = vpop.f32.mrf.mxu0 }
 0x13c   :  { %v2978_v63 = vpop.f32.mrf.mxu1 }
 0x13d   :  { %v2108_v0 = vpop.f32.mrf.mxu0 }
 0x13e   :  { %v2980_v2 = vpop.f32.mrf.mxu1 }
 0x13f   :  { %v2982_v4 = vpop.f32.mrf.mxu0 }
 0x140   :  { %v2984_v5 = vpop.f32.mrf.mxu1 }
 0x141   :  { %3214 = vst [vmem:[#allocation9_spill] sm:$0xff] %v2984_v5  ;;  %v2986_v6 = vpop.f32.mrf.mxu0  ;;  %v3063_v5 = vld [vmem:[%s3199_s3 + $0x30] sm:$0xff]  }
 0x142   :  { %v2988_v7 = vpop.f32.mrf.mxu1  ;;  %v1886_v54 = vunpack.c.h.bf16 %v3063_v5 }
 0x143   :  { %3215 = vst [vmem:[#allocation10_spill] sm:$0xff] %v2988_v7  ;;  %v2113_v8 = vpop.f32.mrf.mxu0  ;;  %v3042_v7 = vld [vmem:[%s3199_s3 + $0x18] sm:$0xff]  }
 0x144   :  { %v2990_v9 = vpop.f32.mrf.mxu1  ;;  %v1873_v36 = vunpack.c.l.bf16 %v3042_v7  ;;  %v1874_v18 = vunpack.c.h.bf16 %v3042_v7 }
 0x145   :  { %v2114_v12 = vpop.f32.mrf.mxu0 }
 0x146   :  { %v2992_v13 = vpop.f32.mrf.mxu1  ;;  %v2115_v44 = vadd.f32 %v2114_v12, %v2113_v8 }
 0x147   :  { %3216 = vst [vmem:[#allocation11_spill] sm:$0xff] %v2992_v13  ;;  %v2994_v14 = vpop.f32.mrf.mxu0  ;;  %v1294_v13 = vadd.f32 %v2103_v56, %v2916_v59  ;;  %v2112_v59 = vadd.f32 %v2986_v6, %v2982_v4  ;;  %v3111_v6 = vadd.f32 %v2976_v61, %v2972_v58 }
 0x148   :  { %v2996_v15 = vpop.f32.mrf.mxu1 }
 0x149   :  { %3217 = vst [vmem:[#allocation12_spill] sm:$0xff] %v2996_v15  ;;  %v2998_v16 = vpop.f32.mrf.mxu0  ;;  %v2109_v15 = vadd.f32 %v2108_v0, %v2107_v62  ;;  %v1286_v62 = vadd.f32 %v2097_v1, %v2910_v43  ;;  %v2164_v43 = vadd.f32 %v2964_v52, %v2962_v49  ;;  %v1310_v49 = vadd.f32 %v2115_v44, %v2928_v29 }
 0x14a   :  { %v3000_v17 = vpop.f32.mrf.mxu1  ;;  %v2118_v56 = vadd.f32 %v2998_v16, %v2994_v14  ;;  %v3228_v14 = vld [vmem:[#allocation2_spill] sm:$0xff] }
 0x14b   :  { %3218 = vst [vmem:[#allocation13_spill] sm:$0xff] %v3000_v17  ;;  %v2119_v19 = vpop.f32.mrf.mxu0  ;;  %v1281_v17 = vadd.f32 %v2094_v42, %v2907_v35 }
 0x14c   :  { %v3002_v22 = vpop.f32.mrf.mxu1 }
 0x14d   :  { %v2120_v23 = vpop.f32.mrf.mxu0 }
 0x14e   :  { %v3004_v24 = vpop.f32.mrf.mxu1  ;;  %v2121_v35 = vadd.f32 %v2120_v23, %v2119_v19  ;;  %v3227_v29 = vld [vmem:[#allocation11_spill] sm:$0xff] }
 0x14f   :  { %v3006_v25 = vpop.f32.mrf.mxu0  ;;  %v2179_v12 = vadd.f32 %v3227_v29, %v2990_v9 }
 0x150   :  { %v3008_v26 = vpop.f32.mrf.mxu1  ;;  %v3233_v44 = vld [vmem:[#allocation12_spill] sm:$0xff] }
 0x151   :  { %3219 = vst [vmem:[#allocation14_spill] sm:$0xff] %v3008_v26  ;;  %v2123_v28 = vpop.f32.mrf.mxu0  ;;  %v1878_v26 = vunpack.c.h.bf16 %v3032_v31  ;;  %v1407_v9 = vadd.f32 %v2179_v12, %v1310_v49 }
 0x152   :  { %v3010_v30 = vpop.f32.mrf.mxu1 }
 0x153   :  { %3220 = vst [vmem:[#allocation15_spill] sm:$0xff] %v3010_v30  ;;  %v2125_v32 = vpop.f32.mrf.mxu0 }
 0x154   :  { %v3027_v10 = vpop.f32.mrf.mxu1 }
 0x155   :  { %3224 = vst [vmem:[#allocation19_spill] sm:$0xff] %v3027_v10  ;;  %v2126_v21 = vpop.f32.mrf.mxu0  ;;  %v3047_v10 = vld [vmem:[%s3199_s3 + $0x38] sm:$0xff]  }
 0x156   :  { %v3034_v30 = vpop.f32.mrf.mxu1 }
 0x157   :  { %3225 = vst [vmem:[#allocation20_spill] sm:$0xff] %v3034_v30  ;;  %v3049_v34 = vpop.f32.mrf.mxu0  ;;  %v3058_v30 = vld [vmem:[%s3199_s3 + $0x10] sm:$0xff]  }
 0x158   :  { %3226 = vst [vmem:[#allocation21_spill] sm:$0xff] %v3049_v34  ;;  %v2100_v34 = vadd.f32 %v2099_v50, %v2098_v48  ;;  %v3065_v40 = vpop.f32.mrf.mxu1  ;;  %v2158_v50 = vadd.f32 %v2954_v41, %v2952_v39  ;;  %v1870_v27 = vunpack.c.h.bf16 %v3058_v30  ;;  %v2161_v48 = vadd.f32 %v2960_v46, %v2958_v45 }
 0x159   :  { %v2129_v37 = vpop.f32.mrf.mxu0  ;;  %v2106_v39 = vadd.f32 %v2974_v60, %v2970_v57  ;;  %v1302_v41 = vadd.f32 %v2109_v15, %v2922_v11  ;;  %v2173_v45 = vadd.f32 %v2980_v2, %v2978_v63  ;;  %v1318_v11 = vadd.f32 %v2121_v35, %v2934_v47 }
 0x15a   :  { %v3071_v38 = vpop.f32.mrf.mxu1  ;;  %v1289_v0 = vadd.f32 %v2100_v34, %v2913_v51  ;;  %v3089_v23 = vadd.f32 %v2158_v50, %v1281_v17  ;;  %v2167_v51 = vadd.f32 %v2968_v55, %v2966_v53  ;;  %v2124_v46 = vadd.f32 %v2123_v28, %v3006_v25  ;;  %v3230_v25 = vld [vmem:[#allocation4_spill] sm:$0xff]  ;;  %v3231_v34 = vld [vmem:[#allocation9_spill] sm:$0xff] }
 0x15b   :  { %v2131_v42 = vpop.f32.mrf.mxu0  ;;  %v2127_v57 = vadd.f32 %v2126_v21, %v2125_v32  ;;  %v1383_v53 = vadd.f32 %v2161_v48, %v1286_v62  ;;  %v3107_v4 = vadd.f32 %v2106_v39, %v2919_v3  ;;  %v2185_v47 = vadd.f32 %v3004_v24, %v3002_v22  ;;  %v3229_v3 = vld [vmem:[#allocation3_spill] sm:$0xff]  ;;  %v3232_v22 = vld [vmem:[#allocation10_spill] sm:$0xff]  ;;  %v3234_v48 = vld [vmem:[#allocation13_spill] sm:$0xff] }
 0x15c   :  { %v2195_v33 = vpop.f32.mrf.mxu1  ;;  %v1386_v55 = vadd.f32 %v2164_v43, %v1289_v0  ;;  %v3104_v8 = vadd.f32 %v2167_v51, %v1294_v13  ;;  %v1399_v21 = vadd.f32 %v2173_v45, %v1302_v41  ;;  %v1305_v2 = vadd.f32 %v2112_v59, %v2925_v20  ;;  %v3235_v62 = vld [vmem:[#allocation14_spill] sm:$0xff]  ;;  %v3236_v0 = vld [vmem:[#allocation15_spill] sm:$0xff] }
 0x15d   :  { %v2132_v19 = vpop.f32.mrf.mxu0  ;;  %v1313_v13 = vadd.f32 %v2118_v56, %v3228_v14  ;;  %v1321_v17 = vadd.f32 %v2124_v46, %v3229_v3  ;;  %v1326_v28 = vadd.f32 %v2127_v57, %v3230_v25  ;;  %v1415_v32 = vadd.f32 %v2185_v47, %v1318_v11  ;;  %v3237_v39 = vld [vmem:[#allocation19_spill] sm:$0xff]  ;;  %v3240_v45 = vld [vmem:[#allocation6_spill] sm:$0xff]  ;;  %v3241_v46 = vld [vmem:[#allocation8_spill] sm:$0xff] }
 0x15e   :  { %v2196_v1 = vpop.f32.mrf.mxu1  ;;  %v2133_v15 = vadd.f32 %v2132_v19, %v2131_v42  ;;  %v2176_v24 = vadd.f32 %v3232_v22, %v3231_v34  ;;  %v2182_v20 = vadd.f32 %v3234_v48, %v3233_v44  ;;  %v2188_v42 = vadd.f32 %v3236_v0, %v3235_v62  ;;  %v3238_v41 = vld [vmem:[#allocation20_spill] sm:$0xff]  ;;  %v3245_v44 = vld [vmem:[#allocation5_spill] sm:$0xff] }
 0x15f   :  { %v2134_v60 = vpop.f32.mrf.mxu0  ;;  %v2191_v19 = vadd.f32 %v3238_v41, %v3237_v39  ;;  %v3239_v43 = vld [vmem:[#allocation21_spill] sm:$0xff]  ;;  %v2194_v25 = vadd.f32 %v3071_v38, %v3065_v40 }
 0x160   :  { %v2198_v52 = vpop.f32.mrf.mxu1  ;;  %v2130_v51 = vadd.f32 %v2129_v37, %v3239_v43  ;;  %v1334_v11 = vadd.f32 %v2133_v15, %v3240_v45  ;;  %v1410_v47 = vadd.f32 %v2182_v20, %v1313_v13  ;;  %v1418_v14 = vadd.f32 %v2188_v42, %v1321_v17  ;;  %v3243_v37 = vld [vmem:[#allocation16_spill] sm:$0xff]  ;;  %v3246_v13 = vld [vmem:[#allocation17_spill] sm:$0xff] }
 0x161   :  { %v2135_v63 = vpop.f32.mrf.mxu0  ;;  %v1423_v3 = vadd.f32 %v2191_v19, %v1326_v28  ;;  %v3250_v62 = vunpack.c.h.bf16 %v3243_v37 }
 0x162   :  { %v2199_v16 = vpop.f32.mrf.mxu1  ;;  %v2136_v58 = vadd.f32 %v2135_v63, %v2134_v60  ;;  %v1402_v63 = vadd.f32 %v2176_v24, %v1305_v2  ;;  %v1329_v48 = vadd.f32 %v2130_v51, %v3245_v44  ;;  %v3247_v2 = vunpack.c.l.bf16 %v3246_v13 }
 0x163   :  { %v2235_v61 = vpop.f32.mrf.mxu0 }
 0x164   :  { %v1480_v50 = vadd.f32 %v2235_v61, %v1383_v53  ;;  %v2243_v35 = vpop.f32.mrf.mxu1  ;;  %v3242_v53 = vld [vmem:[#allocation7_spill] sm:$0xff]  ;;  %v2197_v61 = vadd.f32 %v2196_v1, %v2195_v33 }
 0x165   :  { %v1512_v59 = vadd.f32 %v2243_v35, %v1415_v32  ;;  %v1471_v56 = vpop.f32.mrf.mxu0  ;;  %v1337_v29 = vadd.f32 %v2136_v58, %v3242_v53  ;;  %v3244_v32 = vunpack.c.l.bf16 %v3243_v37  ;;  %v2200_v35 = vadd.f32 %v2199_v16, %v2198_v52 }
 0x166   :  { %v1472_v57 = vadd.f32 %v1471_v56, %v3241_v46  ;;  %v1503_v60 = vpop.f32.mrf.mxu1  ;;  %v1431_v1 = vadd.f32 %v2197_v61, %v1334_v11  ;;  %v3252_v52 = vunpack.c.h.bf16 %v3246_v13  ;;  %v1426_v13 = vadd.f32 %v2194_v25, %v1329_v48 }
 0x167   :  { %v1504_v49 = vadd.f32 %v1503_v60, %v1407_v9  ;;  %v2236_v12 = vpop.f32.mrf.mxu0  ;;  %v1568_v34 = vadd.f32 %v3244_v32, %v1480_v50  ;;  %v1576_v24 = vadd.f32 %v3247_v2, %v1512_v59  ;;  %v3248_v9 = vld [vmem:[#allocation18_spill] sm:$0xff]  ;;  %v1434_v39 = vadd.f32 %v2200_v35, %v1337_v29 }
 0x168   :  { %v1483_v22 = vadd.f32 %v2236_v12, %v1386_v55  ;;  %v2244_v15 = vpop.f32.mrf.mxu1  ;;  %v3249_v17 = vunpack.c.l.bf16 %v3248_v9  ;;  %v3251_v55 = vunpack.c.l.bf16 %v3032_v31  ;;  %v3253_v43 = vunpack.c.h.bf16 %v3248_v9 }
 0x169   :  { %v1515_v58 = vadd.f32 %v2244_v15, %v1418_v14  ;;  %v1474_v20 = vpop.f32.mrf.mxu0  ;;  %v1584_v41 = vmax.f32 %v1568_v34, 0.0  ;;  %v1592_v45 = vmax.f32 %v1576_v24, 0.0  ;;  %v3256_v24 = vunpack.c.l.bf16 %v3063_v5 }
 0x16a   :  { %v1566_v28 = vadd.f32 %v3249_v17, %v1472_v57  ;;  %v1569_v38 = vadd.f32 %v3250_v62, %v1483_v22  ;;  %v1475_v33 = vadd.f32 %v1474_v20, %v3089_v23  ;;  %v1506_v40 = vpop.f32.mrf.mxu1  ;;  %v1574_v50 = vadd.f32 %v3251_v55, %v1504_v49 }
 0x16b   :  { %v1577_v16 = vadd.f32 %v3252_v52, %v1515_v58  ;;  %v1507_v0 = vadd.f32 %v1506_v40, %v1410_v47  ;;  %v2239_v42 = vpop.f32.mrf.mxu0  ;;  %v1394_v22 = vadd.f32 %v3111_v6, %v3107_v4  ;;  %v3257_v25 = vunpack.c.h.bf16 %v3047_v10 }
 0x16c   :  { %v1585_v19 = vmax.f32 %v1569_v38, 0.0  ;;  %v1567_v51 = vadd.f32 %v3253_v43, %v1475_v33  ;;  %v1496_v59 = vadd.f32 %v2239_v42, %v1399_v21  ;;  %v2247_v56 = vpop.f32.mrf.mxu1  ;;  %v1582_v60 = vmax.f32 %v1566_v28, 0.0 }
 0x16d   :  { %v1593_v23 = vmax.f32 %v1577_v16, 0.0  ;;  %v1575_v11 = vadd.f32 %v1878_v26, %v1507_v0  ;;  %v1528_v46 = vadd.f32 %v2247_v56, %v1431_v1  ;;  %v1487_v57 = vpop.f32.mrf.mxu0  ;;  %v1590_v12 = vmax.f32 %v1574_v50, 0.0 }
 0x16e   :  { %v1899_v53 = vpack.c.bf16 %v1585_v19, %v1584_v41  ;;  %v1583_v49 = vmax.f32 %v1567_v51, 0.0  ;;  %v1488_v47 = vadd.f32 %v1487_v57, %v3104_v8  ;;  %v1519_v29 = vpop.f32.mrf.mxu1  ;;  %v1572_v31 = vadd.f32 %v1873_v36, %v1496_v59 }
 0x16f   :  { %v1919_v14 = vpack.c.bf16 %v1593_v23, %v1592_v45  ;;  %v1591_v61 = vmax.f32 %v1575_v11, 0.0  ;;  %v1520_v37 = vadd.f32 %v1519_v29, %v1423_v3  ;;  %v2240_v32 = vpop.f32.mrf.mxu0  ;;  %v3254_v3 = vunpack.c.l.bf16 %v3047_v10 }
 0x170   :  { %1938 = vst [vmem:[%s3200_s4 + $0x8] sm:$0xff] %v1899_v53   ;;  %v1894_v21 = vpack.c.bf16 %v1583_v49, %v1582_v60  ;;  %v1499_v26 = vadd.f32 %v2240_v32, %v1402_v63  ;;  %v2248_v34 = vpop.f32.mrf.mxu1  ;;  %v3255_v36 = vunpack.c.l.bf16 %v3058_v30  ;;  %v1588_v9 = vmax.f32 %v1572_v31, 0.0 }
 0x171   :  { %1942 = vst [vmem:[%s3200_s4 + $0x28] sm:$0xff] %v1919_v14   ;;  %v1914_v8 = vpack.c.bf16 %v1591_v61, %v1590_v12  ;;  %v1580_v15 = vadd.f32 %v3254_v3, %v1528_v46  ;;  %v1531_v44 = vadd.f32 %v2248_v34, %v1434_v39  ;;  %v1490_v35 = vpop.f32.mrf.mxu0  ;;  %v1578_v58 = vadd.f32 %v3256_v24, %v1520_v37 }
 0x172   :  { %1895 = vst [vmem:[%s3200_s4] sm:$0xff] %v1894_v21   ;;  %v1570_v63 = vadd.f32 %v3255_v36, %v1488_v47  ;;  %v1573_v4 = vadd.f32 %v1874_v18, %v1499_v26  ;;  %v1491_v6 = vadd.f32 %v1490_v35, %v1394_v22  ;;  %v1522_v2 = vpop.f32.mrf.mxu1 }
 0x173   :  { %1941 = vst [vmem:[%s3200_s4 + $0x20] sm:$0xff] %v1914_v8   ;;  %v1581_v48 = vadd.f32 %v3257_v25, %v1531_v44  ;;  %v1523_v20 = vadd.f32 %v1522_v2, %v1426_v13  ;;  %v1596_v7 = vmax.f32 %v1580_v15, 0.0  ;;  %v1594_v1 = vmax.f32 %v1578_v58, 0.0 }
 0x174   :  { %v1589_v17 = vmax.f32 %v1573_v4, 0.0  ;;  %v1571_v28 = vadd.f32 %v1870_v27, %v1491_v6  ;;  %v1586_v38 = vmax.f32 %v1570_v63, 0.0 }
 0x175   :  { %v1597_v18 = vmax.f32 %v1581_v48, 0.0  ;;  %v1579_v62 = vadd.f32 %v1886_v54, %v1523_v20 }
 0x176   :  { %v1909_v33 = vpack.c.bf16 %v1589_v17, %v1588_v9  ;;  %v1587_v40 = vmax.f32 %v1571_v28, 0.0 }
 0x177   :  { %v1929_v55 = vpack.c.bf16 %v1597_v18, %v1596_v7  ;;  %v1595_v50 = vmax.f32 %v1579_v62, 0.0 }
 0x178   :  { %1940 = vst [vmem:[%s3200_s4 + $0x18] sm:$0xff] %v1909_v33   ;;  %v1904_v10 = vpack.c.bf16 %v1587_v40, %v1586_v38 }
 0x179   :  { %1944 = vst [vmem:[%s3200_s4 + $0x38] sm:$0xff] %v1929_v55   ;;  %v1924_v30 = vpack.c.bf16 %v1595_v50, %v1594_v1 }
 0x17a   :  { %1939 = vst [vmem:[%s3200_s4 + $0x10] sm:$0xff] %v1904_v10  }
 0x17b   :  { %1943 = vst [vmem:[%s3200_s4 + $0x30] sm:$0xff] %v1924_v30  }

// kernel: jersey_number_classifier_forward.29
= control target key start
LH: loop header
LB: loop body
LE: loop exit
PB: predicated region body
PF: predicated region fallthrough
CT: control target
= control target key end

     0   :  { %s1632_s1 = inlined_call_operand.vmem [shape: bf16[1152,128], index: 1, kind: input, shape index: {}]   ;;  %s1633_s0 = inlined_call_operand.vmem [shape: bf16[32,1152], index: 0, kind: input, shape index: {}]   ;;  %s1634_s2 = inlined_call_operand.vmem [shape: f32[1,128], index: 2, kind: input, shape index: {}]   ;;  %s1635_s3 = inlined_call_operand.vmem [shape: bf16[32,128], index: 3, kind: output, shape index: {}]  }
   0x1   :  { %v1235_v0 = vld [vmem:[%s1632_s1 + $0x78] sm:$0xff]   ;;  %v1239_v4 = vld [vmem:[%s1632_s1 + $0x70] sm:$0xff]   ;;  %v1243_v8 = vld [vmem:[%s1632_s1 + $0x68] sm:$0xff]  }
   0x2   :  { %v1236_v1 = vld [vmem:[%s1632_s1 + $0x38] sm:$0xff]   ;;  %1093 = vmatprep.subr.bf16.mxu0 %v1235_v0  ;;  %v1240_v5 = vld [vmem:[%s1632_s1 + $0x30] sm:$0xff]   ;;  %v1244_v9 = vld [vmem:[%s1632_s1 + $0x28] sm:$0xff]  }
   0x3   :  { %v1237_v2 = vld [vmem:[%s1632_s1 + $0xf8] sm:$0xff]   ;;  %1094 = vmatpush3.bf16.msra.mxu0 %v1236_v1  ;;  %v1241_v6 = vld [vmem:[%s1632_s1 + $0xf0] sm:$0xff]   ;;  %v1245_v10 = vld [vmem:[%s1632_s1 + $0xe8] sm:$0xff]  }
   0x4   :  { %v1238_v3 = vld [vmem:[%s1632_s1 + $0xb8] sm:$0xff]   ;;  %1121 = vmatprep.subr.bf16.mxu1 %v1237_v2  ;;  %1095 = vmatprep.subr.bf16.mxu0 %v1239_v4  ;;  %v1242_v7 = vld [vmem:[%s1632_s1 + $0xb0] sm:$0xff]   ;;  %v1246_v11 = vld [vmem:[%s1632_s1 + $0xa8] sm:$0xff]  }
   0x5   :  { %1122 = vmatpush3.bf16.msra.mxu1 %v1238_v3  ;;  %v1247_v12 = vld [vmem:[%s1632_s1 + $0x60] sm:$0xff]   ;;  %v1251_v16 = vld [vmem:[%s1632_s1 + $0x58] sm:$0xff]   ;;  %v1255_v20 = vld [vmem:[%s1632_s1 + $0x50] sm:$0xff]  }
   0x6   :  { %1123 = vmatprep.subr.bf16.mxu1 %v1241_v6  ;;  %v1248_v13 = vld [vmem:[%s1632_s1 + $0x20] sm:$0xff]   ;;  %v1252_v17 = vld [vmem:[%s1632_s1 + $0x18] sm:$0xff]   ;;  %v1256_v21 = vld [vmem:[%s1632_s1 + $0x10] sm:$0xff]  }
   0x7   :  { %1096 = vmatpush3.bf16.msra.mxu0 %v1240_v5  ;;  %v1249_v14 = vld [vmem:[%s1632_s1 + $0xe0] sm:$0xff]   ;;  %v1253_v18 = vld [vmem:[%s1632_s1 + $0xd8] sm:$0xff]   ;;  %v1257_v22 = vld [vmem:[%s1632_s1 + $0xd0] sm:$0xff]  }
   0x8   :  { %1097 = vmatprep.subr.bf16.mxu0 %v1243_v8  ;;  %v1250_v15 = vld [vmem:[%s1632_s1 + $0xa0] sm:$0xff]   ;;  %v1254_v19 = vld [vmem:[%s1632_s1 + $0x98] sm:$0xff]   ;;  %v1258_v23 = vld [vmem:[%s1632_s1 + $0x90] sm:$0xff]  }
   0x9   :  { %1124 = vmatpush3.bf16.msra.mxu1 %v1242_v7  ;;  %v1259_v24 = vld [vmem:[%s1632_s1 + $0x48] sm:$0xff]   ;;  %v1263_v28 = vld [vmem:[%s1632_s1 + $0x40] sm:$0xff]   ;;  %v1270_v34 = vld [vmem:[%s1632_s1 + $0x178] sm:$0xff]  }
   0xa   :  { %1125 = vmatprep.subr.bf16.mxu1 %v1245_v10  ;;  %v1260_v25 = vld [vmem:[%s1632_s1 + $0x8] sm:$0xff]   ;;  %v1264_v29 = vld [vmem:[%s1632_s1] sm:$0xff]   ;;  %v1274_v37 = vld [vmem:[%s1632_s1 + $0x138] sm:$0xff]  }
   0xb   :  { %1098 = vmatpush3.bf16.msra.mxu0 %v1244_v9  ;;  %v1261_v26 = vld [vmem:[%s1632_s1 + $0xc8] sm:$0xff]   ;;  %v1265_v30 = vld [vmem:[%s1632_s1 + $0xc0] sm:$0xff]   ;;  %v1275_v38 = vld [vmem:[%s1632_s1 + $0x1f8] sm:$0xff]  }
   0xc   :  { %1099 = vmatprep.subr.bf16.mxu0 %v1247_v12  ;;  %v1262_v27 = vld [vmem:[%s1632_s1 + $0x88] sm:$0xff]   ;;  %v1266_v31 = vld [vmem:[%s1633_s0] ss:$36 sps:$4 sm:$0xff]   ;;  %v1276_v39 = vld [vmem:[%s1632_s1 + $0x1b8] sm:$0xff]  }
   0xd   :  { %1126 = vmatpush3.bf16.msra.mxu1 %v1246_v11  ;;  %v1268_v32 = vld [vmem:[%s1633_s0 + $0x4] ss:$36 sps:$4 sm:$0xff]   ;;  %v1273_v36 = vld [vmem:[%s1633_s0 + $0xc] ss:$36 sps:$4 sm:$0xff]   ;;  %v1289_v52 = vld [vmem:[%s1632_s1 + $0x158] sm:$0xff]  }
   0xe   :  { %1127 = vmatprep.subr.bf16.mxu1 %v1249_v14  ;;  %v1269_v33 = vld [vmem:[%s1632_s1 + $0x80] sm:$0xff]   ;;  %742 = vmatprep.mubr.bf16.mxu0 %v1268_v32  ;;  %v1271_v35 = vld [vmem:[%s1633_s0 + $0x8] ss:$36 sps:$4 sm:$0xff]   ;;  %v1277_v40 = vld [vmem:[%s1632_s1 + $0x170] sm:$0xff]  }
   0xf   :  { %1100 = vmatpush3.bf16.msra.mxu0 %v1248_v13  ;;  %791 = vmatprep.mubr.bf16.mxu1 %v1273_v36  ;;  %v1278_v41 = vld [vmem:[%s1632_s1 + $0x130] sm:$0xff]   ;;  %v1281_v44 = vld [vmem:[%s1632_s1 + $0x168] sm:$0xff]   ;;  %v1285_v48 = vld [vmem:[%s1632_s1 + $0x160] sm:$0xff]  }
  0x10   :  { %1101 = vmatprep.subr.bf16.mxu0 %v1251_v16  ;;  %v1279_v42 = vld [vmem:[%s1632_s1 + $0x1f0] sm:$0xff]   ;;  %v1282_v45 = vld [vmem:[%s1632_s1 + $0x128] sm:$0xff]   ;;  %v1286_v49 = vld [vmem:[%s1632_s1 + $0x120] sm:$0xff]  }
  0x11   :  { %1128 = vmatpush3.bf16.msra.mxu1 %v1250_v15  ;;  %v1280_v43 = vld [vmem:[%s1632_s1 + $0x1b0] sm:$0xff]   ;;  %v1283_v46 = vld [vmem:[%s1632_s1 + $0x1e8] sm:$0xff]   ;;  %v1287_v50 = vld [vmem:[%s1632_s1 + $0x1e0] sm:$0xff]  }
  0x12   :  { %1129 = vmatprep.subr.bf16.mxu1 %v1253_v18  ;;  %v1284_v47 = vld [vmem:[%s1632_s1 + $0x1a8] sm:$0xff]   ;;  %v1288_v51 = vld [vmem:[%s1632_s1 + $0x1a0] sm:$0xff]   ;;  %v1290_v53 = vld [vmem:[%s1632_s1 + $0x118] sm:$0xff]  }
  0x13   :  { %1102 = vmatpush3.bf16.msra.mxu0 %v1252_v17  ;;  %v1291_v54 = vld [vmem:[%s1633_s0 + $0x4c] ss:$36 sps:$4 sm:$0xff]   ;;  %v1293_v55 = vld [vmem:[%s1632_s1 + $0x1d8] sm:$0xff]   ;;  %v1307_v4 = vld [vmem:[%s1632_s1 + $0x140] sm:$0xff]  }
  0x14   :  { %1103 = vmatprep.subr.bf16.mxu0 %v1255_v20  ;;  %v1294_v56 = vld [vmem:[%s1633_s0 + $0x48] ss:$36 sps:$4 sm:$0xff]   ;;  %v1295_v57 = vld [vmem:[%s1632_s1 + $0x198] sm:$0xff]   ;;  %v1298_v59 = vld [vmem:[%s1632_s1 + $0x150] sm:$0xff]  }
  0x15   :  { %1130 = vmatpush3.bf16.msra.mxu1 %v1254_v19  ;;  %v1296_v58 = vld [vmem:[%s1633_s0 + $0x54] ss:$36 sps:$4 sm:$0xff]   ;;  %v1303_v0 = vld [vmem:[%s1632_s1 + $0x148] sm:$0xff]   ;;  %v1308_v5 = vld [vmem:[%s1632_s1 + $0x100] sm:$0xff]  }
  0x16   :  { %1131 = vmatprep.subr.bf16.mxu1 %v1257_v22  ;;  %v1299_v60 = vld [vmem:[%s1633_s0 + $0x50] ss:$36 sps:$4 sm:$0xff]   ;;  %v1304_v1 = vld [vmem:[%s1632_s1 + $0x108] sm:$0xff]   ;;  %v1309_v6 = vld [vmem:[%s1632_s1 + $0x1c0] sm:$0xff]  }
  0x17   :  { %1104 = vmatpush3.bf16.msra.mxu0 %v1256_v21  ;;  %v1300_v61 = vld [vmem:[%s1632_s1 + $0x110] sm:$0xff]   ;;  %v1305_v2 = vld [vmem:[%s1632_s1 + $0x1c8] sm:$0xff]   ;;  %v1313_v9 = vld [vmem:[%s1632_s1 + $0x180] sm:$0xff]  }
  0x18   :  { %1105 = vmatprep.subr.bf16.mxu0 %v1259_v24  ;;  %v1301_v62 = vld [vmem:[%s1632_s1 + $0x1d0] sm:$0xff]   ;;  %v1306_v3 = vld [vmem:[%s1632_s1 + $0x188] sm:$0xff]   ;;  %v1314_v10 = vld [vmem:[%s1632_s1 + $0x238] sm:$0xff]  }
  0x19   :  { %1132 = vmatpush3.bf16.msra.mxu1 %v1258_v23  ;;  %v1302_v63 = vld [vmem:[%s1632_s1 + $0x190] sm:$0xff]   ;;  %v1315_v11 = vld [vmem:[%s1633_s0 + $0x18] ss:$36 sps:$4 sm:$0xff]   ;;  %v1322_v16 = vld [vmem:[%s1632_s1 + $0x228] sm:$0xff]  }
  0x1a   :  { %1133 = vmatprep.subr.bf16.mxu1 %v1261_v26  ;;  %v1310_v7 = vld [vmem:[%s1633_s0 + $0x10] ss:$36 sps:$4 sm:$0xff]   ;;  %v1317_v12 = vld [vmem:[%s1633_s0 + $0x1c] ss:$36 sps:$4 sm:$0xff]   ;;  %v1323_v17 = vld [vmem:[%s1633_s0 + $0x64] ss:$36 sps:$4 sm:$0xff]  }
  0x1b   :  { %1106 = vmatpush3.bf16.msra.mxu0 %v1260_v25  ;;  %v1312_v8 = vld [vmem:[%s1633_s0 + $0x14] ss:$36 sps:$4 sm:$0xff]   ;;  %v1319_v14 = vld [vmem:[%s1633_s0 + $0x5c] ss:$36 sps:$4 sm:$0xff]   ;;  %v1329_v23 = vld [vmem:[%s1632_s1 + $0x208] sm:$0xff]  }
  0x1c   :  { %1107 = vmatprep.subr.bf16.mxu0 %v1263_v28  ;;  %v1318_v13 = vld [vmem:[%s1632_s1 + $0x230] sm:$0xff]   ;;  %v1321_v15 = vld [vmem:[%s1633_s0 + $0x58] ss:$36 sps:$4 sm:$0xff]   ;;  %v1325_v18 = vld [vmem:[%s1633_s0 + $0x60] ss:$36 sps:$4 sm:$0xff]  }
  0x1d   :  { %1134 = vmatpush3.bf16.msra.mxu1 %v1262_v27  ;;  %v1326_v19 = vld [vmem:[%s1632_s1 + $0x220] sm:$0xff]   ;;  %v1327_v20 = vld [vmem:[%s1632_s1 + $0x218] sm:$0xff]   ;;  %v1328_v22 = vld [vmem:[%s1632_s1 + $0x210] sm:$0xff]  }
  0x1e   :  { %1135 = vmatprep.subr.bf16.mxu1 %v1265_v30  ;;  %v1331_v21 = vld [vmem:[%s1633_s0 + $0x20] ss:$36 sps:$4 sm:$0xff]   ;;  %v1332_v25 = vld [vmem:[%s1633_s0 + $0x68] ss:$36 sps:$4 sm:$0xff]  }
  0x1f   :  { %1108 = vmatpush3.bf16.msra.mxu0 %v1264_v29  ;;  %v1330_v24 = vld [vmem:[%s1632_s1 + $0x200] sm:$0xff]  }
  0x20   :  { %1149 = vmatprep.subr.bf16.mxu0 %v1270_v34 }
  0x21   :  { %1136 = vmatpush3.bf16.msra.mxu1 %v1269_v33 }
  0x22   :  { %743 = vmatmul.mubr.bf16.vlgmr.msra.gmra.mxu0 %v1266_v31  ;;  %1177 = vmatprep.subr.bf16.mxu1 %v1275_v38 }
  0x23   :  { %1150 = vmatpush3.bf16.msra.mxu0 %v1274_v37  ;;  %750 = vmatprep.mubr.bf16.mxu0 %v1291_v54 }
  0x24   :  { %792 = vmatmul.mubr.bf16.vlgmr.msra.gmra.mxu1 %v1271_v35  ;;  %1151 = vmatprep.subr.bf16.mxu0 %v1277_v40 }
  0x25   :  { %1178 = vmatpush3.bf16.msra.mxu1 %v1276_v39  ;;  %799 = vmatprep.mubr.bf16.mxu1 %v1296_v58 }
  0x26   :  { %1179 = vmatprep.subr.bf16.mxu1 %v1279_v42 }
  0x27   :  { %1152 = vmatpush3.bf16.msra.mxu0 %v1278_v41 }
  0x28   :  { %1153 = vmatprep.subr.bf16.mxu0 %v1281_v44 }
  0x29   :  { %1180 = vmatpush3.bf16.msra.mxu1 %v1280_v43 }
  0x2a   :  { %1181 = vmatprep.subr.bf16.mxu1 %v1283_v46  ;;  %751 = vmatmul.mubr.bf16.gmra.mxu0 %v1294_v56 }
  0x2b   :  { %1154 = vmatpush3.bf16.msra.mxu0 %v1282_v45  ;;  %840 = vmatprep.mubr.bf16.mxu0 %v1312_v8 }
  0x2c   :  { %1155 = vmatprep.subr.bf16.mxu0 %v1285_v48  ;;  %800 = vmatmul.mubr.bf16.gmra.mxu1 %v1299_v60 }
  0x2d   :  { %1182 = vmatpush3.bf16.msra.mxu1 %v1284_v47  ;;  %889 = vmatprep.mubr.bf16.mxu1 %v1317_v12 }
  0x2e   :  { %1183 = vmatprep.subr.bf16.mxu1 %v1287_v50 }
  0x2f   :  { %1156 = vmatpush3.bf16.msra.mxu0 %v1286_v49 }
  0x30   :  { %1157 = vmatprep.subr.bf16.mxu0 %v1289_v52 }
  0x31   :  { %1184 = vmatpush3.bf16.msra.mxu1 %v1288_v51 }
  0x32   :  { %1185 = vmatprep.subr.bf16.mxu1 %v1293_v55 }
  0x33   :  { %1158 = vmatpush3.bf16.msra.mxu0 %v1290_v53 }
  0x34   :  { %1159 = vmatprep.subr.bf16.mxu0 %v1298_v59 }
  0x35   :  { %1186 = vmatpush3.bf16.msra.mxu1 %v1295_v57  ;;  %v983_v57 = vld [vmem:[%s1634_s2] ss:$0 sm:$0xff] }
  0x36   :  { %1187 = vmatprep.subr.bf16.mxu1 %v1301_v62 }
  0x37   :  { %1160 = vmatpush3.bf16.msra.mxu0 %v1300_v61 }
  0x38   :  { %1161 = vmatprep.subr.bf16.mxu0 %v1303_v0 }
  0x39   :  { %1188 = vmatpush3.bf16.msra.mxu1 %v1302_v63 }
  0x3a   :  { %1189 = vmatprep.subr.bf16.mxu1 %v1305_v2 }
  0x3b   :  { %1162 = vmatpush3.bf16.msra.mxu0 %v1304_v1 }
  0x3c   :  { %1163 = vmatprep.subr.bf16.mxu0 %v1307_v4 }
  0x3d   :  { %1190 = vmatpush3.bf16.msra.mxu1 %v1306_v3 }
  0x3e   :  { %1191 = vmatprep.subr.bf16.mxu1 %v1309_v6 }
  0x3f   :  { %1164 = vmatpush3.bf16.msra.mxu0 %v1308_v5 }
  0x40   :  { %1215 = vmatprep.subr.bf16.mxu0 %v1314_v10 }
  0x41   :  { %1192 = vmatpush3.bf16.msra.mxu1 %v1313_v9 }
  0x42   :  { %841 = vmatmul.mubr.bf16.vlgmr.msra.gmra.mxu0 %v1310_v7 }
  0x43   :  { %1216 = vmatpush3.bf16.msra.mxu0 %v1314_v10  ;;  %848 = vmatprep.mubr.bf16.mxu0 %v1319_v14 }
  0x44   :  { %890 = vmatmul.mubr.bf16.vlgmr.msra.gmra.mxu1 %v1315_v11  ;;  %1217 = vmatprep.subr.bf16.mxu0 %v1318_v13 }
  0x45   :  { %897 = vmatprep.mubr.bf16.mxu1 %v1323_v17 }
  0x47   :  { %1218 = vmatpush3.bf16.msra.mxu0 %v1318_v13 }
  0x48   :  { %1219 = vmatprep.subr.bf16.mxu0 %v1322_v16 }
  0x4a   :  { %849 = vmatmul.mubr.bf16.gmra.mxu0 %v1321_v15 }
  0x4b   :  { %1220 = vmatpush3.bf16.msra.mxu0 %v1322_v16  ;;  %1231 = vmatprep.mubr.bf16.mxu0 %v1331_v21 }
  0x4c   :  { %898 = vmatmul.mubr.bf16.gmra.mxu1 %v1325_v18  ;;  %1221 = vmatprep.subr.bf16.mxu0 %v1326_v19 }
  0x4f   :  { %1222 = vmatpush3.bf16.msra.mxu0 %v1326_v19 }
  0x50   :  { %1223 = vmatprep.subr.bf16.mxu0 %v1327_v20 }
  0x53   :  { %1224 = vmatpush3.bf16.msra.mxu0 %v1327_v20 }
  0x54   :  { %1225 = vmatprep.subr.bf16.mxu0 %v1328_v22 }
  0x57   :  { %1226 = vmatpush3.bf16.msra.mxu0 %v1328_v22 }
  0x58   :  { %1227 = vmatprep.subr.bf16.mxu0 %v1329_v23 }
  0x5b   :  { %1228 = vmatpush3.bf16.msra.mxu0 %v1329_v23 }
  0x5c   :  { %1229 = vmatprep.subr.bf16.mxu0 %v1330_v24 }
  0x5f   :  { %1230 = vmatpush3.bf16.msra.mxu0 %v1330_v24 }
  0x62   :  { %1232 = vmatmul.mubr.bf16.vlgmr.msra.gmra.mxu0 %v1332_v25 }
  0xe2   :  { %v1109_v26 = vpop.f32.mrf.mxu0 }
  0xe4   :  { %v1137_v27 = vpop.f32.mrf.mxu1  ;;  %v1110_v28 = vpop.f32.mrf.mxu0 }
  0xe5   :  { %v1111_v54 = vadd.f32 %v1110_v28, %v1109_v26 }
  0xe6   :  { %v1138_v29 = vpop.f32.mrf.mxu1  ;;  %v1112_v30 = vpop.f32.mrf.mxu0 }
  0xe7   :  { %v745_v62 = vadd.f32 %v1111_v54, %v983_v57  ;;  %v1139_v63 = vadd.f32 %v1138_v29, %v1137_v27 }
  0xe8   :  { %v1140_v31 = vpop.f32.mrf.mxu1  ;;  %v1113_v32 = vpop.f32.mrf.mxu0 }
  0xe9   :  { %v1114_v59 = vadd.f32 %v1113_v32, %v1112_v30  ;;  %v794_v10 = vadd.f32 %v1139_v63, %v745_v62 }
  0xea   :  { %v1115_v33 = vpop.f32.mrf.mxu0  ;;  %v1141_v34 = vpop.f32.mrf.mxu1 }
  0xeb   :  { %v748_v5 = vadd.f32 %v1114_v59, %v983_v57  ;;  %v1142_v6 = vadd.f32 %v1141_v34, %v1140_v31 }
  0xec   :  { %v1143_v35 = vpop.f32.mrf.mxu1  ;;  %v1116_v36 = vpop.f32.mrf.mxu0 }
  0xed   :  { %v1117_v53 = vadd.f32 %v1116_v36, %v1115_v33  ;;  %v797_v16 = vadd.f32 %v1142_v6, %v748_v5 }
  0xee   :  { %v1144_v37 = vpop.f32.mrf.mxu1  ;;  %v1118_v38 = vpop.f32.mrf.mxu0 }
  0xef   :  { %v753_v60 = vadd.f32 %v1117_v53, %v983_v57  ;;  %v1145_v61 = vadd.f32 %v1144_v37, %v1143_v35 }
  0xf0   :  { %v1146_v39 = vpop.f32.mrf.mxu1  ;;  %v1119_v40 = vpop.f32.mrf.mxu0 }
  0xf1   :  { %v1120_v58 = vadd.f32 %v1119_v40, %v1118_v38  ;;  %v802_v7 = vadd.f32 %v1145_v61, %v753_v60 }
  0xf2   :  { %v1147_v42 = vpop.f32.mrf.mxu1 }
  0xf3   :  { %v756_v2 = vadd.f32 %v1120_v58, %v983_v57  ;;  %v1148_v3 = vadd.f32 %v1147_v42, %v1146_v39 }
  0xf5   :  { %v805_v12 = vadd.f32 %v1148_v3, %v756_v2 }
 0x102   :  { %v1165_v41 = vpop.f32.mrf.mxu0 }
 0x104   :  { %v1166_v43 = vpop.f32.mrf.mxu0  ;;  %v1193_v44 = vpop.f32.mrf.mxu1 }
 0x105   :  { %v1167_v8 = vadd.f32 %v1166_v43, %v1165_v41 }
 0x106   :  { %v1168_v45 = vpop.f32.mrf.mxu0  ;;  %v1194_v46 = vpop.f32.mrf.mxu1 }
 0x107   :  { %v843_v17 = vadd.f32 %v1167_v8, %v794_v10  ;;  %v1195_v18 = vadd.f32 %v1194_v46, %v1193_v44 }
 0x108   :  { %v1169_v47 = vpop.f32.mrf.mxu0  ;;  %v1196_v48 = vpop.f32.mrf.mxu1 }
 0x109   :  { %v1170_v13 = vadd.f32 %v1169_v47, %v1168_v45  ;;  %v892_v27 = vadd.f32 %v1195_v18, %v843_v17 }
 0x10a   :  { %v1171_v49 = vpop.f32.mrf.mxu0  ;;  %v1197_v50 = vpop.f32.mrf.mxu1 }
 0x10b   :  { %v846_v22 = vadd.f32 %v1170_v13, %v797_v16  ;;  %v1198_v23 = vadd.f32 %v1197_v50, %v1196_v48 }
 0x10c   :  { %v1172_v51 = vpop.f32.mrf.mxu0  ;;  %v1199_v52 = vpop.f32.mrf.mxu1 }
 0x10d   :  { %v1173_v4 = vadd.f32 %v1172_v51, %v1171_v49  ;;  %v895_v32 = vadd.f32 %v1198_v23, %v846_v22 }
 0x10e   :  { %v1174_v55 = vpop.f32.mrf.mxu0  ;;  %v1200_v56 = vpop.f32.mrf.mxu1 }
 0x10f   :  { %v851_v14 = vadd.f32 %v1173_v4, %v802_v7  ;;  %v1201_v15 = vadd.f32 %v1200_v56, %v1199_v52 }
 0x110   :  { %v1175_v0 = vpop.f32.mrf.mxu0  ;;  %v1202_v1 = vpop.f32.mrf.mxu1 }
 0x111   :  { %v1176_v9 = vadd.f32 %v1175_v0, %v1174_v55  ;;  %v900_v24 = vadd.f32 %v1201_v15, %v851_v14 }
 0x112   :  { %v1203_v11 = vpop.f32.mrf.mxu1 }
 0x113   :  { %v854_v19 = vadd.f32 %v1176_v9, %v805_v12  ;;  %v1204_v20 = vadd.f32 %v1203_v11, %v1202_v1 }
 0x115   :  { %v903_v28 = vadd.f32 %v1204_v20, %v854_v19 }
 0x122   :  { %v1233_v21 = vpop.f32.mrf.mxu0 }
 0x123   :  { %v949_v26 = vadd.f32 %v1233_v21, %v900_v24 }
 0x124   :  { %v940_v25 = vpop.f32.mrf.mxu0 }
 0x125   :  { %v941_v30 = vadd.f32 %v940_v25, %v892_v27  ;;  %v957_v34 = vmax.f32 %v949_v26, 0.0 }
 0x126   :  { %v1234_v29 = vpop.f32.mrf.mxu0 }
 0x127   :  { %v952_v31 = vadd.f32 %v1234_v29, %v903_v28  ;;  %v955_v37 = vmax.f32 %v941_v30, 0.0 }
 0x128   :  { %v943_v33 = vpop.f32.mrf.mxu0 }
 0x129   :  { %v958_v35 = vmax.f32 %v952_v31, 0.0  ;;  %v944_v36 = vadd.f32 %v943_v33, %v895_v32 }
 0x12b   :  { %v1090_v38 = vpack.c.bf16 %v958_v35, %v957_v34  ;;  %v956_v39 = vmax.f32 %v944_v36, 0.0 }
 0x12d   :  { %1092 = vst [vmem:[%s1635_s3 + $0x8] sm:$0xff] %v1090_v38   ;;  %v1085_v40 = vpack.c.bf16 %v956_v39, %v955_v37 }
 0x12f   :  { %1086 = vst [vmem:[%s1635_s3] sm:$0xff] %v1085_v40  }

// kernel: jersey_number_classifier_forward.32
= control target key start
LH: loop header
LB: loop body
LE: loop exit
PB: predicated region body
PF: predicated region fallthrough
CT: control target
= control target key end

     0   :  { %s1667_s1 = inlined_call_operand.vmem [shape: bf16[1152,128], index: 1, kind: input, shape index: {}]   ;;  %s1668_s0 = inlined_call_operand.vmem [shape: bf16[32,1152], index: 0, kind: input, shape index: {}]   ;;  %s1669_s2 = inlined_call_operand.vmem [shape: f32[1,128], index: 2, kind: input, shape index: {}]   ;;  %s1670_s3 = inlined_call_operand.vmem [shape: bf16[32,128], index: 3, kind: input, shape index: {}]   ;;  %s1671_s4 = inlined_call_operand.vmem [shape: bf16[32,128], index: 4, kind: output, shape index: {}]  }
   0x1   :  { %v1259_v0 = vld [vmem:[%s1667_s1 + $0x78] sm:$0xff]   ;;  %v1263_v4 = vld [vmem:[%s1667_s1 + $0x70] sm:$0xff]   ;;  %v1267_v8 = vld [vmem:[%s1667_s1 + $0x68] sm:$0xff]  }
   0x2   :  { %v1260_v1 = vld [vmem:[%s1667_s1 + $0x38] sm:$0xff]   ;;  %1117 = vmatprep.subr.bf16.mxu0 %v1259_v0  ;;  %v1264_v5 = vld [vmem:[%s1667_s1 + $0x30] sm:$0xff]   ;;  %v1268_v9 = vld [vmem:[%s1667_s1 + $0x28] sm:$0xff]  }
   0x3   :  { %v1261_v2 = vld [vmem:[%s1667_s1 + $0xf8] sm:$0xff]   ;;  %1118 = vmatpush3.bf16.msra.mxu0 %v1260_v1  ;;  %v1265_v6 = vld [vmem:[%s1667_s1 + $0xf0] sm:$0xff]   ;;  %v1269_v10 = vld [vmem:[%s1667_s1 + $0xe8] sm:$0xff]  }
   0x4   :  { %v1262_v3 = vld [vmem:[%s1667_s1 + $0xb8] sm:$0xff]   ;;  %1145 = vmatprep.subr.bf16.mxu1 %v1261_v2  ;;  %1119 = vmatprep.subr.bf16.mxu0 %v1263_v4  ;;  %v1266_v7 = vld [vmem:[%s1667_s1 + $0xb0] sm:$0xff]   ;;  %v1270_v11 = vld [vmem:[%s1667_s1 + $0xa8] sm:$0xff]  }
   0x5   :  { %1146 = vmatpush3.bf16.msra.mxu1 %v1262_v3  ;;  %v1271_v12 = vld [vmem:[%s1667_s1 + $0x60] sm:$0xff]   ;;  %v1275_v16 = vld [vmem:[%s1667_s1 + $0x58] sm:$0xff]   ;;  %v1279_v20 = vld [vmem:[%s1667_s1 + $0x50] sm:$0xff]  }
   0x6   :  { %1147 = vmatprep.subr.bf16.mxu1 %v1265_v6  ;;  %v1272_v13 = vld [vmem:[%s1667_s1 + $0x20] sm:$0xff]   ;;  %v1276_v17 = vld [vmem:[%s1667_s1 + $0x18] sm:$0xff]   ;;  %v1280_v21 = vld [vmem:[%s1667_s1 + $0x10] sm:$0xff]  }
   0x7   :  { %1120 = vmatpush3.bf16.msra.mxu0 %v1264_v5  ;;  %v1273_v14 = vld [vmem:[%s1667_s1 + $0xe0] sm:$0xff]   ;;  %v1277_v18 = vld [vmem:[%s1667_s1 + $0xd8] sm:$0xff]   ;;  %v1281_v22 = vld [vmem:[%s1667_s1 + $0xd0] sm:$0xff]  }
   0x8   :  { %1121 = vmatprep.subr.bf16.mxu0 %v1267_v8  ;;  %v1274_v15 = vld [vmem:[%s1667_s1 + $0xa0] sm:$0xff]   ;;  %v1278_v19 = vld [vmem:[%s1667_s1 + $0x98] sm:$0xff]   ;;  %v1282_v23 = vld [vmem:[%s1667_s1 + $0x90] sm:$0xff]  }
   0x9   :  { %1148 = vmatpush3.bf16.msra.mxu1 %v1266_v7  ;;  %v1283_v24 = vld [vmem:[%s1667_s1 + $0x48] sm:$0xff]   ;;  %v1287_v28 = vld [vmem:[%s1667_s1 + $0x40] sm:$0xff]   ;;  %v1294_v34 = vld [vmem:[%s1667_s1 + $0x178] sm:$0xff]  }
   0xa   :  { %1149 = vmatprep.subr.bf16.mxu1 %v1269_v10  ;;  %v1284_v25 = vld [vmem:[%s1667_s1 + $0x8] sm:$0xff]   ;;  %v1288_v29 = vld [vmem:[%s1667_s1] sm:$0xff]   ;;  %v1298_v37 = vld [vmem:[%s1667_s1 + $0x138] sm:$0xff]  }
   0xb   :  { %1122 = vmatpush3.bf16.msra.mxu0 %v1268_v9  ;;  %v1285_v26 = vld [vmem:[%s1667_s1 + $0xc8] sm:$0xff]   ;;  %v1289_v30 = vld [vmem:[%s1667_s1 + $0xc0] sm:$0xff]   ;;  %v1299_v38 = vld [vmem:[%s1667_s1 + $0x1f8] sm:$0xff]  }
   0xc   :  { %1123 = vmatprep.subr.bf16.mxu0 %v1271_v12  ;;  %v1286_v27 = vld [vmem:[%s1667_s1 + $0x88] sm:$0xff]   ;;  %v1290_v31 = vld [vmem:[%s1668_s0] ss:$36 sps:$4 sm:$0xff]   ;;  %v1300_v39 = vld [vmem:[%s1667_s1 + $0x1b8] sm:$0xff]  }
   0xd   :  { %1150 = vmatpush3.bf16.msra.mxu1 %v1270_v11  ;;  %v1292_v32 = vld [vmem:[%s1668_s0 + $0x4] ss:$36 sps:$4 sm:$0xff]   ;;  %v1297_v36 = vld [vmem:[%s1668_s0 + $0xc] ss:$36 sps:$4 sm:$0xff]   ;;  %v1313_v52 = vld [vmem:[%s1667_s1 + $0x158] sm:$0xff]  }
   0xe   :  { %1151 = vmatprep.subr.bf16.mxu1 %v1273_v14  ;;  %v1293_v33 = vld [vmem:[%s1667_s1 + $0x80] sm:$0xff]   ;;  %745 = vmatprep.mubr.bf16.mxu0 %v1292_v32  ;;  %v1295_v35 = vld [vmem:[%s1668_s0 + $0x8] ss:$36 sps:$4 sm:$0xff]   ;;  %v1301_v40 = vld [vmem:[%s1667_s1 + $0x170] sm:$0xff]  }
   0xf   :  { %1124 = vmatpush3.bf16.msra.mxu0 %v1272_v13  ;;  %794 = vmatprep.mubr.bf16.mxu1 %v1297_v36  ;;  %v1302_v41 = vld [vmem:[%s1667_s1 + $0x130] sm:$0xff]   ;;  %v1305_v44 = vld [vmem:[%s1667_s1 + $0x168] sm:$0xff]   ;;  %v1309_v48 = vld [vmem:[%s1667_s1 + $0x160] sm:$0xff]  }
  0x10   :  { %1125 = vmatprep.subr.bf16.mxu0 %v1275_v16  ;;  %v1303_v42 = vld [vmem:[%s1667_s1 + $0x1f0] sm:$0xff]   ;;  %v1306_v45 = vld [vmem:[%s1667_s1 + $0x128] sm:$0xff]   ;;  %v1310_v49 = vld [vmem:[%s1667_s1 + $0x120] sm:$0xff]  }
  0x11   :  { %1152 = vmatpush3.bf16.msra.mxu1 %v1274_v15  ;;  %v1304_v43 = vld [vmem:[%s1667_s1 + $0x1b0] sm:$0xff]   ;;  %v1307_v46 = vld [vmem:[%s1667_s1 + $0x1e8] sm:$0xff]   ;;  %v1311_v50 = vld [vmem:[%s1667_s1 + $0x1e0] sm:$0xff]  }
  0x12   :  { %1153 = vmatprep.subr.bf16.mxu1 %v1277_v18  ;;  %v1308_v47 = vld [vmem:[%s1667_s1 + $0x1a8] sm:$0xff]   ;;  %v1312_v51 = vld [vmem:[%s1667_s1 + $0x1a0] sm:$0xff]   ;;  %v1314_v53 = vld [vmem:[%s1667_s1 + $0x118] sm:$0xff]  }
  0x13   :  { %1126 = vmatpush3.bf16.msra.mxu0 %v1276_v17  ;;  %v1315_v54 = vld [vmem:[%s1668_s0 + $0x4c] ss:$36 sps:$4 sm:$0xff]   ;;  %v1317_v55 = vld [vmem:[%s1667_s1 + $0x1d8] sm:$0xff]   ;;  %v1331_v4 = vld [vmem:[%s1667_s1 + $0x140] sm:$0xff]  }
  0x14   :  { %1127 = vmatprep.subr.bf16.mxu0 %v1279_v20  ;;  %v1318_v56 = vld [vmem:[%s1668_s0 + $0x48] ss:$36 sps:$4 sm:$0xff]   ;;  %v1319_v57 = vld [vmem:[%s1667_s1 + $0x198] sm:$0xff]   ;;  %v1322_v59 = vld [vmem:[%s1667_s1 + $0x150] sm:$0xff]  }
  0x15   :  { %1154 = vmatpush3.bf16.msra.mxu1 %v1278_v19  ;;  %v1320_v58 = vld [vmem:[%s1668_s0 + $0x54] ss:$36 sps:$4 sm:$0xff]   ;;  %v1327_v0 = vld [vmem:[%s1667_s1 + $0x148] sm:$0xff]   ;;  %v1332_v5 = vld [vmem:[%s1667_s1 + $0x100] sm:$0xff]  }
  0x16   :  { %1155 = vmatprep.subr.bf16.mxu1 %v1281_v22  ;;  %v1323_v60 = vld [vmem:[%s1668_s0 + $0x50] ss:$36 sps:$4 sm:$0xff]   ;;  %v1328_v1 = vld [vmem:[%s1667_s1 + $0x108] sm:$0xff]   ;;  %v1333_v6 = vld [vmem:[%s1667_s1 + $0x1c0] sm:$0xff]  }
  0x17   :  { %1128 = vmatpush3.bf16.msra.mxu0 %v1280_v21  ;;  %v1324_v61 = vld [vmem:[%s1667_s1 + $0x110] sm:$0xff]   ;;  %v1329_v2 = vld [vmem:[%s1667_s1 + $0x1c8] sm:$0xff]   ;;  %v1337_v9 = vld [vmem:[%s1667_s1 + $0x180] sm:$0xff]  }
  0x18   :  { %1129 = vmatprep.subr.bf16.mxu0 %v1283_v24  ;;  %v1325_v62 = vld [vmem:[%s1667_s1 + $0x1d0] sm:$0xff]   ;;  %v1330_v3 = vld [vmem:[%s1667_s1 + $0x188] sm:$0xff]   ;;  %v1338_v10 = vld [vmem:[%s1667_s1 + $0x238] sm:$0xff]  }
  0x19   :  { %1156 = vmatpush3.bf16.msra.mxu1 %v1282_v23  ;;  %v1326_v63 = vld [vmem:[%s1667_s1 + $0x190] sm:$0xff]   ;;  %v1339_v11 = vld [vmem:[%s1668_s0 + $0x18] ss:$36 sps:$4 sm:$0xff]   ;;  %v1346_v16 = vld [vmem:[%s1667_s1 + $0x228] sm:$0xff]  }
  0x1a   :  { %1157 = vmatprep.subr.bf16.mxu1 %v1285_v26  ;;  %v1334_v7 = vld [vmem:[%s1668_s0 + $0x10] ss:$36 sps:$4 sm:$0xff]   ;;  %v1341_v12 = vld [vmem:[%s1668_s0 + $0x1c] ss:$36 sps:$4 sm:$0xff]   ;;  %v1347_v17 = vld [vmem:[%s1668_s0 + $0x64] ss:$36 sps:$4 sm:$0xff]  }
  0x1b   :  { %1130 = vmatpush3.bf16.msra.mxu0 %v1284_v25  ;;  %v1336_v8 = vld [vmem:[%s1668_s0 + $0x14] ss:$36 sps:$4 sm:$0xff]   ;;  %v1343_v14 = vld [vmem:[%s1668_s0 + $0x5c] ss:$36 sps:$4 sm:$0xff]   ;;  %v1353_v23 = vld [vmem:[%s1667_s1 + $0x208] sm:$0xff]  }
  0x1c   :  { %1131 = vmatprep.subr.bf16.mxu0 %v1287_v28  ;;  %v1342_v13 = vld [vmem:[%s1667_s1 + $0x230] sm:$0xff]   ;;  %v1345_v15 = vld [vmem:[%s1668_s0 + $0x58] ss:$36 sps:$4 sm:$0xff]   ;;  %v1349_v18 = vld [vmem:[%s1668_s0 + $0x60] ss:$36 sps:$4 sm:$0xff]  }
  0x1d   :  { %1158 = vmatpush3.bf16.msra.mxu1 %v1286_v27  ;;  %v1350_v19 = vld [vmem:[%s1667_s1 + $0x220] sm:$0xff]   ;;  %v1351_v20 = vld [vmem:[%s1667_s1 + $0x218] sm:$0xff]   ;;  %v1352_v22 = vld [vmem:[%s1667_s1 + $0x210] sm:$0xff]  }
  0x1e   :  { %1159 = vmatprep.subr.bf16.mxu1 %v1289_v30  ;;  %v1355_v21 = vld [vmem:[%s1668_s0 + $0x20] ss:$36 sps:$4 sm:$0xff]   ;;  %v1356_v25 = vld [vmem:[%s1668_s0 + $0x68] ss:$36 sps:$4 sm:$0xff]  }
  0x1f   :  { %1132 = vmatpush3.bf16.msra.mxu0 %v1288_v29  ;;  %v1354_v24 = vld [vmem:[%s1667_s1 + $0x200] sm:$0xff]  }
  0x20   :  { %1173 = vmatprep.subr.bf16.mxu0 %v1294_v34 }
  0x21   :  { %1160 = vmatpush3.bf16.msra.mxu1 %v1293_v33 }
  0x22   :  { %746 = vmatmul.mubr.bf16.vlgmr.msra.gmra.mxu0 %v1290_v31  ;;  %1201 = vmatprep.subr.bf16.mxu1 %v1299_v38 }
  0x23   :  { %1174 = vmatpush3.bf16.msra.mxu0 %v1298_v37  ;;  %753 = vmatprep.mubr.bf16.mxu0 %v1315_v54 }
  0x24   :  { %795 = vmatmul.mubr.bf16.vlgmr.msra.gmra.mxu1 %v1295_v35  ;;  %1175 = vmatprep.subr.bf16.mxu0 %v1301_v40 }
  0x25   :  { %1202 = vmatpush3.bf16.msra.mxu1 %v1300_v39  ;;  %802 = vmatprep.mubr.bf16.mxu1 %v1320_v58 }
  0x26   :  { %1203 = vmatprep.subr.bf16.mxu1 %v1303_v42 }
  0x27   :  { %1176 = vmatpush3.bf16.msra.mxu0 %v1302_v41 }
  0x28   :  { %1177 = vmatprep.subr.bf16.mxu0 %v1305_v44 }
  0x29   :  { %1204 = vmatpush3.bf16.msra.mxu1 %v1304_v43 }
  0x2a   :  { %1205 = vmatprep.subr.bf16.mxu1 %v1307_v46  ;;  %754 = vmatmul.mubr.bf16.gmra.mxu0 %v1318_v56 }
  0x2b   :  { %1178 = vmatpush3.bf16.msra.mxu0 %v1306_v45  ;;  %843 = vmatprep.mubr.bf16.mxu0 %v1336_v8 }
  0x2c   :  { %1179 = vmatprep.subr.bf16.mxu0 %v1309_v48  ;;  %803 = vmatmul.mubr.bf16.gmra.mxu1 %v1323_v60 }
  0x2d   :  { %1206 = vmatpush3.bf16.msra.mxu1 %v1308_v47  ;;  %892 = vmatprep.mubr.bf16.mxu1 %v1341_v12 }
  0x2e   :  { %1207 = vmatprep.subr.bf16.mxu1 %v1311_v50 }
  0x2f   :  { %1180 = vmatpush3.bf16.msra.mxu0 %v1310_v49 }
  0x30   :  { %1181 = vmatprep.subr.bf16.mxu0 %v1313_v52 }
  0x31   :  { %1208 = vmatpush3.bf16.msra.mxu1 %v1312_v51 }
  0x32   :  { %1209 = vmatprep.subr.bf16.mxu1 %v1317_v55  ;;  %v998_v55 = vld [vmem:[%s1669_s2] ss:$0 sm:$0xff] }
  0x33   :  { %1182 = vmatpush3.bf16.msra.mxu0 %v1314_v53 }
  0x34   :  { %1183 = vmatprep.subr.bf16.mxu0 %v1322_v59 }
  0x35   :  { %1210 = vmatpush3.bf16.msra.mxu1 %v1319_v57 }
  0x36   :  { %1211 = vmatprep.subr.bf16.mxu1 %v1325_v62 }
  0x37   :  { %1184 = vmatpush3.bf16.msra.mxu0 %v1324_v61 }
  0x38   :  { %1185 = vmatprep.subr.bf16.mxu0 %v1327_v0 }
  0x39   :  { %1212 = vmatpush3.bf16.msra.mxu1 %v1326_v63 }
  0x3a   :  { %1213 = vmatprep.subr.bf16.mxu1 %v1329_v2 }
  0x3b   :  { %1186 = vmatpush3.bf16.msra.mxu0 %v1328_v1 }
  0x3c   :  { %1187 = vmatprep.subr.bf16.mxu0 %v1331_v4 }
  0x3d   :  { %1214 = vmatpush3.bf16.msra.mxu1 %v1330_v3 }
  0x3e   :  { %1215 = vmatprep.subr.bf16.mxu1 %v1333_v6 }
  0x3f   :  { %1188 = vmatpush3.bf16.msra.mxu0 %v1332_v5 }
  0x40   :  { %1239 = vmatprep.subr.bf16.mxu0 %v1338_v10 }
  0x41   :  { %1216 = vmatpush3.bf16.msra.mxu1 %v1337_v9 }
  0x42   :  { %844 = vmatmul.mubr.bf16.vlgmr.msra.gmra.mxu0 %v1334_v7 }
  0x43   :  { %1240 = vmatpush3.bf16.msra.mxu0 %v1338_v10  ;;  %851 = vmatprep.mubr.bf16.mxu0 %v1343_v14 }
  0x44   :  { %893 = vmatmul.mubr.bf16.vlgmr.msra.gmra.mxu1 %v1339_v11  ;;  %1241 = vmatprep.subr.bf16.mxu0 %v1342_v13 }
  0x45   :  { %900 = vmatprep.mubr.bf16.mxu1 %v1347_v17 }
  0x47   :  { %1242 = vmatpush3.bf16.msra.mxu0 %v1342_v13 }
  0x48   :  { %1243 = vmatprep.subr.bf16.mxu0 %v1346_v16 }
  0x4a   :  { %852 = vmatmul.mubr.bf16.gmra.mxu0 %v1345_v15 }
  0x4b   :  { %1244 = vmatpush3.bf16.msra.mxu0 %v1346_v16  ;;  %1255 = vmatprep.mubr.bf16.mxu0 %v1355_v21 }
  0x4c   :  { %901 = vmatmul.mubr.bf16.gmra.mxu1 %v1349_v18  ;;  %1245 = vmatprep.subr.bf16.mxu0 %v1350_v19  ;;  %v1115_v18 = vld [vmem:[%s1670_s3 + $0x8] sm:$0xff]  }
  0x4f   :  { %1246 = vmatpush3.bf16.msra.mxu0 %v1350_v19 }
  0x50   :  { %1247 = vmatprep.subr.bf16.mxu0 %v1351_v20 }
  0x53   :  { %1248 = vmatpush3.bf16.msra.mxu0 %v1351_v20 }
  0x54   :  { %1249 = vmatprep.subr.bf16.mxu0 %v1352_v22 }
  0x57   :  { %1250 = vmatpush3.bf16.msra.mxu0 %v1352_v22 }
  0x58   :  { %1251 = vmatprep.subr.bf16.mxu0 %v1353_v23 }
  0x5b   :  { %1252 = vmatpush3.bf16.msra.mxu0 %v1353_v23 }
  0x5c   :  { %1253 = vmatprep.subr.bf16.mxu0 %v1354_v24 }
  0x5f   :  { %1254 = vmatpush3.bf16.msra.mxu0 %v1354_v24  ;;  %v1103_v24 = vunpack.c.l.bf16 %v1115_v18 }
  0x62   :  { %1256 = vmatmul.mubr.bf16.vlgmr.msra.gmra.mxu0 %v1356_v25  ;;  %v1098_v25 = vld [vmem:[%s1670_s3] sm:$0xff]  }
  0xe2   :  { %v1133_v26 = vpop.f32.mrf.mxu0 }
  0xe4   :  { %v1161_v27 = vpop.f32.mrf.mxu1  ;;  %v1134_v28 = vpop.f32.mrf.mxu0 }
  0xe5   :  { %v1135_v54 = vadd.f32 %v1134_v28, %v1133_v26 }
  0xe6   :  { %v1162_v29 = vpop.f32.mrf.mxu1  ;;  %v1136_v30 = vpop.f32.mrf.mxu0 }
  0xe7   :  { %v748_v61 = vadd.f32 %v1135_v54, %v998_v55  ;;  %v1163_v62 = vadd.f32 %v1162_v29, %v1161_v27 }
  0xe8   :  { %v1164_v31 = vpop.f32.mrf.mxu1  ;;  %v1137_v32 = vpop.f32.mrf.mxu0 }
  0xe9   :  { %v1138_v63 = vadd.f32 %v1137_v32, %v1136_v30  ;;  %v797_v7 = vadd.f32 %v1163_v62, %v748_v61  ;;  %v1099_v32 = vunpack.c.l.bf16 %v1098_v25 }
  0xea   :  { %v1139_v33 = vpop.f32.mrf.mxu0  ;;  %v1165_v34 = vpop.f32.mrf.mxu1 }
  0xeb   :  { %v751_v8 = vadd.f32 %v1138_v63, %v998_v55  ;;  %v1166_v9 = vadd.f32 %v1165_v34, %v1164_v31  ;;  %v1104_v34 = vunpack.c.h.bf16 %v1115_v18 }
  0xec   :  { %v1167_v35 = vpop.f32.mrf.mxu1  ;;  %v1140_v36 = vpop.f32.mrf.mxu0 }
  0xed   :  { %v1141_v53 = vadd.f32 %v1140_v36, %v1139_v33  ;;  %v800_v19 = vadd.f32 %v1166_v9, %v751_v8 }
  0xee   :  { %v1168_v37 = vpop.f32.mrf.mxu1  ;;  %v1142_v38 = vpop.f32.mrf.mxu0 }
  0xef   :  { %v756_v58 = vadd.f32 %v1141_v53, %v998_v55  ;;  %v1169_v59 = vadd.f32 %v1168_v37, %v1167_v35 }
  0xf0   :  { %v1170_v39 = vpop.f32.mrf.mxu1  ;;  %v1143_v40 = vpop.f32.mrf.mxu0 }
  0xf1   :  { %v1144_v60 = vadd.f32 %v1143_v40, %v1142_v38  ;;  %v805_v3 = vadd.f32 %v1169_v59, %v756_v58 }
  0xf2   :  { %v1171_v42 = vpop.f32.mrf.mxu1 }
  0xf3   :  { %v759_v4 = vadd.f32 %v1144_v60, %v998_v55  ;;  %v1172_v5 = vadd.f32 %v1171_v42, %v1170_v39  ;;  %v1100_v39 = vunpack.c.h.bf16 %v1098_v25 }
  0xf5   :  { %v808_v14 = vadd.f32 %v1172_v5, %v759_v4 }
 0x102   :  { %v1189_v41 = vpop.f32.mrf.mxu0 }
 0x104   :  { %v1190_v43 = vpop.f32.mrf.mxu0  ;;  %v1217_v44 = vpop.f32.mrf.mxu1 }
 0x105   :  { %v1191_v6 = vadd.f32 %v1190_v43, %v1189_v41 }
 0x106   :  { %v1192_v45 = vpop.f32.mrf.mxu0  ;;  %v1218_v46 = vpop.f32.mrf.mxu1 }
 0x107   :  { %v846_v15 = vadd.f32 %v1191_v6, %v797_v7  ;;  %v1219_v16 = vadd.f32 %v1218_v46, %v1217_v44 }
 0x108   :  { %v1193_v47 = vpop.f32.mrf.mxu0  ;;  %v1220_v48 = vpop.f32.mrf.mxu1 }
 0x109   :  { %v1194_v17 = vadd.f32 %v1193_v47, %v1192_v45  ;;  %v895_v29 = vadd.f32 %v1219_v16, %v846_v15 }
 0x10a   :  { %v1195_v49 = vpop.f32.mrf.mxu0  ;;  %v1221_v50 = vpop.f32.mrf.mxu1 }
 0x10b   :  { %v849_v26 = vadd.f32 %v1194_v17, %v800_v19  ;;  %v1222_v27 = vadd.f32 %v1221_v50, %v1220_v48 }
 0x10c   :  { %v1196_v51 = vpop.f32.mrf.mxu0  ;;  %v1223_v52 = vpop.f32.mrf.mxu1 }
 0x10d   :  { %v1197_v0 = vadd.f32 %v1196_v51, %v1195_v49  ;;  %v898_v38 = vadd.f32 %v1222_v27, %v849_v26 }
 0x10e   :  { %v1198_v56 = vpop.f32.mrf.mxu0  ;;  %v1224_v57 = vpop.f32.mrf.mxu1 }
 0x10f   :  { %v854_v10 = vadd.f32 %v1197_v0, %v805_v3  ;;  %v1225_v11 = vadd.f32 %v1224_v57, %v1223_v52 }
 0x110   :  { %v1199_v1 = vpop.f32.mrf.mxu0  ;;  %v1226_v2 = vpop.f32.mrf.mxu1 }
 0x111   :  { %v1200_v12 = vadd.f32 %v1199_v1, %v1198_v56  ;;  %v903_v22 = vadd.f32 %v1225_v11, %v854_v10 }
 0x112   :  { %v1227_v13 = vpop.f32.mrf.mxu1 }
 0x113   :  { %v857_v20 = vadd.f32 %v1200_v12, %v808_v14  ;;  %v1228_v21 = vadd.f32 %v1227_v13, %v1226_v2 }
 0x115   :  { %v906_v33 = vadd.f32 %v1228_v21, %v857_v20 }
 0x122   :  { %v1257_v23 = vpop.f32.mrf.mxu0 }
 0x123   :  { %v952_v28 = vadd.f32 %v1257_v23, %v903_v22 }
 0x124   :  { %v943_v30 = vpop.f32.mrf.mxu0 }
 0x125   :  { %v944_v31 = vadd.f32 %v943_v30, %v895_v29  ;;  %v968_v36 = vadd.f32 %v1103_v24, %v952_v28 }
 0x126   :  { %v1258_v35 = vpop.f32.mrf.mxu0 }
 0x127   :  { %v955_v37 = vadd.f32 %v1258_v35, %v906_v33  ;;  %v966_v41 = vadd.f32 %v1099_v32, %v944_v31  ;;  %v972_v44 = vmax.f32 %v968_v36, 0.0 }
 0x128   :  { %v946_v40 = vpop.f32.mrf.mxu0 }
 0x129   :  { %v969_v42 = vadd.f32 %v1104_v34, %v955_v37  ;;  %v947_v43 = vadd.f32 %v946_v40, %v898_v38  ;;  %v970_v47 = vmax.f32 %v966_v41, 0.0 }
 0x12b   :  { %v973_v45 = vmax.f32 %v969_v42, 0.0  ;;  %v967_v46 = vadd.f32 %v1100_v39, %v947_v43 }
 0x12d   :  { %v1113_v48 = vpack.c.bf16 %v973_v45, %v972_v44  ;;  %v971_v49 = vmax.f32 %v967_v46, 0.0 }
 0x12f   :  { %1116 = vst [vmem:[%s1671_s4 + $0x8] sm:$0xff] %v1113_v48   ;;  %v1108_v50 = vpack.c.bf16 %v971_v49, %v970_v47 }
 0x131   :  { %1109 = vst [vmem:[%s1671_s4] sm:$0xff] %v1108_v50  }

// kernel: jersey_number_classifier_forward.30
= control target key start
LH: loop header
LB: loop body
LE: loop exit
PB: predicated region body
PF: predicated region fallthrough
CT: control target
= control target key end

     0   :  { %s1880_s1 = inlined_call_operand.vmem [shape: bf16[1152,128], index: 1, kind: input, shape index: {}]   ;;  %s1881_s0 = inlined_call_operand.vmem [shape: bf16[32,1152], index: 0, kind: input, shape index: {}]   ;;  %s1882_s4 = inlined_call_operand.vmem [shape: bf16[128,128], index: 4, kind: input, shape index: {}]   ;;  %s1883_s3 = inlined_call_operand.vmem [shape: bf16[32,128], index: 3, kind: input, shape index: {}]   ;;  %s1884_s2 = inlined_call_operand.vmem [shape: f32[1,128], index: 2, kind: input, shape index: {}]   ;;  %s1885_s5 = inlined_call_operand.vmem [shape: f32[1,128], index: 5, kind: input, shape index: {}]   ;;  %s1886_s6 = inlined_call_operand.vmem [shape: bf16[32,128], index: 6, kind: output, shape index: {}]  }
   0x1   :  { %v1425_v0 = vld [vmem:[%s1880_s1 + $0x78] sm:$0xff]   ;;  %v1429_v4 = vld [vmem:[%s1880_s1 + $0x70] sm:$0xff]   ;;  %v1433_v8 = vld [vmem:[%s1880_s1 + $0x68] sm:$0xff]  }
   0x2   :  { %v1426_v1 = vld [vmem:[%s1880_s1 + $0xf8] sm:$0xff]   ;;  %1253 = vmatprep.subr.bf16.mxu0 %v1425_v0  ;;  %v1430_v5 = vld [vmem:[%s1880_s1 + $0xf0] sm:$0xff]   ;;  %v1434_v9 = vld [vmem:[%s1880_s1 + $0xe8] sm:$0xff]  }
   0x3   :  { %v1427_v2 = vld [vmem:[%s1880_s1 + $0x38] sm:$0xff]   ;;  %1281 = vmatprep.subr.bf16.mxu1 %v1426_v1  ;;  %v1431_v6 = vld [vmem:[%s1880_s1 + $0x30] sm:$0xff]   ;;  %v1435_v10 = vld [vmem:[%s1880_s1 + $0x28] sm:$0xff]  }
   0x4   :  { %v1428_v3 = vld [vmem:[%s1880_s1 + $0xb8] sm:$0xff]   ;;  %1254 = vmatpush3.bf16.msra.mxu0 %v1427_v2  ;;  %v1432_v7 = vld [vmem:[%s1880_s1 + $0xb0] sm:$0xff]   ;;  %v1436_v11 = vld [vmem:[%s1880_s1 + $0xa8] sm:$0xff]  }
   0x5   :  { %1282 = vmatpush3.bf16.msra.mxu1 %v1428_v3  ;;  %1255 = vmatprep.subr.bf16.mxu0 %v1429_v4  ;;  %v1437_v12 = vld [vmem:[%s1880_s1 + $0x60] sm:$0xff]   ;;  %v1441_v16 = vld [vmem:[%s1880_s1 + $0x58] sm:$0xff]   ;;  %v1445_v20 = vld [vmem:[%s1880_s1 + $0x50] sm:$0xff]  }
   0x6   :  { %1283 = vmatprep.subr.bf16.mxu1 %v1430_v5  ;;  %v1438_v13 = vld [vmem:[%s1880_s1 + $0xe0] sm:$0xff]   ;;  %v1442_v17 = vld [vmem:[%s1880_s1 + $0xd8] sm:$0xff]   ;;  %v1446_v21 = vld [vmem:[%s1880_s1 + $0xd0] sm:$0xff]  }
   0x7   :  { %v1439_v14 = vld [vmem:[%s1880_s1 + $0x20] sm:$0xff]   ;;  %v1443_v18 = vld [vmem:[%s1880_s1 + $0x18] sm:$0xff]   ;;  %v1447_v22 = vld [vmem:[%s1880_s1 + $0x10] sm:$0xff]  }
   0x8   :  { %1256 = vmatpush3.bf16.msra.mxu0 %v1431_v6  ;;  %v1440_v15 = vld [vmem:[%s1880_s1 + $0xa0] sm:$0xff]   ;;  %v1444_v19 = vld [vmem:[%s1880_s1 + $0x98] sm:$0xff]   ;;  %v1448_v23 = vld [vmem:[%s1880_s1 + $0x90] sm:$0xff]  }
   0x9   :  { %1284 = vmatpush3.bf16.msra.mxu1 %v1432_v7  ;;  %1257 = vmatprep.subr.bf16.mxu0 %v1433_v8  ;;  %v1449_v24 = vld [vmem:[%s1880_s1 + $0x48] sm:$0xff]   ;;  %v1453_v28 = vld [vmem:[%s1880_s1 + $0x40] sm:$0xff]   ;;  %v1463_v36 = vld [vmem:[%s1880_s1 + $0x178] sm:$0xff]  }
   0xa   :  { %1285 = vmatprep.subr.bf16.mxu1 %v1434_v9  ;;  %v1450_v25 = vld [vmem:[%s1880_s1 + $0xc8] sm:$0xff]   ;;  %v1454_v29 = vld [vmem:[%s1880_s1 + $0xc0] sm:$0xff]   ;;  %v1464_v37 = vld [vmem:[%s1880_s1 + $0x1f8] sm:$0xff]  }
   0xb   :  { %v1451_v26 = vld [vmem:[%s1880_s1 + $0x8] sm:$0xff]   ;;  %v1455_v30 = vld [vmem:[%s1880_s1] sm:$0xff]   ;;  %v1465_v38 = vld [vmem:[%s1880_s1 + $0x138] sm:$0xff]  }
   0xc   :  { %1258 = vmatpush3.bf16.msra.mxu0 %v1435_v10  ;;  %v1452_v27 = vld [vmem:[%s1880_s1 + $0x88] sm:$0xff]   ;;  %v1456_v31 = vld [vmem:[%s1880_s1 + $0x80] sm:$0xff]   ;;  %v1466_v39 = vld [vmem:[%s1880_s1 + $0x1b8] sm:$0xff]  }
   0xd   :  { %1286 = vmatpush3.bf16.msra.mxu1 %v1436_v11  ;;  %1259 = vmatprep.subr.bf16.mxu0 %v1437_v12  ;;  %v1457_v32 = vld [vmem:[%s1881_s0] ss:$36 sps:$4 sm:$0xff]   ;;  %v1460_v34 = vld [vmem:[%s1881_s0 + $0x8] ss:$36 sps:$4 sm:$0xff]   ;;  %v1467_v40 = vld [vmem:[%s1880_s1 + $0x170] sm:$0xff]  }
   0xe   :  { %1287 = vmatprep.subr.bf16.mxu1 %v1438_v13  ;;  %v1459_v33 = vld [vmem:[%s1881_s0 + $0x4] ss:$36 sps:$4 sm:$0xff]   ;;  %v1462_v35 = vld [vmem:[%s1881_s0 + $0xc] ss:$36 sps:$4 sm:$0xff]   ;;  %v1481_v53 = vld [vmem:[%s1880_s1 + $0x158] sm:$0xff]  }
   0xf   :  { %751 = vmatprep.mubr.bf16.mxu0 %v1459_v33  ;;  %800 = vmatprep.mubr.bf16.mxu1 %v1462_v35  ;;  %v1468_v41 = vld [vmem:[%s1880_s1 + $0x1f0] sm:$0xff]   ;;  %v1471_v44 = vld [vmem:[%s1880_s1 + $0x168] sm:$0xff]   ;;  %v1475_v48 = vld [vmem:[%s1880_s1 + $0x160] sm:$0xff]  }
  0x10   :  { %1260 = vmatpush3.bf16.msra.mxu0 %v1439_v14  ;;  %v1469_v42 = vld [vmem:[%s1880_s1 + $0x130] sm:$0xff]   ;;  %v1472_v45 = vld [vmem:[%s1880_s1 + $0x1e8] sm:$0xff]   ;;  %v1476_v49 = vld [vmem:[%s1880_s1 + $0x1e0] sm:$0xff]  }
  0x11   :  { %1288 = vmatpush3.bf16.msra.mxu1 %v1440_v15  ;;  %1261 = vmatprep.subr.bf16.mxu0 %v1441_v16  ;;  %v1470_v43 = vld [vmem:[%s1880_s1 + $0x1b0] sm:$0xff]   ;;  %v1473_v46 = vld [vmem:[%s1880_s1 + $0x128] sm:$0xff]   ;;  %v1477_v50 = vld [vmem:[%s1880_s1 + $0x120] sm:$0xff]  }
  0x12   :  { %1289 = vmatprep.subr.bf16.mxu1 %v1442_v17  ;;  %v1474_v47 = vld [vmem:[%s1880_s1 + $0x1a8] sm:$0xff]   ;;  %v1478_v51 = vld [vmem:[%s1880_s1 + $0x1a0] sm:$0xff]   ;;  %v1482_v54 = vld [vmem:[%s1880_s1 + $0x1d8] sm:$0xff]  }
  0x13   :  { %v1479_v52 = vld [vmem:[%s1881_s0 + $0x4c] ss:$36 sps:$4 sm:$0xff]   ;;  %v1484_v56 = vld [vmem:[%s1880_s1 + $0x118] sm:$0xff]   ;;  %v1497_v4 = vld [vmem:[%s1880_s1 + $0x140] sm:$0xff]  }
  0x14   :  { %1262 = vmatpush3.bf16.msra.mxu0 %v1443_v18  ;;  %v1483_v55 = vld [vmem:[%s1881_s0 + $0x48] ss:$36 sps:$4 sm:$0xff]   ;;  %v1485_v57 = vld [vmem:[%s1880_s1 + $0x198] sm:$0xff]   ;;  %v1488_v59 = vld [vmem:[%s1881_s0 + $0x50] ss:$36 sps:$4 sm:$0xff]  }
  0x15   :  { %1290 = vmatpush3.bf16.msra.mxu1 %v1444_v19  ;;  %1263 = vmatprep.subr.bf16.mxu0 %v1445_v20  ;;  %v1486_v58 = vld [vmem:[%s1881_s0 + $0x54] ss:$36 sps:$4 sm:$0xff]   ;;  %v1493_v0 = vld [vmem:[%s1880_s1 + $0x148] sm:$0xff]   ;;  %v1498_v5 = vld [vmem:[%s1880_s1 + $0x1c0] sm:$0xff]  }
  0x16   :  { %1291 = vmatprep.subr.bf16.mxu1 %v1446_v21  ;;  %v1489_v60 = vld [vmem:[%s1880_s1 + $0x150] sm:$0xff]   ;;  %v1494_v1 = vld [vmem:[%s1880_s1 + $0x1c8] sm:$0xff]   ;;  %v1499_v6 = vld [vmem:[%s1880_s1 + $0x100] sm:$0xff]  }
  0x17   :  { %v1490_v61 = vld [vmem:[%s1880_s1 + $0x1d0] sm:$0xff]   ;;  %v1495_v2 = vld [vmem:[%s1880_s1 + $0x108] sm:$0xff]   ;;  %v1500_v7 = vld [vmem:[%s1880_s1 + $0x180] sm:$0xff]  }
  0x18   :  { %1264 = vmatpush3.bf16.msra.mxu0 %v1447_v22  ;;  %v1491_v62 = vld [vmem:[%s1880_s1 + $0x110] sm:$0xff]   ;;  %v1496_v3 = vld [vmem:[%s1880_s1 + $0x188] sm:$0xff]   ;;  %v1504_v10 = vld [vmem:[%s1881_s0 + $0x18] ss:$36 sps:$4 sm:$0xff]  }
  0x19   :  { %1292 = vmatpush3.bf16.msra.mxu1 %v1448_v23  ;;  %1265 = vmatprep.subr.bf16.mxu0 %v1449_v24  ;;  %v1492_v63 = vld [vmem:[%s1880_s1 + $0x190] sm:$0xff]   ;;  %v1506_v11 = vld [vmem:[%s1881_s0 + $0x1c] ss:$36 sps:$4 sm:$0xff]   ;;  %v1514_v18 = vld [vmem:[%s1880_s1 + $0x228] sm:$0xff]  }
  0x1a   :  { %1293 = vmatprep.subr.bf16.mxu1 %v1450_v25  ;;  %v1501_v8 = vld [vmem:[%s1881_s0 + $0x10] ss:$36 sps:$4 sm:$0xff]   ;;  %v1507_v12 = vld [vmem:[%s1880_s1 + $0x238] sm:$0xff]   ;;  %v1515_v19 = vld [vmem:[%s1882_s4 + $0x28] sm:$0xff]  }
  0x1b   :  { %v1503_v9 = vld [vmem:[%s1881_s0 + $0x14] ss:$36 sps:$4 sm:$0xff]   ;;  %v1511_v16 = vld [vmem:[%s1881_s0 + $0x5c] ss:$36 sps:$4 sm:$0xff]   ;;  %v1516_v20 = vld [vmem:[%s1881_s0 + $0x64] ss:$36 sps:$4 sm:$0xff]  }
  0x1c   :  { %1266 = vmatpush3.bf16.msra.mxu0 %v1451_v26  ;;  %v1508_v13 = vld [vmem:[%s1882_s4 + $0x38] sm:$0xff]   ;;  %v1509_v14 = vld [vmem:[%s1880_s1 + $0x230] sm:$0xff]   ;;  %v1518_v21 = vld [vmem:[%s1881_s0 + $0x60] ss:$36 sps:$4 sm:$0xff]  }
  0x1d   :  { %1294 = vmatpush3.bf16.msra.mxu1 %v1452_v27  ;;  %1267 = vmatprep.subr.bf16.mxu0 %v1453_v28  ;;  %v1510_v15 = vld [vmem:[%s1882_s4 + $0x30] sm:$0xff]   ;;  %v1513_v17 = vld [vmem:[%s1881_s0 + $0x58] ss:$36 sps:$4 sm:$0xff]   ;;  %v1519_v22 = vld [vmem:[%s1880_s1 + $0x220] sm:$0xff]  }
  0x1e   :  { %1295 = vmatprep.subr.bf16.mxu1 %v1454_v29  ;;  %v1520_v23 = vld [vmem:[%s1882_s4 + $0x20] sm:$0xff]   ;;  %v1521_v24 = vld [vmem:[%s1880_s1 + $0x218] sm:$0xff]   ;;  %v1523_v26 = vld [vmem:[%s1880_s1 + $0x210] sm:$0xff]  }
  0x1f   :  { %v1522_v25 = vld [vmem:[%s1882_s4 + $0x18] sm:$0xff]   ;;  %v1524_v27 = vld [vmem:[%s1882_s4 + $0x10] sm:$0xff]   ;;  %v1525_v28 = vld [vmem:[%s1880_s1 + $0x208] sm:$0xff]  }
  0x20   :  { %1268 = vmatpush3.bf16.msra.mxu0 %v1455_v30  ;;  %v1529_v29 = vld [vmem:[%s1881_s0 + $0x20] ss:$36 sps:$4 sm:$0xff]   ;;  %v1532_v35 = vld [vmem:[%s1883_s3 + $0x8] sm:$0xff]  }
  0x21   :  { %1296 = vmatpush3.bf16.msra.mxu1 %v1456_v31  ;;  %1309 = vmatprep.subr.bf16.mxu0 %v1463_v36  ;;  %v1530_v30 = vld [vmem:[%s1883_s3] sm:$0xff]   ;;  %v1526_v31 = vld [vmem:[%s1882_s4 + $0x8] sm:$0xff]  }
  0x22   :  { %1337 = vmatprep.subr.bf16.mxu1 %v1464_v37  ;;  %v1528_v33 = vld [vmem:[%s1882_s4] sm:$0xff]  }
  0x23   :  { %752 = vmatmul.mubr.bf16.vlgmr.msra.gmra.mxu0 %v1457_v32  ;;  %v1527_v32 = vld [vmem:[%s1880_s1 + $0x200] sm:$0xff]  }
  0x24   :  { %801 = vmatmul.mubr.bf16.vlgmr.msra.gmra.mxu1 %v1460_v34  ;;  %1310 = vmatpush3.bf16.msra.mxu0 %v1465_v38  ;;  %v1531_v34 = vld [vmem:[%s1881_s0 + $0x68] ss:$36 sps:$4 sm:$0xff]  }
  0x25   :  { %1338 = vmatpush3.bf16.msra.mxu1 %v1466_v39  ;;  %1311 = vmatprep.subr.bf16.mxu0 %v1467_v40 }
  0x26   :  { %1339 = vmatprep.subr.bf16.mxu1 %v1468_v41  ;;  %759 = vmatprep.mubr.bf16.mxu0 %v1479_v52 }
  0x27   :  { %808 = vmatprep.mubr.bf16.mxu1 %v1486_v58 }
  0x28   :  { %1312 = vmatpush3.bf16.msra.mxu0 %v1469_v42 }
  0x29   :  { %1340 = vmatpush3.bf16.msra.mxu1 %v1470_v43  ;;  %1313 = vmatprep.subr.bf16.mxu0 %v1471_v44 }
  0x2a   :  { %1341 = vmatprep.subr.bf16.mxu1 %v1472_v45 }
  0x2b   :  { %760 = vmatmul.mubr.bf16.gmra.mxu0 %v1483_v55 }
  0x2c   :  { %1314 = vmatpush3.bf16.msra.mxu0 %v1473_v46  ;;  %809 = vmatmul.mubr.bf16.gmra.mxu1 %v1488_v59 }
  0x2d   :  { %1342 = vmatpush3.bf16.msra.mxu1 %v1474_v47  ;;  %1315 = vmatprep.subr.bf16.mxu0 %v1475_v48 }
  0x2e   :  { %1343 = vmatprep.subr.bf16.mxu1 %v1476_v49  ;;  %849 = vmatprep.mubr.bf16.mxu0 %v1503_v9 }
  0x2f   :  { %898 = vmatprep.mubr.bf16.mxu1 %v1506_v11 }
  0x30   :  { %1316 = vmatpush3.bf16.msra.mxu0 %v1477_v50 }
  0x31   :  { %1344 = vmatpush3.bf16.msra.mxu1 %v1478_v51  ;;  %1317 = vmatprep.subr.bf16.mxu0 %v1481_v53 }
  0x32   :  { %1345 = vmatprep.subr.bf16.mxu1 %v1482_v54 }
  0x34   :  { %1318 = vmatpush3.bf16.msra.mxu0 %v1484_v56 }
  0x35   :  { %1346 = vmatpush3.bf16.msra.mxu1 %v1485_v57  ;;  %1319 = vmatprep.subr.bf16.mxu0 %v1489_v60 }
  0x36   :  { %1347 = vmatprep.subr.bf16.mxu1 %v1490_v61 }
  0x38   :  { %1320 = vmatpush3.bf16.msra.mxu0 %v1491_v62 }
  0x39   :  { %1348 = vmatpush3.bf16.msra.mxu1 %v1492_v63  ;;  %1321 = vmatprep.subr.bf16.mxu0 %v1493_v0 }
  0x3a   :  { %1349 = vmatprep.subr.bf16.mxu1 %v1494_v1 }
  0x3c   :  { %1322 = vmatpush3.bf16.msra.mxu0 %v1495_v2 }
  0x3d   :  { %1350 = vmatpush3.bf16.msra.mxu1 %v1496_v3  ;;  %1323 = vmatprep.subr.bf16.mxu0 %v1497_v4  ;;  %v1132_v3 = vld [vmem:[%s1884_s2] ss:$0 sm:$0xff] }
  0x3e   :  { %1351 = vmatprep.subr.bf16.mxu1 %v1498_v5 }
  0x40   :  { %1324 = vmatpush3.bf16.msra.mxu0 %v1499_v6 }
  0x41   :  { %1352 = vmatpush3.bf16.msra.mxu1 %v1500_v7  ;;  %1385 = vmatprep.subr.bf16.mxu0 %v1507_v12 }
  0x42   :  { %1405 = vmatprep.subr.bf16.mxu1 %v1508_v13 }
  0x43   :  { %850 = vmatmul.mubr.bf16.vlgmr.msra.gmra.mxu0 %v1501_v8 }
  0x44   :  { %899 = vmatmul.mubr.bf16.vlgmr.msra.gmra.mxu1 %v1504_v10  ;;  %1386 = vmatpush3.bf16.msra.mxu0 %v1507_v12 }
  0x45   :  { %1406 = vmatpush3.bf16.msra.mxu1 %v1508_v13  ;;  %1387 = vmatprep.subr.bf16.mxu0 %v1509_v14 }
  0x46   :  { %1407 = vmatprep.subr.bf16.mxu1 %v1510_v15  ;;  %857 = vmatprep.mubr.bf16.mxu0 %v1511_v16 }
  0x47   :  { %906 = vmatprep.mubr.bf16.mxu1 %v1516_v20 }
  0x48   :  { %1388 = vmatpush3.bf16.msra.mxu0 %v1509_v14 }
  0x49   :  { %1408 = vmatpush3.bf16.msra.mxu1 %v1510_v15  ;;  %1389 = vmatprep.subr.bf16.mxu0 %v1514_v18 }
  0x4a   :  { %1409 = vmatprep.subr.bf16.mxu1 %v1515_v19 }
  0x4b   :  { %858 = vmatmul.mubr.bf16.gmra.mxu0 %v1513_v17 }
  0x4c   :  { %1390 = vmatpush3.bf16.msra.mxu0 %v1514_v18  ;;  %907 = vmatmul.mubr.bf16.gmra.mxu1 %v1518_v21 }
  0x4d   :  { %1410 = vmatpush3.bf16.msra.mxu1 %v1515_v19  ;;  %1391 = vmatprep.subr.bf16.mxu0 %v1519_v22 }
  0x4e   :  { %1411 = vmatprep.subr.bf16.mxu1 %v1520_v23  ;;  %1401 = vmatprep.mubr.bf16.mxu0 %v1529_v29 }
  0x4f   :  { %1421 = vmatprep.mubr.bf16.mxu1 %v1530_v30  ;;  %v1223_v30 = vld [vmem:[%s1885_s5] ss:$0 sm:$0xff] }
  0x50   :  { %1392 = vmatpush3.bf16.msra.mxu0 %v1519_v22 }
  0x51   :  { %1412 = vmatpush3.bf16.msra.mxu1 %v1520_v23  ;;  %1393 = vmatprep.subr.bf16.mxu0 %v1521_v24 }
  0x52   :  { %1413 = vmatprep.subr.bf16.mxu1 %v1522_v25 }
  0x54   :  { %1394 = vmatpush3.bf16.msra.mxu0 %v1521_v24 }
  0x55   :  { %1414 = vmatpush3.bf16.msra.mxu1 %v1522_v25  ;;  %1395 = vmatprep.subr.bf16.mxu0 %v1523_v26 }
  0x56   :  { %1415 = vmatprep.subr.bf16.mxu1 %v1524_v27 }
  0x58   :  { %1396 = vmatpush3.bf16.msra.mxu0 %v1523_v26 }
  0x59   :  { %1416 = vmatpush3.bf16.msra.mxu1 %v1524_v27  ;;  %1397 = vmatprep.subr.bf16.mxu0 %v1525_v28 }
  0x5a   :  { %1417 = vmatprep.subr.bf16.mxu1 %v1526_v31 }
  0x5c   :  { %1398 = vmatpush3.bf16.msra.mxu0 %v1525_v28 }
  0x5d   :  { %1418 = vmatpush3.bf16.msra.mxu1 %v1526_v31  ;;  %1399 = vmatprep.subr.bf16.mxu0 %v1527_v32 }
  0x5e   :  { %1419 = vmatprep.subr.bf16.mxu1 %v1528_v33 }
  0x60   :  { %1400 = vmatpush3.bf16.msra.mxu0 %v1527_v32 }
  0x61   :  { %1420 = vmatpush3.bf16.msra.mxu1 %v1528_v33 }
  0x63   :  { %1402 = vmatmul.mubr.bf16.vlgmr.msra.gmra.mxu0 %v1531_v34 }
  0x64   :  { %1422 = vmatmul.mubr.bf16.vlgmr.msra.gmra.mxu1 %v1532_v35 }
  0xe3   :  { %v1269_v36 = vpop.f32.mrf.mxu0 }
  0xe4   :  { %v1297_v37 = vpop.f32.mrf.mxu1 }
  0xe5   :  { %v1270_v38 = vpop.f32.mrf.mxu0 }
  0xe6   :  { %v1298_v39 = vpop.f32.mrf.mxu1  ;;  %v1271_v0 = vadd.f32 %v1270_v38, %v1269_v36 }
  0xe7   :  { %v1272_v40 = vpop.f32.mrf.mxu0  ;;  %v1299_v14 = vadd.f32 %v1298_v39, %v1297_v37 }
  0xe8   :  { %v1300_v41 = vpop.f32.mrf.mxu1  ;;  %v754_v8 = vadd.f32 %v1271_v0, %v1132_v3 }
  0xe9   :  { %v1273_v42 = vpop.f32.mrf.mxu0 }
  0xea   :  { %v1301_v44 = vpop.f32.mrf.mxu1  ;;  %v1274_v7 = vadd.f32 %v1273_v42, %v1272_v40  ;;  %v803_v19 = vadd.f32 %v1299_v14, %v754_v8 }
  0xeb   :  { %v1275_v43 = vpop.f32.mrf.mxu0  ;;  %v1302_v23 = vadd.f32 %v1301_v44, %v1300_v41 }
  0xec   :  { %v1303_v45 = vpop.f32.mrf.mxu1  ;;  %v757_v17 = vadd.f32 %v1274_v7, %v1132_v3 }
  0xed   :  { %v1276_v46 = vpop.f32.mrf.mxu0 }
  0xee   :  { %v1304_v47 = vpop.f32.mrf.mxu1  ;;  %v1277_v63 = vadd.f32 %v1276_v46, %v1275_v43  ;;  %v806_v27 = vadd.f32 %v1302_v23, %v757_v17 }
  0xef   :  { %v1278_v48 = vpop.f32.mrf.mxu0  ;;  %v1305_v6 = vadd.f32 %v1304_v47, %v1303_v45 }
  0xf0   :  { %v1306_v49 = vpop.f32.mrf.mxu1  ;;  %v762_v5 = vadd.f32 %v1277_v63, %v1132_v3 }
  0xf1   :  { %v1279_v50 = vpop.f32.mrf.mxu0 }
  0xf2   :  { %v1307_v52 = vpop.f32.mrf.mxu1  ;;  %v1280_v4 = vadd.f32 %v1279_v50, %v1278_v48  ;;  %v811_v15 = vadd.f32 %v1305_v6, %v762_v5 }
  0xf3   :  { %v1308_v13 = vadd.f32 %v1307_v52, %v1306_v49 }
  0xf4   :  { %v765_v12 = vadd.f32 %v1280_v4, %v1132_v3 }
  0xf6   :  { %v814_v24 = vadd.f32 %v1308_v13, %v765_v12 }
 0x103   :  { %v1325_v51 = vpop.f32.mrf.mxu0 }
 0x104   :  { %v1353_v54 = vpop.f32.mrf.mxu1 }
 0x105   :  { %v1326_v53 = vpop.f32.mrf.mxu0 }
 0x106   :  { %v1354_v56 = vpop.f32.mrf.mxu1  ;;  %v1327_v16 = vadd.f32 %v1326_v53, %v1325_v51 }
 0x107   :  { %v1328_v55 = vpop.f32.mrf.mxu0  ;;  %v1355_v31 = vadd.f32 %v1354_v56, %v1353_v54 }
 0x108   :  { %v1356_v58 = vpop.f32.mrf.mxu1  ;;  %v852_v26 = vadd.f32 %v1327_v16, %v803_v19 }
 0x109   :  { %v1329_v57 = vpop.f32.mrf.mxu0 }
 0x10a   :  { %v1357_v60 = vpop.f32.mrf.mxu1  ;;  %v1330_v25 = vadd.f32 %v1329_v57, %v1328_v55  ;;  %v901_v38 = vadd.f32 %v1355_v31, %v852_v26 }
 0x10b   :  { %v1331_v59 = vpop.f32.mrf.mxu0  ;;  %v1358_v40 = vadd.f32 %v1357_v60, %v1356_v58 }
 0x10c   :  { %v1359_v62 = vpop.f32.mrf.mxu1  ;;  %v855_v34 = vadd.f32 %v1330_v25, %v806_v27 }
 0x10d   :  { %v1332_v61 = vpop.f32.mrf.mxu0 }
 0x10e   :  { %v1360_v2 = vpop.f32.mrf.mxu1  ;;  %v1333_v9 = vadd.f32 %v1332_v61, %v1331_v59  ;;  %v904_v48 = vadd.f32 %v1358_v40, %v855_v34 }
 0x10f   :  { %v1334_v1 = vpop.f32.mrf.mxu0  ;;  %v1361_v21 = vadd.f32 %v1360_v2, %v1359_v62 }
 0x110   :  { %v1362_v11 = vpop.f32.mrf.mxu1  ;;  %v860_v20 = vadd.f32 %v1333_v9, %v811_v15 }
 0x111   :  { %v1335_v10 = vpop.f32.mrf.mxu0 }
 0x112   :  { %v1336_v18 = vadd.f32 %v1335_v10, %v1334_v1  ;;  %v1363_v22 = vpop.f32.mrf.mxu1  ;;  %v909_v32 = vadd.f32 %v1361_v21, %v860_v20 }
 0x113   :  { %v1364_v29 = vadd.f32 %v1363_v22, %v1362_v11 }
 0x114   :  { %v863_v28 = vadd.f32 %v1336_v18, %v814_v24 }
 0x116   :  { %v912_v42 = vadd.f32 %v1364_v29, %v863_v28 }
 0x123   :  { %v1403_v33 = vpop.f32.mrf.mxu0 }
 0x124   :  { %v1423_v35 = vpop.f32.mrf.mxu1  ;;  %v958_v36 = vadd.f32 %v1403_v33, %v909_v32 }
 0x125   :  { %v1094_v37 = vadd.f32 %v1423_v35, %v1223_v30  ;;  %v949_v39 = vpop.f32.mrf.mxu0 }
 0x126   :  { %v1085_v41 = vpop.f32.mrf.mxu1  ;;  %v950_v43 = vadd.f32 %v949_v39, %v901_v38 }
 0x127   :  { %v1086_v44 = vadd.f32 %v1223_v30, %v1085_v41  ;;  %v1404_v45 = vpop.f32.mrf.mxu0  ;;  %v1102_v49 = vadd.f32 %v1094_v37, %v958_v36 }
 0x128   :  { %v961_v46 = vadd.f32 %v1404_v45, %v912_v42  ;;  %v1424_v47 = vpop.f32.mrf.mxu1 }
 0x129   :  { %v1097_v50 = vadd.f32 %v1424_v47, %v1223_v30  ;;  %v952_v51 = vpop.f32.mrf.mxu0  ;;  %v1100_v54 = vadd.f32 %v1086_v44, %v950_v43  ;;  %v1106_v57 = vmax.f32 %v1102_v49, 0.0 }
 0x12a   :  { %v953_v52 = vadd.f32 %v952_v51, %v904_v48  ;;  %v1088_v53 = vpop.f32.mrf.mxu1 }
 0x12b   :  { %v1103_v55 = vadd.f32 %v1097_v50, %v961_v46  ;;  %v1089_v56 = vadd.f32 %v1223_v30, %v1088_v53  ;;  %v1104_v58 = vmax.f32 %v1100_v54, 0.0 }
 0x12d   :  { %v1107_v59 = vmax.f32 %v1103_v55, 0.0  ;;  %v1101_v61 = vadd.f32 %v1089_v56, %v953_v52 }
 0x12f   :  { %v1250_v60 = vpack.c.bf16 %v1107_v59, %v1106_v57  ;;  %v1105_v62 = vmax.f32 %v1101_v61, 0.0 }
 0x131   :  { %1252 = vst [vmem:[%s1886_s6 + $0x8] sm:$0xff] %v1250_v60   ;;  %v1245_v63 = vpack.c.bf16 %v1105_v62, %v1104_v58 }
 0x133   :  { %1246 = vst [vmem:[%s1886_s6] sm:$0xff] %v1245_v63  }

// kernel: jersey_number_classifier_forward.33
= control target key start
LH: loop header
LB: loop body
LE: loop exit
PB: predicated region body
PF: predicated region fallthrough
CT: control target
= control target key end

     0   :  { %vm1125_vm0 = vmmov 0   ;;  %s1383_s1 = inlined_call_operand.vmem [shape: bf16[1152,128], index: 1, kind: input, shape index: {}]   ;;  %s1384_s0 = inlined_call_operand.vmem [shape: bf16[8,1152], index: 0, kind: input, shape index: {}]   ;;  %s1385_s2 = inlined_call_operand.vmem [shape: f32[1,128], index: 2, kind: input, shape index: {}]   ;;  %s1386_s3 = inlined_call_operand.vmem [shape: bf16[8,128], index: 3, kind: output, shape index: {}]  }
   0x1   :  { %v1043_v0 = vld [vmem:[%s1383_s1 + $0x78] sm:$0xff]   ;;  %v1047_v4 = vld [vmem:[%s1383_s1 + $0x70] sm:$0xff]   ;;  %v1051_v8 = vld [vmem:[%s1383_s1 + $0x68] sm:$0xff]  }
   0x2   :  { %v1044_v1 = vld [vmem:[%s1383_s1 + $0x38] sm:$0xff]   ;;  %924 = vmatprep.subr.bf16.mxu0 %v1043_v0  ;;  %v1048_v5 = vld [vmem:[%s1383_s1 + $0x30] sm:$0xff]   ;;  %v1052_v9 = vld [vmem:[%s1383_s1 + $0x28] sm:$0xff]  }
   0x3   :  { %v1045_v2 = vld [vmem:[%s1383_s1 + $0xf8] sm:$0xff]   ;;  %925 = vmatpush3.bf16.msra.mxu0 %v1044_v1  ;;  %v1049_v6 = vld [vmem:[%s1383_s1 + $0xf0] sm:$0xff]   ;;  %v1053_v10 = vld [vmem:[%s1383_s1 + $0xe8] sm:$0xff]  }
   0x4   :  { %v1046_v3 = vld [vmem:[%s1383_s1 + $0xb8] sm:$0xff]   ;;  %946 = vmatprep.subr.bf16.mxu1 %v1045_v2  ;;  %926 = vmatprep.subr.bf16.mxu0 %v1047_v4  ;;  %v1050_v7 = vld [vmem:[%s1383_s1 + $0xb0] sm:$0xff]   ;;  %v1054_v11 = vld [vmem:[%s1383_s1 + $0xa8] sm:$0xff]  }
   0x5   :  { %947 = vmatpush3.bf16.msra.mxu1 %v1046_v3  ;;  %v1055_v12 = vld [vmem:[%s1383_s1 + $0x60] sm:$0xff]   ;;  %v1059_v16 = vld [vmem:[%s1383_s1 + $0x58] sm:$0xff]   ;;  %v1063_v20 = vld [vmem:[%s1383_s1 + $0x50] sm:$0xff]  }
   0x6   :  { %948 = vmatprep.subr.bf16.mxu1 %v1049_v6  ;;  %v1056_v13 = vld [vmem:[%s1383_s1 + $0x20] sm:$0xff]   ;;  %v1060_v17 = vld [vmem:[%s1383_s1 + $0x18] sm:$0xff]   ;;  %v1064_v21 = vld [vmem:[%s1383_s1 + $0x10] sm:$0xff]  }
   0x7   :  { %927 = vmatpush3.bf16.msra.mxu0 %v1048_v5  ;;  %v1057_v14 = vld [vmem:[%s1383_s1 + $0xe0] sm:$0xff]   ;;  %v1061_v18 = vld [vmem:[%s1383_s1 + $0xd8] sm:$0xff]   ;;  %v1065_v22 = vld [vmem:[%s1383_s1 + $0xd0] sm:$0xff]  }
   0x8   :  { %928 = vmatprep.subr.bf16.mxu0 %v1051_v8  ;;  %v1058_v15 = vld [vmem:[%s1383_s1 + $0xa0] sm:$0xff]   ;;  %v1062_v19 = vld [vmem:[%s1383_s1 + $0x98] sm:$0xff]   ;;  %v1066_v23 = vld [vmem:[%s1383_s1 + $0x90] sm:$0xff]  }
   0x9   :  { %949 = vmatpush3.bf16.msra.mxu1 %v1050_v7  ;;  %v1067_v24 = vld [vmem:[%s1383_s1 + $0x48] sm:$0xff]   ;;  %v1071_v28 = vld [vmem:[%s1383_s1 + $0x40] sm:$0xff]   ;;  %v1077_v35 = vld [vmem:[%s1383_s1 + $0x178] sm:$0xff]  }
   0xa   :  { %950 = vmatprep.subr.bf16.mxu1 %v1053_v10  ;;  %v1068_v25 = vld [vmem:[%s1383_s1 + $0x8] sm:$0xff]   ;;  %v1072_v29 = vld [vmem:[%s1383_s1] sm:$0xff]   ;;  %v1080_v39 = vld [vmem:[%s1383_s1 + $0x138] sm:$0xff]  }
   0xb   :  { %929 = vmatpush3.bf16.msra.mxu0 %v1052_v9  ;;  %v1069_v26 = vld [vmem:[%s1383_s1 + $0xc8] sm:$0xff]   ;;  %v1073_v30 = vld [vmem:[%s1383_s1 + $0xc0] sm:$0xff]   ;;  %v1081_v40 = vld [vmem:[%s1383_s1 + $0x1f8] sm:$0xff]   ;;  %v1124_v9 = vmov 0.0  }
   0xc   :  { %930 = vmatprep.subr.bf16.mxu0 %v1055_v12  ;;  %v1070_v27 = vld [vmem:[%s1383_s1 + $0x88] sm:$0xff]   ;;  %v15_v31 = vld [vmem:[%s1384_s0] sm:$0xff]  ;;  %v1082_v41 = vld [vmem:[%s1383_s1 + $0x1b8] sm:$0xff]  }
   0xd   :  { %951 = vmatpush3.bf16.msra.mxu1 %v1054_v11  ;;  %v843_v32 = vcombine.low %v15_v31, %v15_v31  ;;  %v844_v33 = vcombine.high %v15_v31, %v15_v31  ;;  %v1076_v34 = vld [vmem:[%s1383_s1 + $0x80] sm:$0xff]   ;;  %v16_v36 = vld [vmem:[%s1384_s0 + $0x8] sm:$0xff]  ;;  %v1083_v42 = vld [vmem:[%s1383_s1 + $0x170] sm:$0xff]  }
   0xe   :  { %952 = vmatprep.subr.bf16.mxu1 %v1057_v14  ;;  %v845_v37 = vcombine.low %v16_v36, %v16_v36  ;;  %v846_v38 = vcombine.high %v16_v36, %v16_v36  ;;  %v1084_v43 = vld [vmem:[%s1383_s1 + $0x130] sm:$0xff]   ;;  %v1087_v46 = vld [vmem:[%s1383_s1 + $0x168] sm:$0xff]   ;;  %v1091_v50 = vld [vmem:[%s1383_s1 + $0x160] sm:$0xff]  }
   0xf   :  { %931 = vmatpush3.bf16.msra.mxu0 %v1056_v13  ;;  %667 = vmatprep.mubr.bf16.mxu0 %v844_v33  ;;  %v1085_v44 = vld [vmem:[%s1383_s1 + $0x1f0] sm:$0xff]   ;;  %v1088_v47 = vld [vmem:[%s1383_s1 + $0x128] sm:$0xff]   ;;  %v1092_v51 = vld [vmem:[%s1383_s1 + $0x120] sm:$0xff]  }
  0x10   :  { %932 = vmatprep.subr.bf16.mxu0 %v1059_v16  ;;  %707 = vmatprep.mubr.bf16.mxu1 %v846_v38  ;;  %v1086_v45 = vld [vmem:[%s1383_s1 + $0x1b0] sm:$0xff]   ;;  %v1089_v48 = vld [vmem:[%s1383_s1 + $0x1e8] sm:$0xff]   ;;  %v1093_v52 = vld [vmem:[%s1383_s1 + $0x1e0] sm:$0xff]  }
  0x11   :  { %953 = vmatpush3.bf16.msra.mxu1 %v1058_v15  ;;  %v1090_v49 = vld [vmem:[%s1383_s1 + $0x1a8] sm:$0xff]   ;;  %v1094_v53 = vld [vmem:[%s1383_s1 + $0x1a0] sm:$0xff]   ;;  %v1095_v54 = vld [vmem:[%s1383_s1 + $0x158] sm:$0xff]  }
  0x12   :  { %954 = vmatprep.subr.bf16.mxu1 %v1061_v18  ;;  %v1096_v55 = vld [vmem:[%s1383_s1 + $0x118] sm:$0xff]   ;;  %v1099_v58 = vld [vmem:[%s1383_s1 + $0x150] sm:$0xff]   ;;  %v1103_v62 = vld [vmem:[%s1383_s1 + $0x148] sm:$0xff]  }
  0x13   :  { %933 = vmatpush3.bf16.msra.mxu0 %v1060_v17  ;;  %v1097_v56 = vld [vmem:[%s1383_s1 + $0x1d8] sm:$0xff]   ;;  %v1100_v59 = vld [vmem:[%s1383_s1 + $0x110] sm:$0xff]   ;;  %v1104_v63 = vld [vmem:[%s1383_s1 + $0x108] sm:$0xff]  }
  0x14   :  { %934 = vmatprep.subr.bf16.mxu0 %v1063_v20  ;;  %v1098_v57 = vld [vmem:[%s1383_s1 + $0x198] sm:$0xff]   ;;  %v1101_v60 = vld [vmem:[%s1383_s1 + $0x1d0] sm:$0xff]   ;;  %v1105_v0 = vld [vmem:[%s1383_s1 + $0x1c8] sm:$0xff]  }
  0x15   :  { %955 = vmatpush3.bf16.msra.mxu1 %v1062_v19  ;;  %v1102_v61 = vld [vmem:[%s1383_s1 + $0x190] sm:$0xff]   ;;  %v1106_v1 = vld [vmem:[%s1383_s1 + $0x188] sm:$0xff]   ;;  %v1107_v2 = vld [vmem:[%s1383_s1 + $0x140] sm:$0xff]  }
  0x16   :  { %956 = vmatprep.subr.bf16.mxu1 %v1065_v22  ;;  %v1108_v3 = vld [vmem:[%s1383_s1 + $0x100] sm:$0xff]   ;;  %v17_v5 = vld [vmem:[%s1384_s0 + $0x10] sm:$0xff]  ;;  %v18_v10 = vld [vmem:[%s1384_s0 + $0x18] sm:$0xff] }
  0x17   :  { %935 = vmatpush3.bf16.msra.mxu0 %v1064_v21  ;;  %v1109_v4 = vld [vmem:[%s1383_s1 + $0x1c0] sm:$0xff]   ;;  %v847_v6 = vcombine.low %v17_v5, %v17_v5  ;;  %v848_v7 = vcombine.high %v17_v5, %v17_v5  ;;  %v849_v11 = vcombine.low %v18_v10, %v18_v10  ;;  %v850_v12 = vcombine.high %v18_v10, %v18_v10  ;;  %v1115_v13 = vld [vmem:[%s1383_s1 + $0x238] sm:$0xff]   ;;  %v1116_v14 = vld [vmem:[%s1383_s1 + $0x230] sm:$0xff]  }
  0x18   :  { %936 = vmatprep.subr.bf16.mxu0 %v1067_v24  ;;  %v1112_v8 = vld [vmem:[%s1383_s1 + $0x180] sm:$0xff]   ;;  %v1117_v15 = vld [vmem:[%s1383_s1 + $0x228] sm:$0xff]   ;;  %v1119_v17 = vld [vmem:[%s1383_s1 + $0x218] sm:$0xff]  }
  0x19   :  { %957 = vmatpush3.bf16.msra.mxu1 %v1066_v23  ;;  %v1118_v16 = vld [vmem:[%s1383_s1 + $0x220] sm:$0xff]   ;;  %v1120_v18 = vld [vmem:[%s1383_s1 + $0x210] sm:$0xff]   ;;  %v1121_v19 = vld [vmem:[%s1383_s1 + $0x208] sm:$0xff]  }
  0x1a   :  { %958 = vmatprep.subr.bf16.mxu1 %v1069_v26  ;;  %v1122_v20 = vld [vmem:[%s1383_s1 + $0x200] sm:$0xff]  }
  0x1b   :  { %937 = vmatpush3.bf16.msra.mxu0 %v1068_v25  ;;  %v1123_v21 = vld [vmem:[%s1384_s0 + $0x20] ss:$0 sps:$4 sm:$0xff]  }
  0x1c   :  { %938 = vmatprep.subr.bf16.mxu0 %v1071_v28 }
  0x1d   :  { %959 = vmatpush3.bf16.msra.mxu1 %v1070_v27 }
  0x1e   :  { %960 = vmatprep.subr.bf16.mxu1 %v1073_v30 }
  0x1f   :  { %939 = vmatpush3.bf16.msra.mxu0 %v1072_v29 }
  0x20   :  { %968 = vmatprep.subr.bf16.mxu0 %v1077_v35 }
  0x21   :  { %961 = vmatpush3.bf16.msra.mxu1 %v1076_v34 }
  0x22   :  { %668 = vmatmul.mubr.bf16.vlgmr.msra.gmra.mxu0 %v843_v32  ;;  %990 = vmatprep.subr.bf16.mxu1 %v1081_v40 }
  0x23   :  { %969 = vmatpush3.bf16.msra.mxu0 %v1080_v39  ;;  %747 = vmatprep.mubr.bf16.mxu0 %v848_v7  ;;  %v842_v39 = vld [vmem:[%s1385_s2] ss:$0 sm:$0xff] }
  0x24   :  { %708 = vmatmul.mubr.bf16.vlgmr.msra.gmra.mxu1 %v845_v37  ;;  %970 = vmatprep.subr.bf16.mxu0 %v1083_v42 }
  0x25   :  { %991 = vmatpush3.bf16.msra.mxu1 %v1082_v41  ;;  %787 = vmatprep.mubr.bf16.mxu1 %v850_v12 }
  0x26   :  { %992 = vmatprep.subr.bf16.mxu1 %v1085_v44 }
  0x27   :  { %971 = vmatpush3.bf16.msra.mxu0 %v1084_v43 }
  0x28   :  { %972 = vmatprep.subr.bf16.mxu0 %v1087_v46 }
  0x29   :  { %993 = vmatpush3.bf16.msra.mxu1 %v1086_v45 }
  0x2a   :  { %994 = vmatprep.subr.bf16.mxu1 %v1089_v48 }
  0x2b   :  { %973 = vmatpush3.bf16.msra.mxu0 %v1088_v47 }
  0x2c   :  { %974 = vmatprep.subr.bf16.mxu0 %v1091_v50 }
  0x2d   :  { %995 = vmatpush3.bf16.msra.mxu1 %v1090_v49 }
  0x2e   :  { %996 = vmatprep.subr.bf16.mxu1 %v1093_v52 }
  0x2f   :  { %975 = vmatpush3.bf16.msra.mxu0 %v1092_v51 }
  0x30   :  { %976 = vmatprep.subr.bf16.mxu0 %v1095_v54 }
  0x31   :  { %997 = vmatpush3.bf16.msra.mxu1 %v1094_v53 }
  0x32   :  { %998 = vmatprep.subr.bf16.mxu1 %v1097_v56 }
  0x33   :  { %977 = vmatpush3.bf16.msra.mxu0 %v1096_v55 }
  0x34   :  { %978 = vmatprep.subr.bf16.mxu0 %v1099_v58 }
  0x35   :  { %999 = vmatpush3.bf16.msra.mxu1 %v1098_v57 }
  0x36   :  { %1000 = vmatprep.subr.bf16.mxu1 %v1101_v60 }
  0x37   :  { %979 = vmatpush3.bf16.msra.mxu0 %v1100_v59 }
  0x38   :  { %980 = vmatprep.subr.bf16.mxu0 %v1103_v62 }
  0x39   :  { %1001 = vmatpush3.bf16.msra.mxu1 %v1102_v61 }
  0x3a   :  { %1002 = vmatprep.subr.bf16.mxu1 %v1105_v0 }
  0x3b   :  { %981 = vmatpush3.bf16.msra.mxu0 %v1104_v63 }
  0x3c   :  { %982 = vmatprep.subr.bf16.mxu0 %v1107_v2 }
  0x3d   :  { %1003 = vmatpush3.bf16.msra.mxu1 %v1106_v1 }
  0x3e   :  { %1004 = vmatprep.subr.bf16.mxu1 %v1109_v4 }
  0x3f   :  { %983 = vmatpush3.bf16.msra.mxu0 %v1108_v3 }
  0x40   :  { %1021 = vmatprep.subr.bf16.mxu0 %v1124_v9 }
  0x41   :  { %1005 = vmatpush3.bf16.msra.mxu1 %v1112_v8 }
  0x42   :  { %748 = vmatmul.mubr.bf16.vlgmr.msra.gmra.mxu0 %v847_v6 }
  0x43   :  { %1022 = vmatpush3.bf16.msra.mxu0 %v1115_v13  ;;  %1037 = vmatprep.mubr.msk.bf16.mxu0 %vm1125_vm0, %v1124_v9 }
  0x44   :  { %788 = vmatmul.mubr.bf16.vlgmr.msra.gmra.mxu1 %v849_v11  ;;  %1023 = vmatprep.subr.bf16.mxu0 %v1124_v9 }
  0x47   :  { %1024 = vmatpush3.bf16.msra.mxu0 %v1116_v14 }
  0x48   :  { %1025 = vmatprep.subr.bf16.mxu0 %v1124_v9 }
  0x4b   :  { %1026 = vmatpush3.bf16.msra.mxu0 %v1117_v15 }
  0x4c   :  { %1027 = vmatprep.subr.bf16.mxu0 %v1124_v9 }
  0x4f   :  { %1028 = vmatpush3.bf16.msra.mxu0 %v1118_v16 }
  0x50   :  { %1029 = vmatprep.subr.bf16.mxu0 %v1124_v9 }
  0x53   :  { %1030 = vmatpush3.bf16.msra.mxu0 %v1119_v17 }
  0x54   :  { %1031 = vmatprep.subr.bf16.mxu0 %v1124_v9 }
  0x57   :  { %1032 = vmatpush3.bf16.msra.mxu0 %v1120_v18 }
  0x58   :  { %1033 = vmatprep.subr.bf16.mxu0 %v1124_v9 }
  0x5b   :  { %1034 = vmatpush3.bf16.msra.mxu0 %v1121_v19 }
  0x5c   :  { %1035 = vmatprep.subr.bf16.mxu0 %v1124_v9 }
  0x5f   :  { %1036 = vmatpush3.bf16.msra.mxu0 %v1122_v20 }
  0x62   :  { %1038 = vmatmul.mubr.bf16.vlgmr.msra.gmra.mxu0 %v1123_v21 }
  0xe2   :  { %v940_v22 = vpop.f32.mrf.mxu0 }
  0xe4   :  { %v941_v23 = vpop.f32.mrf.mxu0  ;;  %v962_v24 = vpop.f32.mrf.mxu1 }
  0xe5   :  { %v942_v38 = vadd.f32 %v941_v23, %v940_v22 }
  0xe6   :  { %v943_v25 = vpop.f32.mrf.mxu0  ;;  %v963_v26 = vpop.f32.mrf.mxu1 }
  0xe7   :  { %v670_v40 = vadd.f32 %v942_v38, %v842_v39  ;;  %v964_v41 = vadd.f32 %v963_v26, %v962_v24 }
  0xe8   :  { %v944_v27 = vpop.f32.mrf.mxu0  ;;  %v965_v28 = vpop.f32.mrf.mxu1 }
  0xe9   :  { %v710_v43 = vadd.f32 %v964_v41, %v670_v40 }
  0xea   :  { %v966_v29 = vpop.f32.mrf.mxu1 }
 0x102   :  { %v984_v30 = vpop.f32.mrf.mxu0 }
 0x104   :  { %v985_v31 = vpop.f32.mrf.mxu0  ;;  %v1006_v32 = vpop.f32.mrf.mxu1 }
 0x105   :  { %v986_v42 = vadd.f32 %v985_v31, %v984_v30 }
 0x106   :  { %v987_v33 = vpop.f32.mrf.mxu0  ;;  %v1007_v34 = vpop.f32.mrf.mxu1 }
 0x107   :  { %v750_v44 = vadd.f32 %v986_v42, %v710_v43  ;;  %v1008_v45 = vadd.f32 %v1007_v34, %v1006_v32 }
 0x108   :  { %v988_v35 = vpop.f32.mrf.mxu0  ;;  %v1009_v36 = vpop.f32.mrf.mxu1 }
 0x109   :  { %v790_v46 = vadd.f32 %v1008_v45, %v750_v44 }
 0x10a   :  { %v1010_v37 = vpop.f32.mrf.mxu1 }
 0x122   :  { %v829_v47 = vpop.f32.mrf.mxu0 }
 0x123   :  { %v830_v48 = vadd.f32 %v829_v47, %v790_v46 }
 0x124   :  { %v1039_v49 = vpop.f32.mrf.mxu0 }
 0x125   :  { %v835_v50 = vmax.f32 %v830_v48, 0.0 }
 0x126   :  { %v832_v51 = vpop.f32.mrf.mxu0 }
 0x127   :  { %v836_v52 = vpack.c.bf16 %v835_v50, %v835_v50 }
 0x128   :  { %v1040_v53 = vpop.f32.mrf.mxu0 }
 0x129   :  { %837 = vst [vmem:[%s1386_s3] sm:$0xf] %v836_v52 }

// kernel: jersey_number_classifier_forward.34
= control target key start
LH: loop header
LB: loop body
LE: loop exit
PB: predicated region body
PF: predicated region fallthrough
CT: control target
= control target key end

     0   :  { %vm1293_vm0 = vmmov 0   ;;  %s1596_s1 = inlined_call_operand.vmem [shape: bf16[1152,128], index: 1, kind: input, shape index: {}]   ;;  %s1597_s0 = inlined_call_operand.vmem [shape: bf16[8,1152], index: 0, kind: input, shape index: {}]   ;;  %s1598_s4 = inlined_call_operand.vmem [shape: bf16[128,128], index: 4, kind: input, shape index: {}]   ;;  %s1599_s3 = inlined_call_operand.vmem [shape: bf16[8,128], index: 3, kind: input, shape index: {}]   ;;  %s1600_s2 = inlined_call_operand.vmem [shape: f32[1,128], index: 2, kind: input, shape index: {}]   ;;  %s1601_s5 = inlined_call_operand.vmem [shape: f32[1,128], index: 5, kind: input, shape index: {}]   ;;  %s1602_s6 = inlined_call_operand.vmem [shape: bf16[8,128], index: 6, kind: output, shape index: {}]  }
   0x1   :  { %v1203_v0 = vld [vmem:[%s1596_s1 + $0x78] sm:$0xff]   ;;  %v1207_v4 = vld [vmem:[%s1596_s1 + $0x70] sm:$0xff]   ;;  %v1211_v8 = vld [vmem:[%s1596_s1 + $0x68] sm:$0xff]  }
   0x2   :  { %v1204_v1 = vld [vmem:[%s1596_s1 + $0xf8] sm:$0xff]   ;;  %1055 = vmatprep.subr.bf16.mxu0 %v1203_v0  ;;  %v1208_v5 = vld [vmem:[%s1596_s1 + $0xf0] sm:$0xff]   ;;  %v1212_v9 = vld [vmem:[%s1596_s1 + $0xe8] sm:$0xff]  }
   0x3   :  { %v1205_v2 = vld [vmem:[%s1596_s1 + $0x38] sm:$0xff]   ;;  %1077 = vmatprep.subr.bf16.mxu1 %v1204_v1  ;;  %v1209_v6 = vld [vmem:[%s1596_s1 + $0x30] sm:$0xff]   ;;  %v1213_v10 = vld [vmem:[%s1596_s1 + $0x28] sm:$0xff]  }
   0x4   :  { %v1206_v3 = vld [vmem:[%s1596_s1 + $0xb8] sm:$0xff]   ;;  %1056 = vmatpush3.bf16.msra.mxu0 %v1205_v2  ;;  %v1210_v7 = vld [vmem:[%s1596_s1 + $0xb0] sm:$0xff]   ;;  %v1214_v11 = vld [vmem:[%s1596_s1 + $0xa8] sm:$0xff]  }
   0x5   :  { %1078 = vmatpush3.bf16.msra.mxu1 %v1206_v3  ;;  %1057 = vmatprep.subr.bf16.mxu0 %v1207_v4  ;;  %v1215_v12 = vld [vmem:[%s1596_s1 + $0x60] sm:$0xff]   ;;  %v1219_v16 = vld [vmem:[%s1596_s1 + $0x58] sm:$0xff]   ;;  %v1223_v20 = vld [vmem:[%s1596_s1 + $0x50] sm:$0xff]  }
   0x6   :  { %1079 = vmatprep.subr.bf16.mxu1 %v1208_v5  ;;  %v1216_v13 = vld [vmem:[%s1596_s1 + $0xe0] sm:$0xff]   ;;  %v1220_v17 = vld [vmem:[%s1596_s1 + $0xd8] sm:$0xff]   ;;  %v1224_v21 = vld [vmem:[%s1596_s1 + $0xd0] sm:$0xff]  }
   0x7   :  { %v1217_v14 = vld [vmem:[%s1596_s1 + $0x20] sm:$0xff]   ;;  %v1221_v18 = vld [vmem:[%s1596_s1 + $0x18] sm:$0xff]   ;;  %v1225_v22 = vld [vmem:[%s1596_s1 + $0x10] sm:$0xff]  }
   0x8   :  { %1058 = vmatpush3.bf16.msra.mxu0 %v1209_v6  ;;  %v1218_v15 = vld [vmem:[%s1596_s1 + $0xa0] sm:$0xff]   ;;  %v1222_v19 = vld [vmem:[%s1596_s1 + $0x98] sm:$0xff]   ;;  %v1226_v23 = vld [vmem:[%s1596_s1 + $0x90] sm:$0xff]  }
   0x9   :  { %1080 = vmatpush3.bf16.msra.mxu1 %v1210_v7  ;;  %1059 = vmatprep.subr.bf16.mxu0 %v1211_v8  ;;  %v1227_v24 = vld [vmem:[%s1596_s1 + $0x48] sm:$0xff]   ;;  %v1231_v28 = vld [vmem:[%s1596_s1 + $0x40] sm:$0xff]   ;;  %v1239_v38 = vld [vmem:[%s1596_s1 + $0x178] sm:$0xff]  }
   0xa   :  { %1081 = vmatprep.subr.bf16.mxu1 %v1212_v9  ;;  %v1228_v25 = vld [vmem:[%s1596_s1 + $0xc8] sm:$0xff]   ;;  %v1232_v29 = vld [vmem:[%s1596_s1 + $0xc0] sm:$0xff]   ;;  %v1240_v39 = vld [vmem:[%s1596_s1 + $0x1f8] sm:$0xff]  }
   0xb   :  { %v1229_v26 = vld [vmem:[%s1596_s1 + $0x8] sm:$0xff]   ;;  %v1233_v30 = vld [vmem:[%s1596_s1] sm:$0xff]   ;;  %v1241_v40 = vld [vmem:[%s1596_s1 + $0x138] sm:$0xff]  }
   0xc   :  { %1060 = vmatpush3.bf16.msra.mxu0 %v1213_v10  ;;  %v1230_v27 = vld [vmem:[%s1596_s1 + $0x88] sm:$0xff]   ;;  %v1234_v31 = vld [vmem:[%s1596_s1 + $0x80] sm:$0xff]   ;;  %v1242_v41 = vld [vmem:[%s1596_s1 + $0x1b8] sm:$0xff]  }
   0xd   :  { %1082 = vmatpush3.bf16.msra.mxu1 %v1214_v11  ;;  %1061 = vmatprep.subr.bf16.mxu0 %v1215_v12  ;;  %v24_v32 = vld [vmem:[%s1597_s0] sm:$0xff]  ;;  %v25_v33 = vld [vmem:[%s1597_s0 + $0x8] sm:$0xff]  ;;  %v1243_v42 = vld [vmem:[%s1596_s1 + $0x170] sm:$0xff]  }
   0xe   :  { %1083 = vmatprep.subr.bf16.mxu1 %v1216_v13  ;;  %v965_v34 = vcombine.low %v24_v32, %v24_v32  ;;  %v966_v35 = vcombine.high %v24_v32, %v24_v32  ;;  %v967_v36 = vcombine.low %v25_v33, %v25_v33  ;;  %v968_v37 = vcombine.high %v25_v33, %v25_v33  ;;  %v1244_v43 = vld [vmem:[%s1596_s1 + $0x1f0] sm:$0xff]   ;;  %v1247_v46 = vld [vmem:[%s1596_s1 + $0x168] sm:$0xff]   ;;  %v1251_v50 = vld [vmem:[%s1596_s1 + $0x160] sm:$0xff]  }
   0xf   :  { %v1245_v44 = vld [vmem:[%s1596_s1 + $0x130] sm:$0xff]   ;;  %v1248_v47 = vld [vmem:[%s1596_s1 + $0x1e8] sm:$0xff]   ;;  %v1252_v51 = vld [vmem:[%s1596_s1 + $0x1e0] sm:$0xff]   ;;  %v1292_v13 = vmov 0.0  }
  0x10   :  { %1062 = vmatpush3.bf16.msra.mxu0 %v1217_v14  ;;  %676 = vmatprep.mubr.bf16.mxu0 %v966_v35  ;;  %v1246_v45 = vld [vmem:[%s1596_s1 + $0x1b0] sm:$0xff]   ;;  %v1249_v48 = vld [vmem:[%s1596_s1 + $0x128] sm:$0xff]   ;;  %v1253_v52 = vld [vmem:[%s1596_s1 + $0x120] sm:$0xff]  }
  0x11   :  { %1084 = vmatpush3.bf16.msra.mxu1 %v1218_v15  ;;  %1063 = vmatprep.subr.bf16.mxu0 %v1219_v16  ;;  %v1250_v49 = vld [vmem:[%s1596_s1 + $0x1a8] sm:$0xff]   ;;  %v1254_v53 = vld [vmem:[%s1596_s1 + $0x1a0] sm:$0xff]   ;;  %v1255_v54 = vld [vmem:[%s1596_s1 + $0x158] sm:$0xff]  }
  0x12   :  { %1085 = vmatprep.subr.bf16.mxu1 %v1220_v17  ;;  %716 = vmatprep.mubr.bf16.mxu1 %v968_v37  ;;  %v1256_v55 = vld [vmem:[%s1596_s1 + $0x1d8] sm:$0xff]   ;;  %v1259_v58 = vld [vmem:[%s1596_s1 + $0x150] sm:$0xff]   ;;  %v1263_v62 = vld [vmem:[%s1596_s1 + $0x148] sm:$0xff]  }
  0x13   :  { %v1257_v56 = vld [vmem:[%s1596_s1 + $0x118] sm:$0xff]   ;;  %v1260_v59 = vld [vmem:[%s1596_s1 + $0x1d0] sm:$0xff]   ;;  %v1264_v63 = vld [vmem:[%s1596_s1 + $0x1c8] sm:$0xff]  }
  0x14   :  { %1064 = vmatpush3.bf16.msra.mxu0 %v1221_v18  ;;  %v1258_v57 = vld [vmem:[%s1596_s1 + $0x198] sm:$0xff]   ;;  %v1261_v60 = vld [vmem:[%s1596_s1 + $0x110] sm:$0xff]   ;;  %v1265_v0 = vld [vmem:[%s1596_s1 + $0x108] sm:$0xff]  }
  0x15   :  { %1086 = vmatpush3.bf16.msra.mxu1 %v1222_v19  ;;  %1065 = vmatprep.subr.bf16.mxu0 %v1223_v20  ;;  %v1262_v61 = vld [vmem:[%s1596_s1 + $0x190] sm:$0xff]   ;;  %v1266_v1 = vld [vmem:[%s1596_s1 + $0x188] sm:$0xff]   ;;  %v1267_v2 = vld [vmem:[%s1596_s1 + $0x140] sm:$0xff]  }
  0x16   :  { %1087 = vmatprep.subr.bf16.mxu1 %v1224_v21  ;;  %v1268_v3 = vld [vmem:[%s1596_s1 + $0x1c0] sm:$0xff]   ;;  %v26_v6 = vld [vmem:[%s1597_s0 + $0x10] sm:$0xff]  ;;  %v27_v9 = vld [vmem:[%s1597_s0 + $0x18] sm:$0xff] }
  0x17   :  { %v1269_v4 = vld [vmem:[%s1596_s1 + $0x100] sm:$0xff]   ;;  %v969_v7 = vcombine.low %v26_v6, %v26_v6  ;;  %v970_v8 = vcombine.high %v26_v6, %v26_v6  ;;  %v971_v10 = vcombine.low %v27_v9, %v27_v9  ;;  %v972_v11 = vcombine.high %v27_v9, %v27_v9  ;;  %v1275_v12 = vld [vmem:[%s1596_s1 + $0x238] sm:$0xff]   ;;  %v1277_v15 = vld [vmem:[%s1596_s1 + $0x230] sm:$0xff]  }
  0x18   :  { %1066 = vmatpush3.bf16.msra.mxu0 %v1225_v22  ;;  %v1270_v5 = vld [vmem:[%s1596_s1 + $0x180] sm:$0xff]   ;;  %v1276_v14 = vld [vmem:[%s1598_s4 + $0x38] sm:$0xff]   ;;  %v1278_v16 = vld [vmem:[%s1598_s4 + $0x30] sm:$0xff]  }
  0x19   :  { %1088 = vmatpush3.bf16.msra.mxu1 %v1226_v23  ;;  %1067 = vmatprep.subr.bf16.mxu0 %v1227_v24  ;;  %v1279_v17 = vld [vmem:[%s1596_s1 + $0x228] sm:$0xff]   ;;  %v1281_v19 = vld [vmem:[%s1596_s1 + $0x220] sm:$0xff]   ;;  %v1283_v21 = vld [vmem:[%s1596_s1 + $0x218] sm:$0xff]  }
  0x1a   :  { %1089 = vmatprep.subr.bf16.mxu1 %v1228_v25  ;;  %v1280_v18 = vld [vmem:[%s1598_s4 + $0x28] sm:$0xff]   ;;  %v1282_v20 = vld [vmem:[%s1598_s4 + $0x20] sm:$0xff]   ;;  %v1284_v22 = vld [vmem:[%s1598_s4 + $0x18] sm:$0xff]  }
  0x1b   :  { %v1285_v23 = vld [vmem:[%s1596_s1 + $0x210] sm:$0xff]   ;;  %v1287_v25 = vld [vmem:[%s1596_s1 + $0x208] sm:$0xff]  }
  0x1c   :  { %1068 = vmatpush3.bf16.msra.mxu0 %v1229_v26  ;;  %v1286_v24 = vld [vmem:[%s1598_s4 + $0x10] sm:$0xff]   ;;  %v1288_v26 = vld [vmem:[%s1598_s4 + $0x8] sm:$0xff]  }
  0x1d   :  { %1090 = vmatpush3.bf16.msra.mxu1 %v1230_v27  ;;  %1069 = vmatprep.subr.bf16.mxu0 %v1231_v28  ;;  %v1289_v27 = vld [vmem:[%s1596_s1 + $0x200] sm:$0xff]  }
  0x1e   :  { %1091 = vmatprep.subr.bf16.mxu1 %v1232_v29  ;;  %v1290_v28 = vld [vmem:[%s1598_s4] sm:$0xff]  }
  0x1f   :  { %v1291_v29 = vld [vmem:[%s1597_s0 + $0x20] ss:$0 sps:$4 sm:$0xff]  }
  0x20   :  { %1070 = vmatpush3.bf16.msra.mxu0 %v1233_v30  ;;  %v844_v30 = vld [vmem:[%s1599_s3] sm:$0xf] }
  0x21   :  { %1092 = vmatpush3.bf16.msra.mxu1 %v1234_v31  ;;  %1099 = vmatprep.subr.bf16.mxu0 %v1239_v38 }
  0x22   :  { %1121 = vmatprep.subr.bf16.mxu1 %v1240_v39 }
  0x23   :  { %677 = vmatmul.mubr.bf16.vlgmr.msra.gmra.mxu0 %v965_v34 }
  0x24   :  { %717 = vmatmul.mubr.bf16.vlgmr.msra.gmra.mxu1 %v967_v36  ;;  %1100 = vmatpush3.bf16.msra.mxu0 %v1241_v40 }
  0x25   :  { %1122 = vmatpush3.bf16.msra.mxu1 %v1242_v41  ;;  %1101 = vmatprep.subr.bf16.mxu0 %v1243_v42 }
  0x26   :  { %1123 = vmatprep.subr.bf16.mxu1 %v1244_v43  ;;  %756 = vmatprep.mubr.bf16.mxu0 %v970_v8 }
  0x27   :  { %796 = vmatprep.mubr.bf16.mxu1 %v972_v11 }
  0x28   :  { %1102 = vmatpush3.bf16.msra.mxu0 %v1245_v44 }
  0x29   :  { %1124 = vmatpush3.bf16.msra.mxu1 %v1246_v45  ;;  %1103 = vmatprep.subr.bf16.mxu0 %v1247_v46 }
  0x2a   :  { %1125 = vmatprep.subr.bf16.mxu1 %v1248_v47 }
  0x2c   :  { %1104 = vmatpush3.bf16.msra.mxu0 %v1249_v48  ;;  %v964_v48 = vld [vmem:[%s1600_s2] ss:$0 sm:$0xff] }
  0x2d   :  { %1126 = vmatpush3.bf16.msra.mxu1 %v1250_v49  ;;  %1105 = vmatprep.subr.bf16.mxu0 %v1251_v50 }
  0x2e   :  { %1127 = vmatprep.subr.bf16.mxu1 %v1252_v51 }
  0x30   :  { %1106 = vmatpush3.bf16.msra.mxu0 %v1253_v52 }
  0x31   :  { %1128 = vmatpush3.bf16.msra.mxu1 %v1254_v53  ;;  %1107 = vmatprep.subr.bf16.mxu0 %v1255_v54 }
  0x32   :  { %1129 = vmatprep.subr.bf16.mxu1 %v1256_v55  ;;  %v1046_v55 = vld [vmem:[%s1601_s5] ss:$0 sm:$0xff] }
  0x34   :  { %1108 = vmatpush3.bf16.msra.mxu0 %v1257_v56 }
  0x35   :  { %1130 = vmatpush3.bf16.msra.mxu1 %v1258_v57  ;;  %1109 = vmatprep.subr.bf16.mxu0 %v1259_v58 }
  0x36   :  { %1131 = vmatprep.subr.bf16.mxu1 %v1260_v59 }
  0x38   :  { %1110 = vmatpush3.bf16.msra.mxu0 %v1261_v60 }
  0x39   :  { %1132 = vmatpush3.bf16.msra.mxu1 %v1262_v61  ;;  %1111 = vmatprep.subr.bf16.mxu0 %v1263_v62 }
  0x3a   :  { %1133 = vmatprep.subr.bf16.mxu1 %v1264_v63 }
  0x3c   :  { %1112 = vmatpush3.bf16.msra.mxu0 %v1265_v0 }
  0x3d   :  { %1134 = vmatpush3.bf16.msra.mxu1 %v1266_v1  ;;  %1113 = vmatprep.subr.bf16.mxu0 %v1267_v2 }
  0x3e   :  { %1135 = vmatprep.subr.bf16.mxu1 %v1268_v3 }
  0x40   :  { %1114 = vmatpush3.bf16.msra.mxu0 %v1269_v4 }
  0x41   :  { %1136 = vmatpush3.bf16.msra.mxu1 %v1270_v5  ;;  %1161 = vmatprep.subr.bf16.mxu0 %v1292_v13 }
  0x42   :  { %1181 = vmatprep.subr.bf16.mxu1 %v1292_v13 }
  0x43   :  { %757 = vmatmul.mubr.bf16.vlgmr.msra.gmra.mxu0 %v969_v7 }
  0x44   :  { %797 = vmatmul.mubr.bf16.vlgmr.msra.gmra.mxu1 %v971_v10  ;;  %1162 = vmatpush3.bf16.msra.mxu0 %v1275_v12 }
  0x45   :  { %1182 = vmatpush3.bf16.msra.mxu1 %v1276_v14  ;;  %1163 = vmatprep.subr.bf16.mxu0 %v1292_v13 }
  0x46   :  { %1183 = vmatprep.subr.bf16.mxu1 %v1292_v13  ;;  %1177 = vmatprep.mubr.msk.bf16.mxu0 %vm1293_vm0, %v1292_v13 }
  0x47   :  { %1197 = vmatprep.mubr.msk.bf16.mxu1 %vm1293_vm0, %v1292_v13 }
  0x48   :  { %1164 = vmatpush3.bf16.msra.mxu0 %v1277_v15 }
  0x49   :  { %1184 = vmatpush3.bf16.msra.mxu1 %v1278_v16  ;;  %1165 = vmatprep.subr.bf16.mxu0 %v1292_v13 }
  0x4a   :  { %1185 = vmatprep.subr.bf16.mxu1 %v1292_v13 }
  0x4c   :  { %1166 = vmatpush3.bf16.msra.mxu0 %v1279_v17 }
  0x4d   :  { %1186 = vmatpush3.bf16.msra.mxu1 %v1280_v18  ;;  %1167 = vmatprep.subr.bf16.mxu0 %v1292_v13 }
  0x4e   :  { %1187 = vmatprep.subr.bf16.mxu1 %v1292_v13 }
  0x50   :  { %1168 = vmatpush3.bf16.msra.mxu0 %v1281_v19 }
  0x51   :  { %1188 = vmatpush3.bf16.msra.mxu1 %v1282_v20  ;;  %1169 = vmatprep.subr.bf16.mxu0 %v1292_v13 }
  0x52   :  { %1189 = vmatprep.subr.bf16.mxu1 %v1292_v13 }
  0x54   :  { %1170 = vmatpush3.bf16.msra.mxu0 %v1283_v21 }
  0x55   :  { %1190 = vmatpush3.bf16.msra.mxu1 %v1284_v22  ;;  %1171 = vmatprep.subr.bf16.mxu0 %v1292_v13 }
  0x56   :  { %1191 = vmatprep.subr.bf16.mxu1 %v1292_v13 }
  0x58   :  { %1172 = vmatpush3.bf16.msra.mxu0 %v1285_v23 }
  0x59   :  { %1192 = vmatpush3.bf16.msra.mxu1 %v1286_v24  ;;  %1173 = vmatprep.subr.bf16.mxu0 %v1292_v13 }
  0x5a   :  { %1193 = vmatprep.subr.bf16.mxu1 %v1292_v13 }
  0x5c   :  { %1174 = vmatpush3.bf16.msra.mxu0 %v1287_v25 }
  0x5d   :  { %1194 = vmatpush3.bf16.msra.mxu1 %v1288_v26  ;;  %1175 = vmatprep.subr.bf16.mxu0 %v1292_v13 }
  0x5e   :  { %1195 = vmatprep.subr.bf16.mxu1 %v1292_v13 }
  0x60   :  { %1176 = vmatpush3.bf16.msra.mxu0 %v1289_v27 }
  0x61   :  { %1196 = vmatpush3.bf16.msra.mxu1 %v1290_v28 }
  0x63   :  { %1178 = vmatmul.mubr.bf16.vlgmr.msra.gmra.mxu0 %v1291_v29 }
  0x64   :  { %1198 = vmatmul.mubr.bf16.vlgmr.msra.gmra.mxu1 %v844_v30 }
  0xe3   :  { %v1071_v31 = vpop.f32.mrf.mxu0 }
  0xe4   :  { %v1093_v32 = vpop.f32.mrf.mxu1 }
  0xe5   :  { %v1072_v33 = vpop.f32.mrf.mxu0 }
  0xe6   :  { %v1094_v34 = vpop.f32.mrf.mxu1  ;;  %v1073_v47 = vadd.f32 %v1072_v33, %v1071_v31 }
  0xe7   :  { %v1074_v35 = vpop.f32.mrf.mxu0  ;;  %v1095_v50 = vadd.f32 %v1094_v34, %v1093_v32 }
  0xe8   :  { %v1096_v36 = vpop.f32.mrf.mxu1  ;;  %v679_v49 = vadd.f32 %v1073_v47, %v964_v48 }
  0xe9   :  { %v1075_v37 = vpop.f32.mrf.mxu0 }
  0xea   :  { %v1097_v38 = vpop.f32.mrf.mxu1  ;;  %v719_v52 = vadd.f32 %v1095_v50, %v679_v49 }
 0x103   :  { %v1115_v39 = vpop.f32.mrf.mxu0 }
 0x104   :  { %v1137_v40 = vpop.f32.mrf.mxu1 }
 0x105   :  { %v1116_v41 = vpop.f32.mrf.mxu0 }
 0x106   :  { %v1138_v42 = vpop.f32.mrf.mxu1  ;;  %v1117_v51 = vadd.f32 %v1116_v41, %v1115_v39 }
 0x107   :  { %v1118_v43 = vpop.f32.mrf.mxu0  ;;  %v1139_v54 = vadd.f32 %v1138_v42, %v1137_v40 }
 0x108   :  { %v1140_v44 = vpop.f32.mrf.mxu1  ;;  %v759_v53 = vadd.f32 %v1117_v51, %v719_v52 }
 0x109   :  { %v1119_v45 = vpop.f32.mrf.mxu0 }
 0x10a   :  { %v1141_v46 = vpop.f32.mrf.mxu1  ;;  %v799_v56 = vadd.f32 %v1139_v54, %v759_v53 }
 0x123   :  { %v838_v57 = vpop.f32.mrf.mxu0 }
 0x124   :  { %v950_v58 = vpop.f32.mrf.mxu1  ;;  %v839_v59 = vadd.f32 %v838_v57, %v799_v56 }
 0x125   :  { %v951_v60 = vadd.f32 %v1046_v55, %v950_v58  ;;  %v1179_v61 = vpop.f32.mrf.mxu0 }
 0x126   :  { %v1199_v62 = vpop.f32.mrf.mxu1 }
 0x127   :  { %v956_v63 = vadd.f32 %v951_v60, %v839_v59  ;;  %v841_v0 = vpop.f32.mrf.mxu0 }
 0x128   :  { %v953_v1 = vpop.f32.mrf.mxu1 }
 0x129   :  { %v957_v2 = vmax.f32 %v956_v63, 0.0  ;;  %v1180_v3 = vpop.f32.mrf.mxu0 }
 0x12a   :  { %v1200_v4 = vpop.f32.mrf.mxu1 }
 0x12b   :  { %v958_v5 = vpack.c.bf16 %v957_v2, %v957_v2 }
 0x12d   :  { %959 = vst [vmem:[%s1602_s6] sm:$0xf] %v958_v5 }

// kernel: jersey_number_classifier_forward.37
= control target key start
LH: loop header
LB: loop body
LE: loop exit
PB: predicated region body
PF: predicated region fallthrough
CT: control target
= control target key end

     0   :  { %v228_v0 = vmov 0.0   ;;  %vm229_vm0 = vmmov 0   ;;  %vm77_vm1 = vcmask 1041409   ;;  %s286_s1 = inlined_call_operand.vmem [shape: bf16[128,128], index: 1, kind: input, shape index: {}]   ;;  %s287_s0 = inlined_call_operand.vmem [shape: bf16[2,4,128], index: 0, kind: input, shape index: {}]   ;;  %s288_s2 = inlined_call_operand.vmem [shape: f32[1,128], index: 2, kind: input, shape index: {}]   ;;  %s289_s3 = inlined_call_operand.vmem [shape: f32[2,128], index: 3, kind: output, shape index: {}]  }
   0x1   :  { %198 = vmatprep.subr.bf16.mxu0 %v228_v0  ;;  %v220_v1 = vld [vmem:[%s286_s1 + $0x38] sm:$0xff]   ;;  %214 = vmatprep.mubr.msk.bf16.mxu0 %vm229_vm0, %v228_v0  ;;  %v221_v2 = vld [vmem:[%s286_s1 + $0x30] sm:$0xff]   ;;  %v222_v3 = vld [vmem:[%s286_s1 + $0x28] sm:$0xff]  }
   0x2   :  { %199 = vmatpush3.bf16.msra.mxu0 %v220_v1  ;;  %v15_v4 = vld [vmem:[%s287_s0] sm:$0x3]  ;;  %v16_v5 = vld [vmem:[%s287_s0 + $0x2] sm:$0x3]  ;;  %v224_v17 = vld [vmem:[%s286_s1 + $0x18] sm:$0xff]  }
   0x3   :  { %200 = vmatprep.subr.bf16.mxu0 %v228_v0  ;;  %v17_v6 = vunpack.c.l.bf16 %v15_v4  ;;  %v18_v7 = vunpack.c.l.bf16 %v16_v5  ;;  %v223_v8 = vld [vmem:[%s286_s1 + $0x20] sm:$0xff]   ;;  %v225_v22 = vld [vmem:[%s286_s1 + $0x10] sm:$0xff]   ;;  %v226_v27 = vld [vmem:[%s286_s1 + $0x8] sm:$0xff]  }
   0x4   :  { %v227_v31 = vld [vmem:[%s286_s1] sm:$0xff]  }
   0x5   :  { %v174_v9 = vrot.slane %v17_v6, 9  ;;  %v175_v10 = vrot.slane %v18_v7, 9  ;;  %v176_v11 = vrot.slane %v17_v6, 10  ;;  %v177_v12 = vrot.slane %v18_v7, 10  ;;  %v180_v34 = vld [vmem:[%s288_s2] ss:$0 sm:$0xff] }
   0x6   :  { %201 = vmatpush3.bf16.msra.mxu0 %v221_v2  ;;  %v178_v15 = vrot.slane %v17_v6, 11  ;;  %v179_v16 = vrot.slane %v18_v7, 11 }
   0x7   :  { %202 = vmatprep.subr.bf16.mxu0 %v228_v0  ;;  %v27_v13 = vadd.f32 %v174_v9, %v17_v6  ;;  %v28_v14 = vadd.f32 %v175_v10, %v18_v7 }
   0x9   :  { %v35_v18 = vadd.f32 %v176_v11, %v27_v13  ;;  %v36_v19 = vadd.f32 %v177_v12, %v28_v14 }
   0xa   :  { %203 = vmatpush3.bf16.msra.mxu0 %v222_v3 }
   0xb   :  { %204 = vmatprep.subr.bf16.mxu0 %v228_v0  ;;  %v43_v20 = vadd.f32 %v178_v15, %v35_v18  ;;  %v44_v21 = vadd.f32 %v179_v16, %v36_v19 }
   0xd   :  { %v45_v23 = vmul.f32 0.25, %v43_v20  ;;  %v46_v24 = vmul.f32 0.25, %v44_v21 }
   0xe   :  { %205 = vmatpush3.bf16.msra.mxu0 %v223_v8 }
   0xf   :  { %206 = vmatprep.subr.bf16.mxu0 %v228_v0  ;;  %v47_v25 = vpack.c.bf16 %v45_v23, %v45_v23  ;;  %v48_v26 = vpack.c.bf16 %v46_v24, %v46_v24 }
  0x11   :  { %v74_v28 = vunpack.c.l.b16 %v47_v25  ;;  %v75_v29 = vunpack.c.l.b16 %v48_v26 }
  0x12   :  { %207 = vmatpush3.bf16.msra.mxu0 %v224_v17 }
  0x13   :  { %208 = vmatprep.subr.bf16.mxu0 %v228_v0  ;;  %v76_v30 = vrot.slane %v75_v29, 7 }
  0x15   :  { %v78_v32 = vsel %vm77_vm1, %v76_v30, %v74_v28 }
  0x16   :  { %209 = vmatpush3.bf16.msra.mxu0 %v225_v22  ;;  %v79_v33 = vpack.c.b16 %v78_v32, %v78_v32 }
  0x17   :  { %210 = vmatprep.subr.bf16.mxu0 %v228_v0 }
  0x1a   :  { %211 = vmatpush3.bf16.msra.mxu0 %v226_v27 }
  0x1b   :  { %212 = vmatprep.subr.bf16.mxu0 %v228_v0 }
  0x1e   :  { %213 = vmatpush3.bf16.msra.mxu0 %v227_v31 }
  0x21   :  { %215 = vmatmul.mubr.bf16.vlgmr.msra.gmra.mxu0 %v79_v33 }
  0xe1   :  { %v163_v35 = vpop.f32.mrf.mxu0 }
  0xe2   :  { %v164_v36 = vadd.f32 %v180_v34, %v163_v35 }
  0xe3   :  { %v216_v37 = vpop.f32.mrf.mxu0 }
  0xe4   :  { %169 = vst [vmem:[%s289_s3] sm:$0x3] %v164_v36 }
  0xe5   :  { %v166_v38 = vpop.f32.mrf.mxu0 }
  0xe7   :  { %v217_v39 = vpop.f32.mrf.mxu0 }

// kernel: jersey_number_classifier_forward.36
= control target key start
LH: loop header
LB: loop body
LE: loop exit
PB: predicated region body
PF: predicated region fallthrough
CT: control target
= control target key end

     0   :  { %vm1131_vm0 = vmmov 0   ;;  %s1397_s1 = inlined_call_operand.vmem [shape: bf16[1152,128], index: 1, kind: input, shape index: {}]   ;;  %s1398_s0 = inlined_call_operand.vmem [shape: bf16[8,1152], index: 0, kind: input, shape index: {}]   ;;  %s1399_s2 = inlined_call_operand.vmem [shape: f32[1,128], index: 2, kind: input, shape index: {}]   ;;  %s1400_s3 = inlined_call_operand.vmem [shape: bf16[8,128], index: 3, kind: input, shape index: {}]   ;;  %s1401_s4 = inlined_call_operand.vmem [shape: bf16[8,128], index: 4, kind: output, shape index: {}]  }
   0x1   :  { %v1049_v0 = vld [vmem:[%s1397_s1 + $0x78] sm:$0xff]   ;;  %v1053_v4 = vld [vmem:[%s1397_s1 + $0x70] sm:$0xff]   ;;  %v1057_v8 = vld [vmem:[%s1397_s1 + $0x68] sm:$0xff]  }
   0x2   :  { %v1050_v1 = vld [vmem:[%s1397_s1 + $0x38] sm:$0xff]   ;;  %930 = vmatprep.subr.bf16.mxu0 %v1049_v0  ;;  %v1054_v5 = vld [vmem:[%s1397_s1 + $0x30] sm:$0xff]   ;;  %v1058_v9 = vld [vmem:[%s1397_s1 + $0x28] sm:$0xff]  }
   0x3   :  { %v1051_v2 = vld [vmem:[%s1397_s1 + $0xf8] sm:$0xff]   ;;  %931 = vmatpush3.bf16.msra.mxu0 %v1050_v1  ;;  %v1055_v6 = vld [vmem:[%s1397_s1 + $0xf0] sm:$0xff]   ;;  %v1059_v10 = vld [vmem:[%s1397_s1 + $0xe8] sm:$0xff]  }
   0x4   :  { %v1052_v3 = vld [vmem:[%s1397_s1 + $0xb8] sm:$0xff]   ;;  %952 = vmatprep.subr.bf16.mxu1 %v1051_v2  ;;  %932 = vmatprep.subr.bf16.mxu0 %v1053_v4  ;;  %v1056_v7 = vld [vmem:[%s1397_s1 + $0xb0] sm:$0xff]   ;;  %v1060_v11 = vld [vmem:[%s1397_s1 + $0xa8] sm:$0xff]  }
   0x5   :  { %953 = vmatpush3.bf16.msra.mxu1 %v1052_v3  ;;  %v1061_v12 = vld [vmem:[%s1397_s1 + $0x60] sm:$0xff]   ;;  %v1065_v16 = vld [vmem:[%s1397_s1 + $0x58] sm:$0xff]   ;;  %v1069_v20 = vld [vmem:[%s1397_s1 + $0x50] sm:$0xff]  }
   0x6   :  { %954 = vmatprep.subr.bf16.mxu1 %v1055_v6  ;;  %v1062_v13 = vld [vmem:[%s1397_s1 + $0x20] sm:$0xff]   ;;  %v1066_v17 = vld [vmem:[%s1397_s1 + $0x18] sm:$0xff]   ;;  %v1070_v21 = vld [vmem:[%s1397_s1 + $0x10] sm:$0xff]  }
   0x7   :  { %933 = vmatpush3.bf16.msra.mxu0 %v1054_v5  ;;  %v1063_v14 = vld [vmem:[%s1397_s1 + $0xe0] sm:$0xff]   ;;  %v1067_v18 = vld [vmem:[%s1397_s1 + $0xd8] sm:$0xff]   ;;  %v1071_v22 = vld [vmem:[%s1397_s1 + $0xd0] sm:$0xff]  }
   0x8   :  { %934 = vmatprep.subr.bf16.mxu0 %v1057_v8  ;;  %v1064_v15 = vld [vmem:[%s1397_s1 + $0xa0] sm:$0xff]   ;;  %v1068_v19 = vld [vmem:[%s1397_s1 + $0x98] sm:$0xff]   ;;  %v1072_v23 = vld [vmem:[%s1397_s1 + $0x90] sm:$0xff]  }
   0x9   :  { %955 = vmatpush3.bf16.msra.mxu1 %v1056_v7  ;;  %v1073_v24 = vld [vmem:[%s1397_s1 + $0x48] sm:$0xff]   ;;  %v1077_v28 = vld [vmem:[%s1397_s1 + $0x40] sm:$0xff]   ;;  %v1083_v35 = vld [vmem:[%s1397_s1 + $0x178] sm:$0xff]  }
   0xa   :  { %956 = vmatprep.subr.bf16.mxu1 %v1059_v10  ;;  %v1074_v25 = vld [vmem:[%s1397_s1 + $0x8] sm:$0xff]   ;;  %v1078_v29 = vld [vmem:[%s1397_s1] sm:$0xff]   ;;  %v1086_v39 = vld [vmem:[%s1397_s1 + $0x138] sm:$0xff]  }
   0xb   :  { %935 = vmatpush3.bf16.msra.mxu0 %v1058_v9  ;;  %v1075_v26 = vld [vmem:[%s1397_s1 + $0xc8] sm:$0xff]   ;;  %v1079_v30 = vld [vmem:[%s1397_s1 + $0xc0] sm:$0xff]   ;;  %v1087_v40 = vld [vmem:[%s1397_s1 + $0x1f8] sm:$0xff]   ;;  %v1130_v9 = vmov 0.0  }
   0xc   :  { %936 = vmatprep.subr.bf16.mxu0 %v1061_v12  ;;  %v1076_v27 = vld [vmem:[%s1397_s1 + $0x88] sm:$0xff]   ;;  %v18_v31 = vld [vmem:[%s1398_s0] sm:$0xff]  ;;  %v1088_v41 = vld [vmem:[%s1397_s1 + $0x1b8] sm:$0xff]  }
   0xd   :  { %957 = vmatpush3.bf16.msra.mxu1 %v1060_v11  ;;  %v849_v32 = vcombine.low %v18_v31, %v18_v31  ;;  %v850_v33 = vcombine.high %v18_v31, %v18_v31  ;;  %v1082_v34 = vld [vmem:[%s1397_s1 + $0x80] sm:$0xff]   ;;  %v19_v36 = vld [vmem:[%s1398_s0 + $0x8] sm:$0xff]  ;;  %v1089_v42 = vld [vmem:[%s1397_s1 + $0x170] sm:$0xff]  }
   0xe   :  { %958 = vmatprep.subr.bf16.mxu1 %v1063_v14  ;;  %v851_v37 = vcombine.low %v19_v36, %v19_v36  ;;  %v852_v38 = vcombine.high %v19_v36, %v19_v36  ;;  %v1090_v43 = vld [vmem:[%s1397_s1 + $0x130] sm:$0xff]   ;;  %v1093_v46 = vld [vmem:[%s1397_s1 + $0x168] sm:$0xff]   ;;  %v1097_v50 = vld [vmem:[%s1397_s1 + $0x160] sm:$0xff]  }
   0xf   :  { %937 = vmatpush3.bf16.msra.mxu0 %v1062_v13  ;;  %670 = vmatprep.mubr.bf16.mxu0 %v850_v33  ;;  %v1091_v44 = vld [vmem:[%s1397_s1 + $0x1f0] sm:$0xff]   ;;  %v1094_v47 = vld [vmem:[%s1397_s1 + $0x128] sm:$0xff]   ;;  %v1098_v51 = vld [vmem:[%s1397_s1 + $0x120] sm:$0xff]  }
  0x10   :  { %938 = vmatprep.subr.bf16.mxu0 %v1065_v16  ;;  %710 = vmatprep.mubr.bf16.mxu1 %v852_v38  ;;  %v1092_v45 = vld [vmem:[%s1397_s1 + $0x1b0] sm:$0xff]   ;;  %v1095_v48 = vld [vmem:[%s1397_s1 + $0x1e8] sm:$0xff]   ;;  %v1099_v52 = vld [vmem:[%s1397_s1 + $0x1e0] sm:$0xff]  }
  0x11   :  { %959 = vmatpush3.bf16.msra.mxu1 %v1064_v15  ;;  %v1096_v49 = vld [vmem:[%s1397_s1 + $0x1a8] sm:$0xff]   ;;  %v1100_v53 = vld [vmem:[%s1397_s1 + $0x1a0] sm:$0xff]   ;;  %v1101_v54 = vld [vmem:[%s1397_s1 + $0x158] sm:$0xff]  }
  0x12   :  { %960 = vmatprep.subr.bf16.mxu1 %v1067_v18  ;;  %v1102_v55 = vld [vmem:[%s1397_s1 + $0x118] sm:$0xff]   ;;  %v1105_v58 = vld [vmem:[%s1397_s1 + $0x150] sm:$0xff]   ;;  %v1109_v62 = vld [vmem:[%s1397_s1 + $0x148] sm:$0xff]  }
  0x13   :  { %939 = vmatpush3.bf16.msra.mxu0 %v1066_v17  ;;  %v1103_v56 = vld [vmem:[%s1397_s1 + $0x1d8] sm:$0xff]   ;;  %v1106_v59 = vld [vmem:[%s1397_s1 + $0x110] sm:$0xff]   ;;  %v1110_v63 = vld [vmem:[%s1397_s1 + $0x108] sm:$0xff]  }
  0x14   :  { %940 = vmatprep.subr.bf16.mxu0 %v1069_v20  ;;  %v1104_v57 = vld [vmem:[%s1397_s1 + $0x198] sm:$0xff]   ;;  %v1107_v60 = vld [vmem:[%s1397_s1 + $0x1d0] sm:$0xff]   ;;  %v1111_v0 = vld [vmem:[%s1397_s1 + $0x1c8] sm:$0xff]  }
  0x15   :  { %961 = vmatpush3.bf16.msra.mxu1 %v1068_v19  ;;  %v1108_v61 = vld [vmem:[%s1397_s1 + $0x190] sm:$0xff]   ;;  %v1112_v1 = vld [vmem:[%s1397_s1 + $0x188] sm:$0xff]   ;;  %v1113_v2 = vld [vmem:[%s1397_s1 + $0x140] sm:$0xff]  }
  0x16   :  { %962 = vmatprep.subr.bf16.mxu1 %v1071_v22  ;;  %v1114_v3 = vld [vmem:[%s1397_s1 + $0x100] sm:$0xff]   ;;  %v20_v5 = vld [vmem:[%s1398_s0 + $0x10] sm:$0xff]  ;;  %v21_v10 = vld [vmem:[%s1398_s0 + $0x18] sm:$0xff] }
  0x17   :  { %941 = vmatpush3.bf16.msra.mxu0 %v1070_v21  ;;  %v1115_v4 = vld [vmem:[%s1397_s1 + $0x1c0] sm:$0xff]   ;;  %v853_v6 = vcombine.low %v20_v5, %v20_v5  ;;  %v854_v7 = vcombine.high %v20_v5, %v20_v5  ;;  %v855_v11 = vcombine.low %v21_v10, %v21_v10  ;;  %v856_v12 = vcombine.high %v21_v10, %v21_v10  ;;  %v1121_v13 = vld [vmem:[%s1397_s1 + $0x238] sm:$0xff]   ;;  %v1122_v14 = vld [vmem:[%s1397_s1 + $0x230] sm:$0xff]  }
  0x18   :  { %942 = vmatprep.subr.bf16.mxu0 %v1073_v24  ;;  %v1118_v8 = vld [vmem:[%s1397_s1 + $0x180] sm:$0xff]   ;;  %v1123_v15 = vld [vmem:[%s1397_s1 + $0x228] sm:$0xff]   ;;  %v1125_v17 = vld [vmem:[%s1397_s1 + $0x218] sm:$0xff]  }
  0x19   :  { %963 = vmatpush3.bf16.msra.mxu1 %v1072_v23  ;;  %v1124_v16 = vld [vmem:[%s1397_s1 + $0x220] sm:$0xff]   ;;  %v1126_v18 = vld [vmem:[%s1397_s1 + $0x210] sm:$0xff]   ;;  %v1127_v19 = vld [vmem:[%s1397_s1 + $0x208] sm:$0xff]  }
  0x1a   :  { %964 = vmatprep.subr.bf16.mxu1 %v1075_v26  ;;  %v1128_v20 = vld [vmem:[%s1397_s1 + $0x200] sm:$0xff]  }
  0x1b   :  { %943 = vmatpush3.bf16.msra.mxu0 %v1074_v25  ;;  %v1129_v21 = vld [vmem:[%s1398_s0 + $0x20] ss:$0 sps:$4 sm:$0xff]  }
  0x1c   :  { %944 = vmatprep.subr.bf16.mxu0 %v1077_v28 }
  0x1d   :  { %965 = vmatpush3.bf16.msra.mxu1 %v1076_v27 }
  0x1e   :  { %966 = vmatprep.subr.bf16.mxu1 %v1079_v30 }
  0x1f   :  { %945 = vmatpush3.bf16.msra.mxu0 %v1078_v29 }
  0x20   :  { %974 = vmatprep.subr.bf16.mxu0 %v1083_v35 }
  0x21   :  { %967 = vmatpush3.bf16.msra.mxu1 %v1082_v34 }
  0x22   :  { %671 = vmatmul.mubr.bf16.vlgmr.msra.gmra.mxu0 %v849_v32  ;;  %996 = vmatprep.subr.bf16.mxu1 %v1087_v40 }
  0x23   :  { %975 = vmatpush3.bf16.msra.mxu0 %v1086_v39  ;;  %750 = vmatprep.mubr.bf16.mxu0 %v854_v7  ;;  %v848_v39 = vld [vmem:[%s1399_s2] ss:$0 sm:$0xff] }
  0x24   :  { %711 = vmatmul.mubr.bf16.vlgmr.msra.gmra.mxu1 %v851_v37  ;;  %976 = vmatprep.subr.bf16.mxu0 %v1089_v42 }
  0x25   :  { %997 = vmatpush3.bf16.msra.mxu1 %v1088_v41  ;;  %790 = vmatprep.mubr.bf16.mxu1 %v856_v12 }
  0x26   :  { %998 = vmatprep.subr.bf16.mxu1 %v1091_v44 }
  0x27   :  { %977 = vmatpush3.bf16.msra.mxu0 %v1090_v43 }
  0x28   :  { %978 = vmatprep.subr.bf16.mxu0 %v1093_v46  ;;  %v838_v46 = vld [vmem:[%s1400_s3] sm:$0xf] }
  0x29   :  { %999 = vmatpush3.bf16.msra.mxu1 %v1092_v45 }
  0x2a   :  { %1000 = vmatprep.subr.bf16.mxu1 %v1095_v48  ;;  %v839_v48 = vunpack.c.l.bf16 %v838_v46 }
  0x2b   :  { %979 = vmatpush3.bf16.msra.mxu0 %v1094_v47 }
  0x2c   :  { %980 = vmatprep.subr.bf16.mxu0 %v1097_v50 }
  0x2d   :  { %1001 = vmatpush3.bf16.msra.mxu1 %v1096_v49 }
  0x2e   :  { %1002 = vmatprep.subr.bf16.mxu1 %v1099_v52 }
  0x2f   :  { %981 = vmatpush3.bf16.msra.mxu0 %v1098_v51 }
  0x30   :  { %982 = vmatprep.subr.bf16.mxu0 %v1101_v54 }
  0x31   :  { %1003 = vmatpush3.bf16.msra.mxu1 %v1100_v53 }
  0x32   :  { %1004 = vmatprep.subr.bf16.mxu1 %v1103_v56 }
  0x33   :  { %983 = vmatpush3.bf16.msra.mxu0 %v1102_v55 }
  0x34   :  { %984 = vmatprep.subr.bf16.mxu0 %v1105_v58 }
  0x35   :  { %1005 = vmatpush3.bf16.msra.mxu1 %v1104_v57 }
  0x36   :  { %1006 = vmatprep.subr.bf16.mxu1 %v1107_v60 }
  0x37   :  { %985 = vmatpush3.bf16.msra.mxu0 %v1106_v59 }
  0x38   :  { %986 = vmatprep.subr.bf16.mxu0 %v1109_v62 }
  0x39   :  { %1007 = vmatpush3.bf16.msra.mxu1 %v1108_v61 }
  0x3a   :  { %1008 = vmatprep.subr.bf16.mxu1 %v1111_v0 }
  0x3b   :  { %987 = vmatpush3.bf16.msra.mxu0 %v1110_v63 }
  0x3c   :  { %988 = vmatprep.subr.bf16.mxu0 %v1113_v2 }
  0x3d   :  { %1009 = vmatpush3.bf16.msra.mxu1 %v1112_v1 }
  0x3e   :  { %1010 = vmatprep.subr.bf16.mxu1 %v1115_v4 }
  0x3f   :  { %989 = vmatpush3.bf16.msra.mxu0 %v1114_v3 }
  0x40   :  { %1027 = vmatprep.subr.bf16.mxu0 %v1130_v9 }
  0x41   :  { %1011 = vmatpush3.bf16.msra.mxu1 %v1118_v8 }
  0x42   :  { %751 = vmatmul.mubr.bf16.vlgmr.msra.gmra.mxu0 %v853_v6 }
  0x43   :  { %1028 = vmatpush3.bf16.msra.mxu0 %v1121_v13  ;;  %1043 = vmatprep.mubr.msk.bf16.mxu0 %vm1131_vm0, %v1130_v9 }
  0x44   :  { %791 = vmatmul.mubr.bf16.vlgmr.msra.gmra.mxu1 %v855_v11  ;;  %1029 = vmatprep.subr.bf16.mxu0 %v1130_v9 }
  0x47   :  { %1030 = vmatpush3.bf16.msra.mxu0 %v1122_v14 }
  0x48   :  { %1031 = vmatprep.subr.bf16.mxu0 %v1130_v9 }
  0x4b   :  { %1032 = vmatpush3.bf16.msra.mxu0 %v1123_v15 }
  0x4c   :  { %1033 = vmatprep.subr.bf16.mxu0 %v1130_v9 }
  0x4f   :  { %1034 = vmatpush3.bf16.msra.mxu0 %v1124_v16 }
  0x50   :  { %1035 = vmatprep.subr.bf16.mxu0 %v1130_v9 }
  0x53   :  { %1036 = vmatpush3.bf16.msra.mxu0 %v1125_v17 }
  0x54   :  { %1037 = vmatprep.subr.bf16.mxu0 %v1130_v9 }
  0x57   :  { %1038 = vmatpush3.bf16.msra.mxu0 %v1126_v18 }
  0x58   :  { %1039 = vmatprep.subr.bf16.mxu0 %v1130_v9 }
  0x5b   :  { %1040 = vmatpush3.bf16.msra.mxu0 %v1127_v19 }
  0x5c   :  { %1041 = vmatprep.subr.bf16.mxu0 %v1130_v9 }
  0x5f   :  { %1042 = vmatpush3.bf16.msra.mxu0 %v1128_v20 }
  0x62   :  { %1044 = vmatmul.mubr.bf16.vlgmr.msra.gmra.mxu0 %v1129_v21 }
  0xe2   :  { %v946_v22 = vpop.f32.mrf.mxu0 }
  0xe4   :  { %v947_v23 = vpop.f32.mrf.mxu0  ;;  %v968_v24 = vpop.f32.mrf.mxu1 }
  0xe5   :  { %v948_v38 = vadd.f32 %v947_v23, %v946_v22 }
  0xe6   :  { %v949_v25 = vpop.f32.mrf.mxu0  ;;  %v969_v26 = vpop.f32.mrf.mxu1 }
  0xe7   :  { %v673_v40 = vadd.f32 %v948_v38, %v848_v39  ;;  %v970_v41 = vadd.f32 %v969_v26, %v968_v24 }
  0xe8   :  { %v950_v27 = vpop.f32.mrf.mxu0  ;;  %v971_v28 = vpop.f32.mrf.mxu1 }
  0xe9   :  { %v713_v43 = vadd.f32 %v970_v41, %v673_v40 }
  0xea   :  { %v972_v29 = vpop.f32.mrf.mxu1 }
 0x102   :  { %v990_v30 = vpop.f32.mrf.mxu0 }
 0x104   :  { %v991_v31 = vpop.f32.mrf.mxu0  ;;  %v1012_v32 = vpop.f32.mrf.mxu1 }
 0x105   :  { %v992_v42 = vadd.f32 %v991_v31, %v990_v30 }
 0x106   :  { %v993_v33 = vpop.f32.mrf.mxu0  ;;  %v1013_v34 = vpop.f32.mrf.mxu1 }
 0x107   :  { %v753_v44 = vadd.f32 %v992_v42, %v713_v43  ;;  %v1014_v45 = vadd.f32 %v1013_v34, %v1012_v32 }
 0x108   :  { %v994_v35 = vpop.f32.mrf.mxu0  ;;  %v1015_v36 = vpop.f32.mrf.mxu1 }
 0x109   :  { %v793_v47 = vadd.f32 %v1014_v45, %v753_v44 }
 0x10a   :  { %v1016_v37 = vpop.f32.mrf.mxu1 }
 0x122   :  { %v832_v49 = vpop.f32.mrf.mxu0 }
 0x123   :  { %v833_v50 = vadd.f32 %v832_v49, %v793_v47 }
 0x124   :  { %v1045_v51 = vpop.f32.mrf.mxu0 }
 0x125   :  { %v840_v52 = vadd.f32 %v839_v48, %v833_v50 }
 0x126   :  { %v835_v53 = vpop.f32.mrf.mxu0 }
 0x127   :  { %v841_v54 = vmax.f32 %v840_v52, 0.0 }
 0x128   :  { %v1046_v55 = vpop.f32.mrf.mxu0 }
 0x129   :  { %v842_v56 = vpack.c.bf16 %v841_v54, %v841_v54 }
 0x12b   :  { %843 = vst [vmem:[%s1401_s4] sm:$0xf] %v842_v56 }

</bundles_post_ra>
